<compile_context>
chip_gen: v7x
topology: tpu7x:2x2x1
jax: 0.10.0
libtpu: 0.0.40
codegen_flags: <defaults>
</compile_context>

<pallas_src>
import math

import jax
import jax.numpy as jnp
from jax.experimental import pallas as pl
from jax.experimental.pallas import tpu as pltpu


# --------------------------- fused VGG forward kernel ------------------------
def _vgg_fused_kernel(x_ref,
                      cw1_ref, cb1_ref, cw2_ref, cb2_ref, cw3_ref, cb3_ref,
                      fw1_ref, fb1_ref, fw2_ref, fb2_ref, fw3_ref, fb3_ref,
                      out_ref,
                      col1_ref, col2_ref, col3_ref, a2_ref, a3_ref, flat_ref):
    """One image through the whole VGG forward pass, entirely in VMEM.

    x_ref:    [1, H, W, Cin]   input image (NHWC)
    cw*_ref:  [9*Cin, Cout]    im2col-packed conv weights (tap-major rows)
    cb*_ref:  [1, Cout]        conv biases (f32)
    fw*_ref:  [Din, Dout]      classifier weights (pre-transposed; fw1 rows are
                               additionally permuted to fold torch's NCHW flatten)
    fb*_ref:  [1, Dout]
    out_ref:  [1, 1, num_classes]
    col*/a*/flat: VMEM scratch (im2col patches, pooled activations, flat input)
    """

    def conv3x3_relu(read_src, col_ref, w_ref, b_ref):
        # im2col into VMEM scratch, then ONE GEMM over K = 9*Cin.
        H, W, nine_cin = col_ref.shape
        cin = nine_cin // 9
        col_ref[...] = jnp.zeros_like(col_ref)           # zero-padding taps
        for kh in range(3):
            for kw in range(3):
                dh, dw = kh - 1, kw - 1
                oh0, oh1 = max(0, -dh), H - max(0, dh)
                ow0, ow1 = max(0, -dw), W - max(0, dw)
                c0 = (kh * 3 + kw) * cin
                col_ref[oh0:oh1, ow0:ow1, c0:c0 + cin] = read_src(
                    oh0 + dh, oh1 + dh, ow0 + dw, ow1 + dw)
        patches = col_ref[...].reshape(H * W, nine_cin).astype(w_ref.dtype)
        y = jnp.dot(patches, w_ref[...], preferred_element_type=jnp.float32)
        return jnp.maximum(y + b_ref[...], 0.0)          # [H*W, Cout], f32 epilogue

    def maxpool2x2(y, H, W):
        # y: [H*W, C] with rows in (h, w) row-major order -> [(H/2)*(W/2), C].
        C = y.shape[-1]
        z = y.reshape(H // 2, 2, W, C)                   # pair rows 2h / 2h+1
        y = jnp.maximum(z[:, 0], z[:, 1])                # [H//2, W, C]
        z = y.reshape((H // 2) * (W // 2), 2, C)         # adjacent w pairs
        return jnp.max(z, axis=1)                        # [(H/2)*(W/2), C]

    H, W = x_ref.shape[1], x_ref.shape[2]

    # ---- stage 1: conv(Cin->C1) + ReLU + pool ----
    y = conv3x3_relu(lambda h0, h1, w0, w1: x_ref[0, h0:h1, w0:w1, :],
                     col1_ref, cw1_ref, cb1_ref)
    a2_ref[...] = maxpool2x2(y, H, W).reshape(a2_ref.shape)

    # ---- stage 2 ----
    y = conv3x3_relu(lambda h0, h1, w0, w1: a2_ref[h0:h1, w0:w1, :],
                     col2_ref, cw2_ref, cb2_ref)
    a3_ref[...] = maxpool2x2(y, H // 2, W // 2).reshape(a3_ref.shape)

    # ---- stage 3 ----
    y = conv3x3_relu(lambda h0, h1, w0, w1: a3_ref[h0:h1, w0:w1, :],
                     col3_ref, cw3_ref, cb3_ref)
    p = maxpool2x2(y, H // 4, W // 4)                    # [(H/8)*(W/8), C3]

    # ---- flatten into one lane-dense (1, 512) row in (h, w, c) order; the
    #      PyTorch NCHW .view(N,-1) ordering is folded into fw1 at prep time.
    n_pos, c3 = p.shape
    for r in range(n_pos):
        flat_ref[:, r * c3:(r + 1) * c3] = p[r:r + 1, :]

    # ---- classifier: Linear+ReLU, Linear+ReLU, Linear (weights VMEM-resident)
    # TODO(synk): nn.Dropout is train-time stochastic; treated as identity (eval).
    h = flat_ref[...]
    h = jnp.maximum(jnp.dot(h.astype(fw1_ref.dtype), fw1_ref[...],
                            preferred_element_type=jnp.float32) + fb1_ref[...], 0.0)
    h = jnp.maximum(jnp.dot(h.astype(fw2_ref.dtype), fw2_ref[...],
                            preferred_element_type=jnp.float32) + fb2_ref[...], 0.0)
    logits = jnp.dot(h.astype(fw3_ref.dtype), fw3_ref[...],
                     preferred_element_type=jnp.float32) + fb3_ref[...]
    out_ref[0] = logits


# ------------------------------ weight packing --------------------------------
def prepare_params(params, compute_dtype=jnp.float32):
    """One-time packing of PyTorch-layout weights.

    * conv OIHW -> im2col [9*Cin, Cout]  (rows ordered (kh, kw, ci))
    * fc weights pre-transposed to [Din, Dout]
    * fc1 rows permuted so the kernel's NHWC (h, w, c) flatten matches
      torch's NCHW x.view(N, -1) ordering exactly.
    * compute_dtype=bf16 pre-casts weights for the v6e/v7x MXU; biases stay f32.
    """
    conv = []
    for (w, b) in params["features"]:
        cout, cin = w.shape[0], w.shape[1]
        w9 = jnp.transpose(w, (2, 3, 1, 0)).reshape(9 * cin, cout)
        conv.append((w9.astype(compute_dtype),
                     b.reshape(1, cout).astype(jnp.float32)))

    (w1, b1), (w2, b2), (w3, b3) = params["classifier"]
    c3 = params["features"][-1][0].shape[0]          # last conv out-channels
    spatial = w1.shape[1] // c3                      # Hf*Wf after last pool
    k = jnp.arange(w1.shape[1])
    perm = (k % c3) * spatial + (k // c3)            # (h,w,c) -> torch (c,h,w)
    fc = [(jnp.transpose(w1[:, perm]).astype(compute_dtype),
           b1.reshape(1, -1).astype(jnp.float32)),
          (jnp.transpose(w2).astype(compute_dtype),
           b2.reshape(1, -1).astype(jnp.float32)),
          (jnp.transpose(w3).astype(compute_dtype),
           b3.reshape(1, -1).astype(jnp.float32))]
    return {"conv": conv, "fc": fc}


# ------------------------------ VGG forward -----------------------------------
@jax.jit
def vgg_forward(packed, x_nchw):
    (cw1, cb1), (cw2, cb2), (cw3, cb3) = packed["conv"]
    (fw1, fb1), (fw2, fb2), (fw3, fb3) = packed["fc"]

    x = jnp.transpose(x_nchw, (0, 2, 3, 1))          # NCHW -> NHWC (tiny input)
    N, H, W, Cin = x.shape
    C1, C2, C3 = cw1.shape[1], cw2.shape[1], cw3.shape[1]
    num_classes = fw3.shape[1]
    flat_dim = (H // 8) * (W // 8) * C3
    assert flat_dim == fw1.shape[0], "classifier input dim mismatch"

    def full(shape):
        return pl.BlockSpec(shape, lambda n, _s=shape: (0,) * len(_s))

    out = pl.pallas_call(
        _vgg_fused_kernel,
        out_shape=jax.ShapeDtypeStruct((N, 1, num_classes), jnp.float32),
        grid=(N,),
        in_specs=[
            pl.BlockSpec((1, H, W, Cin), lambda n: (n, 0, 0, 0)),
            full(cw1.shape), full(cb1.shape),
            full(cw2.shape), full(cb2.shape),
            full(cw3.shape), full(cb3.shape),
            full(fw1.shape), full(fb1.shape),
            full(fw2.shape), full(fb2.shape),
            full(fw3.shape), full(fb3.shape),
        ],
        out_specs=pl.BlockSpec((1, 1, num_classes), lambda n: (n, 0, 0)),
        scratch_shapes=[
            pltpu.VMEM((H, W, 9 * Cin), jnp.float32),            # im2col stage 1
            pltpu.VMEM((H // 2, W // 2, 9 * C1), jnp.float32),   # im2col stage 2
            pltpu.VMEM((H // 4, W // 4, 9 * C2), jnp.float32),   # im2col stage 3
            pltpu.VMEM((H // 2, W // 2, C1), jnp.float32),       # pooled act 1
            pltpu.VMEM((H // 4, W // 4, C2), jnp.float32),       # pooled act 2
            pltpu.VMEM((1, flat_dim), jnp.float32),              # classifier input
        ],
        compiler_params=pltpu.CompilerParams(
            dimension_semantics=("parallel",)),      # v7x: 2 TCs split the batch
    )(x, cw1, cb1, cw2, cb2, cw3, cb3, fw1, fb1, fw2, fb2, fw3, fb3)
    return out.reshape(N, num_classes)


# -------------------------- deterministic params ------------------------------
def init_params(key, cfg=(16, 64, 128), in_ch=3, num_classes=10):
    """Matches VGG._initialize_weights():
       conv: N(0, sqrt(2/(k*k*out_ch))), bias 0;  linear: N(0, 0.01), bias 0."""
    params = {"features": [], "classifier": []}
    cin = in_ch
    for cout in cfg:
        key, k = jax.random.split(key)
        std = math.sqrt(2.0 / (3 * 3 * cout))
        w = jax.random.normal(k, (cout, cin, 3, 3), jnp.float32) * std
        b = jnp.zeros((cout,), jnp.float32)
        params["features"].append((w, b))
        cin = cout
    for din, dout in [(512, 512), (512, 512), (512, num_classes)]:
        key, k = jax.random.split(key)
        w = jax.random.normal(k, (dout, din), jnp.float32) * 0.01
        b = jnp.zeros((dout,), jnp.float32)
        params["classifier"].append((w, b))
    return params


# ------------------------- pure-JAX reference check ---------------------------
def reference_forward(params, x_nchw):
    x = x_nchw
    for (w, b) in params["features"]:
        x = jax.lax.conv_general_dilated(
            x, w, (1, 1), "SAME", dimension_numbers=("NCHW", "OIHW", "NCHW"))
        x = jax.nn.relu(x + b[None, :, None, None])
        x = jax.lax.reduce_window(x, -jnp.inf, jax.lax.max,
                                  (1, 1, 2, 2), (1, 1, 2, 2), "VALID")
    x = x.reshape(x.shape[0], -1)
    for i, (w, b) in enumerate(params["classifier"]):
        x = x @ w.T + b
        if i < 2:
            x = jax.nn.relu(x)
    return x


if __name__ == "__main__":
    key = jax.random.PRNGKey(0)
    kp, kx = jax.random.split(key)
    # cfg (16,'M',64,'M',128,'M') on a 16x16 input -> 2*2*128 = 512 flattened,
    # matching the classifier's Linear(512, ...) input.
    params = init_params(kp, cfg=(16, 64, 128), in_ch=3, num_classes=10)
    x = jax.random.normal(kx, (2, 3, 16, 16), jnp.float32)

    ref = reference_forward(params, x)

    # f32 MXU path (exact module semantics; epilogue is f32 on all generations).
    out_f32 = jax.block_until_ready(
        vgg_forward(prepare_params(params, jnp.float32), x))
    assert out_f32.shape == (2, 10)
    assert jnp.allclose(out_f32, ref, atol=2e-3, rtol=2e-3), "f32 mismatch vs reference"

    # bf16 MXU path (v6e/v7x): bf16 weights/activations at the dots,
    # f32 accumulation + f32 bias/ReLU/pool epilogue.
    out_bf16 = jax.block_until_ready(
        vgg_forward(prepare_params(params, jnp.bfloat16), x))
    assert jnp.allclose(out_bf16, ref, atol=5e-2, rtol=5e-2), "bf16 mismatch vs reference"

    print("KERNEL_OK")
</pallas_src>

<mosaic_0001>
module attributes {stable_mosaic.version = 11 : i64} {
  func.func @_vgg_fused_kernel(%arg0: i32, %arg1: memref<1x16x16x3xf32, #tpu.memory_space<vmem>>, %arg2: memref<27x16xf32, #tpu.memory_space<vmem>>, %arg3: memref<1x16xf32, #tpu.memory_space<vmem>>, %arg4: memref<144x64xf32, #tpu.memory_space<vmem>>, %arg5: memref<1x64xf32, #tpu.memory_space<vmem>>, %arg6: memref<576x128xf32, #tpu.memory_space<vmem>>, %arg7: memref<1x128xf32, #tpu.memory_space<vmem>>, %arg8: memref<512x512xf32, #tpu.memory_space<vmem>>, %arg9: memref<1x512xf32, #tpu.memory_space<vmem>>, %arg10: memref<512x512xf32, #tpu.memory_space<vmem>>, %arg11: memref<1x512xf32, #tpu.memory_space<vmem>>, %arg12: memref<512x10xf32, #tpu.memory_space<vmem>>, %arg13: memref<1x10xf32, #tpu.memory_space<vmem>>, %arg14: memref<1x1x10xf32, #tpu.memory_space<vmem>>, %arg15: memref<16x16x27xf32, #tpu.memory_space<vmem>>, %arg16: memref<8x8x144xf32, #tpu.memory_space<vmem>>, %arg17: memref<4x4x576xf32, #tpu.memory_space<vmem>>, %arg18: memref<8x8x16xf32, #tpu.memory_space<vmem>>, %arg19: memref<4x4x64xf32, #tpu.memory_space<vmem>>, %arg20: memref<1x512xf32, #tpu.memory_space<vmem>>) attributes {dimension_semantics = [#tpu.dimension_semantics<parallel>], iteration_bounds = array<i64: 2>, scalar_prefetch = 0 : i64, scratch_operands = 6 : i64, tpu.core_type = #tpu.core_type<tc>, window_params = [{transform_indices = @transform_0, window_bounds = array<i64: 1, 16, 16, 3>}, {pipeline_mode = #tpu.pipeline_mode<synchronous>, transform_indices = @transform_1, window_bounds = array<i64: 27, 16>}, {pipeline_mode = #tpu.pipeline_mode<synchronous>, transform_indices = @transform_2, window_bounds = array<i64: 1, 16>}, {pipeline_mode = #tpu.pipeline_mode<synchronous>, transform_indices = @transform_3, window_bounds = array<i64: 144, 64>}, {pipeline_mode = #tpu.pipeline_mode<synchronous>, transform_indices = @transform_4, window_bounds = array<i64: 1, 64>}, {pipeline_mode = #tpu.pipeline_mode<synchronous>, transform_indices = @transform_5, window_bounds = array<i64: 576, 128>}, {pipeline_mode = #tpu.pipeline_mode<synchronous>, transform_indices = @transform_6, window_bounds = array<i64: 1, 128>}, {pipeline_mode = #tpu.pipeline_mode<synchronous>, transform_indices = @transform_7, window_bounds = array<i64: 512, 512>}, {pipeline_mode = #tpu.pipeline_mode<synchronous>, transform_indices = @transform_8, window_bounds = array<i64: 1, 512>}, {pipeline_mode = #tpu.pipeline_mode<synchronous>, transform_indices = @transform_9, window_bounds = array<i64: 512, 512>}, {pipeline_mode = #tpu.pipeline_mode<synchronous>, transform_indices = @transform_10, window_bounds = array<i64: 1, 512>}, {pipeline_mode = #tpu.pipeline_mode<synchronous>, transform_indices = @transform_11, window_bounds = array<i64: 512, 10>}, {pipeline_mode = #tpu.pipeline_mode<synchronous>, transform_indices = @transform_12, window_bounds = array<i64: 1, 10>}, {transform_indices = @transform_13, window_bounds = array<i64: 1, 1, 10>}]} {
    %cst = arith.constant 0.000000e+00 : f32
    %0 = vector.broadcast %cst : f32 to vector<16x16x27xf32>
    %c0 = arith.constant 0 : index
    %c0_0 = arith.constant 0 : index
    %c0_1 = arith.constant 0 : index
    %1 = vector.load %arg15[%c0, %c0_0, %c0_1] : memref<16x16x27xf32, #tpu.memory_space<vmem>>, vector<16x16x27xf32>
    tpu.vector_store %arg15[%c0, %c0_0, %c0_1], %0 {strides = array<i32>} : memref<16x16x27xf32, #tpu.memory_space<vmem>>, vector<16x16x27xf32>,
    %c0_2 = arith.constant 0 : index
    %c0_3 = arith.constant 0 : index
    %c0_4 = arith.constant 0 : index
    %c0_5 = arith.constant 0 : index
    %2 = vector.load %arg1[%c0_2, %c0_3, %c0_4, %c0_5] : memref<1x16x16x3xf32, #tpu.memory_space<vmem>>, vector<1x15x15x3xf32>
    %3 = vector.shape_cast %2 : vector<1x15x15x3xf32> to vector<15x15x3xf32>
    %c1 = arith.constant 1 : index
    %c1_6 = arith.constant 1 : index
    %c0_7 = arith.constant 0 : index
    %4 = vector.load %arg15[%c1, %c1_6, %c0_7] : memref<16x16x27xf32, #tpu.memory_space<vmem>>, vector<15x15x3xf32>
    tpu.vector_store %arg15[%c1, %c1_6, %c0_7], %3 {strides = array<i32>} : memref<16x16x27xf32, #tpu.memory_space<vmem>>, vector<15x15x3xf32>,
    %c0_8 = arith.constant 0 : index
    %c0_9 = arith.constant 0 : index
    %c0_10 = arith.constant 0 : index
    %c0_11 = arith.constant 0 : index
    %5 = vector.load %arg1[%c0_8, %c0_9, %c0_10, %c0_11] : memref<1x16x16x3xf32, #tpu.memory_space<vmem>>, vector<1x15x16x3xf32>
    %6 = vector.shape_cast %5 : vector<1x15x16x3xf32> to vector<15x16x3xf32>
    %c1_12 = arith.constant 1 : index
    %c0_13 = arith.constant 0 : index
    %c3 = arith.constant 3 : index
    %7 = vector.load %arg15[%c1_12, %c0_13, %c3] : memref<16x16x27xf32, #tpu.memory_space<vmem>>, vector<15x16x3xf32>
    tpu.vector_store %arg15[%c1_12, %c0_13, %c3], %6 {strides = array<i32>} : memref<16x16x27xf32, #tpu.memory_space<vmem>>, vector<15x16x3xf32>,
    %c0_14 = arith.constant 0 : index
    %c0_15 = arith.constant 0 : index
    %c1_16 = arith.constant 1 : index
    %c0_17 = arith.constant 0 : index
    %8 = vector.load %arg1[%c0_14, %c0_15, %c1_16, %c0_17] : memref<1x16x16x3xf32, #tpu.memory_space<vmem>>, vector<1x15x15x3xf32>
    %9 = vector.shape_cast %8 : vector<1x15x15x3xf32> to vector<15x15x3xf32>
    %c1_18 = arith.constant 1 : index
    %c0_19 = arith.constant 0 : index
    %c6 = arith.constant 6 : index
    %10 = vector.load %arg15[%c1_18, %c0_19, %c6] : memref<16x16x27xf32, #tpu.memory_space<vmem>>, vector<15x15x3xf32>
    tpu.vector_store %arg15[%c1_18, %c0_19, %c6], %9 {strides = array<i32>} : memref<16x16x27xf32, #tpu.memory_space<vmem>>, vector<15x15x3xf32>,
    %c0_20 = arith.constant 0 : index
    %c0_21 = arith.constant 0 : index
    %c0_22 = arith.constant 0 : index
    %c0_23 = arith.constant 0 : index
    %11 = vector.load %arg1[%c0_20, %c0_21, %c0_22, %c0_23] : memref<1x16x16x3xf32, #tpu.memory_space<vmem>>, vector<1x16x15x3xf32>
    %12 = vector.shape_cast %11 : vector<1x16x15x3xf32> to vector<16x15x3xf32>
    %c0_24 = arith.constant 0 : index
    %c1_25 = arith.constant 1 : index
    %c9 = arith.constant 9 : index
    %13 = vector.load %arg15[%c0_24, %c1_25, %c9] : memref<16x16x27xf32, #tpu.memory_space<vmem>>, vector<16x15x3xf32>
    tpu.vector_store %arg15[%c0_24, %c1_25, %c9], %12 {strides = array<i32>} : memref<16x16x27xf32, #tpu.memory_space<vmem>>, vector<16x15x3xf32>,
    %c0_26 = arith.constant 0 : index
    %c0_27 = arith.constant 0 : index
    %c0_28 = arith.constant 0 : index
    %c0_29 = arith.constant 0 : index
    %14 = vector.load %arg1[%c0_26, %c0_27, %c0_28, %c0_29] : memref<1x16x16x3xf32, #tpu.memory_space<vmem>>, vector<1x16x16x3xf32>
    %15 = vector.shape_cast %14 : vector<1x16x16x3xf32> to vector<16x16x3xf32>
    %c0_30 = arith.constant 0 : index
    %c0_31 = arith.constant 0 : index
    %c12 = arith.constant 12 : index
    %16 = vector.load %arg15[%c0_30, %c0_31, %c12] : memref<16x16x27xf32, #tpu.memory_space<vmem>>, vector<16x16x3xf32>
    tpu.vector_store %arg15[%c0_30, %c0_31, %c12], %15 {strides = array<i32>} : memref<16x16x27xf32, #tpu.memory_space<vmem>>, vector<16x16x3xf32>,
    %c0_32 = arith.constant 0 : index
    %c0_33 = arith.constant 0 : index
    %c1_34 = arith.constant 1 : index
    %c0_35 = arith.constant 0 : index
    %17 = vector.load %arg1[%c0_32, %c0_33, %c1_34, %c0_35] : memref<1x16x16x3xf32, #tpu.memory_space<vmem>>, vector<1x16x15x3xf32>
    %18 = vector.shape_cast %17 : vector<1x16x15x3xf32> to vector<16x15x3xf32>
    %c0_36 = arith.constant 0 : index
    %c0_37 = arith.constant 0 : index
    %c15 = arith.constant 15 : index
    %19 = vector.load %arg15[%c0_36, %c0_37, %c15] : memref<16x16x27xf32, #tpu.memory_space<vmem>>, vector<16x15x3xf32>
    tpu.vector_store %arg15[%c0_36, %c0_37, %c15], %18 {strides = array<i32>} : memref<16x16x27xf32, #tpu.memory_space<vmem>>, vector<16x15x3xf32>,
    %c0_38 = arith.constant 0 : index
    %c1_39 = arith.constant 1 : index
    %c0_40 = arith.constant 0 : index
    %c0_41 = arith.constant 0 : index
    %20 = vector.load %arg1[%c0_38, %c1_39, %c0_40, %c0_41] : memref<1x16x16x3xf32, #tpu.memory_space<vmem>>, vector<1x15x15x3xf32>
    %21 = vector.shape_cast %20 : vector<1x15x15x3xf32> to vector<15x15x3xf32>
    %c0_42 = arith.constant 0 : index
    %c1_43 = arith.constant 1 : index
    %c18 = arith.constant 18 : index
    %22 = vector.load %arg15[%c0_42, %c1_43, %c18] : memref<16x16x27xf32, #tpu.memory_space<vmem>>, vector<15x15x3xf32>
    tpu.vector_store %arg15[%c0_42, %c1_43, %c18], %21 {strides = array<i32>} : memref<16x16x27xf32, #tpu.memory_space<vmem>>, vector<15x15x3xf32>,
    %c0_44 = arith.constant 0 : index
    %c1_45 = arith.constant 1 : index
    %c0_46 = arith.constant 0 : index
    %c0_47 = arith.constant 0 : index
    %23 = vector.load %arg1[%c0_44, %c1_45, %c0_46, %c0_47] : memref<1x16x16x3xf32, #tpu.memory_space<vmem>>, vector<1x15x16x3xf32>
    %24 = vector.shape_cast %23 : vector<1x15x16x3xf32> to vector<15x16x3xf32>
    %c0_48 = arith.constant 0 : index
    %c0_49 = arith.constant 0 : index
    %c21 = arith.constant 21 : index
    %25 = vector.load %arg15[%c0_48, %c0_49, %c21] : memref<16x16x27xf32, #tpu.memory_space<vmem>>, vector<15x16x3xf32>
    tpu.vector_store %arg15[%c0_48, %c0_49, %c21], %24 {strides = array<i32>} : memref<16x16x27xf32, #tpu.memory_space<vmem>>, vector<15x16x3xf32>,
    %c0_50 = arith.constant 0 : index
    %c1_51 = arith.constant 1 : index
    %c1_52 = arith.constant 1 : index
    %c0_53 = arith.constant 0 : index
    %26 = vector.load %arg1[%c0_50, %c1_51, %c1_52, %c0_53] : memref<1x16x16x3xf32, #tpu.memory_space<vmem>>, vector<1x15x15x3xf32>
    %27 = vector.shape_cast %26 : vector<1x15x15x3xf32> to vector<15x15x3xf32>
    %c0_54 = arith.constant 0 : index
    %c0_55 = arith.constant 0 : index
    %c24 = arith.constant 24 : index
    %28 = vector.load %arg15[%c0_54, %c0_55, %c24] : memref<16x16x27xf32, #tpu.memory_space<vmem>>, vector<15x15x3xf32>
    tpu.vector_store %arg15[%c0_54, %c0_55, %c24], %27 {strides = array<i32>} : memref<16x16x27xf32, #tpu.memory_space<vmem>>, vector<15x15x3xf32>,
    %c0_56 = arith.constant 0 : index
    %c0_57 = arith.constant 0 : index
    %c0_58 = arith.constant 0 : index
    %29 = vector.load %arg15[%c0_56, %c0_57, %c0_58] : memref<16x16x27xf32, #tpu.memory_space<vmem>>, vector<16x16x27xf32>
    %30 = vector.shape_cast %29 : vector<16x16x27xf32> to vector<256x27xf32>
    %c0_59 = arith.constant 0 : index
    %c0_60 = arith.constant 0 : index
    %31 = vector.load %arg2[%c0_59, %c0_60] : memref<27x16xf32, #tpu.memory_space<vmem>>, vector<27x16xf32>
    %cst_61 = arith.constant dense<0.000000e+00> : vector<256x16xf32>
    %32 = tpu.matmul %30, %31, %cst_61 {dimension_numbers = #tpu.dot_dimension_numbers<[1], [0], [0], [1], [0, 0, 1, 1], [], []>} : vector<256x27xf32>, vector<27x16xf32>, vector<256x16xf32> -> vector<256x16xf32>
    %c0_62 = arith.constant 0 : index
    %c0_63 = arith.constant 0 : index
    %33 = vector.load %arg3[%c0_62, %c0_63] : memref<1x16xf32, #tpu.memory_space<vmem>>, vector<1x16xf32>
    %34 = vector.broadcast %33 : vector<1x16xf32> to vector<256x16xf32>
    %35 = arith.addf %32, %34 : vector<256x16xf32>
    %cst_64 = arith.constant 0.000000e+00 : f32
    %36 = vector.broadcast %cst_64 : f32 to vector<256x16xf32>
    %37 = arith.maximumf %35, %36 : vector<256x16xf32>
    %38 = vector.shape_cast %37 : vector<256x16xf32> to vector<8x2x16x16xf32>
    %39 = vector.extract_strided_slice %38 {offsets = [0, 0, 0, 0], sizes = [8, 1, 16, 16], strides = [1, 1, 1, 1]} : vector<8x2x16x16xf32> to vector<8x1x16x16xf32>
    %40 = vector.shape_cast %39 : vector<8x1x16x16xf32> to vector<8x16x16xf32>
    %41 = vector.extract_strided_slice %38 {offsets = [0, 1, 0, 0], sizes = [8, 1, 16, 16], strides = [1, 1, 1, 1]} : vector<8x2x16x16xf32> to vector<8x1x16x16xf32>
    %42 = vector.shape_cast %41 : vector<8x1x16x16xf32> to vector<8x16x16xf32>
    %43 = arith.maximumf %40, %42 : vector<8x16x16xf32>
    %44 = vector.shape_cast %43 : vector<8x16x16xf32> to vector<64x2x16xf32>
    %cst_65 = arith.constant dense<0xFF800000> : vector<64x16xf32>
    %45 = vector.multi_reduction <maximumf>, %44, %cst_65 [1] : vector<64x2x16xf32> to vector<64x16xf32>
    %46 = vector.shape_cast %45 : vector<64x16xf32> to vector<8x8x16xf32>
    %c0_66 = arith.constant 0 : index
    %c0_67 = arith.constant 0 : index
    %c0_68 = arith.constant 0 : index
    %47 = vector.load %arg18[%c0_66, %c0_67, %c0_68] : memref<8x8x16xf32, #tpu.memory_space<vmem>>, vector<8x8x16xf32>
    tpu.vector_store %arg18[%c0_66, %c0_67, %c0_68], %46 {strides = array<i32>} : memref<8x8x16xf32, #tpu.memory_space<vmem>>, vector<8x8x16xf32>,
    %cst_69 = arith.constant 0.000000e+00 : f32
    %48 = vector.broadcast %cst_69 : f32 to vector<8x8x144xf32>
    %c0_70 = arith.constant 0 : index
    %c0_71 = arith.constant 0 : index
    %c0_72 = arith.constant 0 : index
    %49 = vector.load %arg16[%c0_70, %c0_71, %c0_72] : memref<8x8x144xf32, #tpu.memory_space<vmem>>, vector<8x8x144xf32>
    tpu.vector_store %arg16[%c0_70, %c0_71, %c0_72], %48 {strides = array<i32>} : memref<8x8x144xf32, #tpu.memory_space<vmem>>, vector<8x8x144xf32>,
    %c0_73 = arith.constant 0 : index
    %c0_74 = arith.constant 0 : index
    %c0_75 = arith.constant 0 : index
    %50 = vector.load %arg18[%c0_73, %c0_74, %c0_75] : memref<8x8x16xf32, #tpu.memory_space<vmem>>, vector<7x7x16xf32>
    %c1_76 = arith.constant 1 : index
    %c1_77 = arith.constant 1 : index
    %c0_78 = arith.constant 0 : index
    %51 = vector.load %arg16[%c1_76, %c1_77, %c0_78] : memref<8x8x144xf32, #tpu.memory_space<vmem>>, vector<7x7x16xf32>
    tpu.vector_store %arg16[%c1_76, %c1_77, %c0_78], %50 {strides = array<i32>} : memref<8x8x144xf32, #tpu.memory_space<vmem>>, vector<7x7x16xf32>,
    %c0_79 = arith.constant 0 : index
    %c0_80 = arith.constant 0 : index
    %c0_81 = arith.constant 0 : index
    %52 = vector.load %arg18[%c0_79, %c0_80, %c0_81] : memref<8x8x16xf32, #tpu.memory_space<vmem>>, vector<7x8x16xf32>
    %c1_82 = arith.constant 1 : index
    %c0_83 = arith.constant 0 : index
    %c16 = arith.constant 16 : index
    %53 = vector.load %arg16[%c1_82, %c0_83, %c16] : memref<8x8x144xf32, #tpu.memory_space<vmem>>, vector<7x8x16xf32>
    tpu.vector_store %arg16[%c1_82, %c0_83, %c16], %52 {strides = array<i32>} : memref<8x8x144xf32, #tpu.memory_space<vmem>>, vector<7x8x16xf32>,
    %c0_84 = arith.constant 0 : index
    %c1_85 = arith.constant 1 : index
    %c0_86 = arith.constant 0 : index
    %54 = vector.load %arg18[%c0_84, %c1_85, %c0_86] : memref<8x8x16xf32, #tpu.memory_space<vmem>>, vector<7x7x16xf32>
    %c1_87 = arith.constant 1 : index
    %c0_88 = arith.constant 0 : index
    %c32 = arith.constant 32 : index
    %55 = vector.load %arg16[%c1_87, %c0_88, %c32] : memref<8x8x144xf32, #tpu.memory_space<vmem>>, vector<7x7x16xf32>
    tpu.vector_store %arg16[%c1_87, %c0_88, %c32], %54 {strides = array<i32>} : memref<8x8x144xf32, #tpu.memory_space<vmem>>, vector<7x7x16xf32>,
    %c0_89 = arith.constant 0 : index
    %c0_90 = arith.constant 0 : index
    %c0_91 = arith.constant 0 : index
    %56 = vector.load %arg18[%c0_89, %c0_90, %c0_91] : memref<8x8x16xf32, #tpu.memory_space<vmem>>, vector<8x7x16xf32>
    %c0_92 = arith.constant 0 : index
    %c1_93 = arith.constant 1 : index
    %c48 = arith.constant 48 : index
    %57 = vector.load %arg16[%c0_92, %c1_93, %c48] : memref<8x8x144xf32, #tpu.memory_space<vmem>>, vector<8x7x16xf32>
    tpu.vector_store %arg16[%c0_92, %c1_93, %c48], %56 {strides = array<i32>} : memref<8x8x144xf32, #tpu.memory_space<vmem>>, vector<8x7x16xf32>,
    %c0_94 = arith.constant 0 : index
    %c0_95 = arith.constant 0 : index
    %c0_96 = arith.constant 0 : index
    %58 = vector.load %arg18[%c0_94, %c0_95, %c0_96] : memref<8x8x16xf32, #tpu.memory_space<vmem>>, vector<8x8x16xf32>
    %c0_97 = arith.constant 0 : index
    %c0_98 = arith.constant 0 : index
    %c64 = arith.constant 64 : index
    %59 = vector.load %arg16[%c0_97, %c0_98, %c64] : memref<8x8x144xf32, #tpu.memory_space<vmem>>, vector<8x8x16xf32>
    tpu.vector_store %arg16[%c0_97, %c0_98, %c64], %58 {strides = array<i32>} : memref<8x8x144xf32, #tpu.memory_space<vmem>>, vector<8x8x16xf32>,
    %c0_99 = arith.constant 0 : index
    %c1_100 = arith.constant 1 : index
    %c0_101 = arith.constant 0 : index
    %60 = vector.load %arg18[%c0_99, %c1_100, %c0_101] : memref<8x8x16xf32, #tpu.memory_space<vmem>>, vector<8x7x16xf32>
    %c0_102 = arith.constant 0 : index
    %c0_103 = arith.constant 0 : index
    %c80 = arith.constant 80 : index
    %61 = vector.load %arg16[%c0_102, %c0_103, %c80] : memref<8x8x144xf32, #tpu.memory_space<vmem>>, vector<8x7x16xf32>
    tpu.vector_store %arg16[%c0_102, %c0_103, %c80], %60 {strides = array<i32>} : memref<8x8x144xf32, #tpu.memory_space<vmem>>, vector<8x7x16xf32>,
    %c1_104 = arith.constant 1 : index
    %c0_105 = arith.constant 0 : index
    %c0_106 = arith.constant 0 : index
    %62 = vector.load %arg18[%c1_104, %c0_105, %c0_106] : memref<8x8x16xf32, #tpu.memory_space<vmem>>, vector<7x7x16xf32>
    %c0_107 = arith.constant 0 : index
    %c1_108 = arith.constant 1 : index
    %c96 = arith.constant 96 : index
    %63 = vector.load %arg16[%c0_107, %c1_108, %c96] : memref<8x8x144xf32, #tpu.memory_space<vmem>>, vector<7x7x16xf32>
    tpu.vector_store %arg16[%c0_107, %c1_108, %c96], %62 {strides = array<i32>} : memref<8x8x144xf32, #tpu.memory_space<vmem>>, vector<7x7x16xf32>,
    %c1_109 = arith.constant 1 : index
    %c0_110 = arith.constant 0 : index
    %c0_111 = arith.constant 0 : index
    %64 = vector.load %arg18[%c1_109, %c0_110, %c0_111] : memref<8x8x16xf32, #tpu.memory_space<vmem>>, vector<7x8x16xf32>
    %c0_112 = arith.constant 0 : index
    %c0_113 = arith.constant 0 : index
    %c112 = arith.constant 112 : index
    %65 = vector.load %arg16[%c0_112, %c0_113, %c112] : memref<8x8x144xf32, #tpu.memory_space<vmem>>, vector<7x8x16xf32>
    tpu.vector_store %arg16[%c0_112, %c0_113, %c112], %64 {strides = array<i32>} : memref<8x8x144xf32, #tpu.memory_space<vmem>>, vector<7x8x16xf32>,
    %c1_114 = arith.constant 1 : index
    %c1_115 = arith.constant 1 : index
    %c0_116 = arith.constant 0 : index
    %66 = vector.load %arg18[%c1_114, %c1_115, %c0_116] : memref<8x8x16xf32, #tpu.memory_space<vmem>>, vector<7x7x16xf32>
    %c0_117 = arith.constant 0 : index
    %c0_118 = arith.constant 0 : index
    %c128 = arith.constant 128 : index
    %67 = vector.load %arg16[%c0_117, %c0_118, %c128] : memref<8x8x144xf32, #tpu.memory_space<vmem>>, vector<7x7x16xf32>
    tpu.vector_store %arg16[%c0_117, %c0_118, %c128], %66 {strides = array<i32>} : memref<8x8x144xf32, #tpu.memory_space<vmem>>, vector<7x7x16xf32>,
    %c0_119 = arith.constant 0 : index
    %c0_120 = arith.constant 0 : index
    %c0_121 = arith.constant 0 : index
    %68 = vector.load %arg16[%c0_119, %c0_120, %c0_121] : memref<8x8x144xf32, #tpu.memory_space<vmem>>, vector<8x8x144xf32>
    %69 = vector.shape_cast %68 : vector<8x8x144xf32> to vector<64x144xf32>
    %c0_122 = arith.constant 0 : index
    %c0_123 = arith.constant 0 : index
    %70 = vector.load %arg4[%c0_122, %c0_123] : memref<144x64xf32, #tpu.memory_space<vmem>>, vector<144x64xf32>
    %cst_124 = arith.constant dense<0.000000e+00> : vector<64x64xf32>
    %71 = tpu.matmul %69, %70, %cst_124 {dimension_numbers = #tpu.dot_dimension_numbers<[1], [0], [0], [1], [0, 0, 1, 1], [], []>} : vector<64x144xf32>, vector<144x64xf32>, vector<64x64xf32> -> vector<64x64xf32>
    %c0_125 = arith.constant 0 : index
    %c0_126 = arith.constant 0 : index
    %72 = vector.load %arg5[%c0_125, %c0_126] : memref<1x64xf32, #tpu.memory_space<vmem>>, vector<1x64xf32>
    %73 = vector.broadcast %72 : vector<1x64xf32> to vector<64x64xf32>
    %74 = arith.addf %71, %73 : vector<64x64xf32>
    %cst_127 = arith.constant 0.000000e+00 : f32
    %75 = vector.broadcast %cst_127 : f32 to vector<64x64xf32>
    %76 = arith.maximumf %74, %75 : vector<64x64xf32>
    %77 = vector.shape_cast %76 : vector<64x64xf32> to vector<4x2x8x64xf32>
    %78 = vector.extract_strided_slice %77 {offsets = [0, 0, 0, 0], sizes = [4, 1, 8, 64], strides = [1, 1, 1, 1]} : vector<4x2x8x64xf32> to vector<4x1x8x64xf32>
    %79 = vector.shape_cast %78 : vector<4x1x8x64xf32> to vector<4x8x64xf32>
    %80 = vector.extract_strided_slice %77 {offsets = [0, 1, 0, 0], sizes = [4, 1, 8, 64], strides = [1, 1, 1, 1]} : vector<4x2x8x64xf32> to vector<4x1x8x64xf32>
    %81 = vector.shape_cast %80 : vector<4x1x8x64xf32> to vector<4x8x64xf32>
    %82 = arith.maximumf %79, %81 : vector<4x8x64xf32>
    %83 = vector.shape_cast %82 : vector<4x8x64xf32> to vector<16x2x64xf32>
    %cst_128 = arith.constant dense<0xFF800000> : vector<16x64xf32>
    %84 = vector.multi_reduction <maximumf>, %83, %cst_128 [1] : vector<16x2x64xf32> to vector<16x64xf32>
    %85 = vector.shape_cast %84 : vector<16x64xf32> to vector<4x4x64xf32>
    %c0_129 = arith.constant 0 : index
    %c0_130 = arith.constant 0 : index
    %c0_131 = arith.constant 0 : index
    %86 = vector.load %arg19[%c0_129, %c0_130, %c0_131] : memref<4x4x64xf32, #tpu.memory_space<vmem>>, vector<4x4x64xf32>
    tpu.vector_store %arg19[%c0_129, %c0_130, %c0_131], %85 {strides = array<i32>} : memref<4x4x64xf32, #tpu.memory_space<vmem>>, vector<4x4x64xf32>,
    %cst_132 = arith.constant 0.000000e+00 : f32
    %87 = vector.broadcast %cst_132 : f32 to vector<4x4x576xf32>
    %c0_133 = arith.constant 0 : index
    %c0_134 = arith.constant 0 : index
    %c0_135 = arith.constant 0 : index
    %88 = vector.load %arg17[%c0_133, %c0_134, %c0_135] : memref<4x4x576xf32, #tpu.memory_space<vmem>>, vector<4x4x576xf32>
    tpu.vector_store %arg17[%c0_133, %c0_134, %c0_135], %87 {strides = array<i32>} : memref<4x4x576xf32, #tpu.memory_space<vmem>>, vector<4x4x576xf32>,
    %c0_136 = arith.constant 0 : index
    %c0_137 = arith.constant 0 : index
    %c0_138 = arith.constant 0 : index
    %89 = vector.load %arg19[%c0_136, %c0_137, %c0_138] : memref<4x4x64xf32, #tpu.memory_space<vmem>>, vector<3x3x64xf32>
    %c1_139 = arith.constant 1 : index
    %c1_140 = arith.constant 1 : index
    %c0_141 = arith.constant 0 : index
    %90 = vector.load %arg17[%c1_139, %c1_140, %c0_141] : memref<4x4x576xf32, #tpu.memory_space<vmem>>, vector<3x3x64xf32>
    tpu.vector_store %arg17[%c1_139, %c1_140, %c0_141], %89 {strides = array<i32>} : memref<4x4x576xf32, #tpu.memory_space<vmem>>, vector<3x3x64xf32>,
    %c0_142 = arith.constant 0 : index
    %c0_143 = arith.constant 0 : index
    %c0_144 = arith.constant 0 : index
    %91 = vector.load %arg19[%c0_142, %c0_143, %c0_144] : memref<4x4x64xf32, #tpu.memory_space<vmem>>, vector<3x4x64xf32>
    %c1_145 = arith.constant 1 : index
    %c0_146 = arith.constant 0 : index
    %c64_147 = arith.constant 64 : index
    %92 = vector.load %arg17[%c1_145, %c0_146, %c64_147] : memref<4x4x576xf32, #tpu.memory_space<vmem>>, vector<3x4x64xf32>
    tpu.vector_store %arg17[%c1_145, %c0_146, %c64_147], %91 {strides = array<i32>} : memref<4x4x576xf32, #tpu.memory_space<vmem>>, vector<3x4x64xf32>,
    %c0_148 = arith.constant 0 : index
    %c1_149 = arith.constant 1 : index
    %c0_150 = arith.constant 0 : index
    %93 = vector.load %arg19[%c0_148, %c1_149, %c0_150] : memref<4x4x64xf32, #tpu.memory_space<vmem>>, vector<3x3x64xf32>
    %c1_151 = arith.constant 1 : index
    %c0_152 = arith.constant 0 : index
    %c128_153 = arith.constant 128 : index
    %94 = vector.load %arg17[%c1_151, %c0_152, %c128_153] : memref<4x4x576xf32, #tpu.memory_space<vmem>>, vector<3x3x64xf32>
    tpu.vector_store %arg17[%c1_151, %c0_152, %c128_153], %93 {strides = array<i32>} : memref<4x4x576xf32, #tpu.memory_space<vmem>>, vector<3x3x64xf32>,
    %c0_154 = arith.constant 0 : index
    %c0_155 = arith.constant 0 : index
    %c0_156 = arith.constant 0 : index
    %95 = vector.load %arg19[%c0_154, %c0_155, %c0_156] : memref<4x4x64xf32, #tpu.memory_space<vmem>>, vector<4x3x64xf32>
    %c0_157 = arith.constant 0 : index
    %c1_158 = arith.constant 1 : index
    %c192 = arith.constant 192 : index
    %96 = vector.load %arg17[%c0_157, %c1_158, %c192] : memref<4x4x576xf32, #tpu.memory_space<vmem>>, vector<4x3x64xf32>
    tpu.vector_store %arg17[%c0_157, %c1_158, %c192], %95 {strides = array<i32>} : memref<4x4x576xf32, #tpu.memory_space<vmem>>, vector<4x3x64xf32>,
    %c0_159 = arith.constant 0 : index
    %c0_160 = arith.constant 0 : index
    %c0_161 = arith.constant 0 : index
    %97 = vector.load %arg19[%c0_159, %c0_160, %c0_161] : memref<4x4x64xf32, #tpu.memory_space<vmem>>, vector<4x4x64xf32>
    %c0_162 = arith.constant 0 : index
    %c0_163 = arith.constant 0 : index
    %c256 = arith.constant 256 : index
    %98 = vector.load %arg17[%c0_162, %c0_163, %c256] : memref<4x4x576xf32, #tpu.memory_space<vmem>>, vector<4x4x64xf32>
    tpu.vector_store %arg17[%c0_162, %c0_163, %c256], %97 {strides = array<i32>} : memref<4x4x576xf32, #tpu.memory_space<vmem>>, vector<4x4x64xf32>,
    %c0_164 = arith.constant 0 : index
    %c1_165 = arith.constant 1 : index
    %c0_166 = arith.constant 0 : index
    %99 = vector.load %arg19[%c0_164, %c1_165, %c0_166] : memref<4x4x64xf32, #tpu.memory_space<vmem>>, vector<4x3x64xf32>
    %c0_167 = arith.constant 0 : index
    %c0_168 = arith.constant 0 : index
    %c320 = arith.constant 320 : index
    %100 = vector.load %arg17[%c0_167, %c0_168, %c320] : memref<4x4x576xf32, #tpu.memory_space<vmem>>, vector<4x3x64xf32>
    tpu.vector_store %arg17[%c0_167, %c0_168, %c320], %99 {strides = array<i32>} : memref<4x4x576xf32, #tpu.memory_space<vmem>>, vector<4x3x64xf32>,
    %c1_169 = arith.constant 1 : index
    %c0_170 = arith.constant 0 : index
    %c0_171 = arith.constant 0 : index
    %101 = vector.load %arg19[%c1_169, %c0_170, %c0_171] : memref<4x4x64xf32, #tpu.memory_space<vmem>>, vector<3x3x64xf32>
    %c0_172 = arith.constant 0 : index
    %c1_173 = arith.constant 1 : index
    %c384 = arith.constant 384 : index
    %102 = vector.load %arg17[%c0_172, %c1_173, %c384] : memref<4x4x576xf32, #tpu.memory_space<vmem>>, vector<3x3x64xf32>
    tpu.vector_store %arg17[%c0_172, %c1_173, %c384], %101 {strides = array<i32>} : memref<4x4x576xf32, #tpu.memory_space<vmem>>, vector<3x3x64xf32>,
    %c1_174 = arith.constant 1 : index
    %c0_175 = arith.constant 0 : index
    %c0_176 = arith.constant 0 : index
    %103 = vector.load %arg19[%c1_174, %c0_175, %c0_176] : memref<4x4x64xf32, #tpu.memory_space<vmem>>, vector<3x4x64xf32>
    %c0_177 = arith.constant 0 : index
    %c0_178 = arith.constant 0 : index
    %c448 = arith.constant 448 : index
    %104 = vector.load %arg17[%c0_177, %c0_178, %c448] : memref<4x4x576xf32, #tpu.memory_space<vmem>>, vector<3x4x64xf32>
    tpu.vector_store %arg17[%c0_177, %c0_178, %c448], %103 {strides = array<i32>} : memref<4x4x576xf32, #tpu.memory_space<vmem>>, vector<3x4x64xf32>,
    %c1_179 = arith.constant 1 : index
    %c1_180 = arith.constant 1 : index
    %c0_181 = arith.constant 0 : index
    %105 = vector.load %arg19[%c1_179, %c1_180, %c0_181] : memref<4x4x64xf32, #tpu.memory_space<vmem>>, vector<3x3x64xf32>
    %c0_182 = arith.constant 0 : index
    %c0_183 = arith.constant 0 : index
    %c512 = arith.constant 512 : index
    %106 = vector.load %arg17[%c0_182, %c0_183, %c512] : memref<4x4x576xf32, #tpu.memory_space<vmem>>, vector<3x3x64xf32>
    tpu.vector_store %arg17[%c0_182, %c0_183, %c512], %105 {strides = array<i32>} : memref<4x4x576xf32, #tpu.memory_space<vmem>>, vector<3x3x64xf32>,
    %c0_184 = arith.constant 0 : index
    %c0_185 = arith.constant 0 : index
    %c0_186 = arith.constant 0 : index
    %107 = vector.load %arg17[%c0_184, %c0_185, %c0_186] : memref<4x4x576xf32, #tpu.memory_space<vmem>>, vector<4x4x576xf32>
    %108 = vector.shape_cast %107 : vector<4x4x576xf32> to vector<16x576xf32>
    %c0_187 = arith.constant 0 : index
    %c0_188 = arith.constant 0 : index
    %109 = vector.load %arg6[%c0_187, %c0_188] : memref<576x128xf32, #tpu.memory_space<vmem>>, vector<576x128xf32>
    %cst_189 = arith.constant dense<0.000000e+00> : vector<16x128xf32>
    %110 = tpu.matmul %108, %109, %cst_189 {dimension_numbers = #tpu.dot_dimension_numbers<[1], [0], [0], [1], [0, 0, 1, 1], [], []>} : vector<16x576xf32>, vector<576x128xf32>, vector<16x128xf32> -> vector<16x128xf32>
    %c0_190 = arith.constant 0 : index
    %c0_191 = arith.constant 0 : index
    %111 = vector.load %arg7[%c0_190, %c0_191] : memref<1x128xf32, #tpu.memory_space<vmem>>, vector<1x128xf32>
    %112 = vector.broadcast %111 : vector<1x128xf32> to vector<16x128xf32>
    %113 = arith.addf %110, %112 : vector<16x128xf32>
    %cst_192 = arith.constant 0.000000e+00 : f32
    %114 = vector.broadcast %cst_192 : f32 to vector<16x128xf32>
    %115 = arith.maximumf %113, %114 : vector<16x128xf32>
    %116 = vector.shape_cast %115 : vector<16x128xf32> to vector<2x2x4x128xf32>
    %117 = vector.extract_strided_slice %116 {offsets = [0, 0, 0, 0], sizes = [2, 1, 4, 128], strides = [1, 1, 1, 1]} : vector<2x2x4x128xf32> to vector<2x1x4x128xf32>
    %118 = vector.shape_cast %117 : vector<2x1x4x128xf32> to vector<2x4x128xf32>
    %119 = vector.extract_strided_slice %116 {offsets = [0, 1, 0, 0], sizes = [2, 1, 4, 128], strides = [1, 1, 1, 1]} : vector<2x2x4x128xf32> to vector<2x1x4x128xf32>
    %120 = vector.shape_cast %119 : vector<2x1x4x128xf32> to vector<2x4x128xf32>
    %121 = arith.maximumf %118, %120 : vector<2x4x128xf32>
    %122 = vector.shape_cast %121 : vector<2x4x128xf32> to vector<4x2x128xf32>
    %cst_193 = arith.constant dense<0xFF800000> : vector<4x128xf32>
    %123 = vector.multi_reduction <maximumf>, %122, %cst_193 [1] : vector<4x2x128xf32> to vector<4x128xf32>
    %124 = vector.extract_strided_slice %123 {offsets = [0, 0], sizes = [1, 128], strides = [1, 1]} : vector<4x128xf32> to vector<1x128xf32>
    %c0_194 = arith.constant 0 : index
    %c0_195 = arith.constant 0 : index
    %125 = vector.load %arg20[%c0_194, %c0_195] : memref<1x512xf32, #tpu.memory_space<vmem>>, vector<1x128xf32>
    tpu.vector_store %arg20[%c0_194, %c0_195], %124 {strides = array<i32>} : memref<1x512xf32, #tpu.memory_space<vmem>>, vector<1x128xf32>,
    %126 = vector.extract_strided_slice %123 {offsets = [1, 0], sizes = [1, 128], strides = [1, 1]} : vector<4x128xf32> to vector<1x128xf32>
    %c0_196 = arith.constant 0 : index
    %c128_197 = arith.constant 128 : index
    %127 = vector.load %arg20[%c0_196, %c128_197] : memref<1x512xf32, #tpu.memory_space<vmem>>, vector<1x128xf32>
    tpu.vector_store %arg20[%c0_196, %c128_197], %126 {strides = array<i32>} : memref<1x512xf32, #tpu.memory_space<vmem>>, vector<1x128xf32>,
    %128 = vector.extract_strided_slice %123 {offsets = [2, 0], sizes = [1, 128], strides = [1, 1]} : vector<4x128xf32> to vector<1x128xf32>
    %c0_198 = arith.constant 0 : index
    %c256_199 = arith.constant 256 : index
    %129 = vector.load %arg20[%c0_198, %c256_199] : memref<1x512xf32, #tpu.memory_space<vmem>>, vector<1x128xf32>
    tpu.vector_store %arg20[%c0_198, %c256_199], %128 {strides = array<i32>} : memref<1x512xf32, #tpu.memory_space<vmem>>, vector<1x128xf32>,
    %130 = vector.extract_strided_slice %123 {offsets = [3, 0], sizes = [1, 128], strides = [1, 1]} : vector<4x128xf32> to vector<1x128xf32>
    %c0_200 = arith.constant 0 : index
    %c384_201 = arith.constant 384 : index
    %131 = vector.load %arg20[%c0_200, %c384_201] : memref<1x512xf32, #tpu.memory_space<vmem>>, vector<1x128xf32>
    tpu.vector_store %arg20[%c0_200, %c384_201], %130 {strides = array<i32>} : memref<1x512xf32, #tpu.memory_space<vmem>>, vector<1x128xf32>,
    %c0_202 = arith.constant 0 : index
    %c0_203 = arith.constant 0 : index
    %132 = vector.load %arg20[%c0_202, %c0_203] : memref<1x512xf32, #tpu.memory_space<vmem>>, vector<1x512xf32>
    %c0_204 = arith.constant 0 : index
    %c0_205 = arith.constant 0 : index
    %133 = vector.load %arg8[%c0_204, %c0_205] : memref<512x512xf32, #tpu.memory_space<vmem>>, vector<512x512xf32>
    %cst_206 = arith.constant dense<0.000000e+00> : vector<1x512xf32>
    %134 = tpu.matmul %132, %133, %cst_206 {dimension_numbers = #tpu.dot_dimension_numbers<[1], [0], [0], [1], [0, 0, 1, 1], [], []>} : vector<1x512xf32>, vector<512x512xf32>, vector<1x512xf32> -> vector<1x512xf32>
    %c0_207 = arith.constant 0 : index
    %c0_208 = arith.constant 0 : index
    %135 = vector.load %arg9[%c0_207, %c0_208] : memref<1x512xf32, #tpu.memory_space<vmem>>, vector<1x512xf32>
    %136 = arith.addf %134, %135 : vector<1x512xf32>
    %cst_209 = arith.constant 0.000000e+00 : f32
    %137 = vector.broadcast %cst_209 : f32 to vector<1x512xf32>
    %138 = arith.maximumf %136, %137 : vector<1x512xf32>
    %c0_210 = arith.constant 0 : index
    %c0_211 = arith.constant 0 : index
    %139 = vector.load %arg10[%c0_210, %c0_211] : memref<512x512xf32, #tpu.memory_space<vmem>>, vector<512x512xf32>
    %cst_212 = arith.constant dense<0.000000e+00> : vector<1x512xf32>
    %140 = tpu.matmul %138, %139, %cst_212 {dimension_numbers = #tpu.dot_dimension_numbers<[1], [0], [0], [1], [0, 0, 1, 1], [], []>} : vector<1x512xf32>, vector<512x512xf32>, vector<1x512xf32> -> vector<1x512xf32>
    %c0_213 = arith.constant 0 : index
    %c0_214 = arith.constant 0 : index
    %141 = vector.load %arg11[%c0_213, %c0_214] : memref<1x512xf32, #tpu.memory_space<vmem>>, vector<1x512xf32>
    %142 = arith.addf %140, %141 : vector<1x512xf32>
    %cst_215 = arith.constant 0.000000e+00 : f32
    %143 = vector.broadcast %cst_215 : f32 to vector<1x512xf32>
    %144 = arith.maximumf %142, %143 : vector<1x512xf32>
    %c0_216 = arith.constant 0 : index
    %c0_217 = arith.constant 0 : index
    %145 = vector.load %arg12[%c0_216, %c0_217] : memref<512x10xf32, #tpu.memory_space<vmem>>, vector<512x10xf32>
    %cst_218 = arith.constant dense<0.000000e+00> : vector<1x10xf32>
    %146 = tpu.matmul %144, %145, %cst_218 {dimension_numbers = #tpu.dot_dimension_numbers<[1], [0], [0], [1], [0, 0, 1, 1], [], []>} : vector<1x512xf32>, vector<512x10xf32>, vector<1x10xf32> -> vector<1x10xf32>
    %c0_219 = arith.constant 0 : index
    %c0_220 = arith.constant 0 : index
    %147 = vector.load %arg13[%c0_219, %c0_220] : memref<1x10xf32, #tpu.memory_space<vmem>>, vector<1x10xf32>
    %148 = arith.addf %146, %147 : vector<1x10xf32>
    %c0_221 = arith.constant 0 : index
    %c0_222 = arith.constant 0 : index
    %c0_223 = arith.constant 0 : index
    %149 = vector.load %arg14[%c0_221, %c0_222, %c0_223] : memref<1x1x10xf32, #tpu.memory_space<vmem>>, vector<1x1x10xf32>
    %150 = vector.shape_cast %149 : vector<1x1x10xf32> to vector<1x10xf32>
    %151 = vector.shape_cast %148 : vector<1x10xf32> to vector<1x1x10xf32>
    tpu.vector_store %arg14[%c0_221, %c0_222, %c0_223], %151 {strides = array<i32>} : memref<1x1x10xf32, #tpu.memory_space<vmem>>, vector<1x1x10xf32>,
    return
  }
  func.func @transform_0(%arg0: i32) -> (i32, i32, i32, i32) {
    %c0_i32 = arith.constant 0 : i32
    %c0_i32_0 = arith.constant 0 : i32
    %c0_i32_1 = arith.constant 0 : i32
    %c0_i32_2 = arith.constant 0 : i32
    return %arg0, %c0_i32, %c0_i32_0, %c0_i32_1 : i32, i32, i32, i32
  }
  func.func @transform_1(%arg0: i32) -> (i32, i32) {
    %c0_i32 = arith.constant 0 : i32
    %c0_i32_0 = arith.constant 0 : i32
    %c0_i32_1 = arith.constant 0 : i32
    return %c0_i32, %c0_i32_0 : i32, i32
  }
  func.func @transform_2(%arg0: i32) -> (i32, i32) {
    %c0_i32 = arith.constant 0 : i32
    %c0_i32_0 = arith.constant 0 : i32
    %c0_i32_1 = arith.constant 0 : i32
    return %c0_i32, %c0_i32_0 : i32, i32
  }
  func.func @transform_3(%arg0: i32) -> (i32, i32) {
    %c0_i32 = arith.constant 0 : i32
    %c0_i32_0 = arith.constant 0 : i32
    %c0_i32_1 = arith.constant 0 : i32
    return %c0_i32, %c0_i32_0 : i32, i32
  }
  func.func @transform_4(%arg0: i32) -> (i32, i32) {
    %c0_i32 = arith.constant 0 : i32
    %c0_i32_0 = arith.constant 0 : i32
    %c0_i32_1 = arith.constant 0 : i32
    return %c0_i32, %c0_i32_0 : i32, i32
  }
  func.func @transform_5(%arg0: i32) -> (i32, i32) {
    %c0_i32 = arith.constant 0 : i32
    %c0_i32_0 = arith.constant 0 : i32
    %c0_i32_1 = arith.constant 0 : i32
    return %c0_i32, %c0_i32_0 : i32, i32
  }
  func.func @transform_6(%arg0: i32) -> (i32, i32) {
    %c0_i32 = arith.constant 0 : i32
    %c0_i32_0 = arith.constant 0 : i32
    %c0_i32_1 = arith.constant 0 : i32
    return %c0_i32, %c0_i32_0 : i32, i32
  }
  func.func @transform_7(%arg0: i32) -> (i32, i32) {
    %c0_i32 = arith.constant 0 : i32
    %c0_i32_0 = arith.constant 0 : i32
    %c0_i32_1 = arith.constant 0 : i32
    return %c0_i32, %c0_i32_0 : i32, i32
  }
  func.func @transform_8(%arg0: i32) -> (i32, i32) {
    %c0_i32 = arith.constant 0 : i32
    %c0_i32_0 = arith.constant 0 : i32
    %c0_i32_1 = arith.constant 0 : i32
    return %c0_i32, %c0_i32_0 : i32, i32
  }
  func.func @transform_9(%arg0: i32) -> (i32, i32) {
    %c0_i32 = arith.constant 0 : i32
    %c0_i32_0 = arith.constant 0 : i32
    %c0_i32_1 = arith.constant 0 : i32
    return %c0_i32, %c0_i32_0 : i32, i32
  }
  func.func @transform_10(%arg0: i32) -> (i32, i32) {
    %c0_i32 = arith.constant 0 : i32
    %c0_i32_0 = arith.constant 0 : i32
    %c0_i32_1 = arith.constant 0 : i32
    return %c0_i32, %c0_i32_0 : i32, i32
  }
  func.func @transform_11(%arg0: i32) -> (i32, i32) {
    %c0_i32 = arith.constant 0 : i32
    %c0_i32_0 = arith.constant 0 : i32
    %c0_i32_1 = arith.constant 0 : i32
    return %c0_i32, %c0_i32_0 : i32, i32
  }
  func.func @transform_12(%arg0: i32) -> (i32, i32) {
    %c0_i32 = arith.constant 0 : i32
    %c0_i32_0 = arith.constant 0 : i32
    %c0_i32_1 = arith.constant 0 : i32
    return %c0_i32, %c0_i32_0 : i32, i32
  }
  func.func @transform_13(%arg0: i32) -> (i32, i32, i32) {
    %c0_i32 = arith.constant 0 : i32
    %c0_i32_0 = arith.constant 0 : i32
    %c0_i32_1 = arith.constant 0 : i32
    return %arg0, %c0_i32, %c0_i32_0 : i32, i32, i32
  }
}

</mosaic_0001>

<bundles_post_ra>
// kernel: vgg_forward.1
= control target key start
LH: loop header
LB: loop body
LE: loop exit
PB: predicated region body
PF: predicated region fallthrough
CT: control target
= control target key end

     0   :  { %s9743_s0 = inlined_call_operand.vmem [shape: f32[2,16,16,3], index: 0, kind: input, shape index: {}]   ;;  %s9744_s1 = inlined_call_operand.vmem [shape: f32[27,16], index: 1, kind: input, shape index: {}]   ;;  %s9745_s2 = inlined_call_operand.vmem [shape: f32[1,16], index: 2, kind: input, shape index: {}]   ;;  %s9746_s3 = inlined_call_operand.vmem [shape: f32[144,64], index: 3, kind: input, shape index: {}]   ;;  %s9747_s4 = inlined_call_operand.vmem [shape: f32[1,64], index: 4, kind: input, shape index: {}]   ;;  %s9748_s5 = inlined_call_operand.vmem [shape: f32[576,128], index: 5, kind: input, shape index: {}]   ;;  %s9749_s6 = inlined_call_operand.vmem [shape: f32[1,128], index: 6, kind: input, shape index: {}]   ;;  %s9750_s7 = inlined_call_operand.hbm [shape: f32[512,512], index: 7, kind: input, shape index: {}]   ;;  %s9751_s8 = inlined_call_operand.vmem [shape: f32[1,512], index: 8, kind: input, shape index: {}]   ;;  %s9752_s9 = inlined_call_operand.hbm [shape: f32[512,512], index: 9, kind: input, shape index: {}]   ;;  %s9753_s10 = inlined_call_operand.vmem [shape: f32[1,512], index: 10, kind: input, shape index: {}]   ;;  %s9754_s11 = inlined_call_operand.vmem [shape: f32[512,10], index: 11, kind: input, shape index: {}]   ;;  %s9755_s12 = inlined_call_operand.vmem [shape: f32[1,10], index: 12, kind: input, shape index: {}]   ;;  %s9756_s13 = inlined_call_operand.hbm [shape: f32[2,1,10], index: 13, kind: output, shape index: {}]  }
   0x1   :  { %9785 = sst [smem:[#allocation23_spill]] %s9756_s13 }
   0x2   :  { %18 = vsyncpa [#allocation9], 0 }
   0x3   :  { %19 = vsyncpa [#allocation12], 0 }
   0x4   :  { %20 = vsyncpa [#allocation10], 0 }
   0x5   :  { %22 = vsyncpa [#allocation10 + $0x1], 0  ;;  %s7712_s25 = smov 0   ;;  %s7714_s26 = smov 0  }
   0x6   :  { %s7716_s27 = smov 0   ;;  %s7718_s28 = smov 0  }
   0x7 LB: > { %9786 = sst [smem:[#allocation17_spill]] %s7604_s25  ;;  %s7733_s29 = sadd.s32 4294967295, %s7616_s28   ;;  %s7616_s28 = sphi %s7718_s28, %s9967_s28   ;;  %s7612_s27 = sphi %s7716_s27, %s9969_s27   ;;  %s7608_s26 = sphi %s7714_s26, %s9971_s26   ;;  %s7604_s25 = sphi %s7712_s25, %s9970_s25  }
   0x8   : > { %9787 = sst [smem:[#allocation18_spill]] %s7612_s27  ;;  %s6266_s30 = sadd.s32 4294967294, %s7616_s28  }
   0x9   : > { %9788 = sst [smem:[#allocation19_spill]] %s7616_s28  ;;  %s7737_s14 = sadd.s32 1, %s7616_s28  }
   0xa   : > { %9789 = sst [smem:[#allocation20_spill]] %s7737_s14  ;;  %s313_s15 = sadd.s32 1, %s7612_s27 }
   0xb   : > { %s310_s16 = ssub.s32 %s7616_s28, %s7737_s14  ;;  %p323_p0 = scmp.ne.s32.totalorder %s7612_s27, %s7608_s26 }
   0xc   : > { %p311_p1 = scmp.eq.s32.totalorder %s310_s16, 0  ;;  %p324_p2 = scmp.eq.s32.totalorder %s7733_s29, 1 }
   0xd   : > { %p329_p3 = scmp.ne.s32.totalorder %s7608_s26, %s7604_s25  ;;  %p330_p4 = scmp.eq.s32.totalorder %s6266_s30, 1 }
   0xe   : > { %s7748_s17 = scalar_select %p311_p1, %s7612_s27, %s313_s15  }
   0xf   : > { %p7750_p5 = por %p324_p2, %p323_p0  ;;  %p7754_p6 = por %p330_p4, %p329_p3 }
  0x10   : > { %9790 = sst [smem:[#allocation21_spill]] %s7748_s17  ;;  %p6267_p7 = scmp.ge.s32.totalorder %s7616_s28, 1 }
  0x11   : > { %s9791_s18 = scalar_select %p7750_p5, 1, 0 }
  0x12   : > { %s9792_s19 = scalar_select %p7754_p6, 1, 0 }
  0x13   : > { %p337_p8 = scmp.lt.s32.totalorder %s7616_s28, 3  ;;  %p9761_p9 = scmp.eq.s32.totalorder %s7733_s29, 0 }
  0x14   : > { %9793 = sst [smem:[#allocation22_spill]] %s9792_s19  ;;  %s7618_s21 = smov [#allocation8]  }
  0x15   : > { %p7761_p10 = pnand %p6267_p7, %p337_p8  ;;  %s367_s22 = sshll.u32 %s7618_s21, 4  ;;  %s368_s22 = int_to_ptr.vmem [resolvable:$true] %s367_s22 }
  0x16   : > { %s7619_s24 = smov [#allocation11]   ;;  %s7490_s17 = scalar_lea.hbm %s9750_s7, 32768 }
  0x17   : > { %s9794_s20 = scalar_select %p7761_p10, 1, 0 }
  0x18   : > { %p7402_p11 = pneg %p7761_p10  ;;  %s383_s30 = sshll.u32 %s7619_s24, 4  ;;  %s7773_s30 = int_to_ptr.vmem [resolvable:$true] %s383_s30 }
  0x19   : > { %p7491_p13 = scmp.ne.s32.totalorder %s9750_s7, %s7490_s17  ;;  %p7497_p3 = scmp.lt.u32.totalorder %s7490_s17, %s9750_s7 }
  0x1a   : > { %p7769_p12 = pnand %p9761_p9, %p7402_p11 }
  0x1c   : > { %p7492_p0 = pneg %p7769_p12 }
  0x1e   : > { %p7493_p1 = pnand %p7492_p0, %p7491_p13 }
  0x20   : > { %p7494_p2 = pneg %p7493_p1 }
  0x22   : > { %p7499_p4 = pnand %p7497_p3, %p7494_p2 }
  0x24   : > { %7502 = shalt.err (!%p7499_p4)
}
  0x25   : > { %s7503_s24 = scalar_lea.vmem %s368_s22, 32768  ;;  %p7511_p9 = scmp.lt.s32.totalorder %s368_s22, %s368_s22 }
  0x26   : > { %p7504_p7 = scmp.ne.s32.totalorder %s368_s22, %s7503_s24  ;;  %p7512_p6 = scmp.lt.s32.totalorder %s7503_s24, %s7503_s24 }
  0x28   : > { %p7506_p8 = pnand %p7504_p7, %p7492_p0  ;;  %p7513_p5 = por %p7512_p6, %p7511_p9 }
  0x2a   : > { %p7507_p11 = pneg %p7506_p8 }
  0x2c   : > { %p7514_p10 = pnand %p7513_p5, %p7507_p11 }
  0x2e   : > { %7517 = shalt.err (!%p7514_p10)
}
  0x2f   : > { %s7620_s27 = smov 512   ;;  %s7621_s15 = smov 32  }
  0x30   : > { %7405 = dma.hbm_to_vmem [thread:$0]  (!%p7769_p12), %s9750_s7, 32768, %s368_s22, [#allocation9], %s7620_s27, %s7620_s27, %s7621_s15  }
  0x31   : > { %s7518_s21 = scalar_lea.hbm %s9752_s9, 32768 }
  0x32   : > { %p7519_p13 = scmp.ne.s32.totalorder %s9752_s9, %s7518_s21  ;;  %p7525_p9 = scmp.lt.u32.totalorder %s7518_s21, %s9752_s9 }
  0x34   : > { %p7521_p5 = pnand %p7519_p13, %p7492_p0 }
  0x36   : > { %p7522_p6 = pneg %p7521_p5 }
  0x38   : > { %p7527_p10 = pnand %p7525_p9, %p7522_p6 }
  0x3a   : > { %7530 = shalt.err (!%p7527_p10)
}
  0x3b   : > { %s7531_s22 = scalar_lea.vmem %s7773_s30, 32768  ;;  %p7539_p4 = scmp.lt.s32.totalorder %s7773_s30, %s7773_s30 }
  0x3c   : > { %p7532_p1 = scmp.ne.s32.totalorder %s7773_s30, %s7531_s22  ;;  %p7540_p7 = scmp.lt.s32.totalorder %s7531_s22, %s7531_s22 }
  0x3e   : > { %p7534_p2 = pnand %p7532_p1, %p7492_p0  ;;  %p7541_p8 = por %p7540_p7, %p7539_p4 }
  0x40   : > { %p7535_p3 = pneg %p7534_p2 }
  0x42   : > { %p7542_p11 = pnand %p7541_p8, %p7535_p3 }
  0x44   : > { %7545 = shalt.err (!%p7542_p11)
}
  0x45   : > { %7408 = dma.hbm_to_vmem [thread:$0]  (!%p7769_p12), %s9752_s9, 32768, %s7773_s30, [#allocation12], %s7620_s27, %s7620_s27, %s7621_s15  }
  0x46   : > { %p9796_p13 = scmp.ne.s32.totalorder %s9794_s20, 0 }
  0x47   : > { %p9797_p5 = scmp.eq.s32.totalorder (!%p9796_p13), %s7733_s29, 0 }
  0x48   : > { %416 = sbr.rel (%p9796_p13) target bundleno = 2521 (0x9d9), region = 72 }
  0x4f   : > { %7591 = dma.done.wait (%p9797_p5), [#allocation9], 32768   ;;  %p9798_p0 = pmov %p9797_p5 }
  0x51   : > { %7593 = vsyncadd (%p9798_p0), [#allocation9], 4294934528  ;;  %p9799_p6 = pmov %p9798_p0 }
  0x52   : > { %p9800_p9 = pmov %p9798_p0 }
  0x53   : > { %7595 = dma.done.wait (%p9799_p6), [#allocation12], 32768  }
  0x54   : > { %7597 = vsyncadd (%p9800_p9), [#allocation12], 4294934528  ;;  %p463_p10 = scmp.lt.s32.totalorder %s7733_s29, 1  ;;  %vm468_vm0 = vcmask 220160   ;;  %v7622_v0 = vmov 0.0   ;;  %vm532_vm1 = vcmask 23552  }
  0x55   : > { %469 = vst.msk [vmem:[#allocation2] sm:$0xff] %vm468_vm0, %v7622_v0  ;;  %470 = vst.msk [vmem:[#allocation2 + $0x8] sm:$0xff] %vm468_vm0, %v7622_v0  ;;  %s7623_s15 = smov 12   ;;  %s7624_s14 = smov 9   ;;  %vm9775_vm2 = vcmask 22528   ;;  %v2086_v16 = vld [vmem:[%s9744_s1] sm:$0xff] }
  0x56   : > { %471 = vst.msk [vmem:[#allocation2 + $0x10] sm:$0xff] %vm468_vm0, %v7622_v0  ;;  %472 = vst.msk [vmem:[#allocation2 + $0x18] sm:$0xff] %vm468_vm0, %v7622_v0  ;;  %s464_s28 = scalar_select %p463_p10, %s7733_s29, 1  ;;  %v2087_v17 = vld [vmem:[%s9744_s1 + $0x8] sm:$0xff]  ;;  %v2088_v20 = vld [vmem:[%s9744_s1 + $0x10] sm:$0xff]  ;;  %vm2193_vm3 = vcmask 1042432  }
  0x57   : > { %473 = vst.msk [vmem:[#allocation2 + $0x20] sm:$0xff] %vm468_vm0, %v7622_v0  ;;  %474 = vst.msk [vmem:[#allocation2 + $0x28] sm:$0xff] %vm468_vm0, %v7622_v0  ;;  %s7625_s17 = smov 3   ;;  %s7626_s19 = smov 15   ;;  %v6683_v19 = vpack.c.bf16 %v2087_v17, %v2086_v16  ;;  %v2089_v21 = vld [vmem:[%s9744_s1 + $0x18] sm:$0x7] }
  0x58   : > { %475 = vst.msk [vmem:[#allocation2 + $0x30] sm:$0xff] %vm468_vm0, %v7622_v0  ;;  %476 = vst.msk [vmem:[#allocation2 + $0x38] sm:$0xff] %vm468_vm0, %v7622_v0  ;;  %s6415_s20 = sshll.u32 %s464_s28, 8  ;;  %s7627_s16 = smov 6   ;;  %v6687_v23 = vpack.c.bf16 %v2089_v21, %v2088_v20  ;;  %vm7630_vm4 = vmmov 1   ;;  %vm1087_vm6 = vcmask 97352  }
  0x59   : > { %477 = vst.msk [vmem:[#allocation2 + $0x40] sm:$0xff] %vm468_vm0, %v7622_v0  ;;  %478 = vst.msk [vmem:[#allocation2 + $0x48] sm:$0xff] %vm468_vm0, %v7622_v0  ;;  %s7871_s27 = scalar_lea.vmem %s9743_s0, %s6415_s20  ;;  %s9767_s21 = smov 18   ;;  %6684 = vmatprep.subr.bf16.mxu0 %v6683_v19  ;;  %vm9774_vm7 = vcmask 121952   ;;  %vm9771_vm8 = vcmask 96328   ;;  %vm714_vm9 = vcmask 48152  }
  0x5a   : > { %479 = vst.msk [vmem:[#allocation2 + $0x50] sm:$0xff] %vm468_vm0, %v7622_v0  ;;  %480 = vst.msk [vmem:[#allocation2 + $0x58] sm:$0xff] %vm468_vm0, %v7622_v0  ;;  %v1121_v1 = vld [vmem:[%s7871_s27] sm:$0xff]  ;;  %v1122_v2 = vld [vmem:[%s7871_s27 + $0x8] sm:$0xff]  ;;  %s7629_s24 = smov 21   ;;  %6686 = vmatpush3.bf16.msra.mxu0 %v6683_v19  ;;  %s7631_s22 = smov 24  }
  0x5b   : > { %481 = vst.msk [vmem:[#allocation2 + $0x60] sm:$0xff] %vm468_vm0, %v7622_v0  ;;  %482 = vst.msk [vmem:[#allocation2 + $0x68] sm:$0xff] %vm468_vm0, %v7622_v0  ;;  %1185 = vrot.lane.b32.xlu1 %v1121_v1, %s7623_s15  ;;  %991 = vrot.lane.b32.xlu0 %v1121_v1, %s7624_s14  ;;  %v928_v3 = vld [vmem:[%s7871_s27 + $0x8] sm:$0x7f]  ;;  %v929_v4 = vld [vmem:[%s7871_s27 + $0x10] sm:$0xff]  ;;  %vm1476_vm10 = vcmask 145528  }
  0x5c   : > { %483 = vst.msk [vmem:[#allocation2 + $0x70] sm:$0xff] %vm468_vm0, %v7622_v0  ;;  %484 = vst.msk [vmem:[#allocation2 + $0x78] sm:$0xff] %vm468_vm0, %v7622_v0  ;;  %v7884_v5 = vld [vmem:[%s7871_s27 + $0x20] sm:$0xff]  ;;  %v7889_v6 = vld [vmem:[%s7871_s27 + $0x30] sm:$0xff]  ;;  %vm1474_vm11 = vcmask 146552   ;;  %vm897_vm12 = vcmask 71728  }
  0x5d   : > { %485 = vst.msk [vmem:[#allocation2 + $0x80] sm:$0xff] %vm468_vm0, %v7622_v0  ;;  %486 = vst.msk [vmem:[#allocation2 + $0x88] sm:$0xff] %vm468_vm0, %v7622_v0  ;;  %v1315_v7 = vld [vmem:[%s7871_s27 + $0x9] sm:$0x7f]  ;;  %v1314_v8 = vld [vmem:[%s7871_s27 + $0x1] sm:$0xff]  ;;  %vm895_vm13 = vcmask 72752  }
  0x5e   : > { %487 = vst.msk [vmem:[#allocation2 + $0x90] sm:$0xff] %vm468_vm0, %v7622_v0  ;;  %488 = vst.msk [vmem:[#allocation2 + $0x98] sm:$0xff] %vm468_vm0, %v7622_v0  ;;  %v7898_v9 = vld [vmem:[%s7871_s27 + $0x40] sm:$0xff]  ;;  %v502_v10 = vld [vmem:[%s7871_s27 + $0x8] sm:$0x7f]  ;;  %vm9776_vm14 = vcmask 171152  }
  0x5f   : > { %489 = vst.msk [vmem:[#allocation2 + $0xa0] sm:$0xff] %vm468_vm0, %v7622_v0  ;;  %490 = vst.msk [vmem:[#allocation2 + $0xa8] sm:$0xff] %vm468_vm0, %v7622_v0  ;;  %1187 = vrot.lane.b32.xlu1 %v1122_v2, %s7623_s15  ;;  %993 = vrot.lane.b32.xlu0 %v928_v3, %s7624_s14  ;;  %v746_v11 = vld [vmem:[%s7871_s27 + $0x9] sm:$0x7f]  ;;  %v7910_v12 = vld [vmem:[%s7871_s27 + $0x50] sm:$0xff]  ;;  %vm9772_vm15 = vcmask 170128  }
  0x60   : > { %491 = vst.msk [vmem:[#allocation2 + $0xb0] sm:$0xff] %vm468_vm0, %v7622_v0  ;;  %492 = vst.msk [vmem:[#allocation2 + $0xb8] sm:$0xff] %vm468_vm0, %v7622_v0  ;;  %v6277_v13 = vld [vmem:[%s7871_s27 + $0x18] sm:$0x7f]  ;;  %v7952_v27 = vld [vmem:[%s7871_s27 + $0x60] sm:$0xff]  ;;  %s6412_s28 = sshll.u32 %s7733_s29, 4 }
  0x61   : > { %493 = vst.msk [vmem:[#allocation2 + $0xc0] sm:$0xff] %vm468_vm0, %v7622_v0  ;;  %494 = vst.msk [vmem:[#allocation2 + $0xc8] sm:$0xff] %vm468_vm0, %v7622_v0  ;;  %v930_v14 = vld [vmem:[%s7871_s27 + $0x18] sm:$0x7f]  ;;  %v6279_v28 = vld [vmem:[%s7871_s27 + $0x28] sm:$0x7f] }
  0x62   : > { %495 = vst.msk [vmem:[#allocation2 + $0xd0] sm:$0xff] %vm468_vm0, %v7622_v0  ;;  %496 = vst.msk [vmem:[#allocation2 + $0xd8] sm:$0xff] %vm468_vm0, %v7622_v0  ;;  %v504_v15 = vld [vmem:[%s7871_s27 + $0x18] sm:$0x7f]  ;;  %v932_v29 = vld [vmem:[%s7871_s27 + $0x28] sm:$0x7f] }
  0x63   : > { %497 = vst.msk [vmem:[#allocation2 + $0xe0] sm:$0xff] %vm468_vm0, %v7622_v0  ;;  %498 = vst.msk [vmem:[#allocation2 + $0xe8] sm:$0xff] %vm468_vm0, %v7622_v0  ;;  %626 = vrot.lane.b32.xlu1 %v1122_v2, %s7625_s17  ;;  %624 = vrot.lane.b32.xlu0 %v1121_v1, %s7625_s17  ;;  %v6307_v18 = vld [vmem:[%s7871_s27 + $0x18] sm:$0xff]  ;;  %v506_v30 = vld [vmem:[%s7871_s27 + $0x28] sm:$0x7f]  ;;  %p9962_p1 = scmp.ne.s32.totalorder %s9791_s18, 0 }
  0x64   : > { %499 = vst.msk [vmem:[#allocation2 + $0xf0] sm:$0xff] %vm468_vm0, %v7622_v0  ;;  %500 = vst.msk [vmem:[#allocation2 + $0xf8] sm:$0xff] %vm468_vm0, %v7622_v0  ;;  %v6336_v22 = vld [vmem:[%s7871_s27 + $0x11] sm:$0xff]  ;;  %v6337_v24 = vld [vmem:[%s7871_s27 + $0x19] sm:$0x7f]  ;;  %s7641_s29 = smov [#allocation13]  }
  0x65   : > { %3415 = vst [vmem:[#allocation3] sm:$0xff] %v7622_v0  ;;  %3417 = vst [vmem:[#allocation3 + $0x10] sm:$0xff] %v7622_v0  ;;  %v1317_v25 = vld [vmem:[%s7871_s27 + $0x19] sm:$0x7f]  ;;  %v6309_v31 = vld [vmem:[%s7871_s27 + $0x28] sm:$0xff] }
  0x66   : > { %3419 = vst [vmem:[#allocation3 + $0x20] sm:$0xff] %v7622_v0  ;;  %3421 = vst [vmem:[#allocation3 + $0x30] sm:$0xff] %v7622_v0  ;;  %v748_v26 = vld [vmem:[%s7871_s27 + $0x19] sm:$0x7f]  ;;  %v6338_v32 = vld [vmem:[%s7871_s27 + $0x21] sm:$0xff] }
  0x67   : > { %3423 = vst [vmem:[#allocation3 + $0x40] sm:$0xff] %v7622_v0  ;;  %3425 = vst [vmem:[#allocation3 + $0x50] sm:$0xff] %v7622_v0  ;;  %1380 = vrot.lane.b32.xlu1 %v1315_v7, %s7626_s19  ;;  %1378 = vrot.lane.b32.xlu0 %v1314_v8, %s7626_s19  ;;  %v6339_v33 = vld [vmem:[%s7871_s27 + $0x29] sm:$0x7f]  ;;  %v7987_v36 = vld [vmem:[%s7871_s27 + $0x70] sm:$0xff] }
  0x68   : > { %3427 = vst [vmem:[#allocation3 + $0x60] sm:$0xff] %v7622_v0  ;;  %3429 = vst [vmem:[#allocation3 + $0x70] sm:$0xff] %v7622_v0  ;;  %v1319_v34 = vld [vmem:[%s7871_s27 + $0x29] sm:$0x7f]  ;;  %v6281_v37 = vld [vmem:[%s7871_s27 + $0x38] sm:$0x7f] }
  0x69   : > { %4238 = vst [vmem:[#allocation4] sm:$0xff] %v7622_v0  ;;  %4239 = vst [vmem:[#allocation4 + $0x8] sm:$0xff] %v7622_v0  ;;  %v750_v35 = vld [vmem:[%s7871_s27 + $0x29] sm:$0x7f]  ;;  %v934_v38 = vld [vmem:[%s7871_s27 + $0x38] sm:$0x7f] }
  0x6a   : > { %4241 = vst [vmem:[#allocation4 + $0x14] sm:$0xff] %v7622_v0  ;;  %4242 = vst [vmem:[#allocation4 + $0x1c] sm:$0xff] %v7622_v0  ;;  %v508_v39 = vld [vmem:[%s7871_s27 + $0x38] sm:$0x7f]  ;;  %v8023_v47 = vld [vmem:[%s7871_s27 + $0x80] sm:$0xff] }
  0x6b   : > { %4244 = vst [vmem:[#allocation4 + $0x28] sm:$0xff] %v7622_v0  ;;  %4245 = vst [vmem:[#allocation4 + $0x30] sm:$0xff] %v7622_v0  ;;  %807 = vrot.lane.b32.xlu1 %v746_v11, %s7627_s16  ;;  %805 = vrot.lane.b32.xlu0 %v1314_v8, %s7627_s16  ;;  %v6311_v40 = vld [vmem:[%s7871_s27 + $0x38] sm:$0xff]  ;;  %v6283_v48 = vld [vmem:[%s7871_s27 + $0x48] sm:$0x7f] }
  0x6c   : > { %4247 = vst [vmem:[#allocation4 + $0x3c] sm:$0xff] %v7622_v0  ;;  %4248 = vst [vmem:[#allocation4 + $0x44] sm:$0xff] %v7622_v0  ;;  %v6340_v41 = vld [vmem:[%s7871_s27 + $0x31] sm:$0xff]  ;;  %v6341_v42 = vld [vmem:[%s7871_s27 + $0x39] sm:$0x7f] }
  0x6d   : > { %533 = vst.msk [vmem:[#allocation2 + $0x11] sm:$0xff] %vm532_vm1, %v1121_v1  ;;  %536 = vst.msk [vmem:[#allocation2 + $0x21] sm:$0xff] %vm532_vm1, %v929_v4  ;;  %v1321_v43 = vld [vmem:[%s7871_s27 + $0x39] sm:$0x7f]  ;;  %v936_v49 = vld [vmem:[%s7871_s27 + $0x48] sm:$0x7f] }
  0x6e   : > { %538 = vst.msk [vmem:[#allocation2 + $0x31] sm:$0xff] %vm532_vm1, %v7884_v5  ;;  %540 = vst.msk [vmem:[#allocation2 + $0x41] sm:$0xff] %vm532_vm1, %v7889_v6  ;;  %v752_v44 = vld [vmem:[%s7871_s27 + $0x39] sm:$0x7f]  ;;  %v510_v52 = vld [vmem:[%s7871_s27 + $0x48] sm:$0x7f] }
  0x6f   : > { %542 = vst.msk [vmem:[#allocation2 + $0x51] sm:$0xff] %vm532_vm1, %v7898_v9  ;;  %995 = vrot.lane.b32.xlu1 %v929_v4, %s7624_s14  ;;  %1569 = vrot.lane.b32.xlu0 %v929_v4, %s9767_s21  ;;  %544 = vst.msk [vmem:[#allocation2 + $0x61] sm:$0xff] %vm532_vm1, %v7910_v12  ;;  %v6313_v55 = vld [vmem:[%s7871_s27 + $0x48] sm:$0xff]  ;;  %v8075_v8 = vld [vmem:[%s7871_s27 + $0x90] sm:$0xff] }
  0x70   : > { %535 = vst.msk [vmem:[#allocation2 + $0x19] sm:$0x7f] %vm9775_vm2, %v502_v10  ;;  %537 = vst.msk [vmem:[#allocation2 + $0x29] sm:$0x7f] %vm9775_vm2, %v504_v15  ;;  %v6342_v58 = vld [vmem:[%s7871_s27 + $0x41] sm:$0xff]  ;;  %v6315_v17 = vld [vmem:[%s7871_s27 + $0x58] sm:$0xff] }
  0x71   : > { %vm6688_vm5 = vmpackc.low %vm2193_vm3, %vm7630_vm4  ;;  %546 = vst.msk [vmem:[#allocation2 + $0x71] sm:$0xff] %vm532_vm1, %v7952_v27  ;;  %v6343_v63 = vld [vmem:[%s7871_s27 + $0x49] sm:$0x7f]  ;;  %vm9773_vm3 = vcmask 195752   ;;  %vm9769_vm4 = vcmask 220352   ;;  %v6344_v21 = vld [vmem:[%s7871_s27 + $0x51] sm:$0xff] }
  0x72   : > { %6689 = vmatprep.subr.msk.bf16.mxu0 %vm6688_vm5, %v6687_v23  ;;  %539 = vst.msk [vmem:[#allocation2 + $0x39] sm:$0x7f] %vm9775_vm2, %v506_v30  ;;  %541 = vst.msk [vmem:[#allocation2 + $0x49] sm:$0x7f] %vm9775_vm2, %v508_v39  ;;  %v1323_v0 = vld [vmem:[%s7871_s27 + $0x49] sm:$0x7f] }
  0x73   : > { %1571 = vrot.lane.b32.xlu1 %v6277_v13, %s9767_s21  ;;  %997 = vrot.lane.b32.xlu0 %v930_v14, %s7624_s14  ;;  %s9801_s21 = smov 18   ;;  %548 = vst.msk [vmem:[#allocation2 + $0x81] sm:$0xff] %vm532_vm1, %v7987_v36  ;;  %550 = vst.msk [vmem:[#allocation2 + $0x91] sm:$0xff] %vm532_vm1, %v8023_v47  ;;  %v754_v3 = vld [vmem:[%s7871_s27 + $0x49] sm:$0x7f] }
  0x74   : > { %6692 = vmatpush3.bf16.msk.msra.mxu0 %vm6688_vm5, %v6687_v23  ;;  %543 = vst.msk [vmem:[#allocation2 + $0x59] sm:$0x7f] %vm9775_vm2, %v510_v52  ;;  %v938_v10 = vld [vmem:[%s7871_s27 + $0x58] sm:$0x7f]  ;;  %vm2024_vm5 = vcmask 219328  }
  0x75   : > { %552 = vst.msk [vmem:[#allocation2 + $0xa1] sm:$0xff] %vm532_vm1, %v8075_v8  ;;  %v512_v14 = vld [vmem:[%s7871_s27 + $0x58] sm:$0x7f]  ;;  %v940_v39 = vld [vmem:[%s7871_s27 + $0x68] sm:$0x7f] }
  0x76   : > { %545 = vst.msk [vmem:[#allocation2 + $0x69] sm:$0x7f] %vm9775_vm2, %v512_v14  ;;  %v6348_v14 = vld [vmem:[%s7871_s27 + $0x71] sm:$0xff] }
  0x77   : > { %1189 = vrot.lane.b32.xlu1 %v929_v4, %s7623_s15  ;;  %1751 = vrot.lane.b32.xlu0 %v929_v4, %s7629_s24 }
  0x7b   : > { %1753 = vrot.lane.b32.xlu1 %v6307_v18, %s7629_s24  ;;  %1191 = vrot.lane.b32.xlu0 %v6307_v18, %s7623_s15 }
  0x7f   : > { %628 = vrot.lane.b32.xlu1 %v929_v4, %s7625_s17  ;;  %1932 = vrot.lane.b32.xlu0 %v6336_v22, %s7631_s22 }
  0x83   : > { %1382 = vrot.lane.b32.xlu1 %v6336_v22, %s7626_s19  ;;  %630 = vrot.lane.b32.xlu0 %v6307_v18, %s7625_s17 }
  0x87   : > { %1934 = vrot.lane.b32.xlu1 %v6337_v24, %s7631_s22  ;;  %1384 = vrot.lane.b32.xlu0 %v1317_v25, %s7626_s19 }
  0x8b   : > { %811 = vrot.lane.b32.xlu1 %v748_v26, %s7627_s16  ;;  %809 = vrot.lane.b32.xlu0 %v6336_v22, %s7627_s16 }
  0x8f   : > { %999 = vrot.lane.b32.xlu1 %v7884_v5, %s7624_s14  ;;  %1573 = vrot.lane.b32.xlu0 %v7884_v5, %s9801_s21 }
  0x93   : > { %1575 = vrot.lane.b32.xlu1 %v6279_v28, %s9801_s21  ;;  %1001 = vrot.lane.b32.xlu0 %v932_v29, %s7624_s14  ;;  %v6345_v28 = vld [vmem:[%s7871_s27 + $0x59] sm:$0x7f] }
  0x94   : > { %v1325_v29 = vld [vmem:[%s7871_s27 + $0x59] sm:$0x7f] }
  0x97   : > { %1193 = vrot.lane.b32.xlu1 %v7884_v5, %s7623_s15  ;;  %1755 = vrot.lane.b32.xlu0 %v7884_v5, %s7629_s24 }
  0x9b   : > { %1757 = vrot.lane.b32.xlu1 %v6309_v31, %s7629_s24  ;;  %1195 = vrot.lane.b32.xlu0 %v6309_v31, %s7623_s15 }
  0x9f   : > { %632 = vrot.lane.b32.xlu1 %v7884_v5, %s7625_s17  ;;  %1936 = vrot.lane.b32.xlu0 %v6338_v32, %s7631_s22 }
  0xa3   : > { %1386 = vrot.lane.b32.xlu1 %v6338_v32, %s7626_s19  ;;  %634 = vrot.lane.b32.xlu0 %v6309_v31, %s7625_s17  ;;  %v756_v31 = vld [vmem:[%s7871_s27 + $0x59] sm:$0x7f] }
  0xa7   : > { %1938 = vrot.lane.b32.xlu1 %v6339_v33, %s7631_s22  ;;  %1388 = vrot.lane.b32.xlu0 %v1319_v34, %s7626_s19 }
  0xab   : > { %815 = vrot.lane.b32.xlu1 %v750_v35, %s7627_s16  ;;  %813 = vrot.lane.b32.xlu0 %v6338_v32, %s7627_s16 }
  0xaf   : > { %1003 = vrot.lane.b32.xlu1 %v7889_v6, %s7624_s14  ;;  %1577 = vrot.lane.b32.xlu0 %v7889_v6, %s9801_s21 }
  0xb3   : > { %1579 = vrot.lane.b32.xlu1 %v6281_v37, %s9801_s21  ;;  %1005 = vrot.lane.b32.xlu0 %v934_v38, %s7624_s14  ;;  %v8128_v37 = vld [vmem:[%s7871_s27 + $0xa0] sm:$0xff]  ;;  %v6287_v38 = vld [vmem:[%s7871_s27 + $0x68] sm:$0x7f] }
  0xb4   : > { %554 = vst.msk [vmem:[#allocation2 + $0xb1] sm:$0xff] %vm532_vm1, %v8128_v37 }
  0xb7   : > { %1197 = vrot.lane.b32.xlu1 %v7889_v6, %s7623_s15  ;;  %1759 = vrot.lane.b32.xlu0 %v7889_v6, %s7629_s24 }
  0xbb   : > { %1761 = vrot.lane.b32.xlu1 %v6311_v40, %s7629_s24  ;;  %1199 = vrot.lane.b32.xlu0 %v6311_v40, %s7623_s15 }
  0xbf   : > { %636 = vrot.lane.b32.xlu1 %v7889_v6, %s7625_s17  ;;  %1940 = vrot.lane.b32.xlu0 %v6340_v41, %s7631_s22 }
  0xc3   : > { %1390 = vrot.lane.b32.xlu1 %v6340_v41, %s7626_s19  ;;  %638 = vrot.lane.b32.xlu0 %v6311_v40, %s7625_s17 }
  0xc7   : > { %1942 = vrot.lane.b32.xlu1 %v6341_v42, %s7631_s22  ;;  %1392 = vrot.lane.b32.xlu0 %v1321_v43, %s7626_s19  ;;  %v514_v42 = vld [vmem:[%s7871_s27 + $0x68] sm:$0x7f] }
  0xc8   : > { %547 = vst.msk [vmem:[#allocation2 + $0x79] sm:$0x7f] %vm9775_vm2, %v514_v42  ;;  %v6350_v42 = vld [vmem:[%s7871_s27 + $0x81] sm:$0xff] }
  0xcb   : > { %819 = vrot.lane.b32.xlu1 %v752_v44, %s7627_s16  ;;  %817 = vrot.lane.b32.xlu0 %v6340_v41, %s7627_s16 }
  0xcd   : > { %v1186_v45 = vpop.permute.xlu1 %1185  ;;  %v992_v46 = vpop.permute.xlu0 %991 }
  0xce   : > { %1088 = vst.msk [vmem:[#allocation2 + $0x1] sm:$0xff] %vm1087_vm6, %v992_v46 }
  0xcf   : > { %1007 = vrot.lane.b32.xlu1 %v7898_v9, %s7624_s14  ;;  %1581 = vrot.lane.b32.xlu0 %v7898_v9, %s9801_s21  ;;  %1282 = vst.msk [vmem:[#allocation2] sm:$0xff] %vm9774_vm7, %v1186_v45  ;;  %v6317_v45 = vld [vmem:[%s7871_s27 + $0x68] sm:$0xff] }
  0xd1   : > { %v1188_v50 = vpop.permute.xlu1 %1187  ;;  %v994_v51 = vpop.permute.xlu0 %993 }
  0xd2   : > { %1090 = vst.msk [vmem:[#allocation2 + $0x9] sm:$0x7f] %vm9771_vm8, %v994_v51 }
  0xd3   : > { %1583 = vrot.lane.b32.xlu1 %v6283_v48, %s9801_s21  ;;  %1009 = vrot.lane.b32.xlu0 %v936_v49, %s7624_s14  ;;  %1283 = vst.msk [vmem:[#allocation2 + $0x8] sm:$0xff] %vm9774_vm7, %v1188_v50  ;;  %v6346_v50 = vld [vmem:[%s7871_s27 + $0x61] sm:$0xff] }
  0xd5   : > { %v627_v53 = vpop.permute.xlu1 %626  ;;  %v625_v54 = vpop.permute.xlu0 %624 }
  0xd6   : > { %716 = vst.msk [vmem:[#allocation2 + $0x18] sm:$0xff] %vm714_vm9, %v627_v53  ;;  %715 = vst.msk [vmem:[#allocation2 + $0x10] sm:$0xff] %vm714_vm9, %v625_v54 }
  0xd7   : > { %1201 = vrot.lane.b32.xlu1 %v7898_v9, %s7623_s15  ;;  %1763 = vrot.lane.b32.xlu0 %v7898_v9, %s7629_s24 }
  0xd9   : > { %v1381_v56 = vpop.permute.xlu1 %1380  ;;  %v1379_v57 = vpop.permute.xlu0 %1378 }
  0xda   : > { %1477 = vst.msk [vmem:[#allocation2 + $0x8] sm:$0x7f] %vm1476_vm10, %v1381_v56  ;;  %v6347_v56 = vld [vmem:[%s7871_s27 + $0x69] sm:$0x7f] }
  0xdb   : > { %1475 = vst.msk [vmem:[#allocation2] sm:$0xff] %vm1474_vm11, %v1379_v57  ;;  %1765 = vrot.lane.b32.xlu1 %v6313_v55, %s7629_s24  ;;  %1203 = vrot.lane.b32.xlu0 %v6313_v55, %s7623_s15  ;;  %v1327_v57 = vld [vmem:[%s7871_s27 + $0x69] sm:$0x7f] }
  0xdd   : > { %v808_v59 = vpop.permute.xlu1 %807  ;;  %v806_v60 = vpop.permute.xlu0 %805 }
  0xde   : > { %898 = vst.msk [vmem:[#allocation2 + $0x18] sm:$0x7f] %vm897_vm12, %v808_v59  ;;  %v758_v59 = vld [vmem:[%s7871_s27 + $0x69] sm:$0x7f] }
  0xdf   : > { %896 = vst.msk [vmem:[#allocation2 + $0x10] sm:$0xff] %vm895_vm13, %v806_v60  ;;  %640 = vrot.lane.b32.xlu1 %v7898_v9, %s7625_s17  ;;  %1944 = vrot.lane.b32.xlu0 %v6342_v58, %s7631_s22  ;;  %v6285_v9 = vld [vmem:[%s7871_s27 + $0x58] sm:$0x7f] }
  0xe1   : > { %v996_v61 = vpop.permute.xlu1 %995  ;;  %v1570_v62 = vpop.permute.xlu0 %1569 }
  0xe2   : > { %1091 = vst.msk [vmem:[#allocation2 + $0x11] sm:$0xff] %vm1087_vm6, %v996_v61 }
  0xe3   : > { %1660 = vst.msk [vmem:[#allocation2 + $0x1] sm:$0xff] %vm9776_vm14, %v1570_v62  ;;  %1394 = vrot.lane.b32.xlu1 %v6342_v58, %s7626_s19  ;;  %642 = vrot.lane.b32.xlu0 %v6313_v55, %s7625_s17 }
  0xe5   : > { %v1572_v1 = vpop.permute.xlu1 %1571  ;;  %v998_v2 = vpop.permute.xlu0 %997 }
  0xe6   : > { %1662 = vst.msk [vmem:[#allocation2 + $0x9] sm:$0x7f] %vm9772_vm15, %v1572_v1  ;;  %v6289_v1 = vld [vmem:[%s7871_s27 + $0x78] sm:$0x7f] }
  0xe7   : > { %1092 = vst.msk [vmem:[#allocation2 + $0x19] sm:$0x7f] %vm9771_vm8, %v998_v2  ;;  %1946 = vrot.lane.b32.xlu1 %v6343_v63, %s7631_s22  ;;  %1396 = vrot.lane.b32.xlu0 %v1323_v0, %s7626_s19  ;;  %v8181_v0 = vld [vmem:[%s7871_s27 + $0xb0] sm:$0xff]  ;;  %v942_v2 = vld [vmem:[%s7871_s27 + $0x78] sm:$0x7f] }
  0xe8   : > { %556 = vst.msk [vmem:[#allocation2 + $0xc1] sm:$0xff] %vm532_vm1, %v8181_v0 }
  0xe9   : > { %v1190_v4 = vpop.permute.xlu1 %1189  ;;  %v1752_v5 = vpop.permute.xlu0 %1751 }
  0xea   : > { %1284 = vst.msk [vmem:[#allocation2 + $0x10] sm:$0xff] %vm9774_vm7, %v1190_v4 }
  0xeb   : > { %1842 = vst.msk [vmem:[#allocation2] sm:$0xff] %vm9773_vm3, %v1752_v5  ;;  %823 = vrot.lane.b32.xlu1 %v754_v3, %s7627_s16  ;;  %821 = vrot.lane.b32.xlu0 %v6342_v58, %s7627_s16  ;;  %v516_v5 = vld [vmem:[%s7871_s27 + $0x78] sm:$0x7f] }
  0xec   : > { %549 = vst.msk [vmem:[#allocation2 + $0x89] sm:$0x7f] %vm9775_vm2, %v516_v5  ;;  %v6352_v5 = vld [vmem:[%s7871_s27 + $0x91] sm:$0xff] }
  0xed   : > { %v1754_v6 = vpop.permute.xlu1 %1753  ;;  %v1192_v7 = vpop.permute.xlu0 %1191 }
  0xee   : > { %1843 = vst.msk [vmem:[#allocation2 + $0x8] sm:$0xff] %vm9773_vm3, %v1754_v6 }
  0xef   : > { %1285 = vst.msk [vmem:[#allocation2 + $0x18] sm:$0xff] %vm9774_vm7, %v1192_v7  ;;  %1011 = vrot.lane.b32.xlu1 %v7910_v12, %s7624_s14  ;;  %1585 = vrot.lane.b32.xlu0 %v7910_v12, %s9801_s21 }
  0xf1   : > { %v629_v11 = vpop.permute.xlu1 %628  ;;  %v1933_v13 = vpop.permute.xlu0 %1932 }
  0xf2   : > { %717 = vst.msk [vmem:[#allocation2 + $0x20] sm:$0xff] %vm714_vm9, %v629_v11 }
  0xf3   : > { %2023 = vst.msk [vmem:[#allocation2] sm:$0xff] %vm9769_vm4, %v1933_v13  ;;  %1587 = vrot.lane.b32.xlu1 %v6285_v9, %s9801_s21  ;;  %1013 = vrot.lane.b32.xlu0 %v938_v10, %s7624_s14  ;;  %v6319_v9 = vld [vmem:[%s7871_s27 + $0x78] sm:$0xff] }
  0xf5   : > { %v1383_v15 = vpop.permute.xlu1 %1382  ;;  %v631_v16 = vpop.permute.xlu0 %630 }
  0xf6   : > { %1478 = vst.msk [vmem:[#allocation2 + $0x10] sm:$0xff] %vm1474_vm11, %v1383_v15 }
  0xf7   : > { %718 = vst.msk [vmem:[#allocation2 + $0x28] sm:$0xff] %vm714_vm9, %v631_v16  ;;  %1205 = vrot.lane.b32.xlu1 %v7910_v12, %s7623_s15  ;;  %1767 = vrot.lane.b32.xlu0 %v7910_v12, %s7629_s24 }
  0xf9   : > { %v1935_v18 = vpop.permute.xlu1 %1934  ;;  %v1385_v19 = vpop.permute.xlu0 %1384 }
  0xfa   : > { %v2054_v20 = vld [vmem:[#allocation2] sm:$0xff]  ;;  %2025 = vst.msk [vmem:[#allocation2 + $0x8] sm:$0x7f] %vm2024_vm5, %v1935_v18 }
  0xfb   : > { %1479 = vst.msk [vmem:[#allocation2 + $0x18] sm:$0x7f] %vm1476_vm10, %v1385_v19  ;;  %6616 = vmatprep.mubr.msk.f32.mxu0 %vm468_vm0, %v2054_v20  ;;  %1769 = vrot.lane.b32.xlu1 %v6315_v17, %s7629_s24  ;;  %v6349_v20 = vld [vmem:[%s7871_s27 + $0x79] sm:$0x7f] }
  0xfc   : > { %1207 = vrot.lane.b32.xlu0 %v6315_v17, %s7623_s15 }
  0xfd   : > { %v812_v22 = vpop.permute.xlu1 %811  ;;  %v810_v23 = vpop.permute.xlu0 %809 }
  0xfe   : > { %900 = vst.msk [vmem:[#allocation2 + $0x28] sm:$0x7f] %vm897_vm12, %v812_v22 }
  0xff   : > { %899 = vst.msk [vmem:[#allocation2 + $0x20] sm:$0xff] %vm895_vm13, %v810_v23  ;;  %644 = vrot.lane.b32.xlu1 %v7910_v12, %s7625_s17  ;;  %v760_v23 = vld [vmem:[%s7871_s27 + $0x79] sm:$0x7f] }
 0x100   : > { %1948 = vrot.lane.b32.xlu0 %v6344_v21, %s7631_s22 }
 0x101   : > { %v1000_v24 = vpop.permute.xlu1 %999  ;;  %v1574_v25 = vpop.permute.xlu0 %1573  ;;  %v2055_v26 = vld [vmem:[#allocation2 + $0x8] sm:$0xff] }
 0x102   : > { %1093 = vst.msk [vmem:[#allocation2 + $0x21] sm:$0xff] %vm1087_vm6, %v1000_v24  ;;  %6617 = vmatmul.mubr.msk.f32.vlgmr.msra.gmra.mrb[0].mxu0 %vm468_vm0, %v2055_v26 }
 0x103   : > { %1663 = vst.msk [vmem:[#allocation2 + $0x11] sm:$0xff] %vm9776_vm14, %v1574_v25  ;;  %1398 = vrot.lane.b32.xlu1 %v6344_v21, %s7626_s19 }
 0x104   : > { %646 = vrot.lane.b32.xlu0 %v6315_v17, %s7625_s17 }
 0x105   : > { %v1576_v30 = vpop.permute.xlu1 %1575  ;;  %v1002_v12 = vpop.permute.xlu0 %1001 }
 0x106   : > { %1664 = vst.msk [vmem:[#allocation2 + $0x19] sm:$0x7f] %vm9772_vm15, %v1576_v30  ;;  %v6291_v30 = vld [vmem:[%s7871_s27 + $0x88] sm:$0x7f] }
 0x107   : > { %1094 = vst.msk [vmem:[#allocation2 + $0x29] sm:$0x7f] %vm9771_vm8, %v1002_v12  ;;  %1950 = vrot.lane.b32.xlu1 %v6345_v28, %s7631_s22  ;;  %v944_v12 = vld [vmem:[%s7871_s27 + $0x88] sm:$0x7f] }
 0x108   : > { %1400 = vrot.lane.b32.xlu0 %v1325_v29, %s7626_s19  ;;  %v8234_v29 = vld [vmem:[%s7871_s27 + $0xc0] sm:$0xff] }
 0x109   : > { %v1194_v32 = vpop.permute.xlu1 %1193  ;;  %v1756_v33 = vpop.permute.xlu0 %1755  ;;  %558 = vst.msk [vmem:[#allocation2 + $0xd1] sm:$0xff] %vm532_vm1, %v8234_v29 }
 0x10a   : > { %1286 = vst.msk [vmem:[#allocation2 + $0x20] sm:$0xff] %vm9774_vm7, %v1194_v32 }
 0x10b   : > { %1844 = vst.msk [vmem:[#allocation2 + $0x10] sm:$0xff] %vm9773_vm3, %v1756_v33  ;;  %827 = vrot.lane.b32.xlu1 %v756_v31, %s7627_s16  ;;  %v518_v33 = vld [vmem:[%s7871_s27 + $0x88] sm:$0x7f] }
 0x10c   : > { %825 = vrot.lane.b32.xlu0 %v6344_v21, %s7627_s16  ;;  %v1329_v21 = vld [vmem:[%s7871_s27 + $0x79] sm:$0x7f]  ;;  %551 = vst.msk [vmem:[#allocation2 + $0x99] sm:$0x7f] %vm9775_vm2, %v518_v33 }
 0x10d   : > { %v1758_v34 = vpop.permute.xlu1 %1757  ;;  %v1196_v35 = vpop.permute.xlu0 %1195 }
 0x10e   : > { %1845 = vst.msk [vmem:[#allocation2 + $0x18] sm:$0xff] %vm9773_vm3, %v1758_v34 }
 0x10f   : > { %1287 = vst.msk [vmem:[#allocation2 + $0x28] sm:$0xff] %vm9774_vm7, %v1196_v35  ;;  %1015 = vrot.lane.b32.xlu1 %v7952_v27, %s7624_s14 }
 0x110   : > { %1589 = vrot.lane.b32.xlu0 %v7952_v27, %s9801_s21 }
 0x111   : > { %v633_v40 = vpop.permute.xlu1 %632  ;;  %v1937_v41 = vpop.permute.xlu0 %1936 }
 0x112   : > { %719 = vst.msk [vmem:[#allocation2 + $0x30] sm:$0xff] %vm714_vm9, %v633_v40 }
 0x113   : > { %2026 = vst.msk [vmem:[#allocation2 + $0x10] sm:$0xff] %vm9769_vm4, %v1937_v41  ;;  %1591 = vrot.lane.b32.xlu1 %v6287_v38, %s9801_s21  ;;  %v6321_v38 = vld [vmem:[%s7871_s27 + $0x88] sm:$0xff] }
 0x114   : > { %1017 = vrot.lane.b32.xlu0 %v940_v39, %s7624_s14 }
 0x115   : > { %v1387_v43 = vpop.permute.xlu1 %1386  ;;  %v635_v44 = vpop.permute.xlu0 %634 }
 0x116   : > { %1480 = vst.msk [vmem:[#allocation2 + $0x20] sm:$0xff] %vm1474_vm11, %v1387_v43 }
 0x117   : > { %720 = vst.msk [vmem:[#allocation2 + $0x38] sm:$0xff] %vm714_vm9, %v635_v44  ;;  %1209 = vrot.lane.b32.xlu1 %v7952_v27, %s7623_s15 }
 0x118   : > { %1771 = vrot.lane.b32.xlu0 %v7952_v27, %s7629_s24 }
 0x119   : > { %v1939_v46 = vpop.permute.xlu1 %1938  ;;  %v1389_v48 = vpop.permute.xlu0 %1388 }
 0x11a   : > { %v2056_v49 = vld [vmem:[#allocation2 + $0x10] sm:$0xff]  ;;  %2027 = vst.msk [vmem:[#allocation2 + $0x18] sm:$0x7f] %vm2024_vm5, %v1939_v46 }
 0x11b   : > { %1481 = vst.msk [vmem:[#allocation2 + $0x28] sm:$0x7f] %vm1476_vm10, %v1389_v48  ;;  %6619 = vmatprep.mubr.msk.f32.mxu0 %vm468_vm0, %v2056_v49  ;;  %1773 = vrot.lane.b32.xlu1 %v6317_v45, %s7629_s24  ;;  %v6351_v49 = vld [vmem:[%s7871_s27 + $0x89] sm:$0x7f] }
 0x11c   : > { %1211 = vrot.lane.b32.xlu0 %v6317_v45, %s7623_s15 }
 0x11d   : > { %v816_v51 = vpop.permute.xlu1 %815  ;;  %v814_v52 = vpop.permute.xlu0 %813 }
 0x11e   : > { %902 = vst.msk [vmem:[#allocation2 + $0x38] sm:$0x7f] %vm897_vm12, %v816_v51 }
 0x11f   : > { %901 = vst.msk [vmem:[#allocation2 + $0x30] sm:$0xff] %vm895_vm13, %v814_v52  ;;  %648 = vrot.lane.b32.xlu1 %v7952_v27, %s7625_s17  ;;  %v762_v52 = vld [vmem:[%s7871_s27 + $0x89] sm:$0x7f] }
 0x120   : > { %1952 = vrot.lane.b32.xlu0 %v6346_v50, %s7631_s22 }
 0x121   : > { %v1004_v53 = vpop.permute.xlu1 %1003  ;;  %v1578_v54 = vpop.permute.xlu0 %1577  ;;  %v2057_v55 = vld [vmem:[#allocation2 + $0x18] sm:$0xff] }
 0x122   : > { %1095 = vst.msk [vmem:[#allocation2 + $0x31] sm:$0xff] %vm1087_vm6, %v1004_v53  ;;  %6620 = vmatmul.mubr.msk.f32.gmra.mrb[2].mxu0 %vm468_vm0, %v2057_v55 }
 0x123   : > { %1665 = vst.msk [vmem:[#allocation2 + $0x21] sm:$0xff] %vm9776_vm14, %v1578_v54  ;;  %1402 = vrot.lane.b32.xlu1 %v6346_v50, %s7626_s19 }
 0x124   : > { %650 = vrot.lane.b32.xlu0 %v6317_v45, %s7625_s17 }
 0x125   : > { %v1580_v58 = vpop.permute.xlu1 %1579  ;;  %v1006_v27 = vpop.permute.xlu0 %1005 }
 0x126   : > { %1666 = vst.msk [vmem:[#allocation2 + $0x29] sm:$0x7f] %vm9772_vm15, %v1580_v58  ;;  %v6293_v58 = vld [vmem:[%s7871_s27 + $0x98] sm:$0x7f] }
 0x127   : > { %1096 = vst.msk [vmem:[#allocation2 + $0x39] sm:$0x7f] %vm9771_vm8, %v1006_v27  ;;  %1954 = vrot.lane.b32.xlu1 %v6347_v56, %s7631_s22  ;;  %v946_v27 = vld [vmem:[%s7871_s27 + $0x98] sm:$0x7f] }
 0x128   : > { %1404 = vrot.lane.b32.xlu0 %v1327_v57, %s7626_s19  ;;  %v8287_v57 = vld [vmem:[%s7871_s27 + $0xd0] sm:$0xff] }
 0x129   : > { %v1198_v60 = vpop.permute.xlu1 %1197  ;;  %v1760_v61 = vpop.permute.xlu0 %1759  ;;  %560 = vst.msk [vmem:[#allocation2 + $0xe1] sm:$0xff] %vm532_vm1, %v8287_v57 }
 0x12a   : > { %1288 = vst.msk [vmem:[#allocation2 + $0x30] sm:$0xff] %vm9774_vm7, %v1198_v60 }
 0x12b   : > { %1846 = vst.msk [vmem:[#allocation2 + $0x20] sm:$0xff] %vm9773_vm3, %v1760_v61  ;;  %831 = vrot.lane.b32.xlu1 %v758_v59, %s7627_s16 }
 0x12c   : > { %829 = vrot.lane.b32.xlu0 %v6346_v50, %s7627_s16  ;;  %v1331_v50 = vld [vmem:[%s7871_s27 + $0x89] sm:$0x7f] }
 0x12d   : > { %v1762_v62 = vpop.permute.xlu1 %1761  ;;  %v1200_v63 = vpop.permute.xlu0 %1199 }
 0x12e   : > { %1847 = vst.msk [vmem:[#allocation2 + $0x28] sm:$0xff] %vm9773_vm3, %v1762_v62 }
 0x12f   : > { %1289 = vst.msk [vmem:[#allocation2 + $0x38] sm:$0xff] %vm9774_vm7, %v1200_v63  ;;  %1019 = vrot.lane.b32.xlu1 %v7987_v36, %s7624_s14  ;;  %v520_v63 = vld [vmem:[%s7871_s27 + $0x98] sm:$0x7f] }
 0x130   : > { %1593 = vrot.lane.b32.xlu0 %v7987_v36, %s9801_s21  ;;  %553 = vst.msk [vmem:[#allocation2 + $0xa9] sm:$0x7f] %vm9775_vm2, %v520_v63 }
 0x131   : > { %v637_v3 = vpop.permute.xlu1 %636  ;;  %v1941_v4 = vpop.permute.xlu0 %1940 }
 0x132   : > { %721 = vst.msk [vmem:[#allocation2 + $0x40] sm:$0xff] %vm714_vm9, %v637_v3 }
 0x133   : > { %2028 = vst.msk [vmem:[#allocation2 + $0x20] sm:$0xff] %vm9769_vm4, %v1941_v4  ;;  %1595 = vrot.lane.b32.xlu1 %v6289_v1, %s9801_s21  ;;  %v6323_v1 = vld [vmem:[%s7871_s27 + $0x98] sm:$0xff] }
 0x134   : > { %1021 = vrot.lane.b32.xlu0 %v942_v2, %s7624_s14 }
 0x135   : > { %v1391_v6 = vpop.permute.xlu1 %1390  ;;  %v639_v7 = vpop.permute.xlu0 %638 }
 0x136   : > { %1482 = vst.msk [vmem:[#allocation2 + $0x30] sm:$0xff] %vm1474_vm11, %v1391_v6 }
 0x137   : > { %722 = vst.msk [vmem:[#allocation2 + $0x48] sm:$0xff] %vm714_vm9, %v639_v7  ;;  %1213 = vrot.lane.b32.xlu1 %v7987_v36, %s7623_s15 }
 0x138   : > { %1775 = vrot.lane.b32.xlu0 %v7987_v36, %s7629_s24 }
 0x139   : > { %v1943_v10 = vpop.permute.xlu1 %1942  ;;  %v1393_v11 = vpop.permute.xlu0 %1392 }
 0x13a   : > { %v2058_v13 = vld [vmem:[#allocation2 + $0x20] sm:$0xff]  ;;  %2029 = vst.msk [vmem:[#allocation2 + $0x28] sm:$0x7f] %vm2024_vm5, %v1943_v10 }
 0x13b   : > { %1483 = vst.msk [vmem:[#allocation2 + $0x38] sm:$0x7f] %vm1476_vm10, %v1393_v11  ;;  %6622 = vmatprep.mubr.msk.f32.mxu0 %vm468_vm0, %v2058_v13  ;;  %1777 = vrot.lane.b32.xlu1 %v6319_v9, %s7629_s24  ;;  %v6353_v13 = vld [vmem:[%s7871_s27 + $0x99] sm:$0x7f] }
 0x13c   : > { %1215 = vrot.lane.b32.xlu0 %v6319_v9, %s7623_s15 }
 0x13d   : > { %v820_v15 = vpop.permute.xlu1 %819  ;;  %v818_v16 = vpop.permute.xlu0 %817 }
 0x13e   : > { %904 = vst.msk [vmem:[#allocation2 + $0x48] sm:$0x7f] %vm897_vm12, %v820_v15 }
 0x13f   : > { %903 = vst.msk [vmem:[#allocation2 + $0x40] sm:$0xff] %vm895_vm13, %v818_v16  ;;  %652 = vrot.lane.b32.xlu1 %v7987_v36, %s7625_s17  ;;  %v764_v16 = vld [vmem:[%s7871_s27 + $0x99] sm:$0x7f] }
 0x140   : > { %1956 = vrot.lane.b32.xlu0 %v6348_v14, %s7631_s22 }
 0x141   : > { %v1008_v17 = vpop.permute.xlu1 %1007  ;;  %v1582_v18 = vpop.permute.xlu0 %1581  ;;  %v2059_v19 = vld [vmem:[#allocation2 + $0x28] sm:$0xff] }
 0x142   : > { %1097 = vst.msk [vmem:[#allocation2 + $0x41] sm:$0xff] %vm1087_vm6, %v1008_v17  ;;  %6623 = vmatmul.mubr.msk.f32.gmra.mrb[4].mxu0 %vm468_vm0, %v2059_v19 }
 0x143   : > { %1667 = vst.msk [vmem:[#allocation2 + $0x31] sm:$0xff] %vm9776_vm14, %v1582_v18  ;;  %1406 = vrot.lane.b32.xlu1 %v6348_v14, %s7626_s19 }
 0x144   : > { %654 = vrot.lane.b32.xlu0 %v6319_v9, %s7625_s17 }
 0x145   : > { %v1584_v22 = vpop.permute.xlu1 %1583  ;;  %v1010_v36 = vpop.permute.xlu0 %1009 }
 0x146   : > { %1668 = vst.msk [vmem:[#allocation2 + $0x39] sm:$0x7f] %vm9772_vm15, %v1584_v22  ;;  %v948_v22 = vld [vmem:[%s7871_s27 + $0xa8] sm:$0x7f] }
 0x147   : > { %1098 = vst.msk [vmem:[#allocation2 + $0x49] sm:$0x7f] %vm9771_vm8, %v1010_v36  ;;  %1958 = vrot.lane.b32.xlu1 %v6349_v20, %s7631_s22 }
 0x148   : > { %1408 = vrot.lane.b32.xlu0 %v1329_v21, %s7626_s19  ;;  %v6295_v21 = vld [vmem:[%s7871_s27 + $0xa8] sm:$0x7f] }
 0x149   : > { %v1202_v24 = vpop.permute.xlu1 %1201  ;;  %v1764_v25 = vpop.permute.xlu0 %1763 }
 0x14a   : > { %1290 = vst.msk [vmem:[#allocation2 + $0x40] sm:$0xff] %vm9774_vm7, %v1202_v24  ;;  %v8346_v24 = vld [vmem:[%s7871_s27 + $0xe0] sm:$0xff] }
 0x14b   : > { %1848 = vst.msk [vmem:[#allocation2 + $0x30] sm:$0xff] %vm9773_vm3, %v1764_v25  ;;  %835 = vrot.lane.b32.xlu1 %v760_v23, %s7627_s16 }
 0x14c   : > { %833 = vrot.lane.b32.xlu0 %v6348_v14, %s7627_s16  ;;  %v1333_v14 = vld [vmem:[%s7871_s27 + $0x99] sm:$0x7f]  ;;  %562 = vst.msk [vmem:[#allocation2 + $0xf1] sm:$0xff] %vm532_vm1, %v8346_v24  ;;  %vm9802_vm1 = vcmask 220352  }
 0x14d   : > { %v1766_v26 = vpop.permute.xlu1 %1765  ;;  %v1204_v28 = vpop.permute.xlu0 %1203 }
 0x14e   : > { %1849 = vst.msk [vmem:[#allocation2 + $0x38] sm:$0xff] %vm9773_vm3, %v1766_v26 }
 0x14f   : > { %1291 = vst.msk [vmem:[#allocation2 + $0x48] sm:$0xff] %vm9774_vm7, %v1204_v28  ;;  %1023 = vrot.lane.b32.xlu1 %v8023_v47, %s7624_s14  ;;  %v522_v28 = vld [vmem:[%s7871_s27 + $0xa8] sm:$0x7f] }
 0x150   : > { %1597 = vrot.lane.b32.xlu0 %v8023_v47, %s9801_s21  ;;  %555 = vst.msk [vmem:[#allocation2 + $0xb9] sm:$0x7f] %vm9775_vm2, %v522_v28 }
 0x151   : > { %v641_v31 = vpop.permute.xlu1 %640  ;;  %v1945_v32 = vpop.permute.xlu0 %1944 }
 0x152   : > { %723 = vst.msk [vmem:[#allocation2 + $0x50] sm:$0xff] %vm714_vm9, %v641_v31 }
 0x153   : > { %2030 = vst.msk [vmem:[#allocation2 + $0x30] sm:$0xff] %vm9769_vm4, %v1945_v32  ;;  %1599 = vrot.lane.b32.xlu1 %v6291_v30, %s9801_s21  ;;  %v6325_v30 = vld [vmem:[%s7871_s27 + $0xa8] sm:$0xff] }
 0x154   : > { %1025 = vrot.lane.b32.xlu0 %v944_v12, %s7624_s14  ;;  %v7487_v12 = vld [vmem:[#allocation3] sm:$0xff] }
 0x155   : > { %v1395_v34 = vpop.permute.xlu1 %1394  ;;  %v643_v35 = vpop.permute.xlu0 %642 }
 0x156   : > { %1484 = vst.msk [vmem:[#allocation2 + $0x40] sm:$0xff] %vm1474_vm11, %v1395_v34  ;;  %v6354_v34 = vld [vmem:[%s7871_s27 + $0xa1] sm:$0xff] }
 0x157   : > { %724 = vst.msk [vmem:[#allocation2 + $0x58] sm:$0xff] %vm714_vm9, %v643_v35  ;;  %1217 = vrot.lane.b32.xlu1 %v8023_v47, %s7623_s15 }
 0x158   : > { %1779 = vrot.lane.b32.xlu0 %v8023_v47, %s7629_s24 }
 0x159   : > { %v1947_v39 = vpop.permute.xlu1 %1946  ;;  %v1397_v40 = vpop.permute.xlu0 %1396 }
 0x15a   : > { %v2060_v41 = vld [vmem:[#allocation2 + $0x30] sm:$0xff]  ;;  %2031 = vst.msk [vmem:[#allocation2 + $0x38] sm:$0x7f] %vm2024_vm5, %v1947_v39 }
 0x15b   : > { %1485 = vst.msk [vmem:[#allocation2 + $0x48] sm:$0x7f] %vm1476_vm10, %v1397_v40  ;;  %6625 = vmatprep.mubr.msk.f32.mxu0 %vm468_vm0, %v2060_v41  ;;  %1781 = vrot.lane.b32.xlu1 %v6321_v38, %s7629_s24 }
 0x15c   : > { %1219 = vrot.lane.b32.xlu0 %v6321_v38, %s7623_s15 }
 0x15d   : > { %v824_v43 = vpop.permute.xlu1 %823  ;;  %v822_v44 = vpop.permute.xlu0 %821 }
 0x15e   : > { %906 = vst.msk [vmem:[#allocation2 + $0x58] sm:$0x7f] %vm897_vm12, %v824_v43  ;;  %v1335_v43 = vld [vmem:[%s7871_s27 + $0xa9] sm:$0x7f] }
 0x15f   : > { %905 = vst.msk [vmem:[#allocation2 + $0x50] sm:$0xff] %vm895_vm13, %v822_v44  ;;  %656 = vrot.lane.b32.xlu1 %v8023_v47, %s7625_s17 }
 0x160   : > { %1960 = vrot.lane.b32.xlu0 %v6350_v42, %s7631_s22 }
 0x161   : > { %v1012_v45 = vpop.permute.xlu1 %1011  ;;  %v1586_v46 = vpop.permute.xlu0 %1585  ;;  %v2061_v48 = vld [vmem:[#allocation2 + $0x38] sm:$0xff] }
 0x162   : > { %1099 = vst.msk [vmem:[#allocation2 + $0x51] sm:$0xff] %vm1087_vm6, %v1012_v45  ;;  %6626 = vmatmul.mubr.msk.f32.gmra.mrb[6].mxu0 %vm468_vm0, %v2061_v48  ;;  %v766_v45 = vld [vmem:[%s7871_s27 + $0xa9] sm:$0x7f] }
 0x163   : > { %1669 = vst.msk [vmem:[#allocation2 + $0x41] sm:$0xff] %vm9776_vm14, %v1586_v46  ;;  %1410 = vrot.lane.b32.xlu1 %v6350_v42, %s7626_s19 }
 0x164   : > { %658 = vrot.lane.b32.xlu0 %v6321_v38, %s7625_s17 }
 0x165   : > { %v1588_v51 = vpop.permute.xlu1 %1587  ;;  %v1014_v47 = vpop.permute.xlu0 %1013 }
 0x166   : > { %1670 = vst.msk [vmem:[#allocation2 + $0x49] sm:$0x7f] %vm9772_vm15, %v1588_v51  ;;  %v6297_v51 = vld [vmem:[%s7871_s27 + $0xb8] sm:$0x7f] }
 0x167   : > { %1100 = vst.msk [vmem:[#allocation2 + $0x59] sm:$0x7f] %vm9771_vm8, %v1014_v47  ;;  %1962 = vrot.lane.b32.xlu1 %v6351_v49, %s7631_s22  ;;  %v950_v47 = vld [vmem:[%s7871_s27 + $0xb8] sm:$0x7f] }
 0x168   : > { %1412 = vrot.lane.b32.xlu0 %v1331_v50, %s7626_s19 }
 0x169   : > { %v1206_v53 = vpop.permute.xlu1 %1205  ;;  %v1768_v54 = vpop.permute.xlu0 %1767 }
 0x16a   : > { %1292 = vst.msk [vmem:[#allocation2 + $0x50] sm:$0xff] %vm9774_vm7, %v1206_v53 }
 0x16b   : > { %1850 = vst.msk [vmem:[#allocation2 + $0x40] sm:$0xff] %vm9773_vm3, %v1768_v54  ;;  %839 = vrot.lane.b32.xlu1 %v762_v52, %s7627_s16 }
 0x16c   : > { %837 = vrot.lane.b32.xlu0 %v6350_v42, %s7627_s16  ;;  %v6355_v42 = vld [vmem:[%s7871_s27 + $0xa9] sm:$0x7f] }
 0x16d   : > { %v1770_v55 = vpop.permute.xlu1 %1769 }
 0x16e   : > { %v1208_v56 = vpop.permute.xlu0 %1207  ;;  %1851 = vst.msk [vmem:[#allocation2 + $0x48] sm:$0xff] %vm9773_vm3, %v1770_v55 }
 0x16f   : > { %1293 = vst.msk [vmem:[#allocation2 + $0x58] sm:$0xff] %vm9774_vm7, %v1208_v56  ;;  %1027 = vrot.lane.b32.xlu1 %v8075_v8, %s7624_s14  ;;  %v524_v56 = vld [vmem:[%s7871_s27 + $0xb8] sm:$0x7f] }
 0x170   : > { %1601 = vrot.lane.b32.xlu0 %v8075_v8, %s9801_s21  ;;  %557 = vst.msk [vmem:[#allocation2 + $0xc9] sm:$0x7f] %vm9775_vm2, %v524_v56 }
 0x171   : > { %v645_v59 = vpop.permute.xlu1 %644 }
 0x172   : > { %v1949_v60 = vpop.permute.xlu0 %1948  ;;  %725 = vst.msk [vmem:[#allocation2 + $0x60] sm:$0xff] %vm714_vm9, %v645_v59 }
 0x173   : > { %2032 = vst.msk [vmem:[#allocation2 + $0x40] sm:$0xff] %vm9769_vm4, %v1949_v60  ;;  %1603 = vrot.lane.b32.xlu1 %v6293_v58, %s9801_s21  ;;  %v6327_v58 = vld [vmem:[%s7871_s27 + $0xb8] sm:$0xff] }
 0x174   : > { %1029 = vrot.lane.b32.xlu0 %v946_v27, %s7624_s14 }
 0x175   : > { %v1399_v61 = vpop.permute.xlu1 %1398 }
 0x176   : > { %v647_v62 = vpop.permute.xlu0 %646  ;;  %1486 = vst.msk [vmem:[#allocation2 + $0x50] sm:$0xff] %vm1474_vm11, %v1399_v61  ;;  %v6356_v61 = vld [vmem:[%s7871_s27 + $0xb1] sm:$0xff] }
 0x177   : > { %726 = vst.msk [vmem:[#allocation2 + $0x68] sm:$0xff] %vm714_vm9, %v647_v62  ;;  %1221 = vrot.lane.b32.xlu1 %v8075_v8, %s7623_s15 }
 0x178   : > { %1783 = vrot.lane.b32.xlu0 %v8075_v8, %s7629_s24 }
 0x179   : > { %v1951_v2 = vpop.permute.xlu1 %1950 }
 0x17a   : > { %v1401_v3 = vpop.permute.xlu0 %1400  ;;  %v2062_v4 = vld [vmem:[#allocation2 + $0x40] sm:$0xff]  ;;  %2033 = vst.msk [vmem:[#allocation2 + $0x48] sm:$0x7f] %vm2024_vm5, %v1951_v2 }
 0x17b   : > { %1487 = vst.msk [vmem:[#allocation2 + $0x58] sm:$0x7f] %vm1476_vm10, %v1401_v3  ;;  %6628 = vmatprep.mubr.msk.f32.mxu0 %vm468_vm0, %v2062_v4  ;;  %1785 = vrot.lane.b32.xlu1 %v6323_v1, %s7629_s24  ;;  %v6357_v4 = vld [vmem:[%s7871_s27 + $0xb9] sm:$0x7f] }
 0x17c   : > { %1223 = vrot.lane.b32.xlu0 %v6323_v1, %s7623_s15 }
 0x17d   : > { %v828_v6 = vpop.permute.xlu1 %827 }
 0x17e   : > { %v826_v7 = vpop.permute.xlu0 %825  ;;  %908 = vst.msk [vmem:[#allocation2 + $0x68] sm:$0x7f] %vm897_vm12, %v828_v6 }
 0x17f   : > { %907 = vst.msk [vmem:[#allocation2 + $0x60] sm:$0xff] %vm895_vm13, %v826_v7  ;;  %660 = vrot.lane.b32.xlu1 %v8075_v8, %s7625_s17  ;;  %v768_v7 = vld [vmem:[%s7871_s27 + $0xb9] sm:$0x7f] }
 0x180   : > { %1964 = vrot.lane.b32.xlu0 %v6352_v5, %s7631_s22 }
 0x181   : > { %v1016_v9 = vpop.permute.xlu1 %1015  ;;  %v2063_v11 = vld [vmem:[#allocation2 + $0x48] sm:$0xff] }
 0x182   : > { %v1590_v10 = vpop.permute.xlu0 %1589  ;;  %1101 = vst.msk [vmem:[#allocation2 + $0x61] sm:$0xff] %vm1087_vm6, %v1016_v9  ;;  %6629 = vmatmul.mubr.msk.f32.gmra.mrb[8].mxu0 %vm468_vm0, %v2063_v11 }
 0x183   : > { %1671 = vst.msk [vmem:[#allocation2 + $0x51] sm:$0xff] %vm9776_vm14, %v1590_v10  ;;  %1414 = vrot.lane.b32.xlu1 %v6352_v5, %s7626_s19 }
 0x184   : > { %662 = vrot.lane.b32.xlu0 %v6323_v1, %s7625_s17 }
 0x185   : > { %v1592_v15 = vpop.permute.xlu1 %1591 }
 0x186   : > { %v1018_v8 = vpop.permute.xlu0 %1017  ;;  %1672 = vst.msk [vmem:[#allocation2 + $0x59] sm:$0x7f] %vm9772_vm15, %v1592_v15  ;;  %v952_v15 = vld [vmem:[%s7871_s27 + $0xc8] sm:$0x7f] }
 0x187   : > { %1102 = vst.msk [vmem:[#allocation2 + $0x69] sm:$0x7f] %vm9771_vm8, %v1018_v8  ;;  %1966 = vrot.lane.b32.xlu1 %v6353_v13, %s7631_s22 }
 0x188   : > { %1416 = vrot.lane.b32.xlu0 %v1333_v14, %s7626_s19  ;;  %v6299_v14 = vld [vmem:[%s7871_s27 + $0xc8] sm:$0x7f] }
 0x189   : > { %v1210_v17 = vpop.permute.xlu1 %1209 }
 0x18a   : > { %v1772_v18 = vpop.permute.xlu0 %1771  ;;  %1294 = vst.msk [vmem:[#allocation2 + $0x60] sm:$0xff] %vm9774_vm7, %v1210_v17 }
 0x18b   : > { %1852 = vst.msk [vmem:[#allocation2 + $0x50] sm:$0xff] %vm9773_vm3, %v1772_v18  ;;  %843 = vrot.lane.b32.xlu1 %v764_v16, %s7627_s16 }
 0x18c   : > { %841 = vrot.lane.b32.xlu0 %v6352_v5, %s7627_s16  ;;  %v1337_v5 = vld [vmem:[%s7871_s27 + $0xb9] sm:$0x7f] }
 0x18d   : > { %v1774_v19 = vpop.permute.xlu1 %1773 }
 0x18e   : > { %v1212_v20 = vpop.permute.xlu0 %1211  ;;  %1853 = vst.msk [vmem:[#allocation2 + $0x58] sm:$0xff] %vm9773_vm3, %v1774_v19 }
 0x18f   : > { %1295 = vst.msk [vmem:[#allocation2 + $0x68] sm:$0xff] %vm9774_vm7, %v1212_v20  ;;  %1031 = vrot.lane.b32.xlu1 %v8128_v37, %s7624_s14 }
 0x190   : > { %1605 = vrot.lane.b32.xlu0 %v8128_v37, %s9801_s21 }
 0x191   : > { %v649_v36 = vpop.permute.xlu1 %648 }
 0x192   : > { %v1953_v23 = vpop.permute.xlu0 %1952  ;;  %727 = vst.msk [vmem:[#allocation2 + $0x70] sm:$0xff] %vm714_vm9, %v649_v36 }
 0x193   : > { %2034 = vst.msk [vmem:[#allocation2 + $0x50] sm:$0xff] %vm9769_vm4, %v1953_v23  ;;  %1607 = vrot.lane.b32.xlu1 %v6295_v21, %s9801_s21  ;;  %vm9778_vm4 = vcmask 130048   ;;  %v6329_v21 = vld [vmem:[%s7871_s27 + $0xc8] sm:$0xff] }
 0x194   : > { %1033 = vrot.lane.b32.xlu0 %v948_v22, %s7624_s14  ;;  %3416 = vst.msk [vmem:[#allocation3 + $0x8] sm:$0xff] %vm9778_vm4, %v7487_v12  ;;  %3418 = vst.msk [vmem:[#allocation3 + $0x18] sm:$0xff] %vm9778_vm4, %v7487_v12  ;;  %v526_v22 = vld [vmem:[%s7871_s27 + $0xc8] sm:$0x7f] }
 0x195   : > { %v1403_v25 = vpop.permute.xlu1 %1402  ;;  %3420 = vst.msk [vmem:[#allocation3 + $0x28] sm:$0xff] %vm9778_vm4, %v7487_v12  ;;  %3422 = vst.msk [vmem:[#allocation3 + $0x38] sm:$0xff] %vm9778_vm4, %v7487_v12 }
 0x196   : > { %v651_v26 = vpop.permute.xlu0 %650  ;;  %1488 = vst.msk [vmem:[#allocation2 + $0x60] sm:$0xff] %vm1474_vm11, %v1403_v25 }
 0x197   : > { %728 = vst.msk [vmem:[#allocation2 + $0x78] sm:$0xff] %vm714_vm9, %v651_v26  ;;  %1225 = vrot.lane.b32.xlu1 %v8128_v37, %s7623_s15  ;;  %v6358_v26 = vld [vmem:[%s7871_s27 + $0xc1] sm:$0xff] }
 0x198   : > { %1787 = vrot.lane.b32.xlu0 %v8128_v37, %s7629_s24  ;;  %3424 = vst.msk [vmem:[#allocation3 + $0x48] sm:$0xff] %vm9778_vm4, %v7487_v12  ;;  %3426 = vst.msk [vmem:[#allocation3 + $0x58] sm:$0xff] %vm9778_vm4, %v7487_v12 }
 0x199   : > { %3428 = vst.msk [vmem:[#allocation3 + $0x68] sm:$0xff] %vm9778_vm4, %v7487_v12  ;;  %3430 = vst.msk [vmem:[#allocation3 + $0x78] sm:$0xff] %vm9778_vm4, %v7487_v12  ;;  %v1955_v31 = vpop.permute.xlu1 %1954 }
 0x19a   : > { %v1405_v32 = vpop.permute.xlu0 %1404  ;;  %v2064_v33 = vld [vmem:[#allocation2 + $0x50] sm:$0xff]  ;;  %2035 = vst.msk [vmem:[#allocation2 + $0x58] sm:$0x7f] %vm2024_vm5, %v1955_v31 }
 0x19b   : > { %1489 = vst.msk [vmem:[#allocation2 + $0x68] sm:$0x7f] %vm1476_vm10, %v1405_v32  ;;  %6631 = vmatprep.mubr.msk.f32.mxu0 %vm468_vm0, %v2064_v33  ;;  %1789 = vrot.lane.b32.xlu1 %v6325_v30, %s7629_s24  ;;  %v6359_v33 = vld [vmem:[%s7871_s27 + $0xc9] sm:$0x7f] }
 0x19c   : > { %1227 = vrot.lane.b32.xlu0 %v6325_v30, %s7623_s15  ;;  %559 = vst.msk [vmem:[#allocation2 + $0xd9] sm:$0x7f] %vm9775_vm2, %v526_v22 }
 0x19d   : > { %v832_v35 = vpop.permute.xlu1 %831 }
 0x19e   : > { %v830_v38 = vpop.permute.xlu0 %829  ;;  %910 = vst.msk [vmem:[#allocation2 + $0x78] sm:$0x7f] %vm897_vm12, %v832_v35 }
 0x19f   : > { %909 = vst.msk [vmem:[#allocation2 + $0x70] sm:$0xff] %vm895_vm13, %v830_v38  ;;  %664 = vrot.lane.b32.xlu1 %v8128_v37, %s7625_s17  ;;  %v770_v38 = vld [vmem:[%s7871_s27 + $0xc9] sm:$0x7f] }
 0x1a0   : > { %1968 = vrot.lane.b32.xlu0 %v6354_v34, %s7631_s22 }
 0x1a1   : > { %v1020_v39 = vpop.permute.xlu1 %1019  ;;  %v2065_v41 = vld [vmem:[#allocation2 + $0x58] sm:$0xff] }
 0x1a2   : > { %v1594_v40 = vpop.permute.xlu0 %1593  ;;  %1103 = vst.msk [vmem:[#allocation2 + $0x71] sm:$0xff] %vm1087_vm6, %v1020_v39  ;;  %6632 = vmatmul.mubr.msk.f32.gmra.mrb[10].mxu0 %vm468_vm0, %v2065_v41 }
 0x1a3   : > { %1673 = vst.msk [vmem:[#allocation2 + $0x61] sm:$0xff] %vm9776_vm14, %v1594_v40  ;;  %1418 = vrot.lane.b32.xlu1 %v6354_v34, %s7626_s19 }
 0x1a4   : > { %666 = vrot.lane.b32.xlu0 %v6325_v30, %s7625_s17 }
 0x1a5   : > { %v1596_v44 = vpop.permute.xlu1 %1595 }
 0x1a6   : > { %v1022_v37 = vpop.permute.xlu0 %1021  ;;  %1674 = vst.msk [vmem:[#allocation2 + $0x69] sm:$0x7f] %vm9772_vm15, %v1596_v44  ;;  %v954_v44 = vld [vmem:[%s7871_s27 + $0xd8] sm:$0x7f] }
 0x1a7   : > { %1104 = vst.msk [vmem:[#allocation2 + $0x79] sm:$0x7f] %vm9771_vm8, %v1022_v37  ;;  %1970 = vrot.lane.b32.xlu1 %v6355_v42, %s7631_s22 }
 0x1a8   : > { %1420 = vrot.lane.b32.xlu0 %v1335_v43, %s7626_s19  ;;  %v6301_v43 = vld [vmem:[%s7871_s27 + $0xd8] sm:$0x7f] }
 0x1a9   : > { %v1214_v46 = vpop.permute.xlu1 %1213 }
 0x1aa   : > { %v1776_v48 = vpop.permute.xlu0 %1775  ;;  %1296 = vst.msk [vmem:[#allocation2 + $0x70] sm:$0xff] %vm9774_vm7, %v1214_v46  ;;  %v7632_v46 = vmov 1983009808  }
 0x1ab   : > { %1854 = vst.msk [vmem:[#allocation2 + $0x60] sm:$0xff] %vm9773_vm3, %v1776_v48  ;;  %847 = vrot.lane.b32.xlu1 %v766_v45, %s7627_s16  ;;  %v2488_v48 = vunpack.c.l.s4 %v7632_v46 }
 0x1ac   : > { %845 = vrot.lane.b32.xlu0 %v6354_v34, %s7627_s16  ;;  %v1339_v34 = vld [vmem:[%s7871_s27 + $0xc9] sm:$0x7f] }
 0x1ad   : > { %v1778_v49 = vpop.permute.xlu1 %1777 }
 0x1ae   : > { %v1216_v50 = vpop.permute.xlu0 %1215  ;;  %1855 = vst.msk [vmem:[#allocation2 + $0x68] sm:$0xff] %vm9773_vm3, %v1778_v49  ;;  %v2490_v49 = vlaneseq }
 0x1af   : > { %1297 = vst.msk [vmem:[#allocation2 + $0x78] sm:$0xff] %vm9774_vm7, %v1216_v50  ;;  %1035 = vrot.lane.b32.xlu1 %v8181_v0, %s7624_s14  ;;  %v8509_v50 = vld [vmem:[%s9745_s2] ss:$0 sm:$0xff] }
 0x1b0   : > { %1609 = vrot.lane.b32.xlu0 %v8181_v0, %s9801_s21 }
 0x1b1   : > { %v653_v52 = vpop.permute.xlu1 %652 }
 0x1b2   : > { %v1957_v53 = vpop.permute.xlu0 %1956  ;;  %729 = vst.msk [vmem:[#allocation2 + $0x80] sm:$0xff] %vm714_vm9, %v653_v52 }
 0x1b3   : > { %2036 = vst.msk [vmem:[#allocation2 + $0x60] sm:$0xff] %vm9802_vm1, %v1957_v53  ;;  %1611 = vrot.lane.b32.xlu1 %v6297_v51, %s9801_s21  ;;  %v2489_v53 = vunpack.c.0.s8 %v2488_v48 }
 0x1b4   : > { %1037 = vrot.lane.b32.xlu0 %v950_v47, %s7624_s14 }
 0x1b5   : > { %v1407_v54 = vpop.permute.xlu1 %1406 }
 0x1b6   : > { %v655_v55 = vpop.permute.xlu0 %654  ;;  %1490 = vst.msk [vmem:[#allocation2 + $0x70] sm:$0xff] %vm1474_vm11, %v1407_v54  ;;  %v8518_v54 = vshrl.u32 %v2490_v49, 7 }
 0x1b7   : > { %730 = vst.msk [vmem:[#allocation2 + $0x88] sm:$0xff] %vm714_vm9, %v655_v55  ;;  %1229 = vrot.lane.b32.xlu1 %v8181_v0, %s7623_s15 }
 0x1b8   : > { %1791 = vrot.lane.b32.xlu0 %v8181_v0, %s7629_s24 }
 0x1b9   : > { %v1959_v27 = vpop.permute.xlu1 %1958 }
 0x1ba   : > { %v1409_v59 = vpop.permute.xlu0 %1408  ;;  %v2066_v60 = vld [vmem:[#allocation2 + $0x60] sm:$0xff]  ;;  %2037 = vst.msk [vmem:[#allocation2 + $0x68] sm:$0x7f] %vm2024_vm5, %v1959_v27 }
 0x1bb   : > { %1491 = vst.msk [vmem:[#allocation2 + $0x78] sm:$0x7f] %vm1476_vm10, %v1409_v59  ;;  %6634 = vmatprep.mubr.msk.f32.mxu0 %vm468_vm0, %v2066_v60  ;;  %1793 = vrot.lane.b32.xlu1 %v6327_v58, %s7629_s24 }
 0x1bc   : > { %1231 = vrot.lane.b32.xlu0 %v6327_v58, %s7623_s15 }
 0x1bd   : > { %v836_v62 = vpop.permute.xlu1 %835 }
 0x1be   : > { %v834_v63 = vpop.permute.xlu0 %833  ;;  %912 = vst.msk [vmem:[#allocation2 + $0x88] sm:$0x7f] %vm897_vm12, %v836_v62 }
 0x1bf   : > { %911 = vst.msk [vmem:[#allocation2 + $0x80] sm:$0xff] %vm895_vm13, %v834_v63  ;;  %668 = vrot.lane.b32.xlu1 %v8181_v0, %s7625_s17 }
 0x1c0   : > { %1972 = vrot.lane.b32.xlu0 %v6356_v61, %s7631_s22 }
 0x1c1   : > { %v1024_v1 = vpop.permute.xlu1 %1023  ;;  %v2067_v3 = vld [vmem:[#allocation2 + $0x68] sm:$0xff] }
 0x1c2   : > { %v1598_v2 = vpop.permute.xlu0 %1597  ;;  %1105 = vst.msk [vmem:[#allocation2 + $0x81] sm:$0xff] %vm1087_vm6, %v1024_v1  ;;  %6635 = vmatmul.mubr.msk.f32.gmra.mrb[12].mxu0 %vm468_vm0, %v2067_v3  ;;  %v8534_v1 = vsub.s32 %v2489_v53, %v8518_v54 }
 0x1c3   : > { %1675 = vst.msk [vmem:[#allocation2 + $0x71] sm:$0xff] %vm9776_vm14, %v1598_v2  ;;  %1422 = vrot.lane.b32.xlu1 %v6356_v61, %s7626_s19 }
 0x1c4   : > { %670 = vrot.lane.b32.xlu0 %v6327_v58, %s7625_s17  ;;  %v528_v58 = vld [vmem:[%s7871_s27 + $0xd8] sm:$0x7f] }
 0x1c5   : > { %v1600_v6 = vpop.permute.xlu1 %1599  ;;  %561 = vst.msk [vmem:[#allocation2 + $0xe9] sm:$0x7f] %vm9775_vm2, %v528_v58  ;;  %vm9803_vm2 = vcmask 220352  }
 0x1c6   : > { %v1026_v0 = vpop.permute.xlu0 %1025  ;;  %1676 = vst.msk [vmem:[#allocation2 + $0x79] sm:$0x7f] %vm9772_vm15, %v1600_v6 }
 0x1c7   : > { %1106 = vst.msk [vmem:[#allocation2 + $0x89] sm:$0x7f] %vm9771_vm8, %v1026_v0  ;;  %1974 = vrot.lane.b32.xlu1 %v6357_v4, %s7631_s22 }
 0x1c8   : > { %1424 = vrot.lane.b32.xlu0 %v1337_v5, %s7626_s19 }
 0x1c9   : > { %v1218_v9 = vpop.permute.xlu1 %1217 }
 0x1ca   : > { %v1780_v10 = vpop.permute.xlu0 %1779  ;;  %1298 = vst.msk [vmem:[#allocation2 + $0x80] sm:$0xff] %vm9774_vm7, %v1218_v9  ;;  %v8542_v9 = vld [vmem:[%s7871_s27 + $0xd1] sm:$0xff] }
 0x1cb   : > { %1856 = vst.msk [vmem:[#allocation2 + $0x70] sm:$0xff] %vm9773_vm3, %v1780_v10  ;;  %851 = vrot.lane.b32.xlu1 %v768_v7, %s7627_s16 }
 0x1cc   : > { %849 = vrot.lane.b32.xlu0 %v6356_v61, %s7627_s16  ;;  %v6331_v61 = vld [vmem:[%s7871_s27 + $0xd8] sm:$0xff] }
 0x1cd   : > { %v1782_v11 = vpop.permute.xlu1 %1781 }
 0x1ce   : > { %v1220_v13 = vpop.permute.xlu0 %1219  ;;  %1857 = vst.msk [vmem:[#allocation2 + $0x78] sm:$0xff] %vm9773_vm3, %v1782_v11 }
 0x1cf   : > { %1299 = vst.msk [vmem:[#allocation2 + $0x88] sm:$0xff] %vm9774_vm7, %v1220_v13  ;;  %1039 = vrot.lane.b32.xlu1 %v8234_v29, %s7624_s14 }
 0x1d0   : > { %1613 = vrot.lane.b32.xlu0 %v8234_v29, %s9801_s21 }
 0x1d1   : > { %v657_v8 = vpop.permute.xlu1 %656 }
 0x1d2   : > { %v1961_v16 = vpop.permute.xlu0 %1960  ;;  %731 = vst.msk [vmem:[#allocation2 + $0x90] sm:$0xff] %vm714_vm9, %v657_v8 }
 0x1d3   : > { %2038 = vst.msk [vmem:[#allocation2 + $0x70] sm:$0xff] %vm9802_vm1, %v1961_v16  ;;  %1615 = vrot.lane.b32.xlu1 %v6299_v14, %s9801_s21 }
 0x1d4   : > { %1041 = vrot.lane.b32.xlu0 %v952_v15, %s7624_s14 }
 0x1d5   : > { %v1411_v17 = vpop.permute.xlu1 %1410  ;;  %v8460_v19 = vpop.f32.mrb[0].mxu0 }
 0x1d6   : > { %v659_v18 = vpop.permute.xlu0 %658  ;;  %1492 = vst.msk [vmem:[#allocation2 + $0x80] sm:$0xff] %vm1474_vm11, %v1411_v17  ;;  %v8462_v20 = vpop.f32.mrb[1].mxu0  ;;  %v2269_v51 = vadd.f32 %v8460_v19, %v8509_v50 }
 0x1d7   : > { %732 = vst.msk [vmem:[#allocation2 + $0x98] sm:$0xff] %vm714_vm9, %v659_v18  ;;  %1233 = vrot.lane.b32.xlu1 %v8234_v29, %s7623_s15  ;;  %v2264_v55 = vadd.f32 %v8509_v50, %v8462_v20 }
 0x1d8   : > { %1795 = vrot.lane.b32.xlu0 %v8234_v29, %s7629_s24  ;;  %v2423_v62 = vmax.f32 %v2269_v51, 0.0 }
 0x1d9   : > { %v1963_v36 = vpop.permute.xlu1 %1962  ;;  %v2422_v5 = vmax.f32 %v2264_v55, 0.0 }
 0x1da   : > { %v1413_v23 = vpop.permute.xlu0 %1412  ;;  %v2068_v25 = vld [vmem:[#allocation2 + $0x70] sm:$0xff]  ;;  %2039 = vst.msk [vmem:[#allocation2 + $0x78] sm:$0x7f] %vm2024_vm5, %v1963_v36 }
 0x1db   : > { %1493 = vst.msk [vmem:[#allocation2 + $0x88] sm:$0x7f] %vm1476_vm10, %v1413_v23  ;;  %6637 = vmatprep.mubr.msk.f32.mxu0 %vm468_vm0, %v2068_v25  ;;  %1797 = vrot.lane.b32.xlu1 %v6329_v21, %s7629_s24 }
 0x1dc   : > { %1235 = vrot.lane.b32.xlu0 %v6329_v21, %s7623_s15 }
 0x1dd   : > { %v840_v28 = vpop.permute.xlu1 %839 }
 0x1de   : > { %v838_v30 = vpop.permute.xlu0 %837  ;;  %914 = vst.msk [vmem:[#allocation2 + $0x98] sm:$0x7f] %vm897_vm12, %v840_v28 }
 0x1df   : > { %913 = vst.msk [vmem:[#allocation2 + $0x90] sm:$0xff] %vm895_vm13, %v838_v30  ;;  %672 = vrot.lane.b32.xlu1 %v8234_v29, %s7625_s17 }
 0x1e0   : > { %1976 = vrot.lane.b32.xlu0 %v6358_v26, %s7631_s22 }
 0x1e1   : > { %v1028_v12 = vpop.permute.xlu1 %1027  ;;  %v2069_v32 = vld [vmem:[#allocation2 + $0x78] sm:$0xff] }
 0x1e2   : > { %v1602_v31 = vpop.permute.xlu0 %1601  ;;  %1107 = vst.msk [vmem:[#allocation2 + $0x91] sm:$0xff] %vm1087_vm6, %v1028_v12  ;;  %6638 = vmatmul.mubr.msk.f32.gmra.mrb[14].mxu0 %vm468_vm0, %v2069_v32 }
 0x1e3   : > { %1677 = vst.msk [vmem:[#allocation2 + $0x81] sm:$0xff] %vm9776_vm14, %v1602_v31  ;;  %1426 = vrot.lane.b32.xlu1 %v6358_v26, %s7626_s19 }
 0x1e4   : > { %674 = vrot.lane.b32.xlu0 %v6329_v21, %s7625_s17 }
 0x1e5   : > { %v1604_v35 = vpop.permute.xlu1 %1603 }
 0x1e6   : > { %v1030_v29 = vpop.permute.xlu0 %1029  ;;  %1678 = vst.msk [vmem:[#allocation2 + $0x89] sm:$0x7f] %vm9772_vm15, %v1604_v35 }
 0x1e7   : > { %1108 = vst.msk [vmem:[#allocation2 + $0x99] sm:$0x7f] %vm9771_vm8, %v1030_v29  ;;  %1978 = vrot.lane.b32.xlu1 %v6359_v33, %s7631_s22 }
 0x1e8   : > { %1428 = vrot.lane.b32.xlu0 %v1339_v34, %s7626_s19 }
 0x1e9   : > { %v1222_v39 = vpop.permute.xlu1 %1221 }
 0x1ea   : > { %v1784_v40 = vpop.permute.xlu0 %1783  ;;  %1300 = vst.msk [vmem:[#allocation2 + $0x90] sm:$0xff] %vm9774_vm7, %v1222_v39 }
 0x1eb   : > { %1858 = vst.msk [vmem:[#allocation2 + $0x80] sm:$0xff] %vm9773_vm3, %v1784_v40  ;;  %855 = vrot.lane.b32.xlu1 %v770_v38, %s7627_s16 }
 0x1ec   : > { %853 = vrot.lane.b32.xlu0 %v6358_v26, %s7627_s16 }
 0x1ed   : > { %v1786_v41 = vpop.permute.xlu1 %1785 }
 0x1ee   : > { %v1224_v42 = vpop.permute.xlu0 %1223  ;;  %1859 = vst.msk [vmem:[#allocation2 + $0x88] sm:$0xff] %vm9773_vm3, %v1786_v41 }
 0x1ef   : > { %1301 = vst.msk [vmem:[#allocation2 + $0x98] sm:$0xff] %vm9774_vm7, %v1224_v42  ;;  %1043 = vrot.lane.b32.xlu1 %v8287_v57, %s7624_s14  ;;  %v6361_v42 = vld [vmem:[%s7871_s27 + $0xd9] sm:$0x7f] }
 0x1f0   : > { %1617 = vrot.lane.b32.xlu0 %v8287_v57, %s9801_s21 }
 0x1f1   : > { %v661_v37 = vpop.permute.xlu1 %660 }
 0x1f2   : > { %v1965_v45 = vpop.permute.xlu0 %1964  ;;  %733 = vst.msk [vmem:[#allocation2 + $0xa0] sm:$0xff] %vm714_vm9, %v661_v37 }
 0x1f3   : > { %2040 = vst.msk [vmem:[#allocation2 + $0x80] sm:$0xff] %vm9802_vm1, %v1965_v45  ;;  %1619 = vrot.lane.b32.xlu1 %v6301_v43, %s9801_s21  ;;  %vm9770_vm1 = vcmask 123904   ;;  %v1341_v43 = vld [vmem:[%s7871_s27 + $0xd9] sm:$0x7f] }
 0x1f4   : > { %1045 = vrot.lane.b32.xlu0 %v954_v44, %s7624_s14 }
 0x1f5   : > { %v1415_v47 = vpop.permute.xlu1 %1414  ;;  %v6621_v56 = vpop.f32.mrb[2].mxu0 }
 0x1f6   : > { %v663_v52 = vpop.permute.xlu0 %662  ;;  %1494 = vst.msk [vmem:[#allocation2 + $0x90] sm:$0xff] %vm1474_vm11, %v1415_v47  ;;  %v2279_v27 = vadd.f32 %v6621_v56, %v8509_v50  ;;  %v2273_v59 = vpop.f32.mrb[3].mxu0 }
 0x1f7   : > { %734 = vst.msk [vmem:[#allocation2 + $0xa8] sm:$0xff] %vm714_vm9, %v663_v52  ;;  %1237 = vrot.lane.b32.xlu1 %v8287_v57, %s7623_s15  ;;  %v2274_v60 = vadd.f32 %v8509_v50, %v2273_v59 }
 0x1f8   : > { %1799 = vrot.lane.b32.xlu0 %v8287_v57, %s7629_s24  ;;  %v2425_v63 = vmax.f32 %v2279_v27, 0.0 }
 0x1f9   : > { %v1967_v2 = vpop.permute.xlu1 %1966  ;;  %v2424_v6 = vmax.f32 %v2274_v60, 0.0  ;;  %v772_v60 = vld [vmem:[%s7871_s27 + $0xd9] sm:$0x7f] }
 0x1fa   : > { %v1417_v3 = vpop.permute.xlu0 %1416  ;;  %v2070_v4 = vld [vmem:[#allocation2 + $0x80] sm:$0xff]  ;;  %2041 = vst.msk [vmem:[#allocation2 + $0x88] sm:$0x7f] %vm2024_vm5, %v1967_v2  ;;  %v2455_v0 = vmax.f32 %v2423_v62, %v2425_v63 }
 0x1fb   : > { %1495 = vst.msk [vmem:[#allocation2 + $0x98] sm:$0x7f] %vm1476_vm10, %v1417_v3  ;;  %6640 = vmatprep.mubr.msk.f32.mxu0 %vm468_vm0, %v2070_v4  ;;  %1801 = vrot.lane.b32.xlu1 %v6331_v61, %s7629_s24  ;;  %v2454_v7 = vmax.f32 %v2422_v5, %v2424_v6 }
 0x1fc   : > { %1239 = vrot.lane.b32.xlu0 %v6331_v61, %s7623_s15  ;;  %v2503_v10 = vcombine.high %v2455_v0, %v2455_v0  ;;  %v2510_v11 = vrot.slane %v2455_v0, %v8534_v1 }
 0x1fd   : > { %v844_v13 = vpop.permute.xlu1 %843  ;;  %v2486_v15 = vcombine.high %v2454_v7, %v2454_v7  ;;  %v2493_v8 = vrot.slane %v2454_v7, %v8534_v1 }
 0x1fe   : > { %v842_v14 = vpop.permute.xlu0 %841  ;;  %916 = vst.msk [vmem:[#allocation2 + $0xa8] sm:$0x7f] %vm897_vm12, %v844_v13  ;;  %v2517_v16 = vrot.slane %v2503_v10, %v8534_v1  ;;  %v2518_v17 = vcombine.high %v2510_v11, %v2510_v11  ;;  %v2851_v18 = vsel %vm9770_vm1, %v2510_v11, -inf }
 0x1ff   : > { %915 = vst.msk [vmem:[#allocation2 + $0xa0] sm:$0xff] %vm895_vm13, %v842_v14  ;;  %676 = vrot.lane.b32.xlu1 %v8287_v57, %s7625_s17  ;;  %v2852_v19 = vrot.slane %v2851_v18, 4  ;;  %v2500_v20 = vrot.slane %v2486_v15, %v8534_v1  ;;  %v2501_v21 = vcombine.high %v2493_v8, %v2493_v8  ;;  %v2823_v22 = vsel %vm9770_vm1, %v2493_v8, -inf }
 0x200   : > { %1980 = vrot.lane.b32.xlu0 %v8542_v9, %s7631_s22  ;;  %v2519_v36 = vcombine.high %v2517_v16, %v2517_v16  ;;  %v2858_v23 = vsel %vm9770_vm1, %v2518_v17, -inf  ;;  %v2865_v25 = vsel %vm9770_vm1, %v2517_v16, -inf  ;;  %v2824_v26 = vrot.slane %v2823_v22, 4 }
 0x201   : > { %v1032_v28 = vpop.permute.xlu1 %1031  ;;  %v2071_v12 = vld [vmem:[#allocation2 + $0x88] sm:$0xff]  ;;  %v2853_v31 = vmax.f32 %v2851_v18, %v2852_v19  ;;  %v2859_v57 = vrot.slane %v2858_v23, 4  ;;  %v2866_v32 = vrot.slane %v2865_v25, 4  ;;  %v2502_v33 = vcombine.high %v2500_v20, %v2500_v20 }
 0x202   : > { %v1606_v30 = vpop.permute.xlu0 %1605  ;;  %1109 = vst.msk [vmem:[#allocation2 + $0xa1] sm:$0xff] %vm1087_vm6, %v1032_v28  ;;  %6641 = vmatmul.mubr.msk.f32.gmra.mrb[16].mxu0 %vm468_vm0, %v2071_v12  ;;  %v2872_v34 = vsel %vm9770_vm1, %v2519_v36, -inf  ;;  %v2825_v35 = vmax.f32 %v2823_v22, %v2824_v26  ;;  %v2830_v29 = vsel %vm9770_vm1, %v2501_v21, -inf  ;;  %v2837_v38 = vsel %vm9770_vm1, %v2500_v20, -inf  ;;  %v956_v26 = vld [vmem:[%s7871_s27 + $0xe8] sm:$0x7f] }
 0x203   : > { %1679 = vst.msk [vmem:[#allocation2 + $0x91] sm:$0xff] %vm9776_vm14, %v1606_v30  ;;  %1430 = vrot.lane.b32.xlu1 %v8542_v9, %s7626_s19  ;;  %v2860_v39 = vmax.f32 %v2858_v23, %v2859_v57  ;;  %v2867_v40 = vmax.f32 %v2865_v25, %v2866_v32  ;;  %v2873_v41 = vrot.slane %v2872_v34, 4  ;;  %v2831_v37 = vrot.slane %v2830_v29, 4  ;;  %v6303_v25 = vld [vmem:[%s7871_s27 + $0xe8] sm:$0x7f] }
 0x204   : > { %678 = vrot.lane.b32.xlu0 %v6331_v61, %s7625_s17  ;;  %v2826_v44 = vrot.slane %v2825_v35, 2  ;;  %v2838_v45 = vrot.slane %v2837_v38, 4  ;;  %v2844_v46 = vsel %vm9770_vm1, %v2502_v33, -inf  ;;  %v2854_v47 = vrot.slane %v2853_v31, 2 }
 0x205   : > { %v1608_v48 = vpop.permute.xlu1 %1607  ;;  %v2861_v52 = vrot.slane %v2860_v39, 2  ;;  %v2874_v53 = vmax.f32 %v2872_v34, %v2873_v41  ;;  %v2832_v56 = vmax.f32 %v2830_v29, %v2831_v37  ;;  %v2845_v27 = vrot.slane %v2844_v46, 4 }
 0x206   : > { %v1034_v51 = vpop.permute.xlu0 %1033  ;;  %1680 = vst.msk [vmem:[#allocation2 + $0x99] sm:$0x7f] %vm9772_vm15, %v1608_v48  ;;  %v2827_v55 = vmax.f32 %v2825_v35, %v2826_v44  ;;  %v2839_v58 = vmax.f32 %v2837_v38, %v2838_v45  ;;  %v2868_v59 = vrot.slane %v2867_v40, 2  ;;  %v2855_v5 = vmax.f32 %v2853_v31, %v2854_v47 }
 0x207   : > { %1110 = vst.msk [vmem:[#allocation2 + $0xa9] sm:$0x7f] %vm9771_vm8, %v1034_v51  ;;  %1982 = vrot.lane.b32.xlu1 %v6361_v42, %s7631_s22  ;;  %v2875_v61 = vrot.slane %v2874_v53, 2  ;;  %v2833_v62 = vrot.slane %v2832_v56, 2  ;;  %v2846_v2 = vmax.f32 %v2844_v46, %v2845_v27  ;;  %v2862_v6 = vmax.f32 %v2860_v39, %v2861_v52  ;;  %v6333_v46 = vld [vmem:[%s7871_s27 + $0xe8] sm:$0xff] }
 0x208   : > { %1432 = vrot.lane.b32.xlu0 %v1341_v43, %s7626_s19  ;;  %v2840_v63 = vrot.slane %v2839_v58, 2  ;;  %v2828_v0 = vrot.slane %v2827_v55, 1  ;;  %v2869_v13 = vmax.f32 %v2867_v40, %v2868_v59  ;;  %v2856_v19 = vrot.slane %v2855_v5, 1  ;;  %v1342_v52 = vld [vmem:[%s7871_s27 + $0xe1] sm:$0xff] }
 0x209   : > { %v1226_v3 = vpop.permute.xlu1 %1225  ;;  %v2834_v7 = vmax.f32 %v2832_v56, %v2833_v62  ;;  %v2847_v11 = vrot.slane %v2846_v2, 2  ;;  %v2876_v14 = vmax.f32 %v2874_v53, %v2875_v61  ;;  %v2863_v20 = vrot.slane %v2862_v6, 1  ;;  %v6363_v56 = vld [vmem:[%s7871_s27 + $0xe9] sm:$0x7f] }
 0x20a   : > { %v1788_v4 = vpop.permute.xlu0 %1787  ;;  %1302 = vst.msk [vmem:[#allocation2 + $0xa0] sm:$0xff] %vm9774_vm7, %v1226_v3  ;;  %v2841_v10 = vmax.f32 %v2839_v58, %v2840_v63  ;;  %vm9777_vm1 = vcmask 1041409   ;;  %vm3337_vm8 = vcmask 1042434   ;;  %v2829_v21 = vmax.f32 %v2827_v55, %v2828_v0  ;;  %v1343_v58 = vld [vmem:[%s7871_s27 + $0xe9] sm:$0x7f]  ;;  %v8633_v3 = vld [vmem:[%s7871_s27 + $0xf0] sm:$0xff] }
 0x20b   : > { %1860 = vst.msk [vmem:[#allocation2 + $0x90] sm:$0xff] %vm9773_vm3, %v1788_v4  ;;  %859 = vrot.lane.b32.xlu1 %v772_v60, %s7627_s16  ;;  %v2835_v15 = vrot.slane %v2834_v7, 1  ;;  %v2848_v16 = vmax.f32 %v2846_v2, %v2847_v11  ;;  %v2870_v23 = vrot.slane %v2869_v13, 1  ;;  %vm3339_vm15 = vcmask 1043459   ;;  %v530_v63 = vld [vmem:[%s7871_s27 + $0xe8] sm:$0x7f] }
 0x20c   : > { %857 = vrot.lane.b32.xlu0 %v8542_v9, %s7627_s16  ;;  %v2842_v8 = vrot.slane %v2841_v10, 1  ;;  %v2877_v28 = vrot.slane %v2876_v14, 1  ;;  %v2857_v32 = vmax.f32 %v2855_v5, %v2856_v19  ;;  %v2864_v34 = vmax.f32 %v2862_v6, %v2863_v20  ;;  %v6305_v2 = vld [vmem:[%s7871_s27 + $0xf8] sm:$0x7f] }
 0x20d   : > { %v1790_v17 = vpop.permute.xlu1 %1789  ;;  %v2836_v22 = vmax.f32 %v2834_v7, %v2835_v15  ;;  %v2849_v36 = vrot.slane %v2848_v16, 1  ;;  %vm9780_vm14 = vcmask 1046534   ;;  %v2871_v29 = vmax.f32 %v2869_v13, %v2870_v23  ;;  %v6335_v7 = vld [vmem:[%s7871_s27 + $0xf8] sm:$0xff] }
 0x20e   : > { %v1228_v18 = vpop.permute.xlu0 %1227  ;;  %1861 = vst.msk [vmem:[#allocation2 + $0x98] sm:$0xff] %vm9773_vm3, %v1790_v17  ;;  %v2843_v9 = vmax.f32 %v2841_v10, %v2842_v8  ;;  %vm3341_vm3 = vcmask 1044484   ;;  %v2878_v39 = vmax.f32 %v2876_v14, %v2877_v28  ;;  %v8652_v13 = vld [vmem:[%s7871_s27 + $0xf1] sm:$0xff]  ;;  %v6365_v15 = vld [vmem:[%s7871_s27 + $0xf9] sm:$0x7f] }
 0x20f   : > { %1303 = vst.msk [vmem:[#allocation2 + $0xa8] sm:$0xff] %vm9774_vm7, %v1228_v18  ;;  %1047 = vrot.lane.b32.xlu1 %v8346_v24, %s7624_s14  ;;  %v2850_v30 = vmax.f32 %v2848_v16, %v2849_v36  ;;  %v3336_v12 = vsel %vm9777_vm1, %v2836_v22, %v2829_v21  ;;  %vm9783_vm7 = vcmask 1045509   ;;  %vm9779_vm1 = vcmask 1047559   ;;  %v774_v8 = vld [vmem:[%s7871_s27 + $0xe9] sm:$0x7f] }
 0x210   : > { %1621 = vrot.lane.b32.xlu0 %v8346_v24, %s9801_s21  ;;  %v3338_v33 = vsel %vm3337_vm8, %v2843_v9, %v3336_v12  ;;  %v958_v36 = vld [vmem:[%s7871_s27 + $0xf8] sm:$0x7f] }
 0x211   : > { %v665_v31 = vpop.permute.xlu1 %664  ;;  %v3340_v35 = vsel %vm3339_vm15, %v2850_v30, %v3338_v33 }
 0x212   : > { %v1969_v57 = vpop.permute.xlu0 %1968  ;;  %735 = vst.msk [vmem:[#allocation2 + $0xb0] sm:$0xff] %vm714_vm9, %v665_v31  ;;  %v3342_v38 = vsel %vm3341_vm3, %v2857_v32, %v3340_v35 }
 0x213   : > { %2042 = vst.msk [vmem:[#allocation2 + $0x90] sm:$0xff] %vm9803_vm2, %v1969_v57  ;;  %1623 = vrot.lane.b32.xlu1 %v6303_v25, %s9801_s21  ;;  %v3344_v40 = vsel %vm9783_vm7, %v2864_v34, %v3342_v38  ;;  %vm9781_vm2 = vcmask 130049   ;;  %v3834_v38 = vld [vmem:[%s9746_s3] sm:$0xff] }
 0x214   : > { %1049 = vrot.lane.b32.xlu0 %v956_v26, %s7624_s14  ;;  %v3346_v43 = vsel %vm9780_vm14, %v2871_v29, %v3344_v40  ;;  %vm9806_vm14 = vcmask 170128  }
 0x215   : > { %v1419_v41 = vpop.permute.xlu1 %1418  ;;  %v8600_v44 = vpop.f32.mrb[4].mxu0  ;;  %v3348_v37 = vsel %vm9779_vm1, %v2878_v39, %v3346_v43  ;;  %vm9805_vm1 = vcmask 22528   ;;  %v3835_v39 = vld [vmem:[%s9746_s3 + $0x8] sm:$0xff] }
 0x216   : > { %v667_v42 = vpop.permute.xlu0 %666  ;;  %1496 = vst.msk [vmem:[#allocation2 + $0xa0] sm:$0xff] %vm1474_vm11, %v1419_v41  ;;  %v8603_v45 = vpop.f32.mrb[5].mxu0  ;;  %v2289_v16 = vadd.f32 %v8600_v44, %v8509_v50 }
 0x217   : > { %736 = vst.msk [vmem:[#allocation2 + $0xb8] sm:$0xff] %vm714_vm9, %v667_v42  ;;  %1241 = vrot.lane.b32.xlu1 %v8346_v24, %s7623_s15  ;;  %v2284_v19 = vadd.f32 %v8509_v50, %v8603_v45 }
 0x218   : > { %1803 = vrot.lane.b32.xlu0 %v8346_v24, %s7629_s24  ;;  %3407 = vst.msk [vmem:[#allocation5] sm:$0xff] %vm9778_vm4, %v3348_v37  ;;  %vm9804_vm4 = vcmask 171152   ;;  %v2427_v23 = vmax.f32 %v2289_v16, 0.0  ;;  %v6694_v37 = vpack.c.bf16 %v3835_v39, %v3834_v38 }
 0x219   : > { %v1971_v48 = vpop.permute.xlu1 %1970  ;;  %563 = vst.msk [vmem:[#allocation2 + $0xf9] sm:$0x7f] %vm9805_vm1, %v530_v63  ;;  %vm9808_vm1 = vcmask 121952   ;;  %v2426_v12 = vmax.f32 %v2284_v19, 0.0 }
 0x21a   : > { %v1421_v51 = vpop.permute.xlu0 %1420  ;;  %v2072_v47 = vld [vmem:[#allocation2 + $0x90] sm:$0xff]  ;;  %2043 = vst.msk [vmem:[#allocation2 + $0x98] sm:$0x7f] %vm2024_vm5, %v1971_v48 }
 0x21b   : > { %1497 = vst.msk [vmem:[#allocation2 + $0xa8] sm:$0x7f] %vm1476_vm10, %v1421_v51  ;;  %6643 = vmatprep.mubr.msk.f32.mxu0 %vm468_vm0, %v2072_v47  ;;  %1805 = vrot.lane.b32.xlu1 %v6333_v46, %s7629_s24  ;;  %v1345_v47 = vld [vmem:[%s7871_s27 + $0xf9] sm:$0x7f]  ;;  %s7634_s27 = smov 64  }
 0x21c   : > { %1243 = vrot.lane.b32.xlu0 %v6333_v46, %s7623_s15 }
 0x21d   : > { %v848_v53 = vpop.permute.xlu1 %847 }
 0x21e   : > { %v846_v55 = vpop.permute.xlu0 %845  ;;  %918 = vst.msk [vmem:[#allocation2 + $0xb8] sm:$0x7f] %vm897_vm12, %v848_v53 }
 0x21f   : > { %917 = vst.msk [vmem:[#allocation2 + $0xb0] sm:$0xff] %vm895_vm13, %v846_v55  ;;  %1434 = vrot.lane.b32.xlu1 %v1342_v52, %s7626_s19  ;;  %v3431_v27 = vld [vmem:[#allocation5] sm:$0x7f] }
 0x220   : > { %1984 = vrot.lane.b32.xlu0 %v1342_v52, %s7631_s22  ;;  %v3445_v62 = vrot.slane %v3431_v27, 7 }
 0x221   : > { %v1036_v59 = vpop.permute.xlu1 %1035  ;;  %v2073_v61 = vld [vmem:[#allocation2 + $0x98] sm:$0xff] }
 0x222   : > { %v1610_v60 = vpop.permute.xlu0 %1609  ;;  %1111 = vst.msk [vmem:[#allocation2 + $0xb1] sm:$0xff] %vm1087_vm6, %v1036_v59  ;;  %6644 = vmatmul.mubr.msk.f32.gmra.mrb[18].mxu0 %vm468_vm0, %v2073_v61  ;;  %v3554_v61 = vld [vmem:[#allocation5] sm:$0x7f] }
 0x223   : > { %1681 = vst.msk [vmem:[#allocation2 + $0xa1] sm:$0xff] %vm9804_vm4, %v1610_v60  ;;  %1986 = vrot.lane.b32.xlu1 %v6363_v56, %s7631_s22  ;;  %vm9807_vm4 = vcmask 96328  }
 0x224   : > { %1436 = vrot.lane.b32.xlu0 %v1343_v58, %s7626_s19  ;;  %3461 = vst.msk [vmem:[#allocation3 + $0x10] sm:$0xfe] %vm9781_vm2, %v3445_v62  ;;  %vm9809_vm2 = vcmask 195752  }
 0x225   : > { %v1612_v4 = vpop.permute.xlu1 %1611 }
 0x226   : > { %v1038_v5 = vpop.permute.xlu0 %1037  ;;  %1682 = vst.msk [vmem:[#allocation2 + $0xa9] sm:$0x7f] %vm9806_vm14, %v1612_v4  ;;  %vm9810_vm14 = vmmov %vm9809_vm2 }
 0x227   : > { %1112 = vst.msk [vmem:[#allocation2 + $0xb9] sm:$0x7f] %vm9807_vm4, %v1038_v5  ;;  %1627 = vrot.lane.b32.xlu1 %v6305_v2, %s9801_s21  ;;  %vm9811_vm4 = vmmov %vm9808_vm1 }
 0x228   : > { %1625 = vrot.lane.b32.xlu0 %v8633_v3, %s9801_s21  ;;  %s9961_s21 = sld [smem:[#allocation23_spill]] }
 0x229   : > { %v1230_v6 = vpop.permute.xlu1 %1229 }
 0x22a   : > { %v1792_v0 = vpop.permute.xlu0 %1791  ;;  %1304 = vst.msk [vmem:[#allocation2 + $0xb0] sm:$0xff] %vm9808_vm1, %v1230_v6  ;;  %vm9813_vm1 = vcmask 123904  }
 0x22b   : > { %1862 = vst.msk [vmem:[#allocation2 + $0xa0] sm:$0xff] %vm9809_vm2, %v1792_v0  ;;  %680 = vrot.lane.b32.xlu1 %v8346_v24, %s7625_s17  ;;  %vm9812_vm2 = vcmask 220352  }
 0x22c   : > { %1807 = vrot.lane.b32.xlu0 %v8633_v3, %s7629_s24 }
 0x22d   : > { %v1794_v10 = vpop.permute.xlu1 %1793 }
 0x22e   : > { %v1232_v11 = vpop.permute.xlu0 %1231  ;;  %1863 = vst.msk [vmem:[#allocation2 + $0xa8] sm:$0xff] %vm9810_vm14, %v1794_v10  ;;  %vm9814_vm14 = vmmov %vm9813_vm1  ;;  %s9701_s13 = scalar_lea.hbm %s9961_s21, %s6412_s28 }
 0x22f   : > { %1305 = vst.msk [vmem:[#allocation2 + $0xb8] sm:$0xff] %vm9811_vm4, %v1232_v11  ;;  %1809 = vrot.lane.b32.xlu1 %v6335_v7, %s7629_s24  ;;  %vm9815_vm4 = vmmov %vm9813_vm1  ;;  %s7639_s24 = smov 96  }
 0x230   : > { %682 = vrot.lane.b32.xlu0 %v6333_v46, %s7625_s17  ;;  %s461_s17 = sand.u32 1, %s7608_s26  }
 0x231   : > { %v669_v14 = vpop.permute.xlu1 %668  ;;  %s462_s20 = scalar_lea.vmem [#allocation13], %s461_s17 }
 0x232   : > { %v1973_v24 = vpop.permute.xlu0 %1972  ;;  %737 = vst.msk [vmem:[#allocation2 + $0xc0] sm:$0xff] %vm714_vm9, %v669_v14  ;;  %v3570_v14 = vrot.slane %v3554_v61, 7  ;;  %s6189_s23 = sshll.u32 %s462_s20, 4  ;;  %s9703_s23 = int_to_ptr.vmem [resolvable:$true] %s6189_s23 }
 0x233   : > { %2044 = vst.msk [vmem:[#allocation2 + $0xa0] sm:$0xff] %vm9812_vm2, %v1973_v24  ;;  %861 = vrot.lane.b32.xlu1 %v1342_v52, %s7627_s16  ;;  %v7633_v52 = vmov 0.0|0.0   ;;  %vm9816_vm2 = vmmov %vm9813_vm1 }
 0x234   : > { %1988 = vrot.lane.b32.xlu0 %v8652_v13, %s7631_s22  ;;  %6693 = vmatprep.subr.bf16.mxu1 %v7633_v52 }
 0x235   : > { %v1423_v17 = vpop.permute.xlu1 %1422  ;;  %v6627_v20 = vpop.f32.mrb[6].mxu0  ;;  %6695 = vmatpush1.bf16.msra.mxu1 %v6694_v37 }
 0x236   : > { %v671_v18 = vpop.permute.xlu0 %670  ;;  %1498 = vst.msk [vmem:[#allocation2 + $0xb0] sm:$0xff] %vm1474_vm11, %v1423_v17  ;;  %v2299_v21 = vadd.f32 %v6627_v20, %v8509_v50  ;;  %v2293_v22 = vpop.f32.mrb[7].mxu0  ;;  %6696 = vmatprep.subr.bf16.mxu1 %v7633_v52 }
 0x237   : > { %738 = vst.msk [vmem:[#allocation2 + $0xc8] sm:$0xff] %vm714_vm9, %v671_v18  ;;  %1990 = vrot.lane.b32.xlu1 %v6365_v15, %s7631_s22  ;;  %v2294_v9 = vadd.f32 %v8509_v50, %v2293_v22  ;;  %v3611_v22 = vld [vmem:[#allocation5] sm:$0xff]  ;;  %s7640_s22 = smov 112  }
 0x238   : > { %863 = vrot.lane.b32.xlu0 %v774_v8, %s7627_s16  ;;  %v2429_v25 = vmax.f32 %v2299_v21, 0.0  ;;  %s7638_s16 = smov 32  }
 0x239   : > { %v1975_v26 = vpop.permute.xlu1 %1974  ;;  %v2428_v31 = vmax.f32 %v2294_v9, 0.0 }
 0x23a   : > { %v1425_v28 = vpop.permute.xlu0 %1424  ;;  %v2074_v30 = vld [vmem:[#allocation2 + $0xa0] sm:$0xff]  ;;  %2045 = vst.msk [vmem:[#allocation2 + $0xa8] sm:$0x7f] %vm2024_vm5, %v1975_v26  ;;  %v2457_v57 = vmax.f32 %v2427_v23, %v2429_v25 }
 0x23b   : > { %1499 = vst.msk [vmem:[#allocation2 + $0xb8] sm:$0x7f] %vm1476_vm10, %v1425_v28  ;;  %6646 = vmatprep.mubr.msk.f32.mxu0 %vm468_vm0, %v2074_v30  ;;  %1053 = vrot.lane.b32.xlu1 %v958_v36, %s7624_s14  ;;  %v2456_v32 = vmax.f32 %v2426_v12, %v2428_v31 }
 0x23c   : > { %1051 = vrot.lane.b32.xlu0 %v8633_v3, %s7624_s14  ;;  %v2537_v33 = vcombine.high %v2457_v57, %v2457_v57  ;;  %v2544_v34 = vrot.slane %v2457_v57, %v8534_v1  ;;  %s7636_s14 = smov 80  }
 0x23d   : > { %v852_v35 = vpop.permute.xlu1 %851  ;;  %v2520_v40 = vcombine.high %v2456_v32, %v2456_v32  ;;  %v2527_v41 = vrot.slane %v2456_v32, %v8534_v1 }
 0x23e   : > { %v850_v29 = vpop.permute.xlu0 %849  ;;  %920 = vst.msk [vmem:[#allocation2 + $0xc8] sm:$0x7f] %vm897_vm12, %v852_v35  ;;  %v2551_v42 = vrot.slane %v2537_v33, %v8534_v1  ;;  %v2552_v43 = vcombine.high %v2544_v34, %v2544_v34  ;;  %v2907_v44 = vsel %vm9813_vm1, %v2544_v34, -inf  ;;  %vm9817_vm1 = vcmask 171152   ;;  %v3660_v34 = vld [vmem:[#allocation5 + $0x1] sm:$0x7f] }
 0x23f   : > { %919 = vst.msk [vmem:[#allocation2 + $0xc0] sm:$0xff] %vm895_vm13, %v850_v29  ;;  %1247 = vrot.lane.b32.xlu1 %v6335_v7, %s7623_s15  ;;  %v2908_v45 = vrot.slane %v2907_v44, 4  ;;  %v2534_v46 = vrot.slane %v2520_v40, %v8534_v1  ;;  %v2535_v48 = vcombine.high %v2527_v41, %v2527_v41  ;;  %v2879_v51 = vsel %vm9814_vm14, %v2527_v41, -inf  ;;  %vm9818_vm14 = vmmov %vm9816_vm2  ;;  %v3836_v40 = vld [vmem:[%s9746_s3 + $0x10] sm:$0xff]  ;;  %v3837_v41 = vld [vmem:[%s9746_s3 + $0x18] sm:$0xff] }
 0x240   : > { %1245 = vrot.lane.b32.xlu0 %v8633_v3, %s7623_s15  ;;  %v2553_v53 = vcombine.high %v2551_v42, %v2551_v42  ;;  %v2914_v55 = vsel %vm9815_vm4, %v2552_v43, -inf  ;;  %v2921_v56 = vsel %vm9816_vm2, %v2551_v42, -inf  ;;  %v2880_v58 = vrot.slane %v2879_v51, 4  ;;  %vm9819_vm4 = vmmov %vm9816_vm2  ;;  %s7635_s15 = smov 48  }
 0x241   : > { %v1040_v27 = vpop.permute.xlu1 %1039  ;;  %v2075_v60 = vld [vmem:[#allocation2 + $0xa8] sm:$0xff]  ;;  %v2909_v62 = vmax.f32 %v2907_v44, %v2908_v45  ;;  %v2915_v63 = vrot.slane %v2914_v55, 4  ;;  %v2922_v2 = vrot.slane %v2921_v56, 4  ;;  %v2536_v3 = vcombine.high %v2534_v46, %v2534_v46 }
 0x242   : > { %v1614_v59 = vpop.permute.xlu0 %1613  ;;  %1113 = vst.msk [vmem:[#allocation2 + $0xc1] sm:$0xff] %vm1087_vm6, %v1040_v27  ;;  %6647 = vmatmul.mubr.msk.f32.gmra.mrb[20].mxu0 %vm468_vm0, %v2075_v60  ;;  %v2928_v4 = vsel %vm9818_vm14, %v2553_v53, -inf  ;;  %v2881_v5 = vmax.f32 %v2879_v51, %v2880_v58  ;;  %v2886_v6 = vsel %vm9819_vm4, %v2535_v48, -inf  ;;  %v2893_v0 = vsel %vm9816_vm2, %v2534_v46, -inf  ;;  %v3838_v51 = vld [vmem:[%s9746_s3 + $0x20] sm:$0xff] }
 0x243   : > { %1683 = vst.msk [vmem:[#allocation2 + $0xb1] sm:$0xff] %vm9817_vm1, %v1614_v59  ;;  %1440 = vrot.lane.b32.xlu1 %v1345_v47, %s7626_s19  ;;  %v2916_v7 = vmax.f32 %v2914_v55, %v2915_v63  ;;  %v2923_v10 = vmax.f32 %v2921_v56, %v2922_v2  ;;  %v2929_v11 = vrot.slane %v2928_v4, 4  ;;  %v2887_v15 = vrot.slane %v2886_v6, 4  ;;  %vm9820_vm1 = vmmov %vm9816_vm2  ;;  %v3839_v47 = vld [vmem:[%s9746_s3 + $0x28] sm:$0xff]  ;;  %v3511_v56 = vld [vmem:[#allocation5 + $0x1] sm:$0x7f] }
 0x244   : > { %1438 = vrot.lane.b32.xlu0 %v8652_v13, %s7626_s19  ;;  %v2882_v24 = vrot.slane %v2881_v5, 2  ;;  %v2894_v8 = vrot.slane %v2893_v0, 4  ;;  %v2900_v16 = vsel %vm9820_vm1, %v2536_v3, -inf  ;;  %v2910_v19 = vrot.slane %v2909_v62, 2  ;;  %s7637_s19 = smov 16  }
 0x245   : > { %v1616_v17 = vpop.permute.xlu1 %1615  ;;  %v2917_v20 = vrot.slane %v2916_v7, 2  ;;  %v2930_v21 = vmax.f32 %v2928_v4, %v2929_v11  ;;  %vm9821_vm14 = vcmask 170128   ;;  %vm9822_vm4 = vcmask 96328  }
 0x246   : > { %v1042_v18 = vpop.permute.xlu0 %1041  ;;  %1684 = vst.msk [vmem:[#allocation2 + $0xb9] sm:$0x7f] %vm9821_vm14, %v1616_v17  ;;  %v2883_v13 = vmax.f32 %v2881_v5, %v2882_v24  ;;  %v2888_v9 = vmax.f32 %v2886_v6, %v2887_v15  ;;  %v2895_v36 = vmax.f32 %v2893_v0, %v2894_v8  ;;  %v2901_v23 = vrot.slane %v2900_v16, 4  ;;  %v3840_v0 = vld [vmem:[%s9746_s3 + $0x30] sm:$0xff] }
 0x247   : > { %1114 = vst.msk [vmem:[#allocation2 + $0xc9] sm:$0x7f] %vm9822_vm4, %v1042_v18  ;;  %3627 = vrot.lane.b32.xlu1 %v3611_v22, %s7634_s27  ;;  %v2924_v25 = vrot.slane %v2923_v10, 2  ;;  %v2931_v26 = vrot.slane %v2930_v21, 2  ;;  %v2911_v32 = vmax.f32 %v2909_v62, %v2910_v19  ;;  %v2918_v33 = vmax.f32 %v2916_v7, %v2917_v20  ;;  %v3841_v7 = vld [vmem:[%s9746_s3 + $0x38] sm:$0xff] }
 0x248   : > { %3578 = vrot.lane.b32.xlu0 %v3570_v14, %s7635_s15  ;;  %v2889_v28 = vrot.slane %v2888_v9, 2  ;;  %v2896_v30 = vrot.slane %v2895_v36, 2  ;;  %v2902_v12 = vmax.f32 %v2900_v16, %v2901_v23  ;;  %vm9823_vm2 = vcmask 121952  }
 0x249   : > { %v1234_v31 = vpop.permute.xlu1 %1233  ;;  %vm9824_vm1 = vcmask 195752   ;;  %v2884_v35 = vrot.slane %v2883_v13, 1  ;;  %v2925_v42 = vmax.f32 %v2923_v10, %v2924_v25  ;;  %v2932_v43 = vmax.f32 %v2930_v21, %v2931_v26  ;;  %vm9826_vm4 = vmmov %vm9823_vm2  ;;  %v3842_v21 = vld [vmem:[%s9746_s3 + $0x40] sm:$0xff] }
 0x24a   : > { %v1796_v57 = vpop.permute.xlu0 %1795  ;;  %1306 = vst.msk [vmem:[#allocation2 + $0xc0] sm:$0xff] %vm9823_vm2, %v1234_v31  ;;  %v2890_v29 = vmax.f32 %v2888_v9, %v2889_v28  ;;  %v2897_v38 = vmax.f32 %v2895_v36, %v2896_v30  ;;  %v2903_v39 = vrot.slane %v2902_v12, 2  ;;  %v2912_v53 = vrot.slane %v2911_v32, 1  ;;  %vm9825_vm14 = vmmov %vm9824_vm1  ;;  %v3845_v31 = vld [vmem:[%s9746_s3 + $0x58] sm:$0xff] }
 0x24b   : > { %1864 = vst.msk [vmem:[#allocation2 + $0xb0] sm:$0xff] %vm9824_vm1, %v1796_v57  ;;  %3676 = vrot.lane.b32.xlu1 %v3660_v34, %s7636_s14  ;;  %v2919_v55 = vrot.slane %v2918_v33, 1  ;;  %v6697_v58 = vpack.c.bf16 %v3837_v41, %v3836_v40  ;;  %v2885_v27 = vmax.f32 %v2883_v13, %v2884_v35  ;;  %v2926_v62 = vrot.slane %v2925_v42, 1  ;;  %v3846_v34 = vld [vmem:[%s9746_s3 + $0x60] sm:$0xff]  ;;  %v3847_v35 = vld [vmem:[%s9746_s3 + $0x68] sm:$0xff] }
 0x24c   : > { %3482 = vrot.lane.b32.xlu0 %v3611_v22, %s7637_s19  ;;  %v2891_v44 = vrot.slane %v2890_v29, 1  ;;  %v2898_v37 = vrot.slane %v2897_v38, 1  ;;  %v2904_v45 = vmax.f32 %v2902_v12, %v2903_v39  ;;  %v6700_v63 = vpack.c.bf16 %v3839_v47, %v3838_v51  ;;  %v3843_v22 = vld [vmem:[%s9746_s3 + $0x48] sm:$0xff]  ;;  %v3844_v12 = vld [vmem:[%s9746_s3 + $0x50] sm:$0xff] }
 0x24d   : > { %v1798_v46 = vpop.permute.xlu1 %1797  ;;  %6698 = vmatpush1.bf16.msra.mxu1 %v6697_v58  ;;  %v2933_v2 = vrot.slane %v2932_v43, 1  ;;  %vm9827_vm2 = vcmask 1041409   ;;  %v2913_v10 = vmax.f32 %v2911_v32, %v2912_v53  ;;  %vm9828_vm1 = vcmask 220352   ;;  %v3850_v58 = vld [vmem:[%s9746_s3 + $0x80] sm:$0xff] }
 0x24e   : > { %v1236_v48 = vpop.permute.xlu0 %1235  ;;  %1865 = vst.msk [vmem:[#allocation2 + $0xb8] sm:$0xff] %vm9825_vm14, %v1798_v46  ;;  %v2892_v59 = vmax.f32 %v2890_v29, %v2891_v44  ;;  %v2899_v60 = vmax.f32 %v2897_v38, %v2898_v37  ;;  %v2905_v61 = vrot.slane %v2904_v45, 1  ;;  %6699 = vmatprep.subr.bf16.mxu1 %v7633_v52  ;;  %v2920_v14 = vmax.f32 %v2918_v33, %v2919_v55  ;;  %v3849_v46 = vld [vmem:[%s9746_s3 + $0x78] sm:$0xff] }
 0x24f   : > { %1307 = vst.msk [vmem:[#allocation2 + $0xc8] sm:$0xff] %vm9826_vm4, %v1236_v48  ;;  %v2927_v15 = vmax.f32 %v2925_v42, %v2926_v62  ;;  %v6703_v16 = vpack.c.bf16 %v3841_v7, %v3840_v0  ;;  %v2934_v17 = vmax.f32 %v2932_v43, %v2933_v2  ;;  %vm9829_vm14 = vcmask 1046534   ;;  %v3848_v43 = vld [vmem:[%s9746_s3 + $0x70] sm:$0xff] }
 0x250   : > { %3525 = vrot.lane.b32.xlu0 %v3511_v56, %s7638_s16  ;;  %v2906_v3 = vmax.f32 %v2904_v45, %v2905_v61  ;;  %v3349_v4 = vsel %vm9827_vm2, %v2892_v59, %v2885_v27  ;;  %vm9830_vm4 = vcmask 1047559   ;;  %vm9831_vm2 = vcmask 130048   ;;  %v3851_v27 = vld [vmem:[%s9746_s3 + $0x88] sm:$0xff] }
 0x251   : > { %v673_v5 = vpop.permute.xlu1 %672  ;;  %v3350_v11 = vsel %vm3337_vm8, %v2899_v60, %v3349_v4  ;;  %6701 = vmatpush1.bf16.msra.mxu1 %v6700_v63  ;;  %v6706_v25 = vpack.c.bf16 %v3843_v22, %v3842_v21  ;;  %v6709_v57 = vpack.c.bf16 %v3845_v31, %v3844_v12  ;;  %v6712_v42 = vpack.c.bf16 %v3847_v35, %v3846_v34 }
 0x252   : > { %v1977_v6 = vpop.permute.xlu0 %1976  ;;  %739 = vst.msk [vmem:[#allocation2 + $0xd0] sm:$0xff] %vm714_vm9, %v673_v5  ;;  %v3351_v24 = vsel %vm3339_vm15, %v2906_v3, %v3350_v11  ;;  %6702 = vmatprep.subr.bf16.mxu1 %v7633_v52  ;;  %v6715_v47 = vpack.c.bf16 %v3849_v46, %v3848_v43  ;;  %v6718_v60 = vpack.c.bf16 %v3851_v27, %v3850_v58 }
 0x253   : > { %2046 = vst.msk [vmem:[#allocation2 + $0xb0] sm:$0xff] %vm9828_vm1, %v1977_v6  ;;  %v3352_v8 = vsel %vm3341_vm3, %v2913_v10, %v3351_v24  ;;  %vm9782_vm1 = vcmask 129024  }
 0x254   : > { %v3353_v18 = vsel %vm9783_vm7, %v2920_v14, %v3352_v8  ;;  %vm9838_vm7 = vcmask 195752  }
 0x255   : > { %v1427_v19 = vpop.permute.xlu1 %1426  ;;  %v3354_v13 = vsel %vm9829_vm14, %v2927_v15, %v3353_v18  ;;  %v8757_v9 = vpop.f32.mrb[8].mxu0  ;;  %6704 = vmatpush1.bf16.msra.mxu1 %v6703_v16  ;;  %vm9832_vm14 = vcmask 171152  }
 0x256   : > { %v675_v20 = vpop.permute.xlu0 %674  ;;  %1500 = vst.msk [vmem:[#allocation2 + $0xc0] sm:$0xff] %vm1474_vm11, %v1427_v19  ;;  %v3355_v36 = vsel %vm9830_vm4, %v2934_v17, %v3354_v13  ;;  %v8760_v23 = vpop.f32.mrb[9].mxu0  ;;  %6705 = vmatprep.subr.bf16.mxu1 %v7633_v52  ;;  %vm9833_vm4 = vcmask 130049   ;;  %v2309_v6 = vadd.f32 %v8757_v9, %v8509_v50 }
 0x257   : > { %740 = vst.msk [vmem:[#allocation2 + $0xd8] sm:$0xff] %vm714_vm9, %v675_v20  ;;  %v2304_v10 = vadd.f32 %v8509_v50, %v8760_v23 }
 0x258   : > { %3408 = vst.msk [vmem:[#allocation5 + $0x8] sm:$0xff] %vm9831_vm2, %v3355_v36  ;;  %vm9834_vm2 = vcmask 170128   ;;  %v2431_v8 = vmax.f32 %v2309_v6, 0.0 }
 0x259   : > { %v1979_v26 = vpop.permute.xlu1 %1978  ;;  %6707 = vmatpush1.bf16.msra.mxu1 %v6706_v25  ;;  %v2430_v20 = vmax.f32 %v2304_v10, 0.0 }
 0x25a   : > { %v1429_v28 = vpop.permute.xlu0 %1428  ;;  %v2076_v30 = vld [vmem:[#allocation2 + $0xb0] sm:$0xff]  ;;  %2047 = vst.msk [vmem:[#allocation2 + $0xb8] sm:$0x7f] %vm2024_vm5, %v1979_v26  ;;  %6708 = vmatprep.subr.bf16.mxu1 %v7633_v52 }
 0x25b   : > { %1501 = vst.msk [vmem:[#allocation2 + $0xc8] sm:$0x7f] %vm1476_vm10, %v1429_v28  ;;  %6649 = vmatprep.mubr.msk.f32.mxu0 %vm468_vm0, %v2076_v30 }
 0x25d   : > { %v856_v32 = vpop.permute.xlu1 %855  ;;  %6710 = vmatpush1.bf16.msra.mxu1 %v6709_v57 }
 0x25e   : > { %v854_v33 = vpop.permute.xlu0 %853  ;;  %922 = vst.msk [vmem:[#allocation2 + $0xd8] sm:$0x7f] %vm897_vm12, %v856_v32  ;;  %6711 = vmatprep.subr.bf16.mxu1 %v7633_v52 }
 0x25f   : > { %921 = vst.msk [vmem:[#allocation2 + $0xd0] sm:$0xff] %vm895_vm13, %v854_v33  ;;  %v3710_v29 = vld [vmem:[#allocation5 + $0x8] sm:$0x7f] }
 0x260   : > { %v3555_v38 = vld [vmem:[#allocation5 + $0x8] sm:$0x7f]  ;;  %v3724_v39 = vrot.slane %v3710_v29, 7 }
 0x261   : > { %v3571_v40 = vrot.slane %v3555_v38, 7  ;;  %v3803_v41 = vld [vmem:[#allocation5 + $0x9] sm:$0x7f]  ;;  %v1044_v44 = vpop.permute.xlu1 %1043  ;;  %6713 = vmatpush1.bf16.msra.mxu1 %v6712_v42 }
 0x262   : > { %v1618_v37 = vpop.permute.xlu0 %1617  ;;  %v2077_v45 = vld [vmem:[#allocation2 + $0xb8] sm:$0xff]  ;;  %3811 = vst.msk [vmem:[#allocation3 + $0x8] sm:$0x7f] %vm9782_vm1, %v3803_v41  ;;  %3731 = vrot.lane.b32.xlu1 %v3724_v39, %s7639_s24  ;;  %6714 = vmatprep.subr.bf16.mxu1 %v7633_v52  ;;  %vm9837_vm1 = vcmask 121952  }
 0x263   : > { %v3432_v48 = vld [vmem:[#allocation5 + $0x8] sm:$0x7f]  ;;  %3580 = vrot.lane.b32.xlu0 %v3571_v40, %s7635_s15  ;;  %1115 = vst.msk [vmem:[#allocation2 + $0xd1] sm:$0xff] %vm1087_vm6, %v1044_v44  ;;  %6650 = vmatmul.mubr.msk.f32.gmra.mrb[22].mxu0 %vm468_vm0, %v2077_v45 }
 0x264   : > { %1685 = vst.msk [vmem:[#allocation2 + $0xc1] sm:$0xff] %vm9832_vm14, %v1618_v37  ;;  %v3446_v51 = vrot.slane %v3432_v48, 7  ;;  %v3760_v53 = vld [vmem:[#allocation5 + $0x8] sm:$0xff]  ;;  %vm9835_vm14 = vcmask 96328  }
 0x265   : > { %v1620_v55 = vpop.permute.xlu1 %1619  ;;  %6716 = vmatpush1.bf16.msra.mxu1 %v6715_v47  ;;  %v3661_v61 = vld [vmem:[#allocation5 + $0x9] sm:$0x7f] }
 0x266   : > { %3462 = vst.msk [vmem:[#allocation3 + $0x20] sm:$0xfe] %vm9833_vm4, %v3446_v51  ;;  %v1046_v56 = vpop.permute.xlu0 %1045  ;;  %3774 = vrot.lane.b32.xlu1 %v3760_v53, %s7640_s22  ;;  %vm9836_vm4 = vcmask 130048   ;;  %6717 = vmatprep.subr.bf16.mxu1 %v7633_v52  ;;  %v3512_v2 = vld [vmem:[#allocation5 + $0x9] sm:$0x7f] }
 0x267   : > { %3629 = vrot.lane.b32.xlu0 %v3760_v53, %s7634_s27  ;;  %1686 = vst.msk [vmem:[#allocation2 + $0xc9] sm:$0x7f] %vm9834_vm2, %v1620_v55  ;;  %vm9839_vm2 = vmmov %vm9838_vm7 }
 0x268   : > { %1116 = vst.msk [vmem:[#allocation2 + $0xd9] sm:$0x7f] %vm9835_vm14, %v1046_v56  ;;  %vm9840_vm14 = vmmov %vm9837_vm1 }
 0x269   : > { %v3819_v59 = vld [vmem:[#allocation3 + $0x8] sm:$0xff]  ;;  %v1238_v62 = vpop.permute.xlu1 %1237  ;;  %6719 = vmatpush1.bf16.msra.mxu1 %v6718_v60 }
 0x26a   : > { %6401 = vmatprep.mubr.msk.f32.mxu1 %vm9836_vm4, %v3819_v59  ;;  %v1800_v63 = vpop.permute.xlu0 %1799  ;;  %3484 = vrot.lane.b32.xlu1 %v3760_v53, %s7637_s19  ;;  %1308 = vst.msk [vmem:[#allocation2 + $0xd0] sm:$0xff] %vm9837_vm1, %v1238_v62  ;;  %vm9841_vm4 = vcmask 220352  }
 0x26b   : > { %3678 = vrot.lane.b32.xlu0 %v3661_v61, %s7636_s14  ;;  %1866 = vst.msk [vmem:[#allocation2 + $0xc0] sm:$0xff] %vm9838_vm7, %v1800_v63  ;;  %vm9842_vm7 = vcmask 123904  }
 0x26c   : > { %vm9843_vm1 = vmmov %vm9842_vm7 }
 0x26d   : > { %v1802_v3 = vpop.permute.xlu1 %1801 }
 0x26e   : > { %v1240_v4 = vpop.permute.xlu0 %1239  ;;  %3527 = vrot.lane.b32.xlu1 %v3512_v2, %s7638_s16  ;;  %1867 = vst.msk [vmem:[#allocation2 + $0xc8] sm:$0xff] %vm9839_vm2, %v1802_v3  ;;  %vm9844_vm2 = vmmov %vm9843_vm1 }
 0x26f   : > { %1309 = vst.msk [vmem:[#allocation2 + $0xd8] sm:$0xff] %vm9840_vm14, %v1240_v4  ;;  %vm9845_vm14 = vmmov %vm9843_vm1 }
 0x271   : > { %v677_v5 = vpop.permute.xlu1 %676 }
 0x272   : > { %v1981_v52 = vpop.permute.xlu0 %1980  ;;  %741 = vst.msk [vmem:[#allocation2 + $0xe0] sm:$0xff] %vm714_vm9, %v677_v5 }
 0x273   : > { %2048 = vst.msk [vmem:[#allocation2 + $0xc0] sm:$0xff] %vm9841_vm4, %v1981_v52  ;;  %vm9846_vm4 = vcmask 171152  }
 0x275   : > { %v1431_v0 = vpop.permute.xlu1 %1430  ;;  %v6633_v11 = vpop.f32.mrb[10].mxu0 }
 0x276   : > { %v679_v7 = vpop.permute.xlu0 %678  ;;  %1502 = vst.msk [vmem:[#allocation2 + $0xd0] sm:$0xff] %vm1474_vm11, %v1431_v0  ;;  %v2319_v14 = vadd.f32 %v6633_v11, %v8509_v50  ;;  %v2313_v24 = vpop.f32.mrb[11].mxu0 }
 0x277   : > { %742 = vst.msk [vmem:[#allocation2 + $0xe8] sm:$0xff] %vm714_vm9, %v679_v7  ;;  %v2314_v15 = vadd.f32 %v8509_v50, %v2313_v24 }
 0x278   : > { %v2433_v16 = vmax.f32 %v2319_v14, 0.0 }
 0x279   : > { %v1983_v17 = vpop.permute.xlu1 %1982  ;;  %v2432_v21 = vmax.f32 %v2314_v15, 0.0 }
 0x27a   : > { %v1433_v18 = vpop.permute.xlu0 %1432  ;;  %v2078_v19 = vld [vmem:[#allocation2 + $0xc0] sm:$0xff]  ;;  %2049 = vst.msk [vmem:[#allocation2 + $0xc8] sm:$0x7f] %vm2024_vm5, %v1983_v17  ;;  %v2459_v22 = vmax.f32 %v2431_v8, %v2433_v16 }
 0x27b   : > { %1503 = vst.msk [vmem:[#allocation2 + $0xd8] sm:$0x7f] %vm1476_vm10, %v1433_v18  ;;  %6652 = vmatprep.mubr.msk.f32.mxu0 %vm468_vm0, %v2078_v19  ;;  %v2458_v13 = vmax.f32 %v2430_v20, %v2432_v21 }
 0x27c   : > { %v2571_v9 = vcombine.high %v2459_v22, %v2459_v22  ;;  %v2578_v36 = vrot.slane %v2459_v22, %v8534_v1 }
 0x27d   : > { %v860_v23 = vpop.permute.xlu1 %859  ;;  %v2554_v25 = vcombine.high %v2458_v13, %v2458_v13  ;;  %v2561_v26 = vrot.slane %v2458_v13, %v8534_v1 }
 0x27e   : > { %v858_v50 = vpop.permute.xlu0 %857  ;;  %924 = vst.msk [vmem:[#allocation2 + $0xe8] sm:$0x7f] %vm897_vm12, %v860_v23  ;;  %v2585_v28 = vrot.slane %v2571_v9, %v8534_v1  ;;  %v2586_v30 = vcombine.high %v2578_v36, %v2578_v36  ;;  %v2963_v12 = vsel %vm9842_vm7, %v2578_v36, -inf  ;;  %vm9847_vm7 = vmmov %vm9843_vm1 }
 0x27f   : > { %923 = vst.msk [vmem:[#allocation2 + $0xe0] sm:$0xff] %vm895_vm13, %v858_v50  ;;  %v2964_v31 = vrot.slane %v2963_v12, 4  ;;  %v2568_v57 = vrot.slane %v2554_v25, %v8534_v1  ;;  %v2569_v32 = vcombine.high %v2561_v26, %v2561_v26  ;;  %v2935_v33 = vsel %vm9843_vm1, %v2561_v26, -inf }
 0x280   : > { %v2587_v34 = vcombine.high %v2585_v28, %v2585_v28  ;;  %v2970_v35 = vsel %vm9844_vm2, %v2586_v30, -inf  ;;  %v2977_v29 = vsel %vm9845_vm14, %v2585_v28, -inf  ;;  %v2936_v38 = vrot.slane %v2935_v33, 4  ;;  %vm9848_vm2 = vmmov %vm9843_vm1 }
 0x281   : > { %v1048_v39 = vpop.permute.xlu1 %1047  ;;  %v2079_v41 = vld [vmem:[#allocation2 + $0xc8] sm:$0xff]  ;;  %v2965_v42 = vmax.f32 %v2963_v12, %v2964_v31  ;;  %v2971_v43 = vrot.slane %v2970_v35, 4  ;;  %v2978_v44 = vrot.slane %v2977_v29, 4  ;;  %v2570_v37 = vcombine.high %v2568_v57, %v2568_v57  ;;  %vm9849_vm14 = vmmov %vm9843_vm1 }
 0x282   : > { %v1622_v40 = vpop.permute.xlu0 %1621  ;;  %1117 = vst.msk [vmem:[#allocation2 + $0xe1] sm:$0xff] %vm1087_vm6, %v1048_v39  ;;  %6653 = vmatmul.mubr.msk.f32.gmra.mrb[24].mxu0 %vm468_vm0, %v2079_v41  ;;  %v2984_v45 = vsel %vm9847_vm7, %v2587_v34, -inf  ;;  %v2937_v46 = vmax.f32 %v2935_v33, %v2936_v38  ;;  %v2942_v48 = vsel %vm9843_vm1, %v2569_v32, -inf  ;;  %v2949_v51 = vsel %vm9848_vm2, %v2568_v57, -inf }
 0x283   : > { %1687 = vst.msk [vmem:[#allocation2 + $0xd1] sm:$0xff] %vm9846_vm4, %v1622_v40  ;;  %v2972_v47 = vmax.f32 %v2970_v35, %v2971_v43  ;;  %v2979_v53 = vmax.f32 %v2977_v29, %v2978_v44  ;;  %v2985_v55 = vrot.slane %v2984_v45, 4  ;;  %v2943_v58 = vrot.slane %v2942_v48, 4 }
 0x284   : > { %v2938_v56 = vrot.slane %v2937_v46, 2  ;;  %v2950_v27 = vrot.slane %v2949_v51, 4  ;;  %v2956_v59 = vsel %vm9849_vm14, %v2570_v37, -inf  ;;  %v2966_v62 = vrot.slane %v2965_v42, 2 }
 0x285   : > { %v1624_v60 = vpop.permute.xlu1 %1623  ;;  %v2973_v63 = vrot.slane %v2972_v47, 2  ;;  %v2986_v2 = vmax.f32 %v2984_v45, %v2985_v55  ;;  %vm9850_vm4 = vcmask 170128   ;;  %vm9851_vm7 = vcmask 96328  }
 0x286   : > { %v1050_v61 = vpop.permute.xlu0 %1049  ;;  %1688 = vst.msk [vmem:[#allocation2 + $0xd9] sm:$0x7f] %vm9850_vm4, %v1624_v60  ;;  %v2939_v3 = vmax.f32 %v2937_v46, %v2938_v56  ;;  %v2944_v4 = vmax.f32 %v2942_v48, %v2943_v58  ;;  %v2951_v5 = vmax.f32 %v2949_v51, %v2950_v27  ;;  %v2957_v52 = vrot.slane %v2956_v59, 4 }
 0x287   : > { %1118 = vst.msk [vmem:[#allocation2 + $0xe9] sm:$0x7f] %vm9851_vm7, %v1050_v61  ;;  %v2980_v6 = vrot.slane %v2979_v53, 2  ;;  %v2987_v0 = vrot.slane %v2986_v2, 2  ;;  %v2967_v15 = vmax.f32 %v2965_v42, %v2966_v62  ;;  %v2974_v8 = vmax.f32 %v2972_v47, %v2973_v63 }
 0x288   : > { %v2945_v7 = vrot.slane %v2944_v4, 2  ;;  %v2952_v10 = vrot.slane %v2951_v5, 2  ;;  %v2958_v11 = vmax.f32 %v2956_v59, %v2957_v52  ;;  %vm9852_vm1 = vcmask 121952  }
 0x289   : > { %v1242_v14 = vpop.permute.xlu1 %1241  ;;  %vm9853_vm2 = vcmask 195752   ;;  %v2940_v16 = vrot.slane %v2939_v3, 1  ;;  %v2981_v20 = vmax.f32 %v2979_v53, %v2980_v6  ;;  %v2988_v21 = vmax.f32 %v2986_v2, %v2987_v0  ;;  %vm9855_vm4 = vmmov %vm9852_vm1 }
 0x28a   : > { %v1804_v24 = vpop.permute.xlu0 %1803  ;;  %1310 = vst.msk [vmem:[#allocation2 + $0xe0] sm:$0xff] %vm9852_vm1, %v1242_v14  ;;  %v2946_v17 = vmax.f32 %v2944_v4, %v2945_v7  ;;  %v2953_v18 = vmax.f32 %v2951_v5, %v2952_v10  ;;  %v2959_v19 = vrot.slane %v2958_v11, 2  ;;  %v2968_v50 = vrot.slane %v2967_v15, 1  ;;  %vm9854_vm14 = vmmov %vm9853_vm2 }
 0x28b   : > { %1868 = vst.msk [vmem:[#allocation2 + $0xd0] sm:$0xff] %vm9853_vm2, %v1804_v24  ;;  %v2975_v25 = vrot.slane %v2974_v8, 1  ;;  %v2941_v26 = vmax.f32 %v2939_v3, %v2940_v16  ;;  %v2982_v31 = vrot.slane %v2981_v20, 1  ;;  %v2989_v57 = vrot.slane %v2988_v21, 1 }
 0x28c   : > { %v2947_v22 = vrot.slane %v2946_v17, 1  ;;  %v2954_v13 = vrot.slane %v2953_v18, 1  ;;  %v2960_v9 = vmax.f32 %v2958_v11, %v2959_v19  ;;  %vm9856_vm7 = vcmask 1041409  }
 0x28d   : > { %v1806_v36 = vpop.permute.xlu1 %1805  ;;  %v2969_v29 = vmax.f32 %v2967_v15, %v2968_v50  ;;  %vm9857_vm1 = vcmask 220352   ;;  %v2976_v39 = vmax.f32 %v2974_v8, %v2975_v25  ;;  %v2983_v41 = vmax.f32 %v2981_v20, %v2982_v31  ;;  %v8894_v20 = vld [vmem:[%s9745_s2] ss:$0 sm:$0xff] }
 0x28e   : > { %v1244_v23 = vpop.permute.xlu0 %1243  ;;  %1869 = vst.msk [vmem:[#allocation2 + $0xd8] sm:$0xff] %vm9854_vm14, %v1806_v36  ;;  %v2948_v28 = vmax.f32 %v2946_v17, %v2947_v22  ;;  %v2955_v30 = vmax.f32 %v2953_v18, %v2954_v13  ;;  %v2961_v12 = vrot.slane %v2960_v9, 1  ;;  %v2990_v43 = vmax.f32 %v2988_v21, %v2989_v57 }
 0x28f   : > { %1311 = vst.msk [vmem:[#allocation2 + $0xe8] sm:$0xff] %vm9855_vm4, %v1244_v23  ;;  %vm9858_vm2 = vcmask 1045509   ;;  %vm9859_vm14 = vcmask 1046534   ;;  %vm9860_vm4 = vcmask 1047559  }
 0x290   : > { %v2962_v32 = vmax.f32 %v2960_v9, %v2961_v12  ;;  %v3356_v33 = vsel %vm9856_vm7, %v2948_v28, %v2941_v26  ;;  %vm9861_vm7 = vcmask 130048  }
 0x291   : > { %v1435_v34 = vpop.permute.xlu1 %1434  ;;  %v3357_v38 = vsel %vm3337_vm8, %v2955_v30, %v3356_v33 }
 0x292   : > { %v1985_v35 = vpop.permute.xlu0 %1984  ;;  %1504 = vst.msk [vmem:[#allocation2 + $0xe0] sm:$0xff] %vm1474_vm11, %v1435_v34  ;;  %v3358_v40 = vsel %vm3339_vm15, %v2962_v32, %v3357_v38 }
 0x293   : > { %2050 = vst.msk [vmem:[#allocation2 + $0xd0] sm:$0xff] %vm9857_vm1, %v1985_v35  ;;  %v3359_v42 = vsel %vm3341_vm3, %v2969_v29, %v3358_v40  ;;  %vm9862_vm1 = vcmask 170128  }
 0x294   : > { %v3360_v44 = vsel %vm9858_vm2, %v2976_v39, %v3359_v42  ;;  %vm9863_vm2 = vcmask 171152  }
 0x295   : > { %v1987_v37 = vpop.permute.xlu1 %1986  ;;  %v3361_v46 = vsel %vm9859_vm14, %v2983_v41, %v3360_v44  ;;  %v6636_v48 = vpop.f32.mrb[12].mxu0  ;;  %vm9864_vm14 = vcmask 195752  }
 0x296   : > { %v1437_v45 = vpop.permute.xlu0 %1436  ;;  %2051 = vst.msk [vmem:[#allocation2 + $0xd8] sm:$0x7f] %vm2024_vm5, %v1987_v37  ;;  %v3362_v51 = vsel %vm9860_vm4, %v2990_v43, %v3361_v46  ;;  %v2323_v47 = vpop.f32.mrb[13].mxu0  ;;  %vm9865_vm4 = vmmov %vm9864_vm14  ;;  %v2329_v21 = vadd.f32 %v8894_v20, %v6636_v48 }
 0x297   : > { %1505 = vst.msk [vmem:[#allocation2 + $0xe8] sm:$0x7f] %vm1476_vm10, %v1437_v45  ;;  %v2324_v9 = vadd.f32 %v8894_v20, %v2323_v47 }
 0x298   : > { %3409 = vst.msk [vmem:[#allocation5 + $0x10] sm:$0xff] %vm9861_vm7, %v3362_v51  ;;  %vm9866_vm7 = vcmask 129024   ;;  %v2435_v26 = vmax.f32 %v2329_v21, 0.0 }
 0x299   : > { %v1628_v53 = vpop.permute.xlu1 %1627  ;;  %v2434_v31 = vmax.f32 %v2324_v9, 0.0 }
 0x29a   : > { %v1626_v55 = vpop.permute.xlu0 %1625  ;;  %v2080_v56 = vld [vmem:[#allocation2 + $0xd0] sm:$0xff]  ;;  %1690 = vst.msk [vmem:[#allocation2 + $0xe9] sm:$0x7f] %vm9862_vm1, %v1628_v53  ;;  %vm9867_vm1 = vcmask 130049  }
 0x29b   : > { %1689 = vst.msk [vmem:[#allocation2 + $0xe1] sm:$0xff] %vm9863_vm2, %v1626_v55  ;;  %6655 = vmatprep.mubr.msk.f32.mxu0 %vm468_vm0, %v2080_v56  ;;  %vm9868_vm2 = vcmask 220352  }
 0x29d   : > { %v681_v58 = vpop.permute.xlu1 %680  ;;  %v2081_v59 = vld [vmem:[#allocation2 + $0xd8] sm:$0xff] }
 0x29e   : > { %v1808_v27 = vpop.permute.xlu0 %1807  ;;  %743 = vst.msk [vmem:[#allocation2 + $0xf0] sm:$0xff] %vm714_vm9, %v681_v58  ;;  %6656 = vmatmul.mubr.msk.f32.gmra.mrb[26].mxu0 %vm468_vm0, %v2081_v59 }
 0x29f   : > { %1870 = vst.msk [vmem:[#allocation2 + $0xe0] sm:$0xff] %vm9864_vm14, %v1808_v27  ;;  %v3556_v60 = vld [vmem:[#allocation5 + $0x10] sm:$0x7f]  ;;  %vm9872_vm14 = vcmask 123904  }
 0x2a0   : > { %v3711_v61 = vld [vmem:[#allocation5 + $0x10] sm:$0x7f]  ;;  %v3572_v62 = vrot.slane %v3556_v60, 7 }
 0x2a1   : > { %v3725_v63 = vrot.slane %v3711_v61, 7  ;;  %v1810_v2 = vpop.permute.xlu1 %1809  ;;  %v3804_v4 = vld [vmem:[#allocation5 + $0x11] sm:$0x7f] }
 0x2a2   : > { %v683_v3 = vpop.permute.xlu0 %682  ;;  %v3433_v5 = vld [vmem:[#allocation5 + $0x10] sm:$0x7f]  ;;  %3582 = vrot.lane.b32.xlu1 %v3572_v62, %s7635_s15  ;;  %1871 = vst.msk [vmem:[#allocation2 + $0xe8] sm:$0xff] %vm9865_vm4, %v1810_v2  ;;  %vm3546_vm4 = vcmask 391424  }
 0x2a3   : > { %3733 = vrot.lane.b32.xlu0 %v3725_v63, %s7639_s24  ;;  %744 = vst.msk [vmem:[#allocation2 + $0xf8] sm:$0xff] %vm714_vm9, %v683_v3  ;;  %v3447_v52 = vrot.slane %v3433_v5, 7  ;;  %v3613_v6 = vld [vmem:[#allocation5 + $0x10] sm:$0xff]  ;;  %vm9869_vm9 = vcmask 96328  }
 0x2a4   : > { %3812 = vst.msk [vmem:[#allocation3 + $0x18] sm:$0x7f] %vm9866_vm7, %v3804_v4  ;;  %v3662_v10 = vld [vmem:[#allocation5 + $0x11] sm:$0x7f]  ;;  %vm9873_vm7 = vmmov %vm9872_vm14 }
 0x2a5   : > { %3463 = vst.msk [vmem:[#allocation3 + $0x30] sm:$0xfe] %vm9867_vm1, %v3447_v52  ;;  %v862_v0 = vpop.permute.xlu1 %861  ;;  %v3513_v24 = vld [vmem:[#allocation5 + $0x11] sm:$0x7f]  ;;  %vm9874_vm1 = vmmov %vm9873_vm7 }
 0x2a6   : > { %v1989_v7 = vpop.permute.xlu0 %1988  ;;  %3631 = vrot.lane.b32.xlu1 %v3613_v6, %s7634_s27  ;;  %925 = vst.msk [vmem:[#allocation2 + $0xf0] sm:$0xff] %vm895_vm13, %v862_v0  ;;  %vm9870_vm13 = vcmask 121952  }
 0x2a7   : > { %3776 = vrot.lane.b32.xlu0 %v3613_v6, %s7640_s22  ;;  %2052 = vst.msk [vmem:[#allocation2 + $0xe0] sm:$0xff] %vm9868_vm2, %v1989_v7  ;;  %vm9875_vm2 = vmmov %vm9874_vm1 }
 0x2a9   : > { %v1991_v11 = vpop.permute.xlu1 %1990 }
 0x2aa   : > { %v864_v14 = vpop.permute.xlu0 %863  ;;  %3680 = vrot.lane.b32.xlu1 %v3662_v10, %s7636_s14  ;;  %2053 = vst.msk [vmem:[#allocation2 + $0xe8] sm:$0x7f] %vm2024_vm5, %v1991_v11  ;;  %vm9871_vm5 = vmmov %vm9870_vm13 }
 0x2ab   : > { %3486 = vrot.lane.b32.xlu0 %v3613_v6, %s7637_s19  ;;  %926 = vst.msk [vmem:[#allocation2 + $0xf8] sm:$0x7f] %vm897_vm12, %v864_v14  ;;  %vm3651_vm12 = vcmask 654848  }
 0x2ad   : > { %v1054_v15 = vpop.permute.xlu1 %1053 }
 0x2ae   : > { %v1052_v8 = vpop.permute.xlu0 %1051  ;;  %v2082_v16 = vld [vmem:[#allocation2 + $0xe0] sm:$0xff]  ;;  %1120 = vst.msk [vmem:[#allocation2 + $0xf9] sm:$0x7f] %vm9869_vm9, %v1054_v15 }
 0x2af   : > { %3529 = vrot.lane.b32.xlu0 %v3513_v24, %s7638_s16  ;;  %1119 = vst.msk [vmem:[#allocation2 + $0xf1] sm:$0xff] %vm1087_vm6, %v1052_v8  ;;  %6658 = vmatprep.mubr.msk.f32.mxu0 %vm468_vm0, %v2082_v16  ;;  %vm3602_vm6 = vcmask 523649  }
 0x2b1   : > { %v1248_v17 = vpop.permute.xlu1 %1247  ;;  %v2083_v19 = vld [vmem:[#allocation2 + $0xe8] sm:$0xff] }
 0x2b2   : > { %v1246_v18 = vpop.permute.xlu0 %1245  ;;  %1313 = vst.msk [vmem:[#allocation2 + $0xf8] sm:$0xff] %vm9870_vm13, %v1248_v17  ;;  %6659 = vmatmul.mubr.msk.f32.gmra.mrb[28].mxu0 %vm468_vm0, %v2083_v19 }
 0x2b3   : > { %1312 = vst.msk [vmem:[#allocation2 + $0xf0] sm:$0xff] %vm9871_vm5, %v1246_v18 }
 0x2b5   : > { %v1441_v22 = vpop.permute.xlu1 %1440  ;;  %v6639_v36 = vpop.f32.mrb[14].mxu0 }
 0x2b6   : > { %v1439_v13 = vpop.permute.xlu0 %1438  ;;  %1507 = vst.msk [vmem:[#allocation2 + $0xf8] sm:$0x7f] %vm1476_vm10, %v1441_v22  ;;  %v2339_v23 = vadd.f32 %v8894_v20, %v6639_v36  ;;  %v2333_v50 = vpop.f32.mrb[15].mxu0  ;;  %vm3700_vm10 = vcmask 785024  }
 0x2b7   : > { %1506 = vst.msk [vmem:[#allocation2 + $0xf0] sm:$0xff] %vm1474_vm11, %v1439_v13  ;;  %v2334_v25 = vadd.f32 %v8894_v20, %v2333_v50  ;;  %vm3503_vm11 = vcmask 261248  }
 0x2b8   : > { %v2437_v28 = vmax.f32 %v2339_v23, 0.0 }
 0x2b9   : > { %v3628_v30 = vpop.permute.xlu1 %3627  ;;  %v2436_v57 = vmax.f32 %v2334_v25, 0.0 }
 0x2ba   : > { %v3579_v12 = vpop.permute.xlu0 %3578  ;;  %v2461_v32 = vmax.f32 %v2435_v26, %v2437_v28 }
 0x2bb   : > { %3603 = vst.msk [vmem:[#allocation3] sm:$0xfe] %vm3602_vm6, %v3579_v12  ;;  %v2460_v33 = vmax.f32 %v2434_v31, %v2436_v57 }
 0x2bc   : > { %3652 = vst.msk [vmem:[#allocation3] sm:$0xff] %vm3651_vm12, %v3628_v30  ;;  %v2605_v34 = vcombine.high %v2461_v32, %v2461_v32  ;;  %v2612_v35 = vrot.slane %v2461_v32, %v8534_v1 }
 0x2bd   : > { %v3677_v29 = vpop.permute.xlu1 %3676  ;;  %v2085_v40 = vld [vmem:[#allocation2 + $0xf8] sm:$0xff]  ;;  %v2588_v41 = vcombine.high %v2460_v33, %v2460_v33  ;;  %v2595_v42 = vrot.slane %v2460_v33, %v8534_v1 }
 0x2be   : > { %v3483_v38 = vpop.permute.xlu0 %3482  ;;  %v2084_v39 = vld [vmem:[#allocation2 + $0xf0] sm:$0xff]  ;;  %3701 = vst.msk [vmem:[#allocation3] sm:$0x7f] %vm3700_vm10, %v3677_v29  ;;  %v2619_v43 = vrot.slane %v2605_v34, %v8534_v1  ;;  %v2620_v44 = vcombine.high %v2612_v35, %v2612_v35  ;;  %v3019_v37 = vsel %vm9872_vm14, %v2612_v35, -inf  ;;  %vm9880_vm14 = vcmask 1041409  }
 0x2bf   : > { %3504 = vst.msk [vmem:[#allocation3 + $0x10] sm:$0xff] %vm3503_vm11, %v3483_v38  ;;  %6661 = vmatprep.mubr.msk.f32.mxu0 %vm468_vm0, %v2084_v39  ;;  %v3020_v45 = vrot.slane %v3019_v37, 4  ;;  %v2602_v46 = vrot.slane %v2588_v41, %v8534_v1  ;;  %v2603_v48 = vcombine.high %v2595_v42, %v2595_v42  ;;  %v2991_v51 = vsel %vm9873_vm7, %v2595_v42, -inf }
 0x2c0   : > { %6662 = vmatmul.mubr.msk.f32.gmra.mrb[30].mxu0 %vm468_vm0, %v2085_v40  ;;  %v2621_v47 = vcombine.high %v2619_v43, %v2619_v43  ;;  %v3026_v53 = vsel %vm9874_vm1, %v2620_v44, -inf  ;;  %v3033_v55 = vsel %vm9875_vm2, %v2619_v43, -inf  ;;  %v2992_v56 = vrot.slane %v2991_v51, 4  ;;  %vm9876_vm0 = vmmov %vm9874_vm1 }
 0x2c1   : > { %v3021_v27 = vmax.f32 %v3019_v37, %v3020_v45  ;;  %v3027_v59 = vrot.slane %v3026_v53, 4  ;;  %v3034_v60 = vrot.slane %v3033_v55, 4  ;;  %v2604_v61 = vcombine.high %v2602_v46, %v2602_v46  ;;  %vm9877_vm9 = vmmov %vm9876_vm0 }
 0x2c2   : > { %v3526_v58 = vpop.permute.xlu0 %3525  ;;  %v3040_v62 = vsel %vm9876_vm0, %v2621_v47, -inf  ;;  %v2993_v63 = vmax.f32 %v2991_v51, %v2992_v56  ;;  %v2998_v2 = vsel %vm9877_vm9, %v2603_v48, -inf  ;;  %vm9878_vm13 = vmmov %vm9876_vm0  ;;  %vm3752_vm7 = vcmask 917249  }
 0x2c3   : > { %3547 = vst.msk [vmem:[#allocation3 + $0x10] sm:$0x7f] %vm3546_vm4, %v3526_v58  ;;  %v3005_v3 = vsel %vm9878_vm13, %v2602_v46, -inf  ;;  %v3028_v4 = vmax.f32 %v3026_v53, %v3027_v59  ;;  %v3035_v5 = vmax.f32 %v3033_v55, %v3034_v60  ;;  %v3041_v52 = vrot.slane %v3040_v62, 4  ;;  %vm9879_vm5 = vmmov %vm9876_vm0 }
 0x2c4   : > { %v2994_v6 = vrot.slane %v2993_v63, 2  ;;  %v2999_v0 = vrot.slane %v2998_v2, 4  ;;  %v3006_v7 = vrot.slane %v3005_v3, 4  ;;  %v3012_v10 = vsel %vm9879_vm5, %v2604_v61, -inf }
 0x2c5   : > { %v3022_v11 = vrot.slane %v3021_v27, 2  ;;  %v3029_v14 = vrot.slane %v3028_v4, 2  ;;  %v3042_v24 = vmax.f32 %v3040_v62, %v3041_v52  ;;  %v3013_v17 = vrot.slane %v3012_v10, 4 }
 0x2c6   : > { %v2995_v15 = vmax.f32 %v2993_v63, %v2994_v6  ;;  %v3000_v8 = vmax.f32 %v2998_v2, %v2999_v0  ;;  %v3007_v16 = vmax.f32 %v3005_v3, %v3006_v7  ;;  %v3036_v18 = vrot.slane %v3035_v5, 2  ;;  %v3821_v0 = vld [vmem:[#allocation3 + $0x18] sm:$0xff] }
 0x2c7   : > { %v3043_v19 = vrot.slane %v3042_v24, 2  ;;  %v3014_v13 = vmax.f32 %v3012_v10, %v3013_v17  ;;  %v3023_v9 = vmax.f32 %v3021_v27, %v3022_v11  ;;  %v3030_v36 = vmax.f32 %v3028_v4, %v3029_v14 }
 0x2c8   : > { %v3001_v21 = vrot.slane %v3000_v8, 2  ;;  %v3008_v22 = vrot.slane %v3007_v16, 2  ;;  %v2996_v23 = vrot.slane %v2995_v15, 1  ;;  %v3037_v28 = vmax.f32 %v3035_v5, %v3036_v18 }
 0x2c9   : > { %v3015_v26 = vrot.slane %v3014_v13, 2  ;;  %v3044_v30 = vmax.f32 %v3042_v24, %v3043_v19  ;;  %v3024_v32 = vrot.slane %v3023_v9, 1  ;;  %v3031_v33 = vrot.slane %v3030_v36, 1 }
 0x2ca   : > { %v3002_v50 = vmax.f32 %v3000_v8, %v3001_v21  ;;  %v3009_v25 = vmax.f32 %v3007_v16, %v3008_v22  ;;  %v2997_v34 = vmax.f32 %v2995_v15, %v2996_v23  ;;  %v3038_v39 = vrot.slane %v3037_v28, 1 }
 0x2cb   : > { %v3016_v57 = vmax.f32 %v3014_v13, %v3015_v26  ;;  %v3045_v40 = vrot.slane %v3044_v30, 1  ;;  %v3025_v43 = vmax.f32 %v3023_v9, %v3024_v32  ;;  %v3032_v37 = vmax.f32 %v3030_v36, %v3031_v33 }
 0x2cc   : > { %v3003_v12 = vrot.slane %v3002_v50, 1  ;;  %v3010_v31 = vrot.slane %v3009_v25, 1  ;;  %v3039_v46 = vmax.f32 %v3037_v28, %v3038_v39  ;;  %vm9881_vm1 = vcmask 1045509  }
 0x2cd   : > { %v3017_v38 = vrot.slane %v3016_v57, 1  ;;  %v3046_v53 = vmax.f32 %v3044_v30, %v3045_v40  ;;  %vm9882_vm2 = vcmask 1046534   ;;  %vm3795_vm0 = vcmask 1048448  }
 0x2ce   : > { %v3004_v35 = vmax.f32 %v3002_v50, %v3003_v12  ;;  %v3011_v29 = vmax.f32 %v3009_v25, %v3010_v31  ;;  %vm9883_vm9 = vcmask 1047559   ;;  %vm9884_vm13 = vcmask 130048  }
 0x2cf   : > { %v3018_v41 = vmax.f32 %v3016_v57, %v3017_v38  ;;  %vm9885_vm5 = vmmov %vm9884_vm13 }
 0x2d0   : > { %v3363_v42 = vsel %vm9880_vm14, %v3004_v35, %v2997_v34  ;;  %vm9886_vm14 = vcmask 129024  }
 0x2d1   : > { %v3364_v44 = vsel %vm3337_vm8, %v3011_v29, %v3363_v42 }
 0x2d2   : > { %v3365_v45 = vsel %vm3339_vm15, %v3018_v41, %v3364_v44 }
 0x2d3   : > { %v3366_v48 = vsel %vm3341_vm3, %v3025_v43, %v3365_v45 }
 0x2d4   : > { %v3732_v51 = vpop.permute.xlu1 %3731  ;;  %v3367_v55 = vsel %vm9881_vm1, %v3032_v37, %v3366_v48  ;;  %vm9887_vm1 = vcmask 130049  }
 0x2d5   : > { %v3581_v47 = vpop.permute.xlu0 %3580  ;;  %3753 = vst.msk [vmem:[#allocation3] sm:$0xfe] %vm3752_vm7, %v3732_v51  ;;  %v6642_v56 = vpop.f32.mrb[16].mxu0  ;;  %v3368_v58 = vsel %vm9882_vm2, %v3039_v46, %v3367_v55  ;;  %vm9888_vm2 = vcmask 123904  }
 0x2d6   : > { %3604 = vst.msk [vmem:[#allocation3 + $0x10] sm:$0xfe] %vm3602_vm6, %v3581_v47  ;;  %v2343_v27 = vpop.f32.mrb[17].mxu0  ;;  %v3369_v59 = vsel %vm9883_vm9, %v3046_v53, %v3368_v58  ;;  %v2349_v8 = vadd.f32 %v8894_v20, %v6642_v56  ;;  %vm9889_vm9 = vmmov %vm9888_vm2 }
 0x2d7   : > { %3410 = vst.msk [vmem:[#allocation5 + $0x18] sm:$0xff] %vm9884_vm13, %v3369_v59  ;;  %v2344_v16 = vadd.f32 %v8894_v20, %v2343_v27  ;;  %vm9890_vm13 = vmmov %vm9888_vm2 }
 0x2d8   : > { %v3775_v60 = vpop.permute.xlu1 %3774  ;;  %v2439_v22 = vmax.f32 %v2349_v8, 0.0 }
 0x2d9   : > { %v3630_v61 = vpop.permute.xlu0 %3629  ;;  %3796 = vst.msk [vmem:[#allocation3] sm:$0xff] %vm3795_vm0, %v3775_v60  ;;  %v2438_v9 = vmax.f32 %v2344_v16, 0.0 }
 0x2da   : > { %3653 = vst.msk [vmem:[#allocation3 + $0x10] sm:$0xff] %vm3651_vm12, %v3630_v61 }
 0x2dc   : > { %v3485_v62 = vpop.permute.xlu1 %3484 }
 0x2dd   : > { %v3679_v63 = vpop.permute.xlu0 %3678  ;;  %3505 = vst.msk [vmem:[#allocation3 + $0x20] sm:$0xff] %vm3503_vm11, %v3485_v62 }
 0x2de   : > { %3702 = vst.msk [vmem:[#allocation3 + $0x10] sm:$0x7f] %vm3700_vm10, %v3679_v63  ;;  %v3712_v2 = vld [vmem:[#allocation5 + $0x18] sm:$0x7f] }
 0x2df   : > { %v3557_v3 = vld [vmem:[#allocation5 + $0x18] sm:$0x7f]  ;;  %v3726_v52 = vrot.slane %v3712_v2, 7 }
 0x2e0   : > { %v3528_v4 = vpop.permute.xlu1 %3527  ;;  %v3818_v5 = vld [vmem:[#allocation3] sm:$0xff]  ;;  %v3573_v6 = vrot.slane %v3557_v3, 7  ;;  %v3805_v7 = vld [vmem:[#allocation5 + $0x19] sm:$0x7f] }
 0x2e1   : > { %3548 = vst.msk [vmem:[#allocation3 + $0x20] sm:$0x7f] %vm3546_vm4, %v3528_v4  ;;  %3948 = vmatmul.mubr.f32.vlgmr.msra.gmra.mrb[0].mxu1 %v3818_v5  ;;  %v3434_v10 = vld [vmem:[#allocation5 + $0x18] sm:$0x7f]  ;;  %3735 = vrot.lane.b32.xlu1 %v3726_v52, %s7639_s24 }
 0x2e2   : > { %6402 = vmatprep.mubr.msk.f32.mxu1 %vm9885_vm5, %v3821_v0  ;;  %3813 = vst.msk [vmem:[#allocation3 + $0x28] sm:$0x7f] %vm9886_vm14, %v3805_v7  ;;  %v3448_v11 = vrot.slane %v3434_v10, 7  ;;  %3584 = vrot.lane.b32.xlu0 %v3573_v6, %s7635_s15  ;;  %v3762_v14 = vld [vmem:[#allocation5 + $0x18] sm:$0xff]  ;;  %vm9891_vm5 = vmmov %vm9888_vm2 }
 0x2e3   : > { %v3663_v24 = vld [vmem:[#allocation5 + $0x19] sm:$0x7f]  ;;  %vm9892_vm14 = vmmov %vm9888_vm2 }
 0x2e4   : > { %3464 = vst.msk [vmem:[#allocation3 + $0x40] sm:$0xfe] %vm9887_vm1, %v3448_v11  ;;  %v3514_v15 = vld [vmem:[#allocation5 + $0x19] sm:$0x7f]  ;;  %vm9893_vm1 = vmmov %vm9888_vm2 }
 0x2e5   : > { %3778 = vrot.lane.b32.xlu1 %v3762_v14, %s7640_s22 }
 0x2e6   : > { %3633 = vrot.lane.b32.xlu0 %v3762_v14, %s7634_s27 }
 0x2e9   : > { %3488 = vrot.lane.b32.xlu1 %v3762_v14, %s7637_s19 }
 0x2ea   : > { %3682 = vrot.lane.b32.xlu0 %v3663_v24, %s7636_s14 }
 0x2ed   : > { %3531 = vrot.lane.b32.xlu1 %v3514_v15, %s7638_s16 }
 0x2f5   : > { %v6645_v17 = vpop.f32.mrb[18].mxu0 }
 0x2f6   : > { %v2359_v18 = vadd.f32 %v8894_v20, %v6645_v17  ;;  %v2353_v19 = vpop.f32.mrb[19].mxu0 }
 0x2f7   : > { %v2354_v21 = vadd.f32 %v8894_v20, %v2353_v19 }
 0x2f8   : > { %v2441_v13 = vmax.f32 %v2359_v18, 0.0 }
 0x2f9   : > { %v2440_v36 = vmax.f32 %v2354_v21, 0.0 }
 0x2fa   : > { %v2463_v23 = vmax.f32 %v2439_v22, %v2441_v13 }
 0x2fb   : > { %v2462_v50 = vmax.f32 %v2438_v9, %v2440_v36 }
 0x2fc   : > { %v2639_v25 = vcombine.high %v2463_v23, %v2463_v23  ;;  %v2646_v26 = vrot.slane %v2463_v23, %v8534_v1 }
 0x2fd   : > { %v2622_v28 = vcombine.high %v2462_v50, %v2462_v50  ;;  %v2629_v30 = vrot.slane %v2462_v50, %v8534_v1 }
 0x2fe   : > { %v2653_v12 = vrot.slane %v2639_v25, %v8534_v1  ;;  %v2654_v31 = vcombine.high %v2646_v26, %v2646_v26  ;;  %v3075_v57 = vsel %vm9888_vm2, %v2646_v26, -inf  ;;  %vm9894_vm2 = vmmov %vm9893_vm1 }
 0x2ff   : > { %v3076_v32 = vrot.slane %v3075_v57, 4  ;;  %v2636_v33 = vrot.slane %v2622_v28, %v8534_v1  ;;  %v2637_v34 = vcombine.high %v2629_v30, %v2629_v30  ;;  %v3047_v35 = vsel %vm9889_vm9, %v2629_v30, -inf  ;;  %vm9895_vm9 = vmmov %vm9893_vm1 }
 0x300   : > { %v2655_v29 = vcombine.high %v2653_v12, %v2653_v12  ;;  %v3082_v38 = vsel %vm9890_vm13, %v2654_v31, -inf  ;;  %v3089_v39 = vsel %vm9891_vm5, %v2653_v12, -inf  ;;  %v3048_v40 = vrot.slane %v3047_v35, 4 }
 0x301   : > { %v3077_v41 = vmax.f32 %v3075_v57, %v3076_v32  ;;  %v3083_v42 = vrot.slane %v3082_v38, 4  ;;  %v3090_v43 = vrot.slane %v3089_v39, 4  ;;  %v2638_v44 = vcombine.high %v2636_v33, %v2636_v33 }
 0x302   : > { %v3096_v37 = vsel %vm9892_vm14, %v2655_v29, -inf  ;;  %v3049_v45 = vmax.f32 %v3047_v35, %v3048_v40  ;;  %v3054_v46 = vsel %vm9893_vm1, %v2637_v34, -inf  ;;  %v3061_v48 = vsel %vm9894_vm2, %v2636_v33, -inf }
 0x303   : > { %v3084_v51 = vmax.f32 %v3082_v38, %v3083_v42  ;;  %v3091_v47 = vmax.f32 %v3089_v39, %v3090_v43  ;;  %v3097_v53 = vrot.slane %v3096_v37, 4  ;;  %v3055_v56 = vrot.slane %v3054_v46, 4 }
 0x304   : > { %v3050_v55 = vrot.slane %v3049_v45, 2  ;;  %v3062_v58 = vrot.slane %v3061_v48, 4  ;;  %v3068_v27 = vsel %vm9895_vm9, %v2638_v44, -inf  ;;  %v3078_v59 = vrot.slane %v3077_v41, 2 }
 0x305   : > { %v3085_v60 = vrot.slane %v3084_v51, 2  ;;  %v3098_v61 = vmax.f32 %v3096_v37, %v3097_v53  ;;  %v3056_v63 = vmax.f32 %v3054_v46, %v3055_v56  ;;  %v3069_v3 = vrot.slane %v3068_v27, 4 }
 0x306   : > { %v3051_v62 = vmax.f32 %v3049_v45, %v3050_v55  ;;  %v3063_v2 = vmax.f32 %v3061_v48, %v3062_v58  ;;  %v3092_v4 = vrot.slane %v3091_v47, 2  ;;  %v3079_v7 = vmax.f32 %v3077_v41, %v3078_v59 }
 0x307   : > { %v3099_v5 = vrot.slane %v3098_v61, 2  ;;  %v3057_v52 = vrot.slane %v3056_v63, 2  ;;  %v3070_v0 = vmax.f32 %v3068_v27, %v3069_v3  ;;  %v3086_v10 = vmax.f32 %v3084_v51, %v3085_v60  ;;  %v3823_v27 = vld [vmem:[#allocation3 + $0x28] sm:$0xff] }
 0x308   : > { %v3064_v6 = vrot.slane %v3063_v2, 2  ;;  %v3052_v11 = vrot.slane %v3051_v62, 1  ;;  %v3093_v8 = vmax.f32 %v3091_v47, %v3092_v4  ;;  %v3080_v21 = vrot.slane %v3079_v7, 1 }
 0x309   : > { %v3058_v14 = vmax.f32 %v3056_v63, %v3057_v52  ;;  %v3071_v15 = vrot.slane %v3070_v0, 2  ;;  %v3100_v16 = vmax.f32 %v3098_v61, %v3099_v5  ;;  %v3087_v22 = vrot.slane %v3086_v10, 1 }
 0x30a   : > { %v3065_v24 = vmax.f32 %v3063_v2, %v3064_v6  ;;  %v3053_v13 = vmax.f32 %v3051_v62, %v3052_v11  ;;  %v3094_v50 = vrot.slane %v3093_v8, 1  ;;  %vm9896_vm13 = vcmask 1041409  }
 0x30b   : > { %v3059_v17 = vrot.slane %v3058_v14, 1  ;;  %v3072_v19 = vmax.f32 %v3070_v0, %v3071_v15  ;;  %v3101_v25 = vrot.slane %v3100_v16, 1  ;;  %v3081_v30 = vmax.f32 %v3079_v7, %v3080_v21 }
 0x30c   : > { %v3066_v18 = vrot.slane %v3065_v24, 1  ;;  %v3088_v31 = vmax.f32 %v3086_v10, %v3087_v22  ;;  %v3095_v32 = vmax.f32 %v3093_v8, %v3094_v50  ;;  %vm9897_vm5 = vcmask 1045509  }
 0x30d   : > { %v3060_v9 = vmax.f32 %v3058_v14, %v3059_v17  ;;  %v3073_v23 = vrot.slane %v3072_v19, 1  ;;  %v3102_v34 = vmax.f32 %v3100_v16, %v3101_v25  ;;  %vm9898_vm14 = vcmask 1046534  }
 0x30e   : > { %v3067_v36 = vmax.f32 %v3065_v24, %v3066_v18  ;;  %vm9899_vm1 = vcmask 1047559   ;;  %vm9900_vm2 = vcmask 130048   ;;  %vm9901_vm9 = vcmask 129024  }
 0x30f   : > { %v3074_v26 = vmax.f32 %v3072_v19, %v3073_v23  ;;  %v3370_v28 = vsel %vm9896_vm13, %v3060_v9, %v3053_v13  ;;  %vm9902_vm13 = vmmov %vm9900_vm2 }
 0x310   : > { %v3371_v12 = vsel %vm3337_vm8, %v3067_v36, %v3370_v28 }
 0x311   : > { %v3372_v57 = vsel %vm3339_vm15, %v3074_v26, %v3371_v12 }
 0x312   : > { %v3373_v33 = vsel %vm3341_vm3, %v3081_v30, %v3372_v57 }
 0x313   : > { %v3374_v35 = vsel %vm9897_vm5, %v3088_v31, %v3373_v33  ;;  %vm9903_vm5 = vcmask 130049  }
 0x314   : > { %v3583_v29 = vpop.permute.xlu1 %3582  ;;  %v3375_v39 = vsel %vm9898_vm14, %v3095_v32, %v3374_v35  ;;  %vm9904_vm14 = vcmask 123904  }
 0x315   : > { %v3734_v38 = vpop.permute.xlu0 %3733  ;;  %3605 = vst.msk [vmem:[#allocation3 + $0x20] sm:$0xfe] %vm3602_vm6, %v3583_v29  ;;  %v6648_v40 = vpop.f32.mrb[20].mxu0  ;;  %v3376_v41 = vsel %vm9899_vm1, %v3102_v34, %v3375_v39  ;;  %vm9905_vm1 = vmmov %vm9904_vm14 }
 0x316   : > { %3754 = vst.msk [vmem:[#allocation3 + $0x10] sm:$0xfe] %vm3752_vm7, %v3734_v38  ;;  %v2363_v42 = vpop.f32.mrb[21].mxu0  ;;  %v2369_v63 = vadd.f32 %v8894_v20, %v6648_v40 }
 0x317   : > { %3411 = vst.msk [vmem:[#allocation5 + $0x20] sm:$0xff] %vm9900_vm2, %v3376_v41  ;;  %v2364_v2 = vadd.f32 %v8894_v20, %v2363_v42  ;;  %vm9906_vm2 = vmmov %vm9905_vm1 }
 0x318   : > { %v3632_v43 = vpop.permute.xlu1 %3631  ;;  %v2443_v6 = vmax.f32 %v2369_v63, 0.0 }
 0x319   : > { %v3777_v44 = vpop.permute.xlu0 %3776  ;;  %3654 = vst.msk [vmem:[#allocation3 + $0x20] sm:$0xff] %vm3651_vm12, %v3632_v43  ;;  %v2442_v7 = vmax.f32 %v2364_v2, 0.0 }
 0x31a   : > { %3797 = vst.msk [vmem:[#allocation3 + $0x10] sm:$0xff] %vm3795_vm0, %v3777_v44 }
 0x31c   : > { %v3681_v37 = vpop.permute.xlu1 %3680 }
 0x31d   : > { %v3487_v45 = vpop.permute.xlu0 %3486  ;;  %3703 = vst.msk [vmem:[#allocation3 + $0x20] sm:$0x7f] %vm3700_vm10, %v3681_v37 }
 0x31e   : > { %3506 = vst.msk [vmem:[#allocation3 + $0x30] sm:$0xff] %vm3503_vm11, %v3487_v45  ;;  %v3558_v46 = vld [vmem:[#allocation5 + $0x20] sm:$0x7f] }
 0x31f   : > { %v3713_v48 = vld [vmem:[#allocation5 + $0x20] sm:$0x7f]  ;;  %v3574_v51 = vrot.slane %v3558_v46, 7 }
 0x320   : > { %v3727_v47 = vrot.slane %v3713_v48, 7  ;;  %v3806_v56 = vld [vmem:[#allocation5 + $0x21] sm:$0x7f] }
 0x321   : > { %v3530_v53 = vpop.permute.xlu0 %3529  ;;  %v3820_v55 = vld [vmem:[#allocation3 + $0x10] sm:$0xff]  ;;  %3586 = vrot.lane.b32.xlu1 %v3574_v51, %s7635_s15  ;;  %3814 = vst.msk [vmem:[#allocation3 + $0x38] sm:$0x7f] %vm9901_vm9, %v3806_v56  ;;  %vm9907_vm9 = vmmov %vm9905_vm1 }
 0x322   : > { %v3435_v58 = vld [vmem:[#allocation5 + $0x20] sm:$0x7f]  ;;  %3549 = vst.msk [vmem:[#allocation3 + $0x30] sm:$0x7f] %vm3546_vm4, %v3530_v53  ;;  %3953 = vmatmul.mubr.f32.gmra.mrb[2].mxu1 %v3820_v55  ;;  %3737 = vrot.lane.b32.xlu0 %v3727_v47, %s7639_s24 }
 0x323   : > { %v3449_v59 = vrot.slane %v3435_v58, 7  ;;  %6403 = vmatprep.mubr.msk.f32.mxu1 %vm9902_vm13, %v3823_v27  ;;  %v3615_v60 = vld [vmem:[#allocation5 + $0x20] sm:$0xff]  ;;  %vm9908_vm13 = vmmov %vm9905_vm1 }
 0x324   : > { %v3664_v61 = vld [vmem:[#allocation5 + $0x21] sm:$0x7f] }
 0x325   : > { %3465 = vst.msk [vmem:[#allocation3 + $0x50] sm:$0xfe] %vm9903_vm5, %v3449_v59  ;;  %3635 = vrot.lane.b32.xlu1 %v3615_v60, %s7634_s27  ;;  %v3515_v62 = vld [vmem:[#allocation5 + $0x21] sm:$0x7f]  ;;  %vm9909_vm5 = vmmov %vm9905_vm1 }
 0x326   : > { %3780 = vrot.lane.b32.xlu0 %v3615_v60, %s7640_s22 }
 0x329   : > { %3684 = vrot.lane.b32.xlu1 %v3664_v61, %s7636_s14 }
 0x32a   : > { %3490 = vrot.lane.b32.xlu0 %v3615_v60, %s7637_s19 }
 0x32e   : > { %3533 = vrot.lane.b32.xlu0 %v3515_v62, %s7638_s16 }
 0x336   : > { %v6651_v3 = vpop.f32.mrb[22].mxu0 }
 0x337   : > { %v2379_v4 = vadd.f32 %v8894_v20, %v6651_v3  ;;  %v2373_v5 = vpop.f32.mrb[23].mxu0 }
 0x338   : > { %v2374_v52 = vadd.f32 %v8894_v20, %v2373_v5 }
 0x339   : > { %v2445_v0 = vmax.f32 %v2379_v4, 0.0 }
 0x33a   : > { %v2444_v10 = vmax.f32 %v2374_v52, 0.0 }
 0x33b   : > { %v2465_v11 = vmax.f32 %v2443_v6, %v2445_v0 }
 0x33c   : > { %v2464_v14 = vmax.f32 %v2442_v7, %v2444_v10 }
 0x33d   : > { %v2673_v24 = vcombine.high %v2465_v11, %v2465_v11  ;;  %v2680_v15 = vrot.slane %v2465_v11, %v8534_v1 }
 0x33e   : > { %v2656_v8 = vcombine.high %v2464_v14, %v2464_v14  ;;  %v2663_v16 = vrot.slane %v2464_v14, %v8534_v1 }
 0x33f   : > { %v2687_v17 = vrot.slane %v2673_v24, %v8534_v1  ;;  %v2688_v18 = vcombine.high %v2680_v15, %v2680_v15  ;;  %v3131_v19 = vsel %vm9904_vm14, %v2680_v15, -inf  ;;  %vm9910_vm14 = vmmov %vm9905_vm1 }
 0x340   : > { %v3132_v21 = vrot.slane %v3131_v19, 4  ;;  %v2670_v22 = vrot.slane %v2656_v8, %v8534_v1  ;;  %v2671_v13 = vcombine.high %v2663_v16, %v2663_v16  ;;  %v3103_v9 = vsel %vm9905_vm1, %v2663_v16, -inf }
 0x341   : > { %v2689_v36 = vcombine.high %v2687_v17, %v2687_v17  ;;  %v3138_v23 = vsel %vm9906_vm2, %v2688_v18, -inf  ;;  %v3145_v50 = vsel %vm9907_vm9, %v2687_v17, -inf  ;;  %v3104_v25 = vrot.slane %v3103_v9, 4 }
 0x342   : > { %v3133_v26 = vmax.f32 %v3131_v19, %v3132_v21  ;;  %v3139_v28 = vrot.slane %v3138_v23, 4  ;;  %v3146_v30 = vrot.slane %v3145_v50, 4  ;;  %v2672_v12 = vcombine.high %v2670_v22, %v2670_v22 }
 0x343   : > { %v3152_v31 = vsel %vm9908_vm13, %v2689_v36, -inf  ;;  %v3105_v57 = vmax.f32 %v3103_v9, %v3104_v25  ;;  %v3110_v32 = vsel %vm9909_vm5, %v2671_v13, -inf  ;;  %v3117_v33 = vsel %vm9910_vm14, %v2670_v22, -inf }
 0x344   : > { %v3140_v34 = vmax.f32 %v3138_v23, %v3139_v28  ;;  %v3147_v35 = vmax.f32 %v3145_v50, %v3146_v30  ;;  %v3153_v29 = vrot.slane %v3152_v31, 4  ;;  %v3111_v39 = vrot.slane %v3110_v32, 4 }
 0x345   : > { %v3106_v38 = vrot.slane %v3105_v57, 2  ;;  %v3118_v40 = vrot.slane %v3117_v33, 4  ;;  %v3124_v41 = vsel %vm9905_vm1, %v2672_v12, -inf  ;;  %v3134_v42 = vrot.slane %v3133_v26, 2 }
 0x346   : > { %v3141_v43 = vrot.slane %v3140_v34, 2  ;;  %v3154_v44 = vmax.f32 %v3152_v31, %v3153_v29  ;;  %v3112_v45 = vmax.f32 %v3110_v32, %v3111_v39  ;;  %v3125_v48 = vrot.slane %v3124_v41, 4 }
 0x347   : > { %v3107_v37 = vmax.f32 %v3105_v57, %v3106_v38  ;;  %v3119_v46 = vmax.f32 %v3117_v33, %v3118_v40  ;;  %v3148_v51 = vrot.slane %v3147_v35, 2  ;;  %v3135_v58 = vmax.f32 %v3133_v26, %v3134_v42 }
 0x348   : > { %v3155_v47 = vrot.slane %v3154_v44, 2  ;;  %v3113_v53 = vrot.slane %v3112_v45, 2  ;;  %v3126_v56 = vmax.f32 %v3124_v41, %v3125_v48  ;;  %v3142_v27 = vmax.f32 %v3140_v34, %v3141_v43  ;;  %v3825_v41 = vld [vmem:[#allocation3 + $0x38] sm:$0xff] }
 0x349   : > { %v3120_v55 = vrot.slane %v3119_v46, 2  ;;  %v3108_v59 = vrot.slane %v3107_v37, 1  ;;  %v3149_v63 = vmax.f32 %v3147_v35, %v3148_v51  ;;  %v3136_v52 = vrot.slane %v3135_v58, 1 }
 0x34a   : > { %v3114_v60 = vmax.f32 %v3112_v45, %v3113_v53  ;;  %v3127_v62 = vrot.slane %v3126_v56, 2  ;;  %v3156_v2 = vmax.f32 %v3154_v44, %v3155_v47  ;;  %v3143_v6 = vrot.slane %v3142_v27, 1 }
 0x34b   : > { %v3121_v61 = vmax.f32 %v3119_v46, %v3120_v55  ;;  %v3109_v0 = vmax.f32 %v3107_v37, %v3108_v59  ;;  %v3150_v14 = vrot.slane %v3149_v63, 1  ;;  %vm9911_vm2 = vcmask 1041409  }
 0x34c   : > { %v3115_v3 = vrot.slane %v3114_v60, 1  ;;  %v3128_v5 = vmax.f32 %v3126_v56, %v3127_v62  ;;  %v3157_v24 = vrot.slane %v3156_v2, 1  ;;  %v3137_v16 = vmax.f32 %v3135_v58, %v3136_v52 }
 0x34d   : > { %v3122_v4 = vrot.slane %v3121_v61, 1  ;;  %v3144_v18 = vmax.f32 %v3142_v27, %v3143_v6  ;;  %v3151_v21 = vmax.f32 %v3149_v63, %v3150_v14  ;;  %vm9912_vm9 = vcmask 1045509  }
 0x34e   : > { %v3116_v7 = vmax.f32 %v3114_v60, %v3115_v3  ;;  %v3129_v11 = vrot.slane %v3128_v5, 1  ;;  %v3158_v9 = vmax.f32 %v3156_v2, %v3157_v24  ;;  %vm9913_vm13 = vcmask 1046534  }
 0x34f   : > { %v3123_v10 = vmax.f32 %v3121_v61, %v3122_v4  ;;  %vm9914_vm5 = vcmask 1047559   ;;  %vm9915_vm14 = vcmask 130048   ;;  %vm9916_vm1 = vcmask 129024  }
 0x350   : > { %v3130_v15 = vmax.f32 %v3128_v5, %v3129_v11  ;;  %v3377_v8 = vsel %vm9911_vm2, %v3116_v7, %v3109_v0  ;;  %vm9917_vm2 = vmmov %vm9915_vm14 }
 0x351   : > { %v3378_v17 = vsel %vm3337_vm8, %v3123_v10, %v3377_v8 }
 0x352   : > { %v3379_v19 = vsel %vm3339_vm15, %v3130_v15, %v3378_v17 }
 0x353   : > { %v3380_v22 = vsel %vm3341_vm3, %v3137_v16, %v3379_v19  ;;  %v3736_v13 = vpop.permute.xlu1 %3735 }
 0x354   : > { %v3381_v36 = vsel %vm9912_vm9, %v3144_v18, %v3380_v22  ;;  %3755 = vst.msk [vmem:[#allocation3 + $0x20] sm:$0xfe] %vm3752_vm7, %v3736_v13  ;;  %v3585_v23 = vpop.permute.xlu0 %3584  ;;  %vm9918_vm9 = vcmask 130049  }
 0x355   : > { %v6654_v50 = vpop.f32.mrb[24].mxu0  ;;  %v3382_v25 = vsel %vm9913_vm13, %v3151_v21, %v3381_v36  ;;  %3606 = vst.msk [vmem:[#allocation3 + $0x30] sm:$0xfe] %vm3602_vm6, %v3585_v23  ;;  %vm9919_vm13 = vcmask 123904  }
 0x356   : > { %v2383_v26 = vpop.f32.mrb[25].mxu0  ;;  %v3383_v28 = vsel %vm9914_vm5, %v3158_v9, %v3382_v25  ;;  %v2389_v45 = vadd.f32 %v8894_v20, %v6654_v50  ;;  %vm9920_vm5 = vmmov %vm9919_vm13 }
 0x357   : > { %3412 = vst.msk [vmem:[#allocation5 + $0x28] sm:$0xff] %vm9915_vm14, %v3383_v28  ;;  %v3779_v30 = vpop.permute.xlu1 %3778  ;;  %v2384_v46 = vadd.f32 %v8894_v20, %v2383_v26  ;;  %vm9921_vm14 = vmmov %vm9920_vm5 }
 0x358   : > { %3798 = vst.msk [vmem:[#allocation3 + $0x20] sm:$0xff] %vm3795_vm0, %v3779_v30  ;;  %v3634_v12 = vpop.permute.xlu0 %3633  ;;  %v2447_v55 = vmax.f32 %v2389_v45, 0.0 }
 0x359   : > { %3655 = vst.msk [vmem:[#allocation3 + $0x30] sm:$0xff] %vm3651_vm12, %v3634_v12  ;;  %v2446_v58 = vmax.f32 %v2384_v46, 0.0 }
 0x35b   : > { %v3489_v31 = vpop.permute.xlu1 %3488 }
 0x35c   : > { %3507 = vst.msk [vmem:[#allocation3 + $0x40] sm:$0xff] %vm3503_vm11, %v3489_v31  ;;  %v3683_v57 = vpop.permute.xlu0 %3682 }
 0x35d   : > { %3704 = vst.msk [vmem:[#allocation3 + $0x30] sm:$0x7f] %vm3700_vm10, %v3683_v57 }
 0x35e   : > { %v3714_v32 = vld [vmem:[#allocation5 + $0x28] sm:$0x7f] }
 0x35f   : > { %v3559_v33 = vld [vmem:[#allocation5 + $0x28] sm:$0x7f]  ;;  %v3532_v34 = vpop.permute.xlu1 %3531  ;;  %v3822_v35 = vld [vmem:[#allocation3 + $0x20] sm:$0xff]  ;;  %v3728_v29 = vrot.slane %v3714_v32, 7 }
 0x360   : > { %v3575_v38 = vrot.slane %v3559_v33, 7  ;;  %3550 = vst.msk [vmem:[#allocation3 + $0x40] sm:$0x7f] %vm3546_vm4, %v3532_v34  ;;  %3958 = vmatmul.mubr.f32.gmra.mrb[4].mxu1 %v3822_v35  ;;  %v3807_v39 = vld [vmem:[#allocation5 + $0x29] sm:$0x7f] }
 0x361   : > { %v3436_v40 = vld [vmem:[#allocation5 + $0x28] sm:$0x7f]  ;;  %3739 = vrot.lane.b32.xlu1 %v3728_v29, %s7639_s24  ;;  %3815 = vst.msk [vmem:[#allocation3 + $0x48] sm:$0x7f] %vm9916_vm1, %v3807_v39  ;;  %6404 = vmatprep.mubr.msk.f32.mxu1 %vm9917_vm2, %v3825_v41  ;;  %vm9922_vm1 = vmmov %vm9920_vm5 }
 0x362   : > { %3588 = vrot.lane.b32.xlu0 %v3575_v38, %s7635_s15  ;;  %v3450_v42 = vrot.slane %v3436_v40, 7  ;;  %v3764_v43 = vld [vmem:[#allocation5 + $0x28] sm:$0xff]  ;;  %vm9923_vm2 = vmmov %vm9922_vm1 }
 0x363   : > { %v3665_v44 = vld [vmem:[#allocation5 + $0x29] sm:$0x7f] }
 0x364   : > { %3466 = vst.msk [vmem:[#allocation3 + $0x60] sm:$0xfe] %vm9918_vm9, %v3450_v42  ;;  %v3516_v37 = vld [vmem:[#allocation5 + $0x29] sm:$0x7f]  ;;  %vm9924_vm9 = vmmov %vm9922_vm1 }
 0x365   : > { %3782 = vrot.lane.b32.xlu1 %v3764_v43, %s7640_s22 }
 0x366   : > { %3637 = vrot.lane.b32.xlu0 %v3764_v43, %s7634_s27 }
 0x369   : > { %3492 = vrot.lane.b32.xlu1 %v3764_v43, %s7637_s19 }
 0x36a   : > { %3686 = vrot.lane.b32.xlu0 %v3665_v44, %s7636_s14 }
 0x36d   : > { %3535 = vrot.lane.b32.xlu1 %v3516_v37, %s7638_s16 }
 0x371   : > { %v6657_v48 = vpop.f32.mrb[26].mxu0 }
 0x372   : > { %v2399_v51 = vadd.f32 %v8894_v20, %v6657_v48  ;;  %v2393_v47 = vpop.f32.mrb[27].mxu0 }
 0x373   : > { %v2394_v53 = vadd.f32 %v8894_v20, %v2393_v47 }
 0x374   : > { %v2449_v56 = vmax.f32 %v2399_v51, 0.0 }
 0x375   : > { %v2448_v27 = vmax.f32 %v2394_v53, 0.0 }
 0x376   : > { %v2467_v59 = vmax.f32 %v2447_v55, %v2449_v56 }
 0x377   : > { %v2466_v60 = vmax.f32 %v2446_v58, %v2448_v27 }
 0x378   : > { %v2707_v61 = vcombine.high %v2467_v59, %v2467_v59  ;;  %v2714_v62 = vrot.slane %v2467_v59, %v8534_v1 }
 0x379   : > { %v2690_v63 = vcombine.high %v2466_v60, %v2466_v60  ;;  %v2697_v2 = vrot.slane %v2466_v60, %v8534_v1 }
 0x37a   : > { %v2721_v3 = vrot.slane %v2707_v61, %v8534_v1  ;;  %v2722_v4 = vcombine.high %v2714_v62, %v2714_v62  ;;  %v3187_v5 = vsel %vm9919_vm13, %v2714_v62, -inf  ;;  %vm9925_vm13 = vmmov %vm9922_vm1 }
 0x37b   : > { %v3188_v52 = vrot.slane %v3187_v5, 4  ;;  %v2704_v6 = vrot.slane %v2690_v63, %v8534_v1  ;;  %v2705_v0 = vcombine.high %v2697_v2, %v2697_v2  ;;  %v3159_v7 = vsel %vm9920_vm5, %v2697_v2, -inf  ;;  %vm9926_vm5 = vmmov %vm9922_vm1 }
 0x37c   : > { %v2723_v10 = vcombine.high %v2721_v3, %v2721_v3  ;;  %v3194_v11 = vsel %vm9921_vm14, %v2722_v4, -inf  ;;  %v3201_v14 = vsel %vm9922_vm1, %v2721_v3, -inf  ;;  %v3160_v24 = vrot.slane %v3159_v7, 4 }
 0x37d   : > { %v3189_v15 = vmax.f32 %v3187_v5, %v3188_v52  ;;  %v3195_v8 = vrot.slane %v3194_v11, 4  ;;  %v3202_v16 = vrot.slane %v3201_v14, 4  ;;  %v2706_v17 = vcombine.high %v2704_v6, %v2704_v6 }
 0x37e   : > { %v3208_v18 = vsel %vm9923_vm2, %v2723_v10, -inf  ;;  %v3161_v19 = vmax.f32 %v3159_v7, %v3160_v24  ;;  %v3166_v21 = vsel %vm9924_vm9, %v2705_v0, -inf  ;;  %v3173_v22 = vsel %vm9925_vm13, %v2704_v6, -inf  ;;  %v7489_v10 = vld [vmem:[#allocation3 + $0x70] sm:$0xff] }
 0x37f   : > { %v3196_v13 = vmax.f32 %v3194_v11, %v3195_v8  ;;  %v3203_v9 = vmax.f32 %v3201_v14, %v3202_v16  ;;  %v3209_v36 = vrot.slane %v3208_v18, 4  ;;  %v3167_v50 = vrot.slane %v3166_v21, 4 }
 0x380   : > { %v3162_v23 = vrot.slane %v3161_v19, 2  ;;  %v3174_v25 = vrot.slane %v3173_v22, 4  ;;  %v3180_v26 = vsel %vm9926_vm5, %v2706_v17, -inf  ;;  %v3190_v28 = vrot.slane %v3189_v15, 2 }
 0x381   : > { %v3197_v30 = vrot.slane %v3196_v13, 2  ;;  %v3210_v12 = vmax.f32 %v3208_v18, %v3209_v36  ;;  %v3168_v57 = vmax.f32 %v3166_v21, %v3167_v50  ;;  %v3181_v33 = vrot.slane %v3180_v26, 4 }
 0x382   : > { %v3163_v31 = vmax.f32 %v3161_v19, %v3162_v23  ;;  %v3175_v32 = vmax.f32 %v3173_v22, %v3174_v25  ;;  %v3204_v34 = vrot.slane %v3203_v9, 2  ;;  %v3191_v40 = vmax.f32 %v3189_v15, %v3190_v28 }
 0x383   : > { %v3211_v35 = vrot.slane %v3210_v12, 2  ;;  %v3169_v29 = vrot.slane %v3168_v57, 2  ;;  %v3182_v39 = vmax.f32 %v3180_v26, %v3181_v33  ;;  %v3198_v41 = vmax.f32 %v3196_v13, %v3197_v30 }
 0x384   : > { %v3176_v38 = vrot.slane %v3175_v32, 2  ;;  %v3164_v43 = vrot.slane %v3163_v31, 1  ;;  %v3205_v48 = vmax.f32 %v3203_v9, %v3204_v34  ;;  %v3192_v56 = vrot.slane %v3191_v40, 1 }
 0x385   : > { %v6660_v42 = vpop.f32.mrb[28].mxu0  ;;  %v3170_v44 = vmax.f32 %v3168_v57, %v3169_v29  ;;  %v3183_v45 = vrot.slane %v3182_v39, 2  ;;  %v3212_v51 = vmax.f32 %v3210_v12, %v3211_v35  ;;  %v3199_v58 = vrot.slane %v3198_v41, 1 }
 0x386   : > { %v3177_v37 = vmax.f32 %v3175_v32, %v3176_v38  ;;  %v2403_v46 = vpop.f32.mrb[29].mxu0  ;;  %v3165_v27 = vmax.f32 %v3163_v31, %v3164_v43  ;;  %v3206_v62 = vrot.slane %v3205_v48, 1  ;;  %vm9927_vm14 = vcmask 1041409  }
 0x387   : > { %v3171_v47 = vrot.slane %v3170_v44, 1  ;;  %v3184_v55 = vmax.f32 %v3182_v39, %v3183_v45  ;;  %v3213_v63 = vrot.slane %v3212_v51, 1  ;;  %v3193_v4 = vmax.f32 %v3191_v40, %v3192_v56 }
 0x388   : > { %v3178_v53 = vrot.slane %v3177_v37, 1  ;;  %v3200_v52 = vmax.f32 %v3198_v41, %v3199_v58  ;;  %vm9784_vm1 = vcmask 519168   ;;  %v3207_v0 = vmax.f32 %v3205_v48, %v3206_v62 }
 0x389   : > { %v3172_v59 = vmax.f32 %v3170_v44, %v3171_v47  ;;  %v3185_v61 = vrot.slane %v3184_v55, 1  ;;  %4240 = vst.msk [vmem:[#allocation4 + $0x10] sm:$0xf] %vm9784_vm1, %v7489_v10  ;;  %4243 = vst.msk [vmem:[#allocation4 + $0x24] sm:$0xf] %vm9784_vm1, %v7489_v10  ;;  %v3214_v11 = vmax.f32 %v3212_v51, %v3213_v63  ;;  %vm9928_vm2 = vcmask 1045509  }
 0x38a   : > { %v3179_v60 = vmax.f32 %v3177_v37, %v3178_v53  ;;  %4246 = vst.msk [vmem:[#allocation4 + $0x38] sm:$0xf] %vm9784_vm1, %v7489_v10  ;;  %4249 = vst.msk [vmem:[#allocation4 + $0x4c] sm:$0xf] %vm9784_vm1, %v7489_v10  ;;  %vm9929_vm9 = vcmask 1046534   ;;  %v2409_v15 = vadd.f32 %v8894_v20, %v6660_v42  ;;  %vm9930_vm13 = vcmask 1047559  }
 0x38b   : > { %v3186_v2 = vmax.f32 %v3184_v55, %v3185_v61  ;;  %v3384_v3 = vsel %vm9927_vm14, %v3172_v59, %v3165_v27  ;;  %v2404_v16 = vadd.f32 %v8894_v20, %v2403_v46  ;;  %vm9931_vm5 = vcmask 130048  }
 0x38c   : > { %v3385_v5 = vsel %vm3337_vm8, %v3179_v60, %v3384_v3  ;;  %v2451_v9 = vmax.f32 %v2409_v15, 0.0  ;;  %vm9932_vm14 = vcmask 123904  }
 0x38d   : > { %v3386_v6 = vsel %vm3339_vm15, %v3186_v2, %v3385_v5  ;;  %v2450_v23 = vmax.f32 %v2404_v16, 0.0 }
 0x38e   : > { %v3387_v7 = vsel %vm3341_vm3, %v3193_v4, %v3386_v6 }
 0x38f   : > { %v3388_v14 = vsel %vm9928_vm2, %v3200_v52, %v3387_v7  ;;  %vm9933_vm2 = vmmov %vm9932_vm14 }
 0x390   : > { %v3389_v24 = vsel %vm9929_vm9, %v3207_v0, %v3388_v14  ;;  %vm9934_vm9 = vmmov %vm9933_vm2  ;;  %v3827_v0 = vld [vmem:[#allocation3 + $0x48] sm:$0xff] }
 0x391   : > { %v3390_v8 = vsel %vm9930_vm13, %v3214_v11, %v3389_v24  ;;  %vm9935_vm13 = vmmov %vm9933_vm2 }
 0x392   : > { %3413 = vst.msk [vmem:[#allocation5 + $0x30] sm:$0xff] %vm9931_vm5, %v3390_v8  ;;  %vm9936_vm5 = vcmask 129024   ;;  %vm9938_vm1 = vmmov %vm9933_vm2 }
 0x393   : > { %v6663_v17 = vpop.f32.mrb[30].mxu0  ;;  %v3587_v18 = vpop.permute.xlu1 %3586 }
 0x394   : > { %v2419_v19 = vadd.f32 %v8894_v20, %v6663_v17  ;;  %v2413_v21 = vpop.f32.mrb[31].mxu0  ;;  %3607 = vst.msk [vmem:[#allocation3 + $0x40] sm:$0xfe] %vm3602_vm6, %v3587_v18  ;;  %v3738_v22 = vpop.permute.xlu0 %3737 }
 0x395   : > { %v2414_v13 = vadd.f32 %v8894_v20, %v2413_v21  ;;  %3756 = vst.msk [vmem:[#allocation3 + $0x30] sm:$0xfe] %vm3752_vm7, %v3738_v22 }
 0x396   : > { %v2453_v36 = vmax.f32 %v2419_v19, 0.0 }
 0x397   : > { %v2452_v50 = vmax.f32 %v2414_v13, 0.0  ;;  %v3636_v26 = vpop.permute.xlu1 %3635 }
 0x398   : > { %v2469_v25 = vmax.f32 %v2451_v9, %v2453_v36  ;;  %3656 = vst.msk [vmem:[#allocation3 + $0x40] sm:$0xff] %vm3651_vm12, %v3636_v26  ;;  %v3781_v30 = vpop.permute.xlu0 %3780 }
 0x399   : > { %v2468_v28 = vmax.f32 %v2450_v23, %v2452_v50  ;;  %3799 = vst.msk [vmem:[#allocation3 + $0x30] sm:$0xff] %vm3795_vm0, %v3781_v30  ;;  %v3560_v32 = vld [vmem:[#allocation5 + $0x30] sm:$0x7f] }
 0x39a   : > { %v2741_v12 = vcombine.high %v2469_v25, %v2469_v25  ;;  %v2748_v31 = vrot.slane %v2469_v25, %v8534_v1  ;;  %v3576_v38 = vrot.slane %v3560_v32, 7  ;;  %v3808_v44 = vld [vmem:[#allocation5 + $0x31] sm:$0x7f] }
 0x39b   : > { %v2724_v57 = vcombine.high %v2468_v28, %v2468_v28  ;;  %v2731_v20 = vrot.slane %v2468_v28, %v8534_v1  ;;  %v3685_v29 = vpop.permute.xlu1 %3684  ;;  %3816 = vst.msk [vmem:[#allocation3 + $0x58] sm:$0x7f] %vm9936_vm5, %v3808_v44  ;;  %v9079_v3 = vld [vmem:[#allocation5 + $0x30] sm:$0xff]  ;;  %vm9942_vm5 = vcmask 1041409  }
 0x39c   : > { %v2755_v33 = vrot.slane %v2741_v12, %v8534_v1  ;;  %v2756_v34 = vcombine.high %v2748_v31, %v2748_v31  ;;  %v3243_v35 = vsel %vm9932_vm14, %v2748_v31, -inf  ;;  %3705 = vst.msk [vmem:[#allocation3 + $0x40] sm:$0x7f] %vm3700_vm10, %v3685_v29  ;;  %v3491_v43 = vpop.permute.xlu0 %3490  ;;  %3590 = vrot.lane.b32.xlu1 %v3576_v38, %s7635_s15  ;;  %vm9937_vm14 = vmmov %vm9933_vm2  ;;  %v3715_v22 = vld [vmem:[#allocation5 + $0x30] sm:$0x7f] }
 0x39d   : > { %v3244_v39 = vrot.slane %v3243_v35, 4  ;;  %v2738_v40 = vrot.slane %v2724_v57, %v8534_v1  ;;  %v2739_v41 = vcombine.high %v2731_v20, %v2731_v20  ;;  %v3215_v42 = vsel %vm9933_vm2, %v2731_v20, -inf  ;;  %3508 = vst.msk [vmem:[#allocation3 + $0x50] sm:$0xff] %vm3503_vm11, %v3491_v43  ;;  %v3437_v36 = vld [vmem:[#allocation5 + $0x30] sm:$0x7f] }
 0x39e   : > { %v2757_v37 = vcombine.high %v2755_v33, %v2755_v33  ;;  %v3250_v45 = vsel %vm9934_vm9, %v2756_v34, -inf  ;;  %v3257_v46 = vsel %vm9935_vm13, %v2755_v33, -inf  ;;  %v3216_v48 = vrot.slane %v3215_v42, 4  ;;  %vm9939_vm9 = vmmov %vm9938_vm1 }
 0x39f   : > { %v3245_v51 = vmax.f32 %v3243_v35, %v3244_v39  ;;  %v3251_v47 = vrot.slane %v3250_v45, 4  ;;  %v3258_v53 = vrot.slane %v3257_v46, 4  ;;  %v2740_v55 = vcombine.high %v2738_v40, %v2738_v40 }
 0x3a0   : > { %v3264_v56 = vsel %vm9937_vm14, %v2757_v37, -inf  ;;  %v3217_v58 = vmax.f32 %v3215_v42, %v3216_v48  ;;  %v3222_v27 = vsel %vm9933_vm2, %v2739_v41, -inf  ;;  %v3229_v59 = vsel %vm9938_vm1, %v2738_v40, -inf  ;;  %v3534_v63 = vpop.permute.xlu0 %3533  ;;  %v3824_v2 = vld [vmem:[#allocation3 + $0x30] sm:$0xff]  ;;  %3639 = vrot.lane.b32.xlu1 %v9079_v3, %s7634_s27 }
 0x3a1   : > { %v3252_v60 = vmax.f32 %v3250_v45, %v3251_v47  ;;  %v3259_v61 = vmax.f32 %v3257_v46, %v3258_v53  ;;  %v3265_v62 = vrot.slane %v3264_v56, 4  ;;  %v3223_v5 = vrot.slane %v3222_v27, 4  ;;  %3551 = vst.msk [vmem:[#allocation3 + $0x50] sm:$0x7f] %vm3546_vm4, %v3534_v63  ;;  %3963 = vmatmul.mubr.f32.gmra.mrb[6].mxu1 %v3824_v2 }
 0x3a2   : > { %v3218_v4 = vrot.slane %v3217_v58, 2  ;;  %v3230_v52 = vrot.slane %v3229_v59, 4  ;;  %v3236_v6 = vsel %vm9939_vm9, %v2740_v55, -inf  ;;  %v3246_v7 = vrot.slane %v3245_v51, 2  ;;  %v3666_v55 = vld [vmem:[#allocation5 + $0x31] sm:$0x7f] }
 0x3a3   : > { %v3253_v10 = vrot.slane %v3252_v60, 2  ;;  %v3266_v11 = vmax.f32 %v3264_v56, %v3265_v62  ;;  %vm9940_vm1 = vcmask 130048   ;;  %v3224_v24 = vmax.f32 %v3222_v27, %v3223_v5 }
 0x3a4   : > { %6405 = vmatprep.mubr.msk.f32.mxu1 %vm9940_vm1, %v3827_v0  ;;  %v3219_v14 = vmax.f32 %v3217_v58, %v3218_v4  ;;  %v3231_v15 = vmax.f32 %v3229_v59, %v3230_v52  ;;  %v3237_v8 = vrot.slane %v3236_v6, 4  ;;  %v3260_v16 = vrot.slane %v3259_v61, 2 }
 0x3a5   : > { %v3267_v17 = vrot.slane %v3266_v11, 2  ;;  %v3225_v18 = vrot.slane %v3224_v24, 2  ;;  %v3247_v13 = vmax.f32 %v3245_v51, %v3246_v7  ;;  %v3254_v9 = vmax.f32 %v3252_v60, %v3253_v10  ;;  %v3517_v60 = vld [vmem:[#allocation5 + $0x31] sm:$0x7f] }
 0x3a6   : > { %v3232_v19 = vrot.slane %v3231_v15, 2  ;;  %v3238_v21 = vmax.f32 %v3236_v6, %v3237_v8  ;;  %v3220_v23 = vrot.slane %v3219_v14, 1  ;;  %v3261_v28 = vmax.f32 %v3259_v61, %v3260_v16  ;;  %v9119_v8 = vld [vmem:[%s9747_s4] ss:$0 sm:$0xff] }
 0x3a7   : > { %v3226_v50 = vmax.f32 %v3224_v24, %v3225_v18  ;;  %v3268_v30 = vmax.f32 %v3266_v11, %v3267_v17  ;;  %v3729_v12 = vrot.slane %v3715_v22, 7  ;;  %v3451_v32 = vrot.slane %v3437_v36, 7 }
 0x3a8   : > { %v3233_v25 = vmax.f32 %v3231_v15, %v3232_v19  ;;  %v3239_v26 = vrot.slane %v3238_v21, 2  ;;  %v3248_v33 = vrot.slane %v3247_v13, 1  ;;  %v3255_v34 = vrot.slane %v3254_v9, 1  ;;  %v3829_v15 = vld [vmem:[#allocation3 + $0x58] sm:$0xff] }
 0x3a9   : > { %v3227_v31 = vrot.slane %v3226_v50, 1  ;;  %3741 = vrot.lane.b32.xlu0 %v3729_v12, %s7639_s24  ;;  %v3221_v35 = vmax.f32 %v3219_v14, %v3220_v23  ;;  %vm9941_vm13 = vcmask 130049   ;;  %v3262_v40 = vrot.slane %v3261_v28, 1 }
 0x3aa   : > { %v3234_v57 = vrot.slane %v3233_v25, 1  ;;  %v3240_v20 = vmax.f32 %v3238_v21, %v3239_v26  ;;  %3467 = vst.msk [vmem:[#allocation3 + $0x70] sm:$0xfe] %vm9941_vm13, %v3451_v32  ;;  %v3269_v41 = vrot.slane %v3268_v30, 1  ;;  %v3249_v44 = vmax.f32 %v3247_v13, %v3248_v33  ;;  %vm9947_vm13 = vmmov %vm9940_vm1 }
 0x3ab   : > { %v3228_v29 = vmax.f32 %v3226_v50, %v3227_v31  ;;  %v3256_v45 = vmax.f32 %v3254_v9, %v3255_v34  ;;  %v3263_v48 = vmax.f32 %v3261_v28, %v3262_v40  ;;  %vm9943_vm14 = vcmask 1045509  }
 0x3ac   : > { %v3235_v38 = vmax.f32 %v3233_v25, %v3234_v57  ;;  %v3241_v39 = vrot.slane %v3240_v20, 1  ;;  %v3270_v47 = vmax.f32 %v3268_v30, %v3269_v41  ;;  %vm9944_vm2 = vcmask 1046534  }
 0x3ad   : > { %v3391_v43 = vsel %vm9942_vm5, %v3228_v29, %v3221_v35  ;;  %3784 = vrot.lane.b32.xlu0 %v9079_v3, %s7640_s22  ;;  %vm9945_vm9 = vcmask 1047559   ;;  %vm4088_vm5 = vcmask 517120  }
 0x3ae   : > { %v3242_v42 = vmax.f32 %v3240_v20, %v3241_v39  ;;  %v3392_v37 = vsel %vm3337_vm8, %v3235_v38, %v3391_v43 }
 0x3b0   : > { %v3393_v46 = vsel %vm3339_vm15, %v3242_v42, %v3392_v37 }
 0x3b1   : > { %v3394_v51 = vsel %vm3341_vm3, %v3249_v44, %v3393_v46  ;;  %3688 = vrot.lane.b32.xlu0 %v3666_v55, %s7636_s14  ;;  %vm9946_vm3 = vcmask 129024  }
 0x3b2   : > { %v3395_v53 = vsel %vm9943_vm14, %v3256_v45, %v3394_v51  ;;  %vm9948_vm14 = vcmask 1041409  }
 0x3b3   : > { %v3396_v56 = vsel %vm9944_vm2, %v3263_v48, %v3395_v53  ;;  %vm9949_vm2 = vcmask 519168  }
 0x3b4   : > { %v3397_v58 = vsel %vm9945_vm9, %v3270_v47, %v3396_v56  ;;  %v3949_v27 = vpop.f32.mrb[0].mxu1  ;;  %vm4289_vm9 = vcmask 518144  }
 0x3b5   : > { %3414 = vst.msk [vmem:[#allocation5 + $0x38] sm:$0xff] %vm9940_vm1, %v3397_v58  ;;  %v3951_v59 = vpop.f32.mrb[1].mxu1  ;;  %3494 = vrot.lane.b32.xlu0 %v9079_v3, %s7637_s19  ;;  %v3950_v16 = vadd.f32 %v9119_v8, %v3949_v27  ;;  %vm4263_vm1 = vcmask 519169   ;;  %s7550_s19 = sshll.u32 %s7641_s29, 4  ;;  %s7551_s19 = int_to_ptr.vmem [resolvable:$false] %s7550_s19 }
 0x3b6   : > { %p7553_p4 = scmp.lt.s32.totalorder %s9703_s23, %s7551_s19 }
 0x3b7   : > { %v3988_v21 = vmax.f32 %v3950_v16, 0.0 }
 0x3b9   : > { %3537 = vrot.lane.b32.xlu0 %v3517_v60, %s7638_s16  ;;  %s7552_s16 = scalar_lea.vmem %s7551_s19, 32 }
 0x3bc   : > { %v3618_v61 = vld [vmem:[#allocation5 + $0x38] sm:$0xff] }
 0x3bd   : > { %v3716_v62 = vld [vmem:[#allocation5 + $0x38] sm:$0x7f]  ;;  %3641 = vrot.lane.b32.xlu0 %v3618_v61, %s7634_s27 }
 0x3be   : > { %v3730_v63 = vrot.slane %v3716_v62, 7  ;;  %v3809_v2 = vld [vmem:[#allocation5 + $0x39] sm:$0x7f] }
 0x3bf   : > { %3817 = vst.msk [vmem:[#allocation3 + $0x68] sm:$0x7f] %vm9946_vm3, %v3809_v2  ;;  %v3561_v4 = vld [vmem:[#allocation5 + $0x38] sm:$0x7f]  ;;  %vm9950_vm3 = vmmov %vm9949_vm2 }
 0x3c0   : > { %3743 = vrot.lane.b32.xlu1 %v3730_v63, %s7639_s24  ;;  %v3577_v5 = vrot.slane %v3561_v4, 7  ;;  %v3667_v3 = vld [vmem:[#allocation5 + $0x39] sm:$0x7f] }
 0x3c4   : > { %3786 = vrot.lane.b32.xlu1 %v3618_v61, %s7640_s22 }
 0x3c8   : > { %3592 = vrot.lane.b32.xlu1 %v3577_v5, %s7635_s15  ;;  %s6177_s15 = scalar_lea.sflag [#allocation10], %s461_s17 }
 0x3cc   : > { %3690 = vrot.lane.b32.xlu1 %v3667_v3, %s7636_s14  ;;  %s7546_s14 = scalar_lea.vmem %s9703_s23, 16 }
 0x3cd   : > { %p7547_p12 = scmp.ne.s32.totalorder %s9703_s23, %s7546_s14  ;;  %p7554_p7 = scmp.lt.s32.totalorder %s7552_s16, %s7546_s14 }
 0x3cf   : > { %p7548_p2 = pnand %p7547_p12, %p9962_p1  ;;  %p7555_p8 = por %p7554_p7, %p7553_p4 }
 0x3d1   : > { %p7549_p3 = pneg %p7548_p2 }
 0x3d3   : > { %v3740_v52 = vpop.permute.xlu1 %3739  ;;  %p7556_p11 = pnand %p7555_p8, %p7549_p3 }
 0x3d4   : > { %v3589_v6 = vpop.permute.xlu0 %3588  ;;  %3757 = vst.msk [vmem:[#allocation3 + $0x40] sm:$0xfe] %vm3752_vm7, %v3740_v52 }
 0x3d5   : > { %3608 = vst.msk [vmem:[#allocation3 + $0x50] sm:$0xfe] %vm3602_vm6, %v3589_v6 }
 0x3d7   : > { %v3783_v0 = vpop.permute.xlu1 %3782 }
 0x3d8   : > { %v3638_v7 = vpop.permute.xlu0 %3637  ;;  %3800 = vst.msk [vmem:[#allocation3 + $0x40] sm:$0xff] %vm3795_vm0, %v3783_v0 }
 0x3d9   : > { %3657 = vst.msk [vmem:[#allocation3 + $0x50] sm:$0xff] %vm3651_vm12, %v3638_v7 }
 0x3db   : > { %v3493_v10 = vpop.permute.xlu1 %3492 }
 0x3dc   : > { %v3687_v11 = vpop.permute.xlu0 %3686  ;;  %3509 = vst.msk [vmem:[#allocation3 + $0x60] sm:$0xff] %vm3503_vm11, %v3493_v10 }
 0x3dd   : > { %3706 = vst.msk [vmem:[#allocation3 + $0x50] sm:$0x7f] %vm3700_vm10, %v3687_v11 }
 0x3df   : > { %v3536_v14 = vpop.permute.xlu1 %3535  ;;  %v3826_v24 = vld [vmem:[#allocation3 + $0x40] sm:$0xff] }
 0x3e0   : > { %3552 = vst.msk [vmem:[#allocation3 + $0x60] sm:$0x7f] %vm3546_vm4, %v3536_v14  ;;  %3968 = vmatmul.mubr.f32.gmra.mrb[8].mxu1 %v3826_v24  ;;  %v3831_v24 = vld [vmem:[#allocation3 + $0x68] sm:$0xff] }
 0x3e1   : > { %6406 = vmatprep.mubr.msk.f32.mxu1 %vm9947_vm13, %v3829_v15 }
 0x3f5   : > { %v3954_v17 = vpop.f32.mrb[2].mxu1 }
 0x3f6   : > { %v3955_v18 = vadd.f32 %v9119_v8, %v3954_v17  ;;  %v3956_v19 = vpop.f32.mrb[3].mxu1 }
 0x3f8   : > { %v3989_v22 = vmax.f32 %v3955_v18, 0.0 }
 0x3fa   : > { %v3996_v13 = vmax.f32 %v3988_v21, %v3989_v22 }
 0x3fc   : > { %v4004_v9 = vcombine.high %v3996_v13, %v3996_v13  ;;  %v4011_v36 = vrot.slane %v3996_v13, %v8534_v1  ;;  %v3833_v13 = vld [vmem:[#allocation3 + $0x78] sm:$0xff] }
 0x3fe   : > { %v4018_v23 = vrot.slane %v4004_v9, %v8534_v1  ;;  %v4019_v50 = vcombine.high %v4011_v36, %v4011_v36  ;;  %v4089_v25 = vsel %vm4088_vm5, %v4011_v36, -inf }
 0x3ff   : > { %v4090_v26 = vrot.slane %v4089_v25, 4 }
 0x400   : > { %v4020_v28 = vcombine.high %v4018_v23, %v4018_v23  ;;  %v4096_v30 = vsel %vm4088_vm5, %v4019_v50, -inf  ;;  %v4103_v12 = vsel %vm4088_vm5, %v4018_v23, -inf }
 0x401   : > { %v4091_v31 = vmax.f32 %v4089_v25, %v4090_v26  ;;  %v4097_v57 = vrot.slane %v4096_v30, 4  ;;  %v4104_v20 = vrot.slane %v4103_v12, 4 }
 0x402   : > { %v4110_v32 = vsel %vm4088_vm5, %v4020_v28, -inf }
 0x403   : > { %v4092_v33 = vrot.slane %v4091_v31, 2  ;;  %v4098_v34 = vmax.f32 %v4096_v30, %v4097_v57  ;;  %v4105_v35 = vmax.f32 %v4103_v12, %v4104_v20  ;;  %v4111_v29 = vrot.slane %v4110_v32, 4 }
 0x405   : > { %v4093_v38 = vmax.f32 %v4091_v31, %v4092_v33  ;;  %v4099_v39 = vrot.slane %v4098_v34, 2  ;;  %v4106_v40 = vrot.slane %v4105_v35, 2  ;;  %v4112_v41 = vmax.f32 %v4110_v32, %v4111_v29 }
 0x407   : > { %v4094_v42 = vrot.slane %v4093_v38, 1  ;;  %v4100_v43 = vmax.f32 %v4098_v34, %v4099_v39  ;;  %v4107_v44 = vmax.f32 %v4105_v35, %v4106_v40  ;;  %v4113_v37 = vrot.slane %v4112_v41, 2 }
 0x409   : > { %v4101_v45 = vrot.slane %v4100_v43, 1  ;;  %v4108_v46 = vrot.slane %v4107_v44, 1  ;;  %v4114_v48 = vmax.f32 %v4112_v41, %v4113_v37  ;;  %v4095_v51 = vmax.f32 %v4093_v38, %v4094_v42 }
 0x40b   : > { %v4102_v47 = vmax.f32 %v4100_v43, %v4101_v45  ;;  %v4109_v53 = vmax.f32 %v4107_v44, %v4108_v46  ;;  %v4115_v55 = vrot.slane %v4114_v48, 1 }
 0x40d   : > { %v4116_v56 = vmax.f32 %v4114_v48, %v4115_v55  ;;  %v4217_v58 = vsel %vm9948_vm14, %v4102_v47, %v4095_v51  ;;  %v4423_v48 = vld [vmem:[%s9748_s5 + $0x80] sm:$0xff]  ;;  %v4424_v51 = vld [vmem:[%s9748_s5 + $0x88] sm:$0xff] }
 0x40e   : > { %v4218_v27 = vsel %vm3337_vm8, %v4109_v53, %v4217_v58  ;;  %v3591_v60 = vpop.permute.xlu1 %3590  ;;  %v6720_v47 = vpack.c.bf16 %v4424_v51, %v4423_v48  ;;  %v4407_v53 = vld [vmem:[%s9748_s5] sm:$0xff]  ;;  %v4408_v55 = vld [vmem:[%s9748_s5 + $0x8] sm:$0xff]  ;;  %v4434_v48 = vld [vmem:[%s9748_s5 + $0xd8] sm:$0xff] }
 0x40f   : > { %v4219_v59 = vsel %vm3339_vm15, %v4116_v56, %v4218_v27  ;;  %3609 = vst.msk [vmem:[#allocation3 + $0x60] sm:$0xfe] %vm3602_vm6, %v3591_v60  ;;  %v6722_v60 = vpack.c.bf16 %v4408_v55, %v4407_v53 }
 0x410   : > { %4234 = vst.msk [vmem:[#allocation6] sm:$0xf] %vm9949_vm2, %v4219_v59  ;;  %6721 = vmatprep.subr.bf16.mxu1 %v6720_v47 }
 0x411   : > { %6723 = vmatpush3.bf16.msra.mxu1 %v6722_v60  ;;  %v4435_v60 = vld [vmem:[%s9748_s5 + $0xe0] sm:$0xff] }
 0x412   : > { %v3640_v61 = vpop.permute.xlu1 %3639 }
 0x413   : > { %3658 = vst.msk [vmem:[#allocation3 + $0x60] sm:$0xff] %vm3651_vm12, %v3640_v61 }
 0x417   : > { %v4330_v62 = vld [vmem:[#allocation6 + $0x1] sm:$0x7] }
 0x418   : > { %v4267_v63 = vld [vmem:[#allocation6] sm:$0xf]  ;;  %4338 = vrot.lane.b32.xlu1 %v4330_v62, %s7634_s27 }
 0x419   : > { %v4293_v2 = vld [vmem:[#allocation6] sm:$0x7]  ;;  %4273 = vrot.lane.b32.xlu0 %v4267_v63, %s7634_s27 }
 0x41a   : > { %v4322_v4 = vld [vmem:[#allocation6] sm:$0xf]  ;;  %v4301_v6 = vrot.slane %v4293_v2, 7 }
 0x41b   : > { %v4250_v5 = vld [vmem:[#allocation6] sm:$0x7]  ;;  %4326 = vst.msk [vmem:[#allocation4 + $0x8] sm:$0xf] %vm9950_vm3, %v4322_v4  ;;  %v3742_v0 = vpop.permute.xlu0 %3741  ;;  %v4425_v4 = vld [vmem:[%s9748_s5 + $0x90] sm:$0xff] }
 0x41c   : > { %v4256_v3 = vrot.slane %v4250_v5, 7  ;;  %v4286_v52 = vld [vmem:[#allocation6 + $0x1] sm:$0x7]  ;;  %4305 = vrot.lane.b32.xlu1 %v4301_v6, %s7634_s27  ;;  %3758 = vst.msk [vmem:[#allocation3 + $0x50] sm:$0xfe] %vm3752_vm7, %v3742_v0  ;;  %v4426_v5 = vld [vmem:[%s9748_s5 + $0x98] sm:$0xff] }
 0x41d   : > { %4290 = vst.msk [vmem:[#allocation4 + $0x18] sm:$0x7] %vm4289_vm9, %v4286_v52  ;;  %v4409_v52 = vld [vmem:[%s9748_s5 + $0x10] sm:$0xff]  ;;  %v4410_v6 = vld [vmem:[%s9748_s5 + $0x18] sm:$0xff] }
 0x41e   : > { %4264 = vst.msk [vmem:[#allocation4 + $0x14] sm:$0xe] %vm4263_vm1, %v4256_v3  ;;  %v6724_v3 = vpack.c.bf16 %v4426_v5, %v4425_v4  ;;  %v4420_v4 = vld [vmem:[%s9748_s5 + $0x68] sm:$0xff] }
 0x41f   : > { %v3785_v7 = vpop.permute.xlu0 %3784 }
 0x420   : > { %3801 = vst.msk [vmem:[#allocation3 + $0x50] sm:$0xff] %vm3795_vm0, %v3785_v7  ;;  %6725 = vmatprep.subr.bf16.mxu1 %v6724_v3  ;;  %v4437_v3 = vld [vmem:[%s9748_s5 + $0xf0] sm:$0xff] }
 0x423   : > { %v3689_v10 = vpop.permute.xlu0 %3688 }
 0x424   : > { %3707 = vst.msk [vmem:[#allocation3 + $0x60] sm:$0x7f] %vm3700_vm10, %v3689_v10 }
 0x427   : > { %v3495_v11 = vpop.permute.xlu0 %3494  ;;  %v3828_v14 = vld [vmem:[#allocation3 + $0x50] sm:$0xff] }
 0x428   : > { %3510 = vst.msk [vmem:[#allocation3 + $0x70] sm:$0xff] %vm3503_vm11, %v3495_v11  ;;  %3973 = vmatmul.mubr.f32.gmra.mrb[10].mxu1 %v3828_v14  ;;  %vm9951_vm11 = vmmov %vm9947_vm13 }
 0x429   : > { %6407 = vmatprep.mubr.msk.f32.mxu1 %vm9947_vm13, %v3831_v24  ;;  %v6726_v24 = vpack.c.bf16 %v4410_v6, %v4409_v52  ;;  %v4438_v52 = vld [vmem:[%s9748_s5 + $0xf8] sm:$0xff] }
 0x42a   : > { %v6748_v6 = vpack.c.bf16 %v4438_v52, %v4437_v3 }
 0x42b   : > { %v3538_v15 = vpop.permute.xlu0 %3537  ;;  %6727 = vmatpush3.bf16.msra.mxu1 %v6726_v24  ;;  %v4455_v24 = vld [vmem:[%s9748_s5 + $0x180] sm:$0xff] }
 0x42c   : > { %3553 = vst.msk [vmem:[#allocation3 + $0x70] sm:$0x7f] %vm3546_vm4, %v3538_v15  ;;  %vm9952_vm4 = vmmov %vm9948_vm14 }
 0x42d   : > { %vm9955_vm14 = vmmov %vm9952_vm4 }
 0x42f   : > { %v3642_v22 = vpop.permute.xlu0 %3641 }
 0x432   : > { %v3744_v16 = vpop.permute.xlu1 %3743 }
 0x433   : > { %3759 = vst.msk [vmem:[#allocation3 + $0x60] sm:$0xfe] %vm3752_vm7, %v3744_v16  ;;  %v3959_v17 = vpop.f32.mrb[4].mxu1  ;;  %vm9953_vm7 = vmmov %vm9949_vm2 }
 0x434   : > { %v3961_v19 = vpop.f32.mrb[5].mxu1  ;;  %v3960_v50 = vadd.f32 %v9119_v8, %v3959_v17 }
 0x435   : > { %v4427_v19 = vld [vmem:[%s9748_s5 + $0xa0] sm:$0xff] }
 0x436   : > { %v3787_v18 = vpop.permute.xlu1 %3786  ;;  %v3990_v30 = vmax.f32 %v3960_v50, 0.0 }
 0x437   : > { %3802 = vst.msk [vmem:[#allocation3 + $0x60] sm:$0xff] %vm3795_vm0, %v3787_v18  ;;  %vm9954_vm0 = vmmov %vm9949_vm2 }
 0x438   : > { %vm9956_vm2 = vmmov %vm9954_vm0 }
 0x439   : > { %vm9957_vm3 = vmmov %vm9954_vm0 }
 0x43a   : > { %v3593_v21 = vpop.permute.xlu1 %3592  ;;  %vm9959_vm13 = vmmov %vm9954_vm0 }
 0x43b   : > { %3610 = vst.msk [vmem:[#allocation3 + $0x70] sm:$0xfe] %vm3602_vm6, %v3593_v21  ;;  %vm4350_vm6 = vcmask 1042944   ;;  %v4428_v21 = vld [vmem:[%s9748_s5 + $0xa8] sm:$0xff] }
 0x43c   : > { %3659 = vst.msk [vmem:[#allocation3 + $0x70] sm:$0xff] %vm3651_vm12, %v3642_v22  ;;  %vm4282_vm12 = vcmask 1043968   ;;  %v6728_v22 = vpack.c.bf16 %v4428_v21, %v4427_v19  ;;  %v4457_v19 = vld [vmem:[%s9748_s5 + $0x190] sm:$0xff]  ;;  %v4458_v21 = vld [vmem:[%s9748_s5 + $0x198] sm:$0xff] }
 0x43e   : > { %v3691_v9 = vpop.permute.xlu1 %3690  ;;  %v3830_v36 = vld [vmem:[#allocation3 + $0x60] sm:$0xff]  ;;  %6729 = vmatprep.subr.bf16.mxu1 %v6728_v22 }
 0x43f   : > { %3708 = vst.msk [vmem:[#allocation3 + $0x70] sm:$0x7f] %vm3700_vm10, %v3691_v9  ;;  %3978 = vmatmul.mubr.f32.gmra.mrb[12].mxu1 %v3830_v36  ;;  %vm4317_vm10 = vcmask 1043969   ;;  %v4412_v9 = vld [vmem:[%s9748_s5 + $0x28] sm:$0xff] }
 0x440   : > { %6408 = vmatprep.mubr.msk.f32.mxu1 %vm9951_vm11, %v3833_v13  ;;  %v4411_v13 = vld [vmem:[%s9748_s5 + $0x20] sm:$0xff]  ;;  %vm6174_vm11 = vcmask 73728  }
 0x441   : > { %v6730_v50 = vpack.c.bf16 %v4412_v9, %v4411_v13  ;;  %v6756_v13 = vpack.c.bf16 %v4458_v21, %v4457_v19  ;;  %v4441_v9 = vld [vmem:[%s9748_s5 + $0x110] sm:$0xff] }
 0x443   : > { %6731 = vmatpush3.bf16.msra.mxu1 %v6730_v50  ;;  %v4460_v50 = vld [vmem:[%s9748_s5 + $0x1a8] sm:$0xff] }
 0x446   : > { %v3832_v23 = vld [vmem:[#allocation3 + $0x70] sm:$0xff] }
 0x447   : > { %3983 = vmatmul.mubr.f32.gmra.mrb[14].mxu1 %v3832_v23 }
 0x474   : > { %v3964_v25 = vpop.f32.mrb[6].mxu1 }
 0x475   : > { %v3965_v26 = vadd.f32 %v9119_v8, %v3964_v25  ;;  %v3966_v28 = vpop.f32.mrb[7].mxu1 }
 0x477   : > { %v3991_v12 = vmax.f32 %v3965_v26, 0.0 }
 0x479   : > { %v3997_v31 = vmax.f32 %v3990_v30, %v3991_v12  ;;  %v4429_v30 = vld [vmem:[%s9748_s5 + $0xb0] sm:$0xff]  ;;  %v4430_v12 = vld [vmem:[%s9748_s5 + $0xb8] sm:$0xff] }
 0x47b   : > { %v4021_v57 = vcombine.high %v3997_v31, %v3997_v31  ;;  %v4028_v20 = vrot.slane %v3997_v31, %v8534_v1  ;;  %v6732_v31 = vpack.c.bf16 %v4430_v12, %v4429_v30  ;;  %v4444_v30 = vld [vmem:[%s9748_s5 + $0x128] sm:$0xff]  ;;  %v4461_v12 = vld [vmem:[%s9748_s5 + $0x1b0] sm:$0xff] }
 0x47d   : > { %v4035_v32 = vrot.slane %v4021_v57, %v8534_v1  ;;  %v4036_v33 = vcombine.high %v4028_v20, %v4028_v20  ;;  %v4117_v34 = vsel %vm4088_vm5, %v4028_v20, -inf  ;;  %v4413_v57 = vld [vmem:[%s9748_s5 + $0x30] sm:$0xff]  ;;  %v4414_v20 = vld [vmem:[%s9748_s5 + $0x38] sm:$0xff]  ;;  %6733 = vmatprep.subr.bf16.mxu1 %v6732_v31 }
 0x47e   : > { %v4118_v35 = vrot.slane %v4117_v34, 4  ;;  %v4462_v31 = vld [vmem:[%s9748_s5 + $0x1b8] sm:$0xff] }
 0x47f   : > { %v4037_v29 = vcombine.high %v4035_v32, %v4035_v32  ;;  %v4124_v38 = vsel %vm4088_vm5, %v4036_v33, -inf  ;;  %v4131_v39 = vsel %vm4088_vm5, %v4035_v32, -inf  ;;  %v6734_v32 = vpack.c.bf16 %v4414_v20, %v4413_v57  ;;  %v4431_v33 = vld [vmem:[%s9748_s5 + $0xc0] sm:$0xff] }
 0x480   : > { %v4119_v40 = vmax.f32 %v4117_v34, %v4118_v35  ;;  %v4125_v41 = vrot.slane %v4124_v38, 4  ;;  %v4132_v42 = vrot.slane %v4131_v39, 4  ;;  %v4432_v34 = vld [vmem:[%s9748_s5 + $0xc8] sm:$0xff]  ;;  %v6764_v20 = vpack.c.bf16 %v4462_v31, %v4461_v12 }
 0x481   : > { %v4138_v43 = vsel %vm4088_vm5, %v4037_v29, -inf  ;;  %6735 = vmatpush3.bf16.msra.mxu1 %v6734_v32  ;;  %v6736_v35 = vpack.c.bf16 %v4432_v34, %v4431_v33  ;;  %v4415_v29 = vld [vmem:[%s9748_s5 + $0x40] sm:$0xff]  ;;  %v4445_v32 = vld [vmem:[%s9748_s5 + $0x130] sm:$0xff]  ;;  %v4446_v33 = vld [vmem:[%s9748_s5 + $0x138] sm:$0xff] }
 0x482   : > { %v4120_v44 = vrot.slane %v4119_v40, 2  ;;  %v4126_v37 = vmax.f32 %v4124_v38, %v4125_v41  ;;  %v4133_v45 = vmax.f32 %v4131_v39, %v4132_v42  ;;  %v4139_v46 = vrot.slane %v4138_v43, 4  ;;  %v4416_v38 = vld [vmem:[%s9748_s5 + $0x48] sm:$0xff]  ;;  %v4463_v34 = vld [vmem:[%s9748_s5 + $0x1c0] sm:$0xff] }
 0x483   : > { %v6738_v39 = vpack.c.bf16 %v4416_v38, %v4415_v29  ;;  %6737 = vmatprep.subr.bf16.mxu1 %v6736_v35  ;;  %v4464_v35 = vld [vmem:[%s9748_s5 + $0x1c8] sm:$0xff]  ;;  %v6766_v29 = vpack.c.bf16 %v4446_v33, %v4445_v32  ;;  %v4467_v32 = vld [vmem:[%s9748_s5 + $0x1e0] sm:$0xff] }
 0x484   : > { %v4121_v56 = vmax.f32 %v4119_v40, %v4120_v44  ;;  %v4127_v58 = vrot.slane %v4126_v37, 2  ;;  %v4134_v27 = vrot.slane %v4133_v45, 2  ;;  %v4140_v59 = vmax.f32 %v4138_v43, %v4139_v46  ;;  %v4433_v46 = vld [vmem:[%s9748_s5 + $0xd0] sm:$0xff]  ;;  %v4468_v33 = vld [vmem:[%s9748_s5 + $0x1e8] sm:$0xff] }
 0x485   : > { %6739 = vmatpush3.bf16.msra.mxu1 %v6738_v39  ;;  %v6740_v53 = vpack.c.bf16 %v4434_v48, %v4433_v46  ;;  %v6768_v38 = vpack.c.bf16 %v4464_v35, %v4463_v34  ;;  %v4447_v39 = vld [vmem:[%s9748_s5 + $0x140] sm:$0xff]  ;;  %v6776_v34 = vpack.c.bf16 %v4468_v33, %v4467_v32 }
 0x486   : > { %v4122_v61 = vrot.slane %v4121_v56, 1  ;;  %v4128_v62 = vmax.f32 %v4126_v37, %v4127_v58  ;;  %v4135_v63 = vmax.f32 %v4133_v45, %v4134_v27  ;;  %v4141_v2 = vrot.slane %v4140_v59, 2  ;;  %v4417_v58 = vld [vmem:[%s9748_s5 + $0x50] sm:$0xff]  ;;  %v4418_v27 = vld [vmem:[%s9748_s5 + $0x58] sm:$0xff] }
 0x487   : > { %6741 = vmatprep.subr.bf16.mxu1 %v6740_v53 }
 0x488   : > { %v4129_v0 = vrot.slane %v4128_v62, 1  ;;  %v4136_v7 = vrot.slane %v4135_v63, 1  ;;  %v4142_v10 = vmax.f32 %v4140_v59, %v4141_v2  ;;  %v4123_v15 = vmax.f32 %v4121_v56, %v4122_v61  ;;  %v4436_v61 = vld [vmem:[%s9748_s5 + $0xe8] sm:$0xff]  ;;  %v4419_v2 = vld [vmem:[%s9748_s5 + $0x60] sm:$0xff] }
 0x489   : > { %v6742_v59 = vpack.c.bf16 %v4418_v27, %v4417_v58  ;;  %v6746_v5 = vpack.c.bf16 %v4420_v4, %v4419_v2 }
 0x48a   : > { %v4339_v11 = vpop.permute.xlu1 %4338  ;;  %v4130_v16 = vmax.f32 %v4128_v62, %v4129_v0  ;;  %v4137_v17 = vmax.f32 %v4135_v63, %v4136_v7  ;;  %v4143_v18 = vrot.slane %v4142_v10, 1  ;;  %v6744_v63 = vpack.c.bf16 %v4436_v61, %v4435_v60  ;;  %v4421_v0 = vld [vmem:[%s9748_s5 + $0x70] sm:$0xff]  ;;  %v4422_v7 = vld [vmem:[%s9748_s5 + $0x78] sm:$0xff] }
 0x48b   : > { %v4274_v14 = vpop.permute.xlu0 %4273  ;;  %4351 = vst.msk [vmem:[#allocation4 + $0x8] sm:$0x7] %vm4350_vm6, %v4339_v11  ;;  %6743 = vmatpush3.bf16.msra.mxu1 %v6742_v59 }
 0x48c   : > { %4283 = vst.msk [vmem:[#allocation4 + $0x14] sm:$0xf] %vm4282_vm12, %v4274_v14  ;;  %v4144_v36 = vmax.f32 %v4142_v10, %v4143_v18  ;;  %v4220_v23 = vsel %vm9952_vm4, %v4130_v16, %v4123_v15  ;;  %6745 = vmatprep.subr.bf16.mxu1 %v6744_v63  ;;  %v6750_v10 = vpack.c.bf16 %v4422_v7, %v4421_v0  ;;  %v4456_v15 = vld [vmem:[%s9748_s5 + $0x188] sm:$0xff]  ;;  %v4439_v16 = vld [vmem:[%s9748_s5 + $0x100] sm:$0xff] }
 0x48d   : > { %v4221_v25 = vsel %vm3337_vm8, %v4137_v17, %v4220_v23  ;;  %v6752_v17 = vpack.c.bf16 %v4456_v15, %v4455_v24  ;;  %v4440_v18 = vld [vmem:[%s9748_s5 + $0x108] sm:$0xff]  ;;  %v4459_v23 = vld [vmem:[%s9748_s5 + $0x1a0] sm:$0xff] }
 0x48e   : > { %v4306_v26 = vpop.permute.xlu1 %4305  ;;  %v4222_v28 = vsel %vm3339_vm15, %v4144_v36, %v4221_v25  ;;  %v6754_v22 = vpack.c.bf16 %v4440_v18, %v4439_v16  ;;  %v4442_v36 = vld [vmem:[%s9748_s5 + $0x118] sm:$0xff] }
 0x48f   : > { %4318 = vst.msk [vmem:[#allocation4 + $0x4] sm:$0xe] %vm4317_vm10, %v4306_v26  ;;  %6747 = vmatpush3.bf16.msra.mxu1 %v6746_v5  ;;  %6753 = vmatprep.subr.bf16.mxu0 %v6752_v17  ;;  %v6758_v25 = vpack.c.bf16 %v4442_v36, %v4441_v9  ;;  %v6760_v26 = vpack.c.bf16 %v4460_v50, %v4459_v23 }
 0x490   : > { %4235 = vst.msk [vmem:[#allocation6 + $0x4] sm:$0xf] %vm9953_vm7, %v4222_v28  ;;  %6749 = vmatprep.subr.bf16.mxu1 %v6748_v6  ;;  %6755 = vmatpush3.bf16.msra.mxu0 %v6754_v22  ;;  %v4443_v28 = vld [vmem:[%s9748_s5 + $0x120] sm:$0xff] }
 0x491   : > { %6757 = vmatprep.subr.bf16.mxu0 %v6756_v13  ;;  %v6762_v57 = vpack.c.bf16 %v4444_v30, %v4443_v28 }
 0x493   : > { %6751 = vmatpush3.bf16.msra.mxu1 %v6750_v10 }
 0x494   : > { %6759 = vmatpush3.bf16.msra.mxu0 %v6758_v25  ;;  %v4449_v25 = vld [vmem:[%s9748_s5 + $0x150] sm:$0xff] }
 0x495   : > { %6761 = vmatprep.subr.bf16.mxu0 %v6760_v26  ;;  %v4450_v26 = vld [vmem:[%s9748_s5 + $0x158] sm:$0xff] }
 0x496   : > { %v6774_v30 = vpack.c.bf16 %v4450_v26, %v4449_v25 }
 0x497   : > { %v4371_v40 = vld [vmem:[#allocation6 + $0x4] sm:$0xf] }
 0x498   : > { %v4331_v41 = vld [vmem:[#allocation6 + $0x5] sm:$0x7]  ;;  %4377 = vrot.lane.b32.xlu1 %v4371_v40, %s7634_s27  ;;  %6763 = vmatpush3.bf16.msra.mxu0 %v6762_v57  ;;  %v4448_v40 = vld [vmem:[%s9748_s5 + $0x148] sm:$0xff] }
 0x499   : > { %4340 = vrot.lane.b32.xlu0 %v4331_v41, %s7634_s27  ;;  %v4294_v42 = vld [vmem:[#allocation6 + $0x4] sm:$0x7]  ;;  %6765 = vmatprep.subr.bf16.mxu0 %v6764_v20  ;;  %v4465_v41 = vld [vmem:[%s9748_s5 + $0x1d0] sm:$0xff] }
 0x49a   : > { %v4356_v43 = vld [vmem:[#allocation6 + $0x4] sm:$0x7]  ;;  %v4302_v47 = vrot.slane %v4294_v42, 7  ;;  %v4466_v42 = vld [vmem:[%s9748_s5 + $0x1d8] sm:$0xff] }
 0x49b   : > { %v4323_v44 = vld [vmem:[#allocation6 + $0x4] sm:$0xf]  ;;  %v4362_v45 = vrot.slane %v4356_v43, 7  ;;  %v6770_v43 = vpack.c.bf16 %v4448_v40, %v4447_v39 }
 0x49c   : > { %v4268_v37 = vld [vmem:[#allocation6 + $0x4] sm:$0xf]  ;;  %4327 = vst.msk [vmem:[#allocation4 + $0x1c] sm:$0xf] %vm9954_vm0, %v4323_v44  ;;  %6767 = vmatpush3.bf16.msra.mxu0 %v6766_v29  ;;  %v6772_v44 = vpack.c.bf16 %v4466_v42, %v4465_v41 }
 0x49d   : > { %v4251_v51 = vld [vmem:[#allocation6 + $0x4] sm:$0x7]  ;;  %4368 = vst.msk [vmem:[#allocation4 + $0xc] sm:$0xe] %vm4263_vm1, %v4362_v45  ;;  %4275 = vrot.lane.b32.xlu1 %v4268_v37, %s7634_s27  ;;  %4307 = vrot.lane.b32.xlu0 %v4302_v47, %s7634_s27 }
 0x49e   : > { %v4257_v55 = vrot.slane %v4251_v51, 7  ;;  %v4389_v56 = vld [vmem:[#allocation6 + $0x5] sm:$0x7]  ;;  %6769 = vmatprep.subr.bf16.mxu0 %v6768_v38 }
 0x49f   : > { %4392 = vst.msk [vmem:[#allocation4 + $0x10] sm:$0x7] %vm4289_vm9, %v4389_v56  ;;  %v4287_v62 = vld [vmem:[#allocation6 + $0x5] sm:$0x7] }
 0x4a0   : > { %4265 = vst.msk [vmem:[#allocation4 + $0x28] sm:$0xe] %vm4263_vm1, %v4257_v55  ;;  %6771 = vmatpush3.bf16.msra.mxu0 %v6770_v43  ;;  %v7473_v39 = vld [vmem:[#allocation4] ss:$20 sps:$4 sm:$0xff]   ;;  %v4452_v43 = vld [vmem:[%s9748_s5 + $0x168] sm:$0xff] }
 0x4a1   : > { %4291 = vst.msk [vmem:[#allocation4 + $0x2c] sm:$0x7] %vm4289_vm9, %v4287_v62  ;;  %6773 = vmatprep.subr.bf16.mxu0 %v6772_v44  ;;  %v4451_v42 = vld [vmem:[%s9748_s5 + $0x160] sm:$0xff]  ;;  %v4469_v44 = vld [vmem:[%s9748_s5 + $0x1f0] sm:$0xff] }
 0x4a4   : > { %6775 = vmatpush3.bf16.msra.mxu0 %v6774_v30 }
 0x4a5   : > { %6777 = vmatprep.subr.bf16.mxu0 %v6776_v34 }
 0x4b3   : > { %v3969_v11 = vpop.f32.mrb[8].mxu1 }
 0x4b4   : > { %v3971_v14 = vpop.f32.mrb[9].mxu1  ;;  %v3970_v37 = vadd.f32 %v9119_v8, %v3969_v11 }
 0x4b6   : > { %v3992_v51 = vmax.f32 %v3970_v37, 0.0 }
 0x4fb   : > { %v3974_v45 = vpop.f32.mrb[10].mxu1 }
 0x4fc   : > { %v3975_v46 = vadd.f32 %v9119_v8, %v3974_v45  ;;  %v3976_v48 = vpop.f32.mrb[11].mxu1  ;;  %v6778_v45 = vpack.c.bf16 %v4452_v43, %v4451_v42  ;;  %v4472_v42 = vld [vmem:[%s9748_s5 + $0x208] sm:$0xff] }
 0x4fd   : > { %v4453_v48 = vld [vmem:[%s9748_s5 + $0x170] sm:$0xff] }
 0x4fe   : > { %v3993_v47 = vmax.f32 %v3975_v46, 0.0  ;;  %v4470_v46 = vld [vmem:[%s9748_s5 + $0x1f8] sm:$0xff]  ;;  %6779 = vmatpush3.bf16.msra.mxu0 %v6778_v45 }
 0x500   : > { %v3998_v53 = vmax.f32 %v3992_v51, %v3993_v47  ;;  %v4454_v51 = vld [vmem:[%s9748_s5 + $0x178] sm:$0xff] }
 0x502   : > { %v4038_v55 = vcombine.high %v3998_v53, %v3998_v53  ;;  %v4045_v56 = vrot.slane %v3998_v53, %v8534_v1  ;;  %v6780_v53 = vpack.c.bf16 %v4470_v46, %v4469_v44 }
 0x504   : > { %v4052_v58 = vrot.slane %v4038_v55, %v8534_v1  ;;  %v4053_v27 = vcombine.high %v4045_v56, %v4045_v56  ;;  %v4145_v59 = vsel %vm4088_vm5, %v4045_v56, -inf  ;;  %6781 = vmatprep.subr.bf16.mxu0 %v6780_v53 }
 0x505   : > { %v4146_v60 = vrot.slane %v4145_v59, 4 }
 0x506   : > { %v4054_v61 = vcombine.high %v4052_v58, %v4052_v58  ;;  %v4152_v62 = vsel %vm4088_vm5, %v4053_v27, -inf  ;;  %v4159_v63 = vsel %vm4088_vm5, %v4052_v58, -inf  ;;  %v6782_v58 = vpack.c.bf16 %v4454_v51, %v4453_v48  ;;  %v4473_v48 = vld [vmem:[%s9748_s5 + $0x210] sm:$0xff]  ;;  %v4474_v51 = vld [vmem:[%s9748_s5 + $0x218] sm:$0xff] }
 0x507   : > { %v4147_v2 = vmax.f32 %v4145_v59, %v4146_v60  ;;  %v4153_v4 = vrot.slane %v4152_v62, 4  ;;  %v4160_v5 = vrot.slane %v4159_v63, 4  ;;  %v6788_v53 = vpack.c.bf16 %v4474_v51, %v4473_v48  ;;  %v4835_v51 = vld [vmem:[#allocation8 + $0x98] sm:$0xff] }
 0x508   : > { %v4166_v3 = vsel %vm4088_vm5, %v4054_v61, -inf  ;;  %6783 = vmatpush3.bf16.msra.mxu0 %v6782_v58 }
 0x509   : > { %v4148_v0 = vrot.slane %v4147_v2, 2  ;;  %v4154_v7 = vmax.f32 %v4152_v62, %v4153_v4  ;;  %v4161_v10 = vmax.f32 %v4159_v63, %v4160_v5  ;;  %v4167_v11 = vrot.slane %v4166_v3, 4 }
 0x50a   : > { %v4378_v52 = vpop.permute.xlu1 %4377 }
 0x50b   : > { %v4341_v6 = vpop.permute.xlu0 %4340  ;;  %4386 = vst.msk [vmem:[#allocation4 + $0xc] sm:$0xf] %vm4282_vm12, %v4378_v52  ;;  %v4149_v14 = vmax.f32 %v4147_v2, %v4148_v0  ;;  %v4155_v24 = vrot.slane %v4154_v7, 2  ;;  %v4162_v15 = vrot.slane %v4161_v10, 2  ;;  %v4168_v16 = vmax.f32 %v4166_v3, %v4167_v11 }
 0x50c   : > { %4352 = vst.msk [vmem:[#allocation4 + $0x1c] sm:$0x7] %vm4350_vm6, %v4341_v6 }
 0x50d   : > { %v4150_v19 = vrot.slane %v4149_v14, 1  ;;  %v4156_v21 = vmax.f32 %v4154_v7, %v4155_v24  ;;  %v4163_v22 = vmax.f32 %v4161_v10, %v4162_v15  ;;  %v4169_v13 = vrot.slane %v4168_v16, 2 }
 0x50f   : > { %v4276_v17 = vpop.permute.xlu1 %4275  ;;  %v4308_v18 = vpop.permute.xlu0 %4307  ;;  %v4157_v9 = vrot.slane %v4156_v21, 1  ;;  %v4164_v36 = vrot.slane %v4163_v22, 1  ;;  %v4170_v23 = vmax.f32 %v4168_v16, %v4169_v13  ;;  %v4151_v12 = vmax.f32 %v4149_v14, %v4150_v19 }
 0x510   : > { %4284 = vst.msk [vmem:[#allocation4 + $0x28] sm:$0xf] %vm4282_vm12, %v4276_v17 }
 0x511   : > { %4319 = vst.msk [vmem:[#allocation4 + $0x18] sm:$0xe] %vm4317_vm10, %v4308_v18  ;;  %v4158_v31 = vmax.f32 %v4156_v21, %v4157_v9  ;;  %v4165_v57 = vmax.f32 %v4163_v22, %v4164_v36  ;;  %v4171_v20 = vrot.slane %v4170_v23, 1 }
 0x512   : > { %v3979_v50 = vpop.f32.mrb[12].mxu1 }
 0x513   : > { %v3981_v28 = vpop.f32.mrb[13].mxu1  ;;  %v4172_v35 = vmax.f32 %v4170_v23, %v4171_v20  ;;  %v4223_v29 = vsel %vm9955_vm14, %v4158_v31, %v4151_v12  ;;  %v3980_v37 = vadd.f32 %v9119_v8, %v3979_v50 }
 0x514   : > { %v4224_v38 = vsel %vm3337_vm8, %v4165_v57, %v4223_v29 }
 0x515   : > { %v4225_v41 = vsel %vm3339_vm15, %v4172_v35, %v4224_v38  ;;  %v3994_v27 = vmax.f32 %v3980_v37, 0.0 }
 0x516   : > { %4236 = vst.msk [vmem:[#allocation6 + $0x8] sm:$0xf] %vm9956_vm2, %v4225_v41  ;;  %v4471_v41 = vld [vmem:[%s9748_s5 + $0x200] sm:$0xff] }
 0x517   : > { %v6784_v43 = vpack.c.bf16 %v4472_v42, %v4471_v41  ;;  %v4828_v41 = vld [vmem:[#allocation8 + $0x60] sm:$0xff]  ;;  %v4826_v42 = vld [vmem:[#allocation8 + $0x50] sm:$0xff] }
 0x518   : > { %v7475_v40 = vld [vmem:[#allocation4 + $0x4] ss:$20 sps:$4 sm:$0xff]  }
 0x519   : > { %4585 = vmatprep.mubr.f32.mxu1 %v7475_v40  ;;  %6785 = vmatprep.subr.bf16.mxu1 %v6784_v43 }
 0x51a   : > { %v3984_v47 = vpop.f32.mrb[14].mxu1  ;;  %4586 = vmatmul.mubr.f32.vlgmr.msra.gmra.mrb[16].mxu1 %v7473_v39 }
 0x51b   : > { %v3985_v55 = vadd.f32 %v9119_v8, %v3984_v47  ;;  %v3986_v56 = vpop.f32.mrb[15].mxu1  ;;  %6787 = vmatpush3.bf16.msra.mxu1 %v6784_v43  ;;  %v4475_v47 = vld [vmem:[%s9748_s5 + $0x220] sm:$0xff] }
 0x51c   : > { %6789 = vmatprep.subr.bf16.mxu1 %v6788_v53 }
 0x51d   : > { %v3995_v59 = vmax.f32 %v3985_v55, 0.0  ;;  %v4390_v61 = vld [vmem:[#allocation6 + $0x9] sm:$0x7] }
 0x51e   : > { %v4332_v62 = vld [vmem:[#allocation6 + $0x9] sm:$0x7]  ;;  %4393 = vst.msk [vmem:[#allocation4 + $0x24] sm:$0x7] %vm4289_vm9, %v4390_v61 }
 0x51f   : > { %v3999_v60 = vmax.f32 %v3994_v27, %v3995_v59  ;;  %v4372_v63 = vld [vmem:[#allocation6 + $0x8] sm:$0xf]  ;;  %4342 = vrot.lane.b32.xlu1 %v4332_v62, %s7634_s27  ;;  %6791 = vmatpush3.bf16.msra.mxu1 %v6788_v53  ;;  %v4477_v62 = vld [vmem:[%s9748_s5 + $0x230] sm:$0xff] }
 0x520   : > { %4379 = vrot.lane.b32.xlu0 %v4372_v63, %s7634_s27  ;;  %v4295_v2 = vld [vmem:[#allocation6 + $0x8] sm:$0x7]  ;;  %v4832_v53 = vld [vmem:[#allocation8 + $0x80] sm:$0xff] }
 0x521   : > { %v4055_v4 = vcombine.high %v3999_v60, %v3999_v60  ;;  %v4062_v8 = vrot.slane %v3999_v60, %v8534_v1  ;;  %v4324_v5 = vld [vmem:[#allocation6 + $0x8] sm:$0xf]  ;;  %v4303_v3 = vrot.slane %v4295_v2, 7  ;;  %v4478_v2 = vld [vmem:[%s9748_s5 + $0x238] sm:$0xff] }
 0x522   : > { %4328 = vst.msk [vmem:[#allocation4 + $0x30] sm:$0xf] %vm9957_vm3, %v4324_v5  ;;  %v4357_v52 = vld [vmem:[#allocation6 + $0x8] sm:$0x7] }
 0x523   : > { %v4252_v6 = vld [vmem:[#allocation6 + $0x8] sm:$0x7]  ;;  %v4069_v0 = vrot.slane %v4055_v4, %v8534_v1  ;;  %v4070_v7 = vcombine.high %v4062_v8, %v4062_v8  ;;  %v4173_v10 = vsel %vm4088_vm5, %v4062_v8, -inf  ;;  %v4363_v11 = vrot.slane %v4357_v52, 7  ;;  %4309 = vrot.lane.b32.xlu1 %v4303_v3, %s7634_s27 }
 0x524   : > { %v4288_v14 = vld [vmem:[#allocation6 + $0x9] sm:$0x7]  ;;  %v4174_v15 = vrot.slane %v4173_v10, 4  ;;  %v4258_v16 = vrot.slane %v4252_v6, 7  ;;  %v6796_v8 = vpack.c.bf16 %v4478_v2, %v4477_v62  ;;  %v4843_v62 = vld [vmem:[#allocation8 + $0xd8] sm:$0xff] }
 0x525   : > { %v4269_v24 = vld [vmem:[#allocation6 + $0x8] sm:$0xf]  ;;  %4292 = vst.msk [vmem:[#allocation4 + $0x40] sm:$0x7] %vm4289_vm9, %v4288_v14  ;;  %v4071_v17 = vcombine.high %v4069_v0, %v4069_v0  ;;  %v4180_v18 = vsel %vm4088_vm5, %v4070_v7, -inf  ;;  %v4187_v19 = vsel %vm4088_vm5, %v4069_v0, -inf }
 0x526   : > { %4277 = vrot.lane.b32.xlu0 %v4269_v24, %s7634_s27  ;;  %4369 = vst.msk [vmem:[#allocation4 + $0x20] sm:$0xe] %vm4263_vm1, %v4363_v11  ;;  %v4175_v21 = vmax.f32 %v4173_v10, %v4174_v15  ;;  %v4181_v22 = vrot.slane %v4180_v18, 4  ;;  %v4188_v13 = vrot.slane %v4187_v19, 4  ;;  %4266 = vst.msk [vmem:[#allocation4 + $0x3c] sm:$0xe] %vm4263_vm1, %v4258_v16 }
 0x527   : > { %v4194_v9 = vsel %vm4088_vm5, %v4071_v17, -inf  ;;  %vm9958_vm5 = vmmov %vm9952_vm4  ;;  %v4476_v55 = vld [vmem:[%s9748_s5 + $0x228] sm:$0xff]  ;;  %v7482_v17 = vld [vmem:[#allocation4 + $0x10] ss:$20 sps:$4 sm:$0xff]  }
 0x528   : > { %v4176_v36 = vrot.slane %v4175_v21, 2  ;;  %v4182_v23 = vmax.f32 %v4180_v18, %v4181_v22  ;;  %v4189_v50 = vmax.f32 %v4187_v19, %v4188_v13  ;;  %v4195_v25 = vrot.slane %v4194_v9, 4  ;;  %v7476_v7 = vld [vmem:[#allocation4 + $0x8] ss:$20 sps:$4 sm:$0xff]  }
 0x529   : > { %v6792_v56 = vpack.c.bf16 %v4476_v55, %v4475_v47  ;;  %v4839_v47 = vld [vmem:[#allocation8 + $0xb8] sm:$0xff] }
 0x52a   : > { %v4177_v26 = vmax.f32 %v4175_v21, %v4176_v36  ;;  %v4183_v28 = vrot.slane %v4182_v23, 2  ;;  %v4190_v30 = vrot.slane %v4189_v50, 2  ;;  %v4196_v12 = vmax.f32 %v4194_v9, %v4195_v25  ;;  %v4817_v36 = vld [vmem:[#allocation8 + $0x8] sm:$0xff] }
 0x52b   : > { %6793 = vmatprep.subr.bf16.mxu1 %v6792_v56  ;;  %v6936_v55 = vpack.c.bf16 %v4839_v47, %v4835_v51  ;;  %v4879_v47 = vld [vmem:[#allocation8 + $0x1f8] sm:$0xff] }
 0x52c   : > { %v4178_v31 = vrot.slane %v4177_v26, 1  ;;  %v4184_v57 = vmax.f32 %v4182_v23, %v4183_v28  ;;  %v4191_v20 = vmax.f32 %v4189_v50, %v4190_v30  ;;  %v4197_v32 = vrot.slane %v4196_v12, 2  ;;  %6795 = vmatpush3.bf16.msra.mxu1 %v6792_v56  ;;  %v4821_v23 = vld [vmem:[#allocation8 + $0x28] sm:$0xff]  ;;  %v4819_v50 = vld [vmem:[#allocation8 + $0x18] sm:$0xff]  ;;  %v4816_v28 = vld [vmem:[#allocation8] sm:$0xff] }
 0x52d   : > { %6797 = vmatprep.subr.bf16.mxu1 %v6796_v8  ;;  %v6800_v25 = vpack.c.bf16 %v4821_v23, %v4817_v36  ;;  %v4820_v30 = vld [vmem:[#allocation8 + $0x20] sm:$0xff]  ;;  %v4857_v36 = vld [vmem:[#allocation8 + $0x148] sm:$0xff] }
 0x52e   : > { %v4185_v33 = vrot.slane %v4184_v57, 1  ;;  %v4192_v34 = vrot.slane %v4191_v20, 1  ;;  %v4198_v35 = vmax.f32 %v4196_v12, %v4197_v32  ;;  %v4179_v29 = vmax.f32 %v4177_v26, %v4178_v31  ;;  %v4823_v26 = vld [vmem:[#allocation8 + $0x38] sm:$0xff]  ;;  %v4825_v32 = vld [vmem:[#allocation8 + $0x48] sm:$0xff]  ;;  %v4836_v56 = vld [vmem:[#allocation8 + $0xa0] sm:$0xff] }
 0x52f   : > { %v6928_v12 = vpack.c.bf16 %v4823_v26, %v4819_v50  ;;  %v6802_v31 = vpack.c.bf16 %v4820_v30, %v4816_v28  ;;  %6801 = vmatprep.subr.bf16.mxu0 %v6800_v25  ;;  %v4861_v23 = vld [vmem:[#allocation8 + $0x168] sm:$0xff]  ;;  %v4859_v50 = vld [vmem:[#allocation8 + $0x158] sm:$0xff]  ;;  %v4856_v28 = vld [vmem:[#allocation8 + $0x140] sm:$0xff] }
 0x530   : > { %v4186_v38 = vmax.f32 %v4184_v57, %v4185_v33  ;;  %v4193_v39 = vmax.f32 %v4191_v20, %v4192_v34  ;;  %v4199_v40 = vrot.slane %v4198_v35, 1  ;;  %6799 = vmatpush3.bf16.msra.mxu1 %v6796_v8  ;;  %v4818_v57 = vld [vmem:[#allocation8 + $0x10] sm:$0xff]  ;;  %v4829_v34 = vld [vmem:[#allocation8 + $0x68] sm:$0xff]  ;;  %v4840_v8 = vld [vmem:[#allocation8 + $0xc0] sm:$0xff]  ;;  %v6820_v25 = vpack.c.bf16 %v4861_v23, %v4857_v36 }
 0x531   : > { %v4822_v20 = vld [vmem:[#allocation8 + $0x30] sm:$0xff]  ;;  %6929 = vmatprep.subr.bf16.mxu1 %v6928_v12  ;;  %v4863_v26 = vld [vmem:[#allocation8 + $0x178] sm:$0xff]  ;;  %v4860_v30 = vld [vmem:[#allocation8 + $0x160] sm:$0xff] }
 0x532   : > { %v4200_v44 = vmax.f32 %v4198_v35, %v4199_v40  ;;  %v4226_v37 = vsel %vm9958_vm5, %v4186_v38, %v4179_v29  ;;  %v6930_v33 = vpack.c.bf16 %v4822_v20, %v4818_v57  ;;  %v4827_v35 = vld [vmem:[#allocation8 + $0x58] sm:$0xff]  ;;  %v6804_v38 = vpack.c.bf16 %v4829_v34, %v4825_v32  ;;  %v4824_v40 = vld [vmem:[#allocation8 + $0x40] sm:$0xff]  ;;  %v4858_v57 = vld [vmem:[#allocation8 + $0x150] sm:$0xff] }
 0x533   : > { %v4227_v45 = vsel %vm3337_vm8, %v4193_v39, %v4226_v37  ;;  %vm9960_vm8 = vmmov %vm9954_vm0  ;;  %v4831_v29 = vld [vmem:[#allocation8 + $0x78] sm:$0xff]  ;;  %v6806_v43 = vpack.c.bf16 %v4828_v41, %v4824_v40  ;;  %v4833_v37 = vld [vmem:[#allocation8 + $0x88] sm:$0xff]  ;;  %v6948_v12 = vpack.c.bf16 %v4863_v26, %v4859_v50 }
 0x534   : > { %v4228_v46 = vsel %vm3339_vm15, %v4200_v44, %v4227_v45  ;;  %vm4516_vm15 = vcmask 523264   ;;  %v6932_v39 = vpack.c.bf16 %v4831_v29, %v4827_v35  ;;  %v4830_v44 = vld [vmem:[#allocation8 + $0x70] sm:$0xff]  ;;  %v4837_v45 = vld [vmem:[#allocation8 + $0xa8] sm:$0xff]  ;;  %v4867_v35 = vld [vmem:[#allocation8 + $0x198] sm:$0xff] }
 0x535   : > { %4237 = vst.msk [vmem:[#allocation6 + $0xc] sm:$0xf] %vm9959_vm13, %v4228_v46  ;;  %v6934_v46 = vpack.c.bf16 %v4830_v44, %v4826_v42  ;;  %v6808_v48 = vpack.c.bf16 %v4837_v45, %v4833_v37  ;;  %v4862_v20 = vld [vmem:[#allocation8 + $0x170] sm:$0xff]  ;;  %v4869_v34 = vld [vmem:[#allocation8 + $0x1a8] sm:$0xff]  ;;  %v4868_v40 = vld [vmem:[#allocation8 + $0x1a0] sm:$0xff] }
 0x536   : > { %v6950_v32 = vpack.c.bf16 %v4862_v20, %v4858_v57  ;;  %v4870_v44 = vld [vmem:[#allocation8 + $0x1b0] sm:$0xff]  ;;  %v4873_v45 = vld [vmem:[#allocation8 + $0x1c8] sm:$0xff]  ;;  %v4899_v50 = vld [vmem:[#allocation8 + $0x298] sm:$0xff] }
 0x537   : > { %v4897_v36 = vld [vmem:[#allocation8 + $0x288] sm:$0xff]  ;;  %v4903_v26 = vld [vmem:[#allocation8 + $0x2b8] sm:$0xff]  ;;  %v4898_v57 = vld [vmem:[#allocation8 + $0x290] sm:$0xff] }
 0x538   : > { %v4901_v23 = vld [vmem:[#allocation8 + $0x2a8] sm:$0xff]  ;;  %v4902_v20 = vld [vmem:[#allocation8 + $0x2b0] sm:$0xff] }
 0x53c   : > { %v4373_v58 = vld [vmem:[#allocation6 + $0xc] sm:$0xf] }
 0x53d   : > { %v4296_v27 = vld [vmem:[#allocation6 + $0xc] sm:$0x7]  ;;  %4381 = vrot.lane.b32.xlu1 %v4373_v58, %s7634_s27  ;;  %v4834_v58 = vld [vmem:[#allocation8 + $0x90] sm:$0xff] }
 0x53e   : > { %v4304_v59 = vrot.slane %v4296_v27, 7  ;;  %v4358_v60 = vld [vmem:[#allocation6 + $0xc] sm:$0x7]  ;;  %v4838_v27 = vld [vmem:[#allocation8 + $0xb0] sm:$0xff] }
 0x53f   : > { %v4325_v61 = vld [vmem:[#allocation6 + $0xc] sm:$0xf]  ;;  %v4364_v63 = vrot.slane %v4358_v60, 7  ;;  %v4841_v60 = vld [vmem:[#allocation8 + $0xc8] sm:$0xff] }
 0x540   : > { %4329 = vst.msk [vmem:[#allocation4 + $0x44] sm:$0xf] %vm9960_vm8, %v4325_v61  ;;  %v4391_v4 = vld [vmem:[#allocation6 + $0xd] sm:$0x7]  ;;  %4311 = vrot.lane.b32.xlu0 %v4304_v59, %s7634_s27  ;;  %v6810_v59 = vpack.c.bf16 %v4836_v56, %v4832_v53  ;;  %v4845_v61 = vld [vmem:[#allocation8 + $0xe8] sm:$0xff]  ;;  %v4872_v53 = vld [vmem:[#allocation8 + $0x1c0] sm:$0xff] }
 0x541   : > { %4394 = vst.msk [vmem:[#allocation4 + $0x38] sm:$0x7] %vm4289_vm9, %v4391_v4  ;;  %v4333_v5 = vld [vmem:[#allocation6 + $0xd] sm:$0x7]  ;;  %v6812_v2 = vpack.c.bf16 %v4845_v61, %v4841_v60  ;;  %v4881_v61 = vld [vmem:[#allocation8 + $0x208] sm:$0xff]  ;;  %vm4778_vm9 = vcmask 1041408  }
 0x542   : > { %4370 = vst.msk [vmem:[#allocation4 + $0x34] sm:$0xe] %vm4263_vm1, %v4364_v63  ;;  %v6938_v63 = vpack.c.bf16 %v4838_v27, %v4834_v58  ;;  %v4847_v4 = vld [vmem:[#allocation8 + $0xf8] sm:$0xff]  ;;  %v4874_v27 = vld [vmem:[#allocation8 + $0x1d0] sm:$0xff]  ;;  %vm4809_vm1 = vcmp.lt.s32.totalorder %v2490_v49, 128  ;;  %v4944_v49 = vld [vmem:[#allocation8 + $0x400] sm:$0xff] }
 0x544   : > { %4344 = vrot.lane.b32.xlu0 %v4333_v5, %s7634_s27  ;;  %v4844_v5 = vld [vmem:[#allocation8 + $0xe0] sm:$0xff] }
 0x548   : > { %v7486_v21 = vld [vmem:[#allocation4 + $0x38] ss:$20 sps:$4 sm:$0xff]  }
 0x591   : > { %v4343_v3 = vpop.permute.xlu1 %4342 }
 0x592   : > { %v4380_v52 = vpop.permute.xlu0 %4379  ;;  %4353 = vst.msk [vmem:[#allocation4 + $0x30] sm:$0x7] %vm4350_vm6, %v4343_v3  ;;  %v6940_v3 = vpack.c.bf16 %v4847_v4, %v4843_v62  ;;  %v4885_v62 = vld [vmem:[#allocation8 + $0x228] sm:$0xff]  ;;  %v4887_v4 = vld [vmem:[#allocation8 + $0x238] sm:$0xff] }
 0x593   : > { %4387 = vst.msk [vmem:[#allocation4 + $0x20] sm:$0xf] %vm4282_vm12, %v4380_v52  ;;  %v4842_v52 = vld [vmem:[#allocation8 + $0xd0] sm:$0xff] }
 0x595   : > { %v4310_v6 = vpop.permute.xlu1 %4309 }
 0x596   : > { %4320 = vst.msk [vmem:[#allocation4 + $0x2c] sm:$0xe] %vm4317_vm10, %v4310_v6  ;;  %v4846_v6 = vld [vmem:[#allocation8 + $0xf0] sm:$0xff] }
 0x598   : > { %v4278_v0 = vpop.permute.xlu0 %4277 }
 0x599   : > { %4285 = vst.msk [vmem:[#allocation4 + $0x3c] sm:$0xf] %vm4282_vm12, %v4278_v0  ;;  %v4849_v0 = vld [vmem:[#allocation8 + $0x108] sm:$0xff] }
 0x59a   : > { %v7478_v10 = vld [vmem:[#allocation4 + $0xc] ss:$20 sps:$4 sm:$0xff]  }
 0x59b   : > { %4660 = vmatprep.mubr.f32.mxu0 %v7478_v10  ;;  %v4851_v10 = vld [vmem:[#allocation8 + $0x118] sm:$0xff] }
 0x59c   : > { %4661 = vmatmul.mubr.f32.vlgmr.msra.gmra.mrb[32].mxu0 %v7476_v7  ;;  %v4853_v7 = vld [vmem:[#allocation8 + $0x128] sm:$0xff] }
 0x59d   : > { %6803 = vmatpush1.bf16.msra.mxu0 %v6802_v31  ;;  %v6822_v31 = vpack.c.bf16 %v4860_v30, %v4856_v28  ;;  %v4896_v28 = vld [vmem:[#allocation8 + $0x280] sm:$0xff] }
 0x59e   : > { %6805 = vmatprep.subr.bf16.mxu0 %v6804_v38  ;;  %v4871_v38 = vld [vmem:[#allocation8 + $0x1b8] sm:$0xff]  ;;  %v4900_v30 = vld [vmem:[#allocation8 + $0x2a0] sm:$0xff] }
 0x59f   : > { %v6952_v41 = vpack.c.bf16 %v4871_v38, %v4867_v35  ;;  %v4907_v35 = vld [vmem:[#allocation8 + $0x2d8] sm:$0xff] }
 0x5a0   : > { %v7481_v16 = vld [vmem:[#allocation4 + $0x28] ss:$20 sps:$4 sm:$0xff]  }
 0x5a1   : > { %6807 = vmatpush1.bf16.msra.mxu0 %v6806_v43  ;;  %v4866_v43 = vld [vmem:[#allocation8 + $0x190] sm:$0xff] }
 0x5a2   : > { %6809 = vmatprep.subr.bf16.mxu0 %v6808_v48  ;;  %v6954_v37 = vpack.c.bf16 %v4870_v44, %v4866_v43  ;;  %v4875_v48 = vld [vmem:[#allocation8 + $0x1d8] sm:$0xff]  ;;  %v4910_v44 = vld [vmem:[#allocation8 + $0x2f0] sm:$0xff] }
 0x5a3   : > { %v6956_v56 = vpack.c.bf16 %v4879_v47, %v4875_v48  ;;  %v4919_v47 = vld [vmem:[#allocation8 + $0x338] sm:$0xff] }
 0x5a5   : > { %6811 = vmatpush1.bf16.msra.mxu0 %v6810_v59  ;;  %v4878_v59 = vld [vmem:[#allocation8 + $0x1f0] sm:$0xff] }
 0x5a6   : > { %6813 = vmatprep.subr.bf16.mxu0 %v6812_v2  ;;  %v6958_v60 = vpack.c.bf16 %v4878_v59, %v4874_v27  ;;  %v6832_v2 = vpack.c.bf16 %v4885_v62, %v4881_v61  ;;  %v4918_v27 = vld [vmem:[#allocation8 + $0x330] sm:$0xff]  ;;  %v4925_v61 = vld [vmem:[#allocation8 + $0x368] sm:$0xff]  ;;  %v4923_v62 = vld [vmem:[#allocation8 + $0x358] sm:$0xff] }
 0x5af   : > { %v4382_v11 = vpop.permute.xlu1 %4381 }
 0x5b0   : > { %4388 = vst.msk [vmem:[#allocation4 + $0x34] sm:$0xf] %vm4282_vm12, %v4382_v11  ;;  %v4855_v11 = vld [vmem:[#allocation8 + $0x138] sm:$0xff] }
 0x5b2   : > { %v4312_v14 = vpop.permute.xlu0 %4311 }
 0x5b3   : > { %4321 = vst.msk [vmem:[#allocation4 + $0x40] sm:$0xe] %vm4317_vm10, %v4312_v14  ;;  %v6814_v14 = vpack.c.bf16 %v4844_v5, %v4840_v8  ;;  %v4880_v8 = vld [vmem:[#allocation8 + $0x200] sm:$0xff] }
 0x5b4   : > { %v4884_v5 = vld [vmem:[#allocation8 + $0x220] sm:$0xff] }
 0x5b5   : > { %6815 = vmatpush1.bf16.msra.mxu0 %v6814_v14  ;;  %v4891_v14 = vld [vmem:[#allocation8 + $0x258] sm:$0xff] }
 0x5b6   : > { %v4345_v24 = vpop.permute.xlu0 %4344 }
 0x5b7   : > { %4354 = vst.msk [vmem:[#allocation4 + $0x44] sm:$0x7] %vm4350_vm6, %v4345_v24  ;;  %v7483_v18 = vld [vmem:[#allocation4 + $0x34] ss:$20 sps:$4 sm:$0xff]   ;;  %v6942_v24 = vpack.c.bf16 %v4846_v6, %v4842_v52  ;;  %v6834_v52 = vpack.c.bf16 %v4884_v5, %v4880_v8 }
 0x5b8   : > { %4665 = vmatprep.mubr.f32.mxu0 %v7483_v18  ;;  %v6944_v18 = vpack.c.bf16 %v4855_v11, %v4851_v10  ;;  %v4882_v6 = vld [vmem:[#allocation8 + $0x210] sm:$0xff]  ;;  %v4889_v10 = vld [vmem:[#allocation8 + $0x248] sm:$0xff]  ;;  %v4920_v8 = vld [vmem:[#allocation8 + $0x340] sm:$0xff] }
 0x5b9   : > { %v4893_v11 = vld [vmem:[#allocation8 + $0x268] sm:$0xff]  ;;  %v4924_v5 = vld [vmem:[#allocation8 + $0x360] sm:$0xff] }
 0x5ba   : > { %v7479_v15 = vld [vmem:[#allocation4 + $0x2c] ss:$20 sps:$4 sm:$0xff]  }
 0x5bb   : > { %4590 = vmatprep.mubr.f32.mxu1 %v7479_v15  ;;  %v6816_v15 = vpack.c.bf16 %v4853_v7, %v4849_v0  ;;  %v4886_v0 = vld [vmem:[#allocation8 + $0x230] sm:$0xff] }
 0x5bc   : > { %4591 = vmatmul.mubr.f32.gmra.mrb[18].mxu1 %v7481_v16  ;;  %v4848_v16 = vld [vmem:[#allocation8 + $0x100] sm:$0xff]  ;;  %v6962_v7 = vpack.c.bf16 %v4886_v0, %v4882_v6  ;;  %v4926_v6 = vld [vmem:[#allocation8 + $0x370] sm:$0xff]  ;;  %v4929_v0 = vld [vmem:[#allocation8 + $0x388] sm:$0xff] }
 0x5bd   : > { %6680 = vmatprep.mubr.msk.f32.mxu1 %vm4516_vm15, %v7482_v17  ;;  %v4852_v17 = vld [vmem:[#allocation8 + $0x120] sm:$0xff]  ;;  %6817 = vmatprep.subr.bf16.mxu0 %v6816_v15  ;;  %v4895_v15 = vld [vmem:[#allocation8 + $0x278] sm:$0xff] }
 0x5be   : > { %v7485_v19 = vld [vmem:[#allocation4 + $0x30] ss:$20 sps:$4 sm:$0xff]  }
 0x5bf   : > { %4666 = vmatmul.mubr.f32.gmra.mrb[34].mxu0 %v7485_v19  ;;  %v4850_v19 = vld [vmem:[#allocation8 + $0x110] sm:$0xff] }
 0x5c0   : > { %6681 = vmatmul.mubr.msk.f32.vlgmr.msra.gmra.mrb[20].mxu1 %vm4516_vm15, %v7486_v21  ;;  %v4854_v21 = vld [vmem:[#allocation8 + $0x130] sm:$0xff] }
 0x5c1   : > { %6931 = vmatpush1.bf16.msra.mxu1 %v6930_v33  ;;  %v4865_v33 = vld [vmem:[#allocation8 + $0x188] sm:$0xff] }
 0x5c2   : > { %6933 = vmatprep.subr.bf16.mxu1 %v6932_v39  ;;  %v6824_v29 = vpack.c.bf16 %v4869_v34, %v4865_v33  ;;  %v4864_v39 = vld [vmem:[#allocation8 + $0x180] sm:$0xff]  ;;  %v6970_v33 = vpack.c.bf16 %v4902_v20, %v4898_v57  ;;  %v4909_v34 = vld [vmem:[#allocation8 + $0x2e8] sm:$0xff]  ;;  %v4942_v57 = vld [vmem:[#allocation8 + $0x3f0] sm:$0xff] }
 0x5c3   : > { %v6826_v42 = vpack.c.bf16 %v4868_v40, %v4864_v39  ;;  %v4904_v40 = vld [vmem:[#allocation8 + $0x2c0] sm:$0xff]  ;;  %v4945_v20 = vld [vmem:[#allocation8 + $0x408] sm:$0xff] }
 0x5c5   : > { %6935 = vmatpush1.bf16.msra.mxu1 %v6934_v46  ;;  %v4877_v46 = vld [vmem:[#allocation8 + $0x1e8] sm:$0xff] }
 0x5c6   : > { %6937 = vmatprep.subr.bf16.mxu1 %v6936_v55  ;;  %v6828_v51 = vpack.c.bf16 %v4877_v46, %v4873_v45  ;;  %v4876_v55 = vld [vmem:[#allocation8 + $0x1e0] sm:$0xff]  ;;  %v4917_v45 = vld [vmem:[#allocation8 + $0x328] sm:$0xff] }
 0x5c7   : > { %v6830_v58 = vpack.c.bf16 %v4876_v55, %v4872_v53  ;;  %v4912_v53 = vld [vmem:[#allocation8 + $0x300] sm:$0xff] }
 0x5c9   : > { %6939 = vmatpush1.bf16.msra.mxu1 %v6938_v63  ;;  %v4883_v63 = vld [vmem:[#allocation8 + $0x218] sm:$0xff] }
 0x5ca   : > { %6941 = vmatprep.subr.bf16.mxu1 %v6940_v3  ;;  %v6960_v3 = vpack.c.bf16 %v4887_v4, %v4883_v63  ;;  %v4927_v4 = vld [vmem:[#allocation8 + $0x378] sm:$0xff] }
 0x5cd   : > { %6943 = vmatpush1.bf16.msra.mxu1 %v6942_v24  ;;  %v6836_v24 = vpack.c.bf16 %v4893_v11, %v4889_v10  ;;  %v4931_v10 = vld [vmem:[#allocation8 + $0x398] sm:$0xff] }
 0x5ce   : > { %6945 = vmatprep.subr.bf16.mxu1 %v6944_v18  ;;  %v6964_v18 = vpack.c.bf16 %v4895_v15, %v4891_v14  ;;  %v4935_v11 = vld [vmem:[#allocation8 + $0x3b8] sm:$0xff]  ;;  %v6854_v14 = vpack.c.bf16 %v4924_v5, %v4920_v8 }
 0x5ed   : > { %v6484_v22 = vpop.f32.mrb[16].mxu1 }
 0x5ee   : > { %v6485_v13 = vpop.f32.mrb[17].mxu1 }
 0x5ef   : > { %v9443_v9 = vadd.f32 %v6485_v13, %v6484_v22  ;;  %v6818_v22 = vpack.c.bf16 %v4852_v17, %v4848_v16  ;;  %v6946_v13 = vpack.c.bf16 %v4854_v21, %v4850_v19  ;;  %v4888_v16 = vld [vmem:[#allocation8 + $0x240] sm:$0xff]  ;;  %v4890_v21 = vld [vmem:[#allocation8 + $0x250] sm:$0xff] }
 0x5f0   : > { %v4892_v17 = vld [vmem:[#allocation8 + $0x260] sm:$0xff] }
 0x5f1   : > { %6819 = vmatpush1.bf16.msra.mxu0 %v6818_v22  ;;  %6947 = vmatpush1.bf16.msra.mxu1 %v6946_v13  ;;  %v6838_v19 = vpack.c.bf16 %v4892_v17, %v4888_v16  ;;  %v4894_v22 = vld [vmem:[#allocation8 + $0x270] sm:$0xff]  ;;  %v4928_v16 = vld [vmem:[#allocation8 + $0x380] sm:$0xff] }
 0x5f2   : > { %6821 = vmatprep.subr.bf16.mxu0 %v6820_v25  ;;  %6949 = vmatprep.subr.bf16.mxu1 %v6948_v12  ;;  %v6966_v13 = vpack.c.bf16 %v4894_v22, %v4890_v21  ;;  %v6840_v25 = vpack.c.bf16 %v4901_v23, %v4897_v36  ;;  %v6968_v12 = vpack.c.bf16 %v4903_v26, %v4899_v50  ;;  %v4932_v17 = vld [vmem:[#allocation8 + $0x3a0] sm:$0xff]  ;;  %v4934_v21 = vld [vmem:[#allocation8 + $0x3b0] sm:$0xff]  ;;  %v4937_v22 = vld [vmem:[#allocation8 + $0x3c8] sm:$0xff] }
 0x5f3   : > { %v4939_v36 = vld [vmem:[#allocation8 + $0x3d8] sm:$0xff]  ;;  %v6858_v50 = vpack.c.bf16 %v4932_v17, %v4928_v16 }
 0x5f4   : > { %v4943_v23 = vld [vmem:[#allocation8 + $0x3f8] sm:$0xff] }
 0x5f5   : > { %6823 = vmatpush1.bf16.msra.mxu0 %v6822_v31  ;;  %6951 = vmatpush1.bf16.msra.mxu1 %v6950_v32  ;;  %v6842_v31 = vpack.c.bf16 %v4900_v30, %v4896_v28  ;;  %v4905_v32 = vld [vmem:[#allocation8 + $0x2c8] sm:$0xff]  ;;  %v4936_v28 = vld [vmem:[#allocation8 + $0x3c0] sm:$0xff] }
 0x5f6   : > { %6825 = vmatprep.subr.bf16.mxu0 %v6824_v29  ;;  %6953 = vmatprep.subr.bf16.mxu1 %v6952_v41  ;;  %v4911_v29 = vld [vmem:[#allocation8 + $0x2f8] sm:$0xff]  ;;  %v6844_v38 = vpack.c.bf16 %v4909_v34, %v4905_v32  ;;  %v4908_v41 = vld [vmem:[#allocation8 + $0x2e0] sm:$0xff]  ;;  %v4949_v32 = vld [vmem:[#allocation8 + $0x428] sm:$0xff] }
 0x5f7   : > { %v6972_v39 = vpack.c.bf16 %v4911_v29, %v4907_v35  ;;  %v6846_v43 = vpack.c.bf16 %v4908_v41, %v4904_v40  ;;  %v4940_v30 = vld [vmem:[#allocation8 + $0x3e0] sm:$0xff]  ;;  %v4951_v34 = vld [vmem:[#allocation8 + $0x438] sm:$0xff]  ;;  %v6409_v40 = vld [vmem:[%s9749_s6] ss:$0 sm:$0xff] }
 0x5f8   : > { %v6862_v35 = vpack.c.bf16 %v4940_v30, %v4936_v28 }
 0x5f9   : > { %6827 = vmatpush1.bf16.msra.mxu0 %v6826_v42  ;;  %6955 = vmatpush1.bf16.msra.mxu1 %v6954_v37  ;;  %v4906_v42 = vld [vmem:[#allocation8 + $0x2d0] sm:$0xff]  ;;  %v4913_v37 = vld [vmem:[#allocation8 + $0x308] sm:$0xff] }
 0x5fa   : > { %6829 = vmatprep.subr.bf16.mxu0 %v6828_v51  ;;  %6957 = vmatprep.subr.bf16.mxu1 %v6956_v56  ;;  %v6974_v46 = vpack.c.bf16 %v4910_v44, %v4906_v42  ;;  %v6848_v48 = vpack.c.bf16 %v4917_v45, %v4913_v37  ;;  %v4915_v51 = vld [vmem:[#allocation8 + $0x318] sm:$0xff]  ;;  %v4916_v56 = vld [vmem:[#allocation8 + $0x320] sm:$0xff] }
 0x5fb   : > { %v6976_v55 = vpack.c.bf16 %v4919_v47, %v4915_v51  ;;  %v6850_v59 = vpack.c.bf16 %v4916_v56, %v4912_v53 }
 0x5fd   : > { %6831 = vmatpush1.bf16.msra.mxu0 %v6830_v58  ;;  %6959 = vmatpush1.bf16.msra.mxu1 %v6958_v60  ;;  %v4914_v58 = vld [vmem:[#allocation8 + $0x310] sm:$0xff]  ;;  %v4921_v60 = vld [vmem:[#allocation8 + $0x348] sm:$0xff] }
 0x5fe   : > { %6833 = vmatprep.subr.bf16.mxu0 %v6832_v2  ;;  %6961 = vmatprep.subr.bf16.mxu1 %v6960_v3  ;;  %v6978_v63 = vpack.c.bf16 %v4918_v27, %v4914_v58  ;;  %v6852_v2 = vpack.c.bf16 %v4925_v61, %v4921_v60  ;;  %v6980_v3 = vpack.c.bf16 %v4927_v4, %v4923_v62 }
 0x601   : > { %6835 = vmatpush1.bf16.msra.mxu0 %v6834_v52  ;;  %6963 = vmatpush1.bf16.msra.mxu1 %v6962_v7  ;;  %v4922_v52 = vld [vmem:[#allocation8 + $0x350] sm:$0xff]  ;;  %v4933_v7 = vld [vmem:[#allocation8 + $0x3a8] sm:$0xff] }
 0x602   : > { %6837 = vmatprep.subr.bf16.mxu0 %v6836_v24  ;;  %6965 = vmatprep.subr.bf16.mxu1 %v6964_v18  ;;  %v6982_v24 = vpack.c.bf16 %v4926_v6, %v4922_v52  ;;  %v6856_v15 = vpack.c.bf16 %v4933_v7, %v4929_v0  ;;  %v4930_v18 = vld [vmem:[#allocation8 + $0x390] sm:$0xff] }
 0x605   : > { %6839 = vmatpush1.bf16.msra.mxu0 %v6838_v19  ;;  %6967 = vmatpush1.bf16.msra.mxu1 %v6966_v13  ;;  %v6984_v19 = vpack.c.bf16 %v4935_v11, %v4931_v10  ;;  %v4941_v13 = vld [vmem:[#allocation8 + $0x3e8] sm:$0xff] }
 0x606   : > { %6841 = vmatprep.subr.bf16.mxu0 %v6840_v25  ;;  %6969 = vmatprep.subr.bf16.mxu1 %v6968_v12  ;;  %v6986_v25 = vpack.c.bf16 %v4934_v21, %v4930_v18  ;;  %v6860_v26 = vpack.c.bf16 %v4941_v13, %v4937_v22  ;;  %v4938_v12 = vld [vmem:[#allocation8 + $0x3d0] sm:$0xff] }
 0x607   : > { %v6990_v29 = vpack.c.bf16 %v4942_v57, %v4938_v12 }
 0x609   : > { %6843 = vmatpush1.bf16.msra.mxu0 %v6842_v31  ;;  %6971 = vmatpush1.bf16.msra.mxu1 %v6970_v33  ;;  %v6988_v31 = vpack.c.bf16 %v4943_v23, %v4939_v36  ;;  %v4947_v33 = vld [vmem:[#allocation8 + $0x418] sm:$0xff] }
 0x60a   : > { %6845 = vmatprep.subr.bf16.mxu0 %v6844_v38  ;;  %6973 = vmatprep.subr.bf16.mxu1 %v6972_v39  ;;  %v6864_v38 = vpack.c.bf16 %v4949_v32, %v4945_v20  ;;  %v6992_v39 = vpack.c.bf16 %v4951_v34, %v4947_v33  ;;  %v9457_v33 = vsub.s32 1, %v8518_v54  ;;  %v9460_v34 = vsub.s32 0, %v8518_v54 }
 0x60d   : > { %6847 = vmatpush1.bf16.msra.mxu0 %v6846_v43  ;;  %6975 = vmatpush1.bf16.msra.mxu1 %v6974_v46  ;;  %v4588_v43 = vadd.f32 %v9443_v9, %v6409_v40 }
 0x60e   : > { %6849 = vmatprep.subr.bf16.mxu0 %v6848_v48  ;;  %6977 = vmatprep.subr.bf16.mxu1 %v6976_v55 }
 0x611   : > { %6851 = vmatpush1.bf16.msra.mxu0 %v6850_v59  ;;  %6979 = vmatpush1.bf16.msra.mxu1 %v6978_v63 }
 0x612   : > { %6853 = vmatprep.subr.bf16.mxu0 %v6852_v2  ;;  %6981 = vmatprep.subr.bf16.mxu1 %v6980_v3 }
 0x615   : > { %6855 = vmatpush1.bf16.msra.mxu0 %v6854_v14  ;;  %6983 = vmatpush1.bf16.msra.mxu1 %v6982_v24 }
 0x616   : > { %6857 = vmatprep.subr.bf16.mxu0 %v6856_v15  ;;  %6985 = vmatprep.subr.bf16.mxu1 %v6984_v19 }
 0x619   : > { %6859 = vmatpush1.bf16.msra.mxu0 %v6858_v50  ;;  %6987 = vmatpush1.bf16.msra.mxu1 %v6986_v25 }
 0x61a   : > { %6861 = vmatprep.subr.bf16.mxu0 %v6860_v26  ;;  %6989 = vmatprep.subr.bf16.mxu1 %v6988_v31 }
 0x61d   : > { %6863 = vmatpush1.bf16.msra.mxu0 %v6862_v35  ;;  %6991 = vmatpush1.bf16.msra.mxu1 %v6990_v29  ;;  %v4948_v35 = vld [vmem:[#allocation8 + $0x420] sm:$0xff]  ;;  %v4946_v29 = vld [vmem:[#allocation8 + $0x410] sm:$0xff] }
 0x61e   : > { %6865 = vmatprep.subr.bf16.mxu0 %v6864_v38  ;;  %6993 = vmatprep.subr.bf16.mxu1 %v6992_v39  ;;  %v4950_v38 = vld [vmem:[#allocation8 + $0x430] sm:$0xff]  ;;  %v4953_v39 = vld [vmem:[#allocation8 + $0x448] sm:$0xff] }
 0x66f   : > { %v6522_v41 = vpop.f32.mrb[32].mxu0 }
 0x670   : > { %v6523_v42 = vpop.f32.mrb[33].mxu0 }
 0x671   : > { %v6524_v44 = vadd.f32 %v6523_v42, %v6522_v41  ;;  %v9465_v42 = vsub.s32 3, %v8518_v54 }
 0x673   : > { %v4663_v37 = vadd.f32 %v6524_v44, %v4588_v43  ;;  %v4955_v43 = vld [vmem:[#allocation8 + $0x458] sm:$0xff] }
 0x674   : > { %v4959_v44 = vld [vmem:[#allocation8 + $0x478] sm:$0xff] }
 0x68f   : > { %v6487_v45 = vpop.f32.mrb[18].mxu1 }
 0x690   : > { %v6488_v46 = vpop.f32.mrb[19].mxu1 }
 0x691   : > { %v6489_v48 = vadd.f32 %v6488_v46, %v6487_v45  ;;  %v6866_v46 = vpack.c.bf16 %v4948_v35, %v4944_v49 }
 0x692   : > { %v6525_v51 = vpop.f32.mrb[34].mxu0 }
 0x693   : > { %v6682_v47 = vpop.f32.mrb[20].mxu1  ;;  %v6526_v53 = vpop.f32.mrb[35].mxu0  ;;  %v4593_v56 = vadd.f32 %v6489_v48, %v6409_v40  ;;  %v4957_v40 = vld [vmem:[#allocation8 + $0x468] sm:$0xff]  ;;  %v6994_v48 = vpack.c.bf16 %v4950_v38, %v4946_v29  ;;  %v4984_v29 = vld [vmem:[#allocation8 + $0x540] sm:$0xff] }
 0x694   : > { %v4737_v55 = vpop.f32.mrb[21].mxu1  ;;  %v6527_v58 = vadd.f32 %v6526_v53, %v6525_v51  ;;  %v4952_v51 = vld [vmem:[#allocation8 + $0x440] sm:$0xff]  ;;  %v4954_v53 = vld [vmem:[#allocation8 + $0x450] sm:$0xff] }
 0x695   : > { %v4738_v27 = vadd.f32 %v4737_v55, %v4663_v37  ;;  %v4958_v55 = vld [vmem:[#allocation8 + $0x470] sm:$0xff]  ;;  %v4988_v38 = vld [vmem:[#allocation8 + $0x560] sm:$0xff] }
 0x696   : > { %v4668_v59 = vadd.f32 %v6527_v58, %v4593_v56  ;;  %v4961_v56 = vld [vmem:[#allocation8 + $0x488] sm:$0xff]  ;;  %v6868_v58 = vpack.c.bf16 %v4957_v40, %v4953_v39 }
 0x697   : > { %v4746_v60 = vmax.f32 %v4738_v27, 0.0  ;;  %v6996_v27 = vpack.c.bf16 %v4959_v44, %v4955_v43  ;;  %v4986_v43 = vld [vmem:[#allocation8 + $0x550] sm:$0xff] }
 0x698   : > { %v4743_v61 = vadd.f32 %v6682_v47, %v4668_v59  ;;  %v4956_v47 = vld [vmem:[#allocation8 + $0x460] sm:$0xff]  ;;  %v4965_v59 = vld [vmem:[#allocation8 + $0x4a8] sm:$0xff]  ;;  %v4990_v44 = vld [vmem:[#allocation8 + $0x570] sm:$0xff] }
 0x699   : > { %v4750_v62 = vcombine.high %v4746_v60, %v4746_v60 }
 0x69a   : > { %v4747_v63 = vmax.f32 %v4743_v61, 0.0  ;;  %v4967_v61 = vld [vmem:[#allocation8 + $0x4b8] sm:$0xff] }
 0x69b   : > { %v4754_v2 = vmax.f32 %v4746_v60, %v4750_v62  ;;  %v4963_v60 = vld [vmem:[#allocation8 + $0x498] sm:$0xff] }
 0x69c   : > { %v4751_v9 = vcombine.high %v4747_v63, %v4747_v63 }
 0x69d   : > { %v4764_v4 = vrot.slane %v4754_v2, %v8534_v1  ;;  %v6998_v2 = vpack.c.bf16 %v4958_v55, %v4954_v53  ;;  %v4992_v53 = vld [vmem:[#allocation8 + $0x580] sm:$0xff] }
 0x69e   : > { %v4755_v8 = vmax.f32 %v4747_v63, %v4751_v9  ;;  %v6870_v63 = vpack.c.bf16 %v4956_v47, %v4952_v51  ;;  %v4960_v9 = vld [vmem:[#allocation8 + $0x480] sm:$0xff]  ;;  %v6886_v51 = vpack.c.bf16 %v4988_v38, %v4984_v29  ;;  %v7014_v47 = vpack.c.bf16 %v4990_v44, %v4986_v43  ;;  %v5026_v44 = vld [vmem:[#allocation8 + $0x690] sm:$0xff] }
 0x69f   : > { %v4765_v5 = vcombine.high %v4764_v4, %v4764_v4  ;;  %v4779_v3 = vsel %vm4778_vm9, %v4764_v4, -inf  ;;  %v4964_v4 = vld [vmem:[#allocation8 + $0x4a0] sm:$0xff] }
 0x6a0   : > { %v4780_v52 = vrot.slane %v4779_v3, 4  ;;  %v4772_v6 = vrot.slane %v4755_v8, %v8534_v1  ;;  %v6872_v8 = vpack.c.bf16 %v4965_v59, %v4961_v56  ;;  %v4996_v55 = vld [vmem:[#allocation8 + $0x5a0] sm:$0xff]  ;;  %v4998_v59 = vld [vmem:[#allocation8 + $0x5b0] sm:$0xff] }
 0x6a1   : > { %v4786_v0 = vsel %vm4778_vm9, %v4765_v5, -inf  ;;  %v7000_v5 = vpack.c.bf16 %v4967_v61, %v4963_v60  ;;  %v5001_v60 = vld [vmem:[#allocation8 + $0x5c8] sm:$0xff]  ;;  %v5024_v38 = vld [vmem:[#allocation8 + $0x680] sm:$0xff] }
 0x6a2   : > { %v4781_v7 = vmax.f32 %v4779_v3, %v4780_v52  ;;  %v4787_v10 = vrot.slane %v4786_v0, 4  ;;  %v4773_v11 = vcombine.high %v4772_v6, %v4772_v6  ;;  %v4793_v14 = vsel %vm4778_vm9, %v4772_v6, -inf  ;;  %v4962_v3 = vld [vmem:[#allocation8 + $0x490] sm:$0xff]  ;;  %v4969_v6 = vld [vmem:[#allocation8 + $0x4c8] sm:$0xff] }
 0x6a3   : > { %v4794_v24 = vrot.slane %v4793_v14, 4  ;;  %v4966_v52 = vld [vmem:[#allocation8 + $0x4b0] sm:$0xff]  ;;  %v5005_v61 = vld [vmem:[#allocation8 + $0x5e8] sm:$0xff] }
 0x6a4   : > { %v4782_v15 = vrot.slane %v4781_v7, 2  ;;  %v4788_v16 = vmax.f32 %v4786_v0, %v4787_v10  ;;  %v4800_v17 = vsel %vm4778_vm9, %v4773_v11, -inf  ;;  %v4973_v0 = vld [vmem:[#allocation8 + $0x4e8] sm:$0xff]  ;;  %v4975_v10 = vld [vmem:[#allocation8 + $0x4f8] sm:$0xff]  ;;  %v6874_v11 = vpack.c.bf16 %v4964_v4, %v4960_v9  ;;  %v5000_v4 = vld [vmem:[#allocation8 + $0x5c0] sm:$0xff] }
 0x6a5   : > { %v4795_v18 = vmax.f32 %v4793_v14, %v4794_v24  ;;  %v4801_v19 = vrot.slane %v4800_v17, 4  ;;  %v7002_v14 = vpack.c.bf16 %v4966_v52, %v4962_v3  ;;  %v4968_v24 = vld [vmem:[#allocation8 + $0x4c0] sm:$0xff]  ;;  %v5002_v52 = vld [vmem:[#allocation8 + $0x5d0] sm:$0xff] }
 0x6a6   : > { %v4783_v21 = vmax.f32 %v4781_v7, %v4782_v15  ;;  %v4789_v22 = vrot.slane %v4788_v16, 2  ;;  %v4971_v7 = vld [vmem:[#allocation8 + $0x4d8] sm:$0xff]  ;;  %v4972_v15 = vld [vmem:[#allocation8 + $0x4e0] sm:$0xff] }
 0x6a7   : > { %v4796_v13 = vrot.slane %v4795_v18, 2  ;;  %v4802_v36 = vmax.f32 %v4800_v17, %v4801_v19  ;;  %v7004_v17 = vpack.c.bf16 %v4975_v10, %v4971_v7  ;;  %v4974_v19 = vld [vmem:[#allocation8 + $0x4f0] sm:$0xff]  ;;  %v5013_v7 = vld [vmem:[#allocation8 + $0x628] sm:$0xff]  ;;  %v5011_v10 = vld [vmem:[#allocation8 + $0x618] sm:$0xff] }
 0x6a8   : > { %v4784_v23 = vrot.slane %v4783_v21, 1  ;;  %v4790_v1 = vmax.f32 %v4788_v16, %v4789_v22  ;;  %v6876_v16 = vpack.c.bf16 %v4973_v0, %v4969_v6  ;;  %v4981_v22 = vld [vmem:[#allocation8 + $0x528] sm:$0xff]  ;;  %v5006_v6 = vld [vmem:[#allocation8 + $0x5f0] sm:$0xff] }
 0x6a9   : > { %v4797_v50 = vmax.f32 %v4795_v18, %v4796_v13  ;;  %v4803_v25 = vrot.slane %v4802_v36, 2  ;;  %v4970_v18 = vld [vmem:[#allocation8 + $0x4d0] sm:$0xff]  ;;  %v4979_v13 = vld [vmem:[#allocation8 + $0x518] sm:$0xff]  ;;  %v5009_v0 = vld [vmem:[#allocation8 + $0x608] sm:$0xff] }
 0x6aa   : > { %v4785_v26 = vmax.f32 %v4783_v21, %v4784_v23  ;;  %v4791_v28 = vrot.slane %v4790_v1, 1  ;;  %v4977_v21 = vld [vmem:[#allocation8 + $0x508] sm:$0xff]  ;;  %v6878_v23 = vpack.c.bf16 %v4972_v15, %v4968_v24  ;;  %v7022_v24 = vpack.c.bf16 %v5006_v6, %v5002_v52  ;;  %v5008_v15 = vld [vmem:[#allocation8 + $0x600] sm:$0xff]  ;;  %v5042_v6 = vld [vmem:[#allocation8 + $0x710] sm:$0xff] }
 0x6ab   : > { %v4798_v30 = vrot.slane %v4797_v50, 1  ;;  %v4804_v12 = vmax.f32 %v4802_v36, %v4803_v25  ;;  %v4983_v36 = vld [vmem:[#allocation8 + $0x538] sm:$0xff]  ;;  %v4980_v25 = vld [vmem:[#allocation8 + $0x520] sm:$0xff] }
 0x6ac   : > { %v4792_v31 = vmax.f32 %v4790_v1, %v4791_v28  ;;  %4811 = vst.msk [vmem:[#allocation7] sm:$0x1] %vm4809_vm1, %v4785_v26  ;;  %v7006_v1 = vpack.c.bf16 %v4974_v19, %v4970_v18  ;;  %v6880_v26 = vpack.c.bf16 %v4981_v22, %v4977_v21  ;;  %v7008_v28 = vpack.c.bf16 %v4983_v36, %v4979_v13  ;;  %v5010_v19 = vld [vmem:[#allocation8 + $0x610] sm:$0xff]  ;;  %v5017_v22 = vld [vmem:[#allocation8 + $0x648] sm:$0xff]  ;;  %v5019_v36 = vld [vmem:[#allocation8 + $0x658] sm:$0xff] }
 0x6ad   : > { %v4799_v57 = vmax.f32 %v4797_v50, %v4798_v30  ;;  %v4805_v20 = vrot.slane %v4804_v12, 1  ;;  %v4976_v50 = vld [vmem:[#allocation8 + $0x500] sm:$0xff]  ;;  %v4978_v30 = vld [vmem:[#allocation8 + $0x510] sm:$0xff]  ;;  %v5021_v13 = vld [vmem:[#allocation8 + $0x668] sm:$0xff] }
 0x6ae   : > { %4812 = vst.msk [vmem:[#allocation7 + $0x1] sm:$0x1] %vm4809_vm1, %v4792_v31  ;;  %v4985_v31 = vld [vmem:[#allocation8 + $0x548] sm:$0xff]  ;;  %v6882_v49 = vpack.c.bf16 %v4980_v25, %v4976_v50  ;;  %v5014_v21 = vld [vmem:[#allocation8 + $0x630] sm:$0xff]  ;;  %v5016_v25 = vld [vmem:[#allocation8 + $0x640] sm:$0xff] }
 0x6af   : > { %v4806_v32 = vmax.f32 %v4804_v12, %v4805_v20  ;;  %4813 = vst.msk [vmem:[#allocation7 + $0x2] sm:$0x1] %vm4809_vm1, %v4799_v57  ;;  %v4982_v12 = vld [vmem:[#allocation8 + $0x530] sm:$0xff]  ;;  %v4989_v57 = vld [vmem:[#allocation8 + $0x568] sm:$0xff]  ;;  %v4987_v20 = vld [vmem:[#allocation8 + $0x558] sm:$0xff]  ;;  %v7026_v50 = vpack.c.bf16 %v5014_v21, %v5010_v19 }
 0x6b0   : > { %v7010_v35 = vpack.c.bf16 %v4982_v12, %v4978_v30  ;;  %v6884_v39 = vpack.c.bf16 %v4989_v57, %v4985_v31  ;;  %v5018_v12 = vld [vmem:[#allocation8 + $0x650] sm:$0xff]  ;;  %v5025_v57 = vld [vmem:[#allocation8 + $0x688] sm:$0xff] }
 0x6b1   : > { %4814 = vst.msk [vmem:[#allocation7 + $0x3] sm:$0x1] %vm4809_vm1, %v4806_v32  ;;  %v4991_v32 = vld [vmem:[#allocation8 + $0x578] sm:$0xff]  ;;  %v5022_v31 = vld [vmem:[#allocation8 + $0x670] sm:$0xff] }
 0x6b2   : > { %v7012_v40 = vpack.c.bf16 %v4991_v32, %v4987_v20  ;;  %v5029_v20 = vld [vmem:[#allocation8 + $0x6a8] sm:$0xff]  ;;  %v5027_v32 = vld [vmem:[#allocation8 + $0x698] sm:$0xff]  ;;  %v7030_v29 = vpack.c.bf16 %v5022_v31, %v5018_v12  ;;  %v5050_v21 = vld [vmem:[#allocation8 + $0x750] sm:$0xff] }
 0x6b3   : > { %v5058_v31 = vld [vmem:[#allocation8 + $0x790] sm:$0xff] }
 0x6b8   : > { %v9462_v41 = vld [vmem:[#allocation7] sm:$0xf] }
 0x6b9   : > { %v5081_v37 = vrot.slane %v9462_v41, %v9457_v33  ;;  %v5077_v45 = vrot.slane %v9462_v41, %v9460_v34  ;;  %v5089_v62 = vrot.slane %v9462_v41, %v9465_v42 }
 0x6bb   : > { %5179 = vmatprep.mubr.f32.mxu0 %v5081_v37  ;;  %5321 = vmatprep.mubr.f32.mxu1 %v5081_v37  ;;  %v4993_v37 = vld [vmem:[#allocation8 + $0x588] sm:$0xff] }
 0x6bc   : > { %5180 = vmatmul.mubr.f32.vlgmr.msra.gmra.mrb[36].mxu0 %v5077_v45  ;;  %5322 = vmatmul.mubr.f32.vlgmr.msra.gmra.mrb[22].mxu1 %v5077_v45  ;;  %v4997_v45 = vld [vmem:[#allocation8 + $0x5a8] sm:$0xff] }
 0x6bd   : > { %6867 = vmatpush1.bf16.msra.mxu0 %v6866_v46  ;;  %6995 = vmatpush1.bf16.msra.mxu1 %v6994_v48  ;;  %v4995_v46 = vld [vmem:[#allocation8 + $0x598] sm:$0xff]  ;;  %v6888_v56 = vpack.c.bf16 %v4997_v45, %v4993_v37  ;;  %v5030_v37 = vld [vmem:[#allocation8 + $0x6b0] sm:$0xff]  ;;  %v5033_v45 = vld [vmem:[#allocation8 + $0x6c8] sm:$0xff] }
 0x6be   : > { %5250 = vmatprep.mubr.f32.mxu0 %v5089_v62  ;;  %5392 = vmatprep.mubr.f32.mxu1 %v5089_v62  ;;  %v4999_v48 = vld [vmem:[#allocation8 + $0x5b8] sm:$0xff] }
 0x6bf   : > { %6869 = vmatprep.subr.bf16.mxu0 %v6868_v58  ;;  %6997 = vmatprep.subr.bf16.mxu1 %v6996_v27  ;;  %v7016_v58 = vpack.c.bf16 %v4999_v48, %v4995_v46  ;;  %v4994_v27 = vld [vmem:[#allocation8 + $0x590] sm:$0xff]  ;;  %v5003_v62 = vld [vmem:[#allocation8 + $0x5d8] sm:$0xff]  ;;  %v5037_v46 = vld [vmem:[#allocation8 + $0x6e8] sm:$0xff] }
 0x6c0   : > { %v7018_v9 = vpack.c.bf16 %v4998_v59, %v4994_v27  ;;  %v5035_v48 = vld [vmem:[#allocation8 + $0x6d8] sm:$0xff]  ;;  %v5034_v59 = vld [vmem:[#allocation8 + $0x6d0] sm:$0xff] }
 0x6c1   : > { %6871 = vmatpush1.bf16.msra.mxu0 %v6870_v63  ;;  %6999 = vmatpush1.bf16.msra.mxu1 %v6998_v2  ;;  %v5007_v63 = vld [vmem:[#allocation8 + $0x5f8] sm:$0xff]  ;;  %v6890_v2 = vpack.c.bf16 %v4996_v55, %v4992_v53  ;;  %v7034_v53 = vpack.c.bf16 %v5030_v37, %v5026_v44  ;;  %v5032_v55 = vld [vmem:[#allocation8 + $0x6c0] sm:$0xff]  ;;  %v5066_v37 = vld [vmem:[#allocation8 + $0x7d0] sm:$0xff] }
 0x6c2   : > { %6873 = vmatprep.subr.bf16.mxu0 %v6872_v8  ;;  %7001 = vmatprep.subr.bf16.mxu1 %v7000_v5  ;;  %v5004_v8 = vld [vmem:[#allocation8 + $0x5e0] sm:$0xff]  ;;  %v6892_v5 = vpack.c.bf16 %v5005_v61, %v5001_v60  ;;  %v7020_v3 = vpack.c.bf16 %v5007_v63, %v5003_v62  ;;  %v5038_v60 = vld [vmem:[#allocation8 + $0x6f0] sm:$0xff]  ;;  %v5041_v61 = vld [vmem:[#allocation8 + $0x708] sm:$0xff] }
 0x6c3   : > { %v5045_v62 = vld [vmem:[#allocation8 + $0x728] sm:$0xff]  ;;  %v5043_v63 = vld [vmem:[#allocation8 + $0x718] sm:$0xff] }
 0x6c5   : > { %6875 = vmatpush1.bf16.msra.mxu0 %v6874_v11  ;;  %7003 = vmatpush1.bf16.msra.mxu1 %v7002_v14  ;;  %v5015_v11 = vld [vmem:[#allocation8 + $0x638] sm:$0xff]  ;;  %v6894_v14 = vpack.c.bf16 %v5004_v8, %v5000_v4  ;;  %v7038_v4 = vpack.c.bf16 %v5038_v60, %v5034_v59  ;;  %v5040_v8 = vld [vmem:[#allocation8 + $0x700] sm:$0xff] }
 0x6c6   : > { %6877 = vmatprep.subr.bf16.mxu0 %v6876_v16  ;;  %7005 = vmatprep.subr.bf16.mxu1 %v7004_v17  ;;  %v5012_v16 = vld [vmem:[#allocation8 + $0x620] sm:$0xff]  ;;  %v6896_v17 = vpack.c.bf16 %v5013_v7, %v5009_v0  ;;  %v7024_v18 = vpack.c.bf16 %v5015_v11, %v5011_v10  ;;  %v5046_v0 = vld [vmem:[#allocation8 + $0x730] sm:$0xff]  ;;  %v5049_v7 = vld [vmem:[#allocation8 + $0x748] sm:$0xff] }
 0x6c7   : > { %v5053_v10 = vld [vmem:[#allocation8 + $0x768] sm:$0xff]  ;;  %v5051_v11 = vld [vmem:[#allocation8 + $0x758] sm:$0xff] }
 0x6c9   : > { %6879 = vmatpush1.bf16.msra.mxu0 %v6878_v23  ;;  %7007 = vmatpush1.bf16.msra.mxu1 %v7006_v1  ;;  %v5023_v23 = vld [vmem:[#allocation8 + $0x678] sm:$0xff]  ;;  %v6898_v1 = vpack.c.bf16 %v5012_v16, %v5008_v15  ;;  %v7042_v15 = vpack.c.bf16 %v5046_v0, %v5042_v6  ;;  %v5048_v16 = vld [vmem:[#allocation8 + $0x740] sm:$0xff] }
 0x6ca   : > { %6881 = vmatprep.subr.bf16.mxu0 %v6880_v26  ;;  %7009 = vmatprep.subr.bf16.mxu1 %v7008_v28  ;;  %v5020_v26 = vld [vmem:[#allocation8 + $0x660] sm:$0xff]  ;;  %v6900_v28 = vpack.c.bf16 %v5021_v13, %v5017_v22  ;;  %v7028_v30 = vpack.c.bf16 %v5023_v23, %v5019_v36  ;;  %v5054_v22 = vld [vmem:[#allocation8 + $0x770] sm:$0xff]  ;;  %v5057_v13 = vld [vmem:[#allocation8 + $0x788] sm:$0xff] }
 0x6cb   : > { %v5061_v36 = vld [vmem:[#allocation8 + $0x7a8] sm:$0xff]  ;;  %v5059_v23 = vld [vmem:[#allocation8 + $0x798] sm:$0xff] }
 0x6cd   : > { %6883 = vmatpush1.bf16.msra.mxu0 %v6882_v49  ;;  %7011 = vmatpush1.bf16.msra.mxu1 %v7010_v35  ;;  %v5031_v49 = vld [vmem:[#allocation8 + $0x6b8] sm:$0xff]  ;;  %v6902_v35 = vpack.c.bf16 %v5020_v26, %v5016_v25  ;;  %v7046_v25 = vpack.c.bf16 %v5054_v22, %v5050_v21  ;;  %v5056_v26 = vld [vmem:[#allocation8 + $0x780] sm:$0xff]  ;;  %v5421_v22 = vld [vmem:[#allocation11 + $0x90] sm:$0xff] }
 0x6ce   : > { %6885 = vmatprep.subr.bf16.mxu0 %v6884_v39  ;;  %7013 = vmatprep.subr.bf16.mxu1 %v7012_v40  ;;  %v5028_v39 = vld [vmem:[#allocation8 + $0x6a0] sm:$0xff]  ;;  %v6904_v40 = vpack.c.bf16 %v5029_v20, %v5025_v57  ;;  %v7032_v43 = vpack.c.bf16 %v5031_v49, %v5027_v32  ;;  %v5062_v57 = vld [vmem:[#allocation8 + $0x7b0] sm:$0xff]  ;;  %v5065_v20 = vld [vmem:[#allocation8 + $0x7c8] sm:$0xff] }
 0x6cf   : > { %v5069_v32 = vld [vmem:[#allocation8 + $0x7e8] sm:$0xff]  ;;  %v5067_v49 = vld [vmem:[#allocation8 + $0x7d8] sm:$0xff] }
 0x6d1   : > { %6887 = vmatpush1.bf16.msra.mxu0 %v6886_v51  ;;  %7015 = vmatpush1.bf16.msra.mxu1 %v7014_v47  ;;  %v5039_v51 = vld [vmem:[#allocation8 + $0x6f8] sm:$0xff]  ;;  %v6906_v47 = vpack.c.bf16 %v5028_v39, %v5024_v38  ;;  %v7050_v38 = vpack.c.bf16 %v5062_v57, %v5058_v31  ;;  %v5064_v39 = vld [vmem:[#allocation8 + $0x7c0] sm:$0xff]  ;;  %v5429_v57 = vld [vmem:[#allocation11 + $0xd0] sm:$0xff] }
 0x6d2   : > { %6889 = vmatprep.subr.bf16.mxu0 %v6888_v56  ;;  %7017 = vmatprep.subr.bf16.mxu1 %v7016_v58  ;;  %v5036_v56 = vld [vmem:[#allocation8 + $0x6e0] sm:$0xff]  ;;  %v6908_v58 = vpack.c.bf16 %v5037_v46, %v5033_v45  ;;  %v7036_v27 = vpack.c.bf16 %v5039_v51, %v5035_v48  ;;  %v5070_v45 = vld [vmem:[#allocation8 + $0x7f0] sm:$0xff]  ;;  %v5404_v46 = vld [vmem:[#allocation11 + $0x8] sm:$0xff] }
 0x6d3   : > { %v5408_v48 = vld [vmem:[#allocation11 + $0x28] sm:$0xff]  ;;  %v5406_v51 = vld [vmem:[#allocation11 + $0x18] sm:$0xff] }
 0x6d4   : > { %v7056_v59 = vpack.c.bf16 %v5408_v48, %v5404_v46  ;;  %v5441_v46 = vld [vmem:[#allocation11 + $0x130] sm:$0xff]  ;;  %v5444_v48 = vld [vmem:[#allocation11 + $0x148] sm:$0xff] }
 0x6d5   : > { %6891 = vmatpush1.bf16.msra.mxu0 %v6890_v2  ;;  %7019 = vmatpush1.bf16.msra.mxu1 %v7018_v9  ;;  %v5047_v2 = vld [vmem:[#allocation8 + $0x738] sm:$0xff]  ;;  %v6910_v9 = vpack.c.bf16 %v5036_v56, %v5032_v55  ;;  %v7054_v55 = vpack.c.bf16 %v5070_v45, %v5066_v37  ;;  %v5403_v56 = vld [vmem:[#allocation11] sm:$0xff]  ;;  %v5437_v45 = vld [vmem:[#allocation11 + $0x110] sm:$0xff] }
 0x6d6   : > { %6893 = vmatprep.subr.bf16.mxu0 %v6892_v5  ;;  %7021 = vmatprep.subr.bf16.mxu1 %v7020_v3  ;;  %v5044_v5 = vld [vmem:[#allocation8 + $0x720] sm:$0xff]  ;;  %v6912_v3 = vpack.c.bf16 %v5045_v62, %v5041_v61  ;;  %v7040_v52 = vpack.c.bf16 %v5047_v2, %v5043_v63  ;;  %v5405_v61 = vld [vmem:[#allocation11 + $0x10] sm:$0xff]  ;;  %v5412_v63 = vld [vmem:[#allocation11 + $0x48] sm:$0xff] }
 0x6d7   : > { %v5409_v62 = vld [vmem:[#allocation11 + $0x30] sm:$0xff]  ;;  %v5416_v2 = vld [vmem:[#allocation11 + $0x68] sm:$0xff] }
 0x6d9   : > { %6895 = vmatpush1.bf16.msra.mxu0 %v6894_v14  ;;  %7023 = vmatpush1.bf16.msra.mxu1 %v7022_v24  ;;  %v5055_v14 = vld [vmem:[#allocation8 + $0x778] sm:$0xff]  ;;  %v6914_v24 = vpack.c.bf16 %v5044_v5, %v5040_v8  ;;  %v7186_v5 = vpack.c.bf16 %v5409_v62, %v5405_v61  ;;  %v5445_v62 = vld [vmem:[#allocation11 + $0x150] sm:$0xff] }
 0x6da   : > { %6897 = vmatprep.subr.bf16.mxu0 %v6896_v17  ;;  %7025 = vmatprep.subr.bf16.mxu1 %v7024_v18  ;;  %v5052_v17 = vld [vmem:[#allocation8 + $0x760] sm:$0xff]  ;;  %v6916_v18 = vpack.c.bf16 %v5053_v10, %v5049_v7  ;;  %v7044_v19 = vpack.c.bf16 %v5055_v14, %v5051_v11  ;;  %v5413_v7 = vld [vmem:[#allocation11 + $0x50] sm:$0xff]  ;;  %v5420_v11 = vld [vmem:[#allocation11 + $0x88] sm:$0xff] }
 0x6db   : > { %v5417_v10 = vld [vmem:[#allocation11 + $0x70] sm:$0xff]  ;;  %v5424_v14 = vld [vmem:[#allocation11 + $0xa8] sm:$0xff] }
 0x6dd   : > { %6899 = vmatpush1.bf16.msra.mxu0 %v6898_v1  ;;  %7027 = vmatpush1.bf16.msra.mxu1 %v7026_v50  ;;  %v5063_v1 = vld [vmem:[#allocation8 + $0x7b8] sm:$0xff]  ;;  %v6918_v50 = vpack.c.bf16 %v5052_v17, %v5048_v16  ;;  %v7190_v17 = vpack.c.bf16 %v5417_v10, %v5413_v7  ;;  %v5453_v7 = vld [vmem:[#allocation11 + $0x190] sm:$0xff] }
 0x6de   : > { %6901 = vmatprep.subr.bf16.mxu0 %v6900_v28  ;;  %7029 = vmatprep.subr.bf16.mxu1 %v7028_v30  ;;  %v5060_v28 = vld [vmem:[#allocation8 + $0x7a0] sm:$0xff]  ;;  %v6920_v30 = vpack.c.bf16 %v5061_v36, %v5057_v13  ;;  %v7048_v12 = vpack.c.bf16 %v5063_v1, %v5059_v23  ;;  %v5425_v13 = vld [vmem:[#allocation11 + $0xb0] sm:$0xff]  ;;  %v5428_v36 = vld [vmem:[#allocation11 + $0xc8] sm:$0xff] }
 0x6df   : > { %v5432_v23 = vld [vmem:[#allocation11 + $0xe8] sm:$0xff]  ;;  %v5430_v1 = vld [vmem:[#allocation11 + $0xd8] sm:$0xff]  ;;  %v5457_v10 = vld [vmem:[#allocation11 + $0x1b0] sm:$0xff] }
 0x6e1   : > { %6903 = vmatpush1.bf16.msra.mxu0 %v6902_v35  ;;  %7031 = vmatpush1.bf16.msra.mxu1 %v7030_v29  ;;  %v5071_v35 = vld [vmem:[#allocation8 + $0x7f8] sm:$0xff]  ;;  %v6922_v29 = vpack.c.bf16 %v5060_v28, %v5056_v26  ;;  %v7194_v26 = vpack.c.bf16 %v5425_v13, %v5421_v22  ;;  %v5427_v28 = vld [vmem:[#allocation11 + $0xc0] sm:$0xff]  ;;  %v5461_v22 = vld [vmem:[#allocation11 + $0x1d0] sm:$0xff] }
 0x6e2   : > { %6905 = vmatprep.subr.bf16.mxu0 %v6904_v40  ;;  %7033 = vmatprep.subr.bf16.mxu1 %v7032_v43  ;;  %v5068_v40 = vld [vmem:[#allocation8 + $0x7e0] sm:$0xff]  ;;  %v6924_v43 = vpack.c.bf16 %v5069_v32, %v5065_v20  ;;  %v7052_v44 = vpack.c.bf16 %v5071_v35, %v5067_v49  ;;  %v5433_v20 = vld [vmem:[#allocation11 + $0xf0] sm:$0xff]  ;;  %v5436_v32 = vld [vmem:[#allocation11 + $0x108] sm:$0xff] }
 0x6e3   : > { %v5440_v49 = vld [vmem:[#allocation11 + $0x128] sm:$0xff]  ;;  %v5438_v35 = vld [vmem:[#allocation11 + $0x118] sm:$0xff]  ;;  %v5465_v13 = vld [vmem:[#allocation11 + $0x1f0] sm:$0xff] }
 0x6e5   : > { %6907 = vmatpush1.bf16.msra.mxu0 %v6906_v47  ;;  %7035 = vmatpush1.bf16.msra.mxu1 %v7034_v53  ;;  %v5410_v47 = vld [vmem:[#allocation11 + $0x38] sm:$0xff]  ;;  %v6926_v53 = vpack.c.bf16 %v5068_v40, %v5064_v39  ;;  %v7198_v39 = vpack.c.bf16 %v5433_v20, %v5429_v57  ;;  %v5435_v40 = vld [vmem:[#allocation11 + $0x100] sm:$0xff]  ;;  %v5469_v57 = vld [vmem:[#allocation11 + $0x210] sm:$0xff] }
 0x6e6   : > { %6909 = vmatprep.subr.bf16.mxu0 %v6908_v58  ;;  %7037 = vmatprep.subr.bf16.mxu1 %v7036_v27  ;;  %v5407_v58 = vld [vmem:[#allocation11 + $0x20] sm:$0xff]  ;;  %v9474_v27 = vsub.s32 2, %v8518_v54  ;;  %v7184_v60 = vpack.c.bf16 %v5410_v47, %v5406_v51  ;;  %v7060_v54 = vpack.c.bf16 %v5416_v2, %v5412_v63  ;;  %v5448_v51 = vld [vmem:[#allocation11 + $0x168] sm:$0xff]  ;;  %v5446_v47 = vld [vmem:[#allocation11 + $0x158] sm:$0xff] }
 0x6e7   : > { %v7058_v8 = vpack.c.bf16 %v5407_v58, %v5403_v56  ;;  %v7202_v56 = vpack.c.bf16 %v5441_v46, %v5437_v45  ;;  %v5443_v58 = vld [vmem:[#allocation11 + $0x140] sm:$0xff]  ;;  %v5449_v63 = vld [vmem:[#allocation11 + $0x170] sm:$0xff]  ;;  %v5452_v2 = vld [vmem:[#allocation11 + $0x188] sm:$0xff] }
 0x6e8   : > { %v5085_v6 = vrot.slane %v9462_v41, %v9474_v27  ;;  %v7064_v41 = vpack.c.bf16 %v5424_v14, %v5420_v11  ;;  %v5460_v11 = vld [vmem:[#allocation11 + $0x1c8] sm:$0xff]  ;;  %v5473_v20 = vld [vmem:[#allocation11 + $0x230] sm:$0xff] }
 0x6e9   : > { %6911 = vmatpush1.bf16.msra.mxu0 %v6910_v9  ;;  %7039 = vmatpush1.bf16.msra.mxu1 %v7038_v4  ;;  %v5414_v9 = vld [vmem:[#allocation11 + $0x58] sm:$0xff]  ;;  %v5464_v14 = vld [vmem:[#allocation11 + $0x1e8] sm:$0xff]  ;;  %v5477_v45 = vld [vmem:[#allocation11 + $0x250] sm:$0xff] }
 0x6ea   : > { %6913 = vmatprep.subr.bf16.mxu0 %v6912_v3  ;;  %7041 = vmatprep.subr.bf16.mxu1 %v7040_v52  ;;  %v5418_v4 = vld [vmem:[#allocation11 + $0x78] sm:$0xff]  ;;  %v5411_v3 = vld [vmem:[#allocation11 + $0x40] sm:$0xff]  ;;  %v5481_v46 = vld [vmem:[#allocation11 + $0x270] sm:$0xff] }
 0x6eb   : > { %v5415_v52 = vld [vmem:[#allocation11 + $0x60] sm:$0xff]  ;;  %v7188_v0 = vpack.c.bf16 %v5418_v4, %v5414_v9  ;;  %v5456_v9 = vld [vmem:[#allocation11 + $0x1a8] sm:$0xff]  ;;  %v5454_v4 = vld [vmem:[#allocation11 + $0x198] sm:$0xff] }
 0x6ec   : > { %v7062_v16 = vpack.c.bf16 %v5415_v52, %v5411_v3  ;;  %v7206_v3 = vpack.c.bf16 %v5449_v63, %v5445_v62  ;;  %v5451_v52 = vld [vmem:[#allocation11 + $0x180] sm:$0xff]  ;;  %v5485_v62 = vld [vmem:[#allocation11 + $0x290] sm:$0xff] }
 0x6ed   : > { %6915 = vmatpush1.bf16.msra.mxu0 %v6914_v24  ;;  %7043 = vmatpush1.bf16.msra.mxu1 %v7042_v15  ;;  %v5422_v24 = vld [vmem:[#allocation11 + $0x98] sm:$0xff]  ;;  %v5489_v63 = vld [vmem:[#allocation11 + $0x2b0] sm:$0xff] }
 0x6ee   : > { %6917 = vmatprep.subr.bf16.mxu0 %v6916_v18  ;;  %7045 = vmatprep.subr.bf16.mxu1 %v7044_v19  ;;  %v5426_v15 = vld [vmem:[#allocation11 + $0xb8] sm:$0xff]  ;;  %v5419_v18 = vld [vmem:[#allocation11 + $0x80] sm:$0xff] }
 0x6ef   : > { %v5423_v19 = vld [vmem:[#allocation11 + $0xa0] sm:$0xff]  ;;  %v7192_v21 = vpack.c.bf16 %v5426_v15, %v5422_v24  ;;  %v5462_v24 = vld [vmem:[#allocation11 + $0x1d8] sm:$0xff] }
 0x6f0   : > { %v5466_v15 = vld [vmem:[#allocation11 + $0x1f8] sm:$0xff] }
 0x6f1   : > { %6919 = vmatpush1.bf16.msra.mxu0 %v6918_v50  ;;  %7047 = vmatpush1.bf16.msra.mxu1 %v7046_v25  ;;  %v5434_v50 = vld [vmem:[#allocation11 + $0xf8] sm:$0xff]  ;;  %v7066_v25 = vpack.c.bf16 %v5423_v19, %v5419_v18  ;;  %v5459_v18 = vld [vmem:[#allocation11 + $0x1c0] sm:$0xff] }
 0x6f2   : > { %6921 = vmatprep.subr.bf16.mxu0 %v6920_v30  ;;  %7049 = vmatprep.subr.bf16.mxu1 %v7048_v12  ;;  %v5431_v30 = vld [vmem:[#allocation11 + $0xe0] sm:$0xff]  ;;  %v7068_v12 = vpack.c.bf16 %v5432_v23, %v5428_v36  ;;  %v7196_v31 = vpack.c.bf16 %v5434_v50, %v5430_v1  ;;  %v5468_v36 = vld [vmem:[#allocation11 + $0x208] sm:$0xff]  ;;  %v5470_v1 = vld [vmem:[#allocation11 + $0x218] sm:$0xff] }
 0x6f3   : > { %v5463_v19 = vld [vmem:[#allocation11 + $0x1e0] sm:$0xff]  ;;  %v5472_v23 = vld [vmem:[#allocation11 + $0x228] sm:$0xff]  ;;  %v5474_v50 = vld [vmem:[#allocation11 + $0x238] sm:$0xff] }
 0x6f5   : > { %6923 = vmatpush1.bf16.msra.mxu0 %v6922_v29  ;;  %7051 = vmatpush1.bf16.msra.mxu1 %v7050_v38  ;;  %v5442_v29 = vld [vmem:[#allocation11 + $0x138] sm:$0xff]  ;;  %v7070_v38 = vpack.c.bf16 %v5431_v30, %v5427_v28  ;;  %v5467_v28 = vld [vmem:[#allocation11 + $0x200] sm:$0xff] }
 0x6f6   : > { %6925 = vmatprep.subr.bf16.mxu0 %v6924_v43  ;;  %7053 = vmatprep.subr.bf16.mxu1 %v7052_v44  ;;  %v5439_v43 = vld [vmem:[#allocation11 + $0x120] sm:$0xff]  ;;  %v7072_v44 = vpack.c.bf16 %v5440_v49, %v5436_v32  ;;  %v7200_v37 = vpack.c.bf16 %v5442_v29, %v5438_v35  ;;  %v5476_v32 = vld [vmem:[#allocation11 + $0x248] sm:$0xff]  ;;  %v5478_v35 = vld [vmem:[#allocation11 + $0x258] sm:$0xff] }
 0x6f7   : > { %v5471_v30 = vld [vmem:[#allocation11 + $0x220] sm:$0xff]  ;;  %v5480_v49 = vld [vmem:[#allocation11 + $0x268] sm:$0xff]  ;;  %v5482_v29 = vld [vmem:[#allocation11 + $0x278] sm:$0xff] }
 0x6f9   : > { %6927 = vmatpush1.bf16.msra.mxu0 %v6926_v53  ;;  %7055 = vmatpush1.bf16.msra.mxu1 %v7054_v55  ;;  %v5450_v53 = vld [vmem:[#allocation11 + $0x178] sm:$0xff]  ;;  %v7074_v55 = vpack.c.bf16 %v5439_v43, %v5435_v40  ;;  %v5475_v40 = vld [vmem:[#allocation11 + $0x240] sm:$0xff] }
 0x6fa   : > { %7057 = vmatprep.subr.bf16.mxu0 %v7056_v59  ;;  %7185 = vmatprep.subr.bf16.mxu1 %v7184_v60  ;;  %v5447_v59 = vld [vmem:[#allocation11 + $0x160] sm:$0xff]  ;;  %v7076_v60 = vpack.c.bf16 %v5448_v51, %v5444_v48  ;;  %v7204_v61 = vpack.c.bf16 %v5450_v53, %v5446_v47  ;;  %v5484_v48 = vld [vmem:[#allocation11 + $0x288] sm:$0xff]  ;;  %v5486_v47 = vld [vmem:[#allocation11 + $0x298] sm:$0xff] }
 0x6fb   : > { %v5479_v43 = vld [vmem:[#allocation11 + $0x260] sm:$0xff]  ;;  %v5488_v51 = vld [vmem:[#allocation11 + $0x2a8] sm:$0xff]  ;;  %v5490_v53 = vld [vmem:[#allocation11 + $0x2b8] sm:$0xff] }
 0x6fc   : > { %5251 = vmatmul.mubr.f32.vlgmr.msra.gmra.mrb[36].mxu0 %v5085_v6  ;;  %5393 = vmatmul.mubr.f32.vlgmr.msra.gmra.mrb[22].mxu1 %v5085_v6  ;;  %v5455_v6 = vld [vmem:[#allocation11 + $0x1a0] sm:$0xff] }
 0x6fd   : > { %7059 = vmatpush1.bf16.msra.mxu0 %v7058_v8  ;;  %7187 = vmatpush1.bf16.msra.mxu1 %v7186_v5  ;;  %v5458_v8 = vld [vmem:[#allocation11 + $0x1b8] sm:$0xff]  ;;  %v7078_v5 = vpack.c.bf16 %v5447_v59, %v5443_v58  ;;  %v5483_v58 = vld [vmem:[#allocation11 + $0x280] sm:$0xff] }
 0x6fe   : > { %7061 = vmatprep.subr.bf16.mxu0 %v7060_v54  ;;  %7189 = vmatprep.subr.bf16.mxu1 %v7188_v0  ;;  %v7080_v54 = vpack.c.bf16 %v5456_v9, %v5452_v2  ;;  %v7208_v0 = vpack.c.bf16 %v5458_v8, %v5454_v4  ;;  %v5487_v59 = vld [vmem:[#allocation11 + $0x2a0] sm:$0xff]  ;;  %v5492_v2 = vld [vmem:[#allocation11 + $0x2c8] sm:$0xff]  ;;  %v5494_v4 = vld [vmem:[#allocation11 + $0x2d8] sm:$0xff] }
 0x6ff   : > { %v5496_v9 = vld [vmem:[#allocation11 + $0x2e8] sm:$0xff]  ;;  %v5498_v8 = vld [vmem:[#allocation11 + $0x2f8] sm:$0xff] }
 0x701   : > { %7063 = vmatpush1.bf16.msra.mxu0 %v7062_v16  ;;  %7191 = vmatpush1.bf16.msra.mxu1 %v7190_v17  ;;  %v7082_v16 = vpack.c.bf16 %v5455_v6, %v5451_v52  ;;  %v7210_v17 = vpack.c.bf16 %v5457_v10, %v5453_v7  ;;  %v5491_v52 = vld [vmem:[#allocation11 + $0x2c0] sm:$0xff]  ;;  %v5493_v7 = vld [vmem:[#allocation11 + $0x2d0] sm:$0xff] }
 0x702   : > { %7065 = vmatprep.subr.bf16.mxu0 %v7064_v41  ;;  %7193 = vmatprep.subr.bf16.mxu1 %v7192_v21  ;;  %v7084_v41 = vpack.c.bf16 %v5464_v14, %v5460_v11  ;;  %v7212_v21 = vpack.c.bf16 %v5466_v15, %v5462_v24  ;;  %v5495_v6 = vld [vmem:[#allocation11 + $0x2e0] sm:$0xff]  ;;  %v5497_v10 = vld [vmem:[#allocation11 + $0x2f0] sm:$0xff]  ;;  %v5500_v11 = vld [vmem:[#allocation11 + $0x308] sm:$0xff] }
 0x703   : > { %v5504_v14 = vld [vmem:[#allocation11 + $0x328] sm:$0xff]  ;;  %v5502_v24 = vld [vmem:[#allocation11 + $0x318] sm:$0xff] }
 0x704   : > { %v5506_v15 = vld [vmem:[#allocation11 + $0x338] sm:$0xff] }
 0x705   : > { %7067 = vmatpush1.bf16.msra.mxu0 %v7066_v25  ;;  %7195 = vmatpush1.bf16.msra.mxu1 %v7194_v26  ;;  %v7086_v25 = vpack.c.bf16 %v5463_v19, %v5459_v18  ;;  %v7214_v26 = vpack.c.bf16 %v5465_v13, %v5461_v22  ;;  %v5499_v18 = vld [vmem:[#allocation11 + $0x300] sm:$0xff]  ;;  %v5501_v22 = vld [vmem:[#allocation11 + $0x310] sm:$0xff] }
 0x706   : > { %7069 = vmatprep.subr.bf16.mxu0 %v7068_v12  ;;  %7197 = vmatprep.subr.bf16.mxu1 %v7196_v31  ;;  %v7088_v12 = vpack.c.bf16 %v5472_v23, %v5468_v36  ;;  %v7216_v31 = vpack.c.bf16 %v5474_v50, %v5470_v1  ;;  %v5503_v19 = vld [vmem:[#allocation11 + $0x320] sm:$0xff]  ;;  %v5505_v13 = vld [vmem:[#allocation11 + $0x330] sm:$0xff]  ;;  %v5508_v36 = vld [vmem:[#allocation11 + $0x348] sm:$0xff] }
 0x707   : > { %v5512_v23 = vld [vmem:[#allocation11 + $0x368] sm:$0xff]  ;;  %v5510_v1 = vld [vmem:[#allocation11 + $0x358] sm:$0xff] }
 0x708   : > { %v5514_v50 = vld [vmem:[#allocation11 + $0x378] sm:$0xff] }
 0x709   : > { %7071 = vmatpush1.bf16.msra.mxu0 %v7070_v38  ;;  %7199 = vmatpush1.bf16.msra.mxu1 %v7198_v39  ;;  %v7090_v38 = vpack.c.bf16 %v5471_v30, %v5467_v28  ;;  %v7218_v39 = vpack.c.bf16 %v5473_v20, %v5469_v57  ;;  %v5507_v28 = vld [vmem:[#allocation11 + $0x340] sm:$0xff]  ;;  %v5509_v57 = vld [vmem:[#allocation11 + $0x350] sm:$0xff] }
 0x70a   : > { %7073 = vmatprep.subr.bf16.mxu0 %v7072_v44  ;;  %7201 = vmatprep.subr.bf16.mxu1 %v7200_v37  ;;  %v7092_v44 = vpack.c.bf16 %v5480_v49, %v5476_v32  ;;  %v7220_v37 = vpack.c.bf16 %v5482_v29, %v5478_v35  ;;  %v5511_v30 = vld [vmem:[#allocation11 + $0x360] sm:$0xff]  ;;  %v5513_v20 = vld [vmem:[#allocation11 + $0x370] sm:$0xff]  ;;  %v5516_v32 = vld [vmem:[#allocation11 + $0x388] sm:$0xff] }
 0x70b   : > { %v5520_v49 = vld [vmem:[#allocation11 + $0x3a8] sm:$0xff]  ;;  %v5518_v35 = vld [vmem:[#allocation11 + $0x398] sm:$0xff] }
 0x70c   : > { %v5522_v29 = vld [vmem:[#allocation11 + $0x3b8] sm:$0xff] }
 0x70d   : > { %7075 = vmatpush1.bf16.msra.mxu0 %v7074_v55  ;;  %7203 = vmatpush1.bf16.msra.mxu1 %v7202_v56  ;;  %v7094_v55 = vpack.c.bf16 %v5479_v43, %v5475_v40  ;;  %v7222_v56 = vpack.c.bf16 %v5481_v46, %v5477_v45  ;;  %v5515_v40 = vld [vmem:[#allocation11 + $0x380] sm:$0xff]  ;;  %v7112_v43 = vpack.c.bf16 %v5520_v49, %v5516_v32  ;;  %v5517_v45 = vld [vmem:[#allocation11 + $0x390] sm:$0xff] }
 0x70e   : > { %7077 = vmatprep.subr.bf16.mxu0 %v7076_v60  ;;  %7205 = vmatprep.subr.bf16.mxu1 %v7204_v61  ;;  %v7096_v60 = vpack.c.bf16 %v5488_v51, %v5484_v48  ;;  %v7224_v61 = vpack.c.bf16 %v5490_v53, %v5486_v47  ;;  %v5521_v46 = vld [vmem:[#allocation11 + $0x3b0] sm:$0xff]  ;;  %v5524_v47 = vld [vmem:[#allocation11 + $0x3c8] sm:$0xff] }
 0x70f   : > { %v7242_v51 = vpack.c.bf16 %v5521_v46, %v5517_v45  ;;  %v5528_v53 = vld [vmem:[#allocation11 + $0x3e8] sm:$0xff] }
 0x711   : > { %7079 = vmatpush1.bf16.msra.mxu0 %v7078_v5  ;;  %7207 = vmatpush1.bf16.msra.mxu1 %v7206_v3  ;;  %v7098_v5 = vpack.c.bf16 %v5487_v59, %v5483_v58  ;;  %v7226_v3 = vpack.c.bf16 %v5489_v63, %v5485_v62  ;;  %v5530_v58 = vld [vmem:[#allocation11 + $0x3f8] sm:$0xff]  ;;  %v5523_v59 = vld [vmem:[#allocation11 + $0x3c0] sm:$0xff]  ;;  %v5525_v63 = vld [vmem:[#allocation11 + $0x3d0] sm:$0xff] }
 0x712   : > { %7081 = vmatprep.subr.bf16.mxu0 %v7080_v54  ;;  %7209 = vmatprep.subr.bf16.mxu1 %v7208_v0  ;;  %v7100_v54 = vpack.c.bf16 %v5496_v9, %v5492_v2  ;;  %v7228_v0 = vpack.c.bf16 %v5498_v8, %v5494_v4  ;;  %v5529_v2 = vld [vmem:[#allocation11 + $0x3f0] sm:$0xff]  ;;  %v5532_v9 = vld [vmem:[#allocation11 + $0x408] sm:$0xff] }
 0x713   : > { %v7246_v4 = vpack.c.bf16 %v5529_v2, %v5525_v63  ;;  %v5536_v8 = vld [vmem:[#allocation11 + $0x428] sm:$0xff]  ;;  %v5557_v2 = vld [vmem:[#allocation11 + $0x4d0] sm:$0xff] }
 0x715   : > { %7083 = vmatpush1.bf16.msra.mxu0 %v7082_v16  ;;  %7211 = vmatpush1.bf16.msra.mxu1 %v7210_v17  ;;  %v7102_v16 = vpack.c.bf16 %v5495_v6, %v5491_v52  ;;  %v7230_v17 = vpack.c.bf16 %v5497_v10, %v5493_v7  ;;  %v7120_v52 = vpack.c.bf16 %v5536_v8, %v5532_v9  ;;  %v5561_v9 = vld [vmem:[#allocation11 + $0x4f0] sm:$0xff]  ;;  %v5568_v8 = vld [vmem:[#allocation11 + $0x528] sm:$0xff] }
 0x716   : > { %7085 = vmatprep.subr.bf16.mxu0 %v7084_v41  ;;  %7213 = vmatprep.subr.bf16.mxu1 %v7212_v21  ;;  %v7104_v41 = vpack.c.bf16 %v5504_v14, %v5500_v11  ;;  %v7232_v21 = vpack.c.bf16 %v5506_v15, %v5502_v24  ;;  %v5531_v24 = vld [vmem:[#allocation11 + $0x400] sm:$0xff] }
 0x719   : > { %7087 = vmatpush1.bf16.msra.mxu0 %v7086_v25  ;;  %7215 = vmatpush1.bf16.msra.mxu1 %v7214_v26  ;;  %v7106_v25 = vpack.c.bf16 %v5503_v19, %v5499_v18  ;;  %v7234_v26 = vpack.c.bf16 %v5505_v13, %v5501_v22  ;;  %v5535_v18 = vld [vmem:[#allocation11 + $0x420] sm:$0xff]  ;;  %v5533_v19 = vld [vmem:[#allocation11 + $0x410] sm:$0xff]  ;;  %v5540_v22 = vld [vmem:[#allocation11 + $0x448] sm:$0xff] }
 0x71a   : > { %7089 = vmatprep.subr.bf16.mxu0 %v7088_v12  ;;  %7217 = vmatprep.subr.bf16.mxu1 %v7216_v31  ;;  %v7108_v12 = vpack.c.bf16 %v5512_v23, %v5508_v36  ;;  %v7236_v31 = vpack.c.bf16 %v5514_v50, %v5510_v1  ;;  %v5544_v36 = vld [vmem:[#allocation11 + $0x468] sm:$0xff]  ;;  %v5542_v23 = vld [vmem:[#allocation11 + $0x458] sm:$0xff] }
 0x71b   : > { %v5546_v1 = vld [vmem:[#allocation11 + $0x478] sm:$0xff]  ;;  %v7124_v32 = vpack.c.bf16 %v5544_v36, %v5540_v22  ;;  %v5571_v22 = vld [vmem:[#allocation11 + $0x540] sm:$0xff] }
 0x71c   : > { %v7252_v49 = vpack.c.bf16 %v5546_v1, %v5542_v23  ;;  %v5573_v1 = vld [vmem:[#allocation11 + $0x550] sm:$0xff] }
 0x71d   : > { %7091 = vmatpush1.bf16.msra.mxu0 %v7090_v38  ;;  %7219 = vmatpush1.bf16.msra.mxu1 %v7218_v39  ;;  %v7110_v38 = vpack.c.bf16 %v5511_v30, %v5507_v28  ;;  %v7238_v39 = vpack.c.bf16 %v5513_v20, %v5509_v57  ;;  %v5539_v28 = vld [vmem:[#allocation11 + $0x440] sm:$0xff]  ;;  %v5545_v57 = vld [vmem:[#allocation11 + $0x470] sm:$0xff]  ;;  %v5548_v20 = vld [vmem:[#allocation11 + $0x488] sm:$0xff] }
 0x71e   : > { %7093 = vmatprep.subr.bf16.mxu0 %v7092_v44  ;;  %7221 = vmatprep.subr.bf16.mxu1 %v7220_v37  ;;  %v7240_v44 = vpack.c.bf16 %v5522_v29, %v5518_v35  ;;  %v5519_v37 = vld [vmem:[#allocation11 + $0x3a0] sm:$0xff]  ;;  %v5552_v35 = vld [vmem:[#allocation11 + $0x4a8] sm:$0xff]  ;;  %v5550_v29 = vld [vmem:[#allocation11 + $0x498] sm:$0xff] }
 0x71f   : > { %v7114_v48 = vpack.c.bf16 %v5519_v37, %v5515_v40  ;;  %v5543_v30 = vld [vmem:[#allocation11 + $0x460] sm:$0xff]  ;;  %v7128_v45 = vpack.c.bf16 %v5552_v35, %v5548_v20  ;;  %v5581_v35 = vld [vmem:[#allocation11 + $0x590] sm:$0xff] }
 0x720   : > { %v7126_v40 = vpack.c.bf16 %v5543_v30, %v5539_v28  ;;  %v5551_v37 = vld [vmem:[#allocation11 + $0x4a0] sm:$0xff]  ;;  %v5582_v28 = vld [vmem:[#allocation11 + $0x598] sm:$0xff] }
 0x721   : > { %7095 = vmatpush1.bf16.msra.mxu0 %v7094_v55  ;;  %7223 = vmatpush1.bf16.msra.mxu1 %v7222_v56  ;;  %v5526_v55 = vld [vmem:[#allocation11 + $0x3d8] sm:$0xff]  ;;  %v7116_v56 = vpack.c.bf16 %v5528_v53, %v5524_v47  ;;  %v5556_v47 = vld [vmem:[#allocation11 + $0x4c8] sm:$0xff]  ;;  %v5583_v20 = vld [vmem:[#allocation11 + $0x5a0] sm:$0xff] }
 0x722   : > { %7097 = vmatprep.subr.bf16.mxu0 %v7096_v60  ;;  %7225 = vmatprep.subr.bf16.mxu1 %v7224_v61  ;;  %v5527_v60 = vld [vmem:[#allocation11 + $0x3e0] sm:$0xff]  ;;  %v7244_v61 = vpack.c.bf16 %v5530_v58, %v5526_v55  ;;  %v5560_v53 = vld [vmem:[#allocation11 + $0x4e8] sm:$0xff]  ;;  %v5558_v55 = vld [vmem:[#allocation11 + $0x4d8] sm:$0xff] }
 0x723   : > { %v7118_v62 = vpack.c.bf16 %v5527_v60, %v5523_v59  ;;  %v5555_v60 = vld [vmem:[#allocation11 + $0x4c0] sm:$0xff]  ;;  %v5586_v30 = vld [vmem:[#allocation11 + $0x5b8] sm:$0xff] }
 0x725   : > { %7099 = vmatpush1.bf16.msra.mxu0 %v7098_v5  ;;  %7227 = vmatpush1.bf16.msra.mxu1 %v7226_v3  ;;  %v5534_v5 = vld [vmem:[#allocation11 + $0x418] sm:$0xff] }
 0x726   : > { %7101 = vmatprep.subr.bf16.mxu0 %v7100_v54  ;;  %7229 = vmatprep.subr.bf16.mxu1 %v7228_v0  ;;  %v5538_v3 = vld [vmem:[#allocation11 + $0x438] sm:$0xff]  ;;  %v9481_v54 = vld [vmem:[%s9751_s8] sm:$0xf] }
 0x727   : > { %v7248_v6 = vpack.c.bf16 %v5538_v3, %v5534_v5  ;;  %v5098_v0 = vrot.slane %v9481_v54, %v9460_v34  ;;  %v5102_v7 = vrot.slane %v9481_v54, %v9457_v33  ;;  %v5110_v10 = vrot.slane %v9481_v54, %v9465_v42  ;;  %v5566_v5 = vld [vmem:[#allocation11 + $0x518] sm:$0xff] }
 0x728   : > { %v5570_v3 = vld [vmem:[#allocation11 + $0x538] sm:$0xff] }
 0x729   : > { %7103 = vmatpush1.bf16.msra.mxu0 %v7102_v16  ;;  %7231 = vmatpush1.bf16.msra.mxu1 %v7230_v17 }
 0x72a   : > { %7105 = vmatprep.subr.bf16.mxu0 %v7104_v41  ;;  %7233 = vmatprep.subr.bf16.mxu1 %v7232_v21  ;;  %v5537_v41 = vld [vmem:[#allocation11 + $0x430] sm:$0xff] }
 0x72d   : > { %7107 = vmatpush1.bf16.msra.mxu0 %v7106_v25  ;;  %7235 = vmatpush1.bf16.msra.mxu1 %v7234_v26  ;;  %v7122_v25 = vpack.c.bf16 %v5535_v18, %v5531_v24  ;;  %v7250_v26 = vpack.c.bf16 %v5537_v41, %v5533_v19  ;;  %v5565_v24 = vld [vmem:[#allocation11 + $0x510] sm:$0xff]  ;;  %v5574_v18 = vld [vmem:[#allocation11 + $0x558] sm:$0xff] }
 0x72e   : > { %7109 = vmatprep.subr.bf16.mxu0 %v7108_v12  ;;  %7237 = vmatprep.subr.bf16.mxu1 %v7236_v31  ;;  %v5541_v31 = vld [vmem:[#allocation11 + $0x450] sm:$0xff]  ;;  %v5578_v19 = vld [vmem:[#allocation11 + $0x578] sm:$0xff] }
 0x72f   : > { %v7268_v23 = vpack.c.bf16 %v5578_v19, %v5574_v18  ;;  %v5612_v18 = vld [vmem:[#allocation11 + $0x688] sm:$0xff] }
 0x730   : > { %v5616_v19 = vld [vmem:[#allocation11 + $0x6a8] sm:$0xff] }
 0x731   : > { %7111 = vmatpush1.bf16.msra.mxu0 %v7110_v38  ;;  %7239 = vmatpush1.bf16.msra.mxu1 %v7238_v39  ;;  %v5554_v38 = vld [vmem:[#allocation11 + $0x4b8] sm:$0xff] }
 0x732   : > { %7113 = vmatprep.subr.bf16.mxu0 %v7112_v43  ;;  %7241 = vmatprep.subr.bf16.mxu1 %v7240_v44  ;;  %v7254_v43 = vpack.c.bf16 %v5545_v57, %v5541_v31  ;;  %v5547_v44 = vld [vmem:[#allocation11 + $0x480] sm:$0xff]  ;;  %v7256_v46 = vpack.c.bf16 %v5554_v38, %v5550_v29  ;;  %v5585_v29 = vld [vmem:[#allocation11 + $0x5b0] sm:$0xff]  ;;  %v5588_v38 = vld [vmem:[#allocation11 + $0x5c8] sm:$0xff] }
 0x733   : > { %v7130_v58 = vpack.c.bf16 %v5551_v37, %v5547_v44  ;;  %v5579_v57 = vld [vmem:[#allocation11 + $0x580] sm:$0xff]  ;;  %v7274_v37 = vpack.c.bf16 %v5585_v29, %v5581_v35 }
 0x734   : > { %v7146_v44 = vpack.c.bf16 %v5583_v20, %v5579_v57 }
 0x735   : > { %7115 = vmatpush1.bf16.msra.mxu0 %v7114_v48  ;;  %7243 = vmatpush1.bf16.msra.mxu1 %v7242_v51  ;;  %v5549_v48 = vld [vmem:[#allocation11 + $0x490] sm:$0xff] }
 0x736   : > { %7117 = vmatprep.subr.bf16.mxu0 %v7116_v56  ;;  %7245 = vmatprep.subr.bf16.mxu1 %v7244_v61  ;;  %v5553_v51 = vld [vmem:[#allocation11 + $0x4b0] sm:$0xff]  ;;  %v5562_v56 = vld [vmem:[#allocation11 + $0x4f8] sm:$0xff]  ;;  %v5559_v61 = vld [vmem:[#allocation11 + $0x4e0] sm:$0xff] }
 0x737   : > { %v7258_v59 = vpack.c.bf16 %v5553_v51, %v5549_v48  ;;  %v7260_v63 = vpack.c.bf16 %v5562_v56, %v5558_v55  ;;  %v5596_v55 = vld [vmem:[#allocation11 + $0x608] sm:$0xff] }
 0x738   : > { %v5600_v56 = vld [vmem:[#allocation11 + $0x628] sm:$0xff] }
 0x739   : > { %7119 = vmatpush1.bf16.msra.mxu0 %v7118_v62  ;;  %7247 = vmatpush1.bf16.msra.mxu1 %v7246_v4  ;;  %v7132_v62 = vpack.c.bf16 %v5560_v53, %v5556_v47  ;;  %v5564_v4 = vld [vmem:[#allocation11 + $0x508] sm:$0xff]  ;;  %v5589_v47 = vld [vmem:[#allocation11 + $0x5d0] sm:$0xff] }
 0x73a   : > { %7121 = vmatprep.subr.bf16.mxu0 %v7120_v52  ;;  %7249 = vmatprep.subr.bf16.mxu1 %v7248_v6  ;;  %v7134_v52 = vpack.c.bf16 %v5559_v61, %v5555_v60  ;;  %v7262_v6 = vpack.c.bf16 %v5561_v9, %v5557_v2  ;;  %v5593_v53 = vld [vmem:[#allocation11 + $0x5f0] sm:$0xff]  ;;  %v7152_v2 = vpack.c.bf16 %v5600_v56, %v5596_v55 }
 0x73b   : > { %v7278_v61 = vpack.c.bf16 %v5593_v53, %v5589_v47  ;;  %v5629_v55 = vld [vmem:[#allocation11 + $0x710] sm:$0xff] }
 0x73c   : > { %v5633_v56 = vld [vmem:[#allocation11 + $0x730] sm:$0xff] }
 0x7cf   : > { %v5252_v11 = vpop.f32.mrb[36].mxu0  ;;  %v9489_v14 = vpop.f32.mrb[22].mxu1 }
 0x7d0   : > { %v7376_v15 = vadd.f32 %v5252_v11, %v5098_v0  ;;  %v5254_v16 = vpop.f32.mrb[37].mxu0  ;;  %v5396_v17 = vpop.f32.mrb[23].mxu1  ;;  %v5563_v0 = vld [vmem:[#allocation11 + $0x500] sm:$0xff]  ;;  %v7264_v11 = vpack.c.bf16 %v5570_v3, %v5566_v5  ;;  %v5604_v5 = vld [vmem:[#allocation11 + $0x648] sm:$0xff] }
 0x7d1   : > { %v7377_v21 = vadd.f32 %v5254_v16, %v5102_v7  ;;  %v7379_v13 = vadd.f32 %v5396_v17, %v5110_v10  ;;  %v5567_v7 = vld [vmem:[#allocation11 + $0x520] sm:$0xff]  ;;  %v7136_v10 = vpack.c.bf16 %v5568_v8, %v5564_v4  ;;  %v5572_v16 = vld [vmem:[#allocation11 + $0x548] sm:$0xff]  ;;  %v5597_v4 = vld [vmem:[#allocation11 + $0x610] sm:$0xff] }
 0x7d2   : > { %v5399_v12 = vmax.f32 %v7376_v15, 0.0  ;;  %v5569_v15 = vld [vmem:[#allocation11 + $0x530] sm:$0xff]  ;;  %v5576_v17 = vld [vmem:[#allocation11 + $0x568] sm:$0xff]  ;;  %v7138_v41 = vpack.c.bf16 %v5567_v7, %v5563_v0 }
 0x7d3   : > { %v5400_v50 = vmax.f32 %v7377_v21, 0.0  ;;  %v5402_v39 = vmax.f32 %v7379_v13, 0.0  ;;  %v7266_v21 = vpack.c.bf16 %v5569_v15, %v5565_v24  ;;  %v5575_v13 = vld [vmem:[#allocation11 + $0x560] sm:$0xff]  ;;  %v7140_v36 = vpack.c.bf16 %v5576_v17, %v5572_v16  ;;  %v5601_v8 = vld [vmem:[#allocation11 + $0x630] sm:$0xff]  ;;  %v5608_v3 = vld [vmem:[#allocation11 + $0x668] sm:$0xff] }
 0x7d4   : > { %v7282_v7 = vpack.c.bf16 %v5601_v8, %v5597_v4  ;;  %v7156_v24 = vpack.c.bf16 %v5608_v3, %v5604_v5  ;;  %v5605_v16 = vld [vmem:[#allocation11 + $0x650] sm:$0xff] }
 0x7d5   : > { %5745 = vmatprep.mubr.f32.mxu0 %v5400_v50  ;;  %5887 = vmatprep.mubr.f32.mxu1 %v5400_v50  ;;  %v5577_v50 = vld [vmem:[#allocation11 + $0x570] sm:$0xff] }
 0x7d6   : > { %5746 = vmatmul.mubr.f32.vlgmr.msra.gmra.mrb[38].mxu0 %v5399_v12  ;;  %5888 = vmatmul.mubr.f32.vlgmr.msra.gmra.mrb[24].mxu1 %v5399_v12  ;;  %v7142_v12 = vpack.c.bf16 %v5575_v13, %v5571_v22  ;;  %v7270_v31 = vpack.c.bf16 %v5577_v50, %v5573_v1  ;;  %v5609_v17 = vld [vmem:[#allocation11 + $0x670] sm:$0xff]  ;;  %v7160_v1 = vpack.c.bf16 %v5616_v19, %v5612_v18 }
 0x7d7   : > { %7123 = vmatpush1.bf16.msra.mxu0 %v7122_v25  ;;  %7251 = vmatpush1.bf16.msra.mxu1 %v7250_v26  ;;  %v5580_v25 = vld [vmem:[#allocation11 + $0x588] sm:$0xff]  ;;  %v7286_v13 = vpack.c.bf16 %v5609_v17, %v5605_v16  ;;  %v5637_v5 = vld [vmem:[#allocation11 + $0x750] sm:$0xff] }
 0x7d8   : > { %5816 = vmatprep.mubr.f32.mxu0 %v5402_v39  ;;  %5958 = vmatprep.mubr.f32.mxu1 %v5402_v39  ;;  %v5584_v26 = vld [vmem:[#allocation11 + $0x5a8] sm:$0xff]  ;;  %v5641_v3 = vld [vmem:[#allocation11 + $0x770] sm:$0xff] }
 0x7d9   : > { %7125 = vmatprep.subr.bf16.mxu0 %v7124_v32  ;;  %7253 = vmatprep.subr.bf16.mxu1 %v7252_v49  ;;  %v7144_v32 = vpack.c.bf16 %v5584_v26, %v5580_v25  ;;  %v7272_v49 = vpack.c.bf16 %v5586_v30, %v5582_v28  ;;  %v5592_v39 = vld [vmem:[#allocation11 + $0x5e8] sm:$0xff]  ;;  %v5613_v25 = vld [vmem:[#allocation11 + $0x690] sm:$0xff] }
 0x7da   : > { %v7148_v48 = vpack.c.bf16 %v5592_v39, %v5588_v38  ;;  %v5617_v26 = vld [vmem:[#allocation11 + $0x6b0] sm:$0xff]  ;;  %v5620_v28 = vld [vmem:[#allocation11 + $0x6c8] sm:$0xff] }
 0x7db   : > { %7127 = vmatpush1.bf16.msra.mxu0 %v7126_v40  ;;  %7255 = vmatpush1.bf16.msra.mxu1 %v7254_v43  ;;  %v5590_v40 = vld [vmem:[#allocation11 + $0x5d8] sm:$0xff]  ;;  %v5624_v30 = vld [vmem:[#allocation11 + $0x6e8] sm:$0xff]  ;;  %v7290_v20 = vpack.c.bf16 %v5617_v26, %v5613_v25  ;;  %v5621_v38 = vld [vmem:[#allocation11 + $0x6d0] sm:$0xff]  ;;  %v5106_v25 = vrot.slane %v9481_v54, %v9474_v27 }
 0x7dc   : > { %7129 = vmatprep.subr.bf16.mxu0 %v7128_v45  ;;  %7257 = vmatprep.subr.bf16.mxu1 %v7256_v46  ;;  %v5594_v43 = vld [vmem:[#allocation11 + $0x5f8] sm:$0xff]  ;;  %v5587_v45 = vld [vmem:[#allocation11 + $0x5c0] sm:$0xff]  ;;  %v7164_v35 = vpack.c.bf16 %v5624_v30, %v5620_v28  ;;  %v5625_v39 = vld [vmem:[#allocation11 + $0x6f0] sm:$0xff] }
 0x7dd   : > { %v5591_v46 = vld [vmem:[#allocation11 + $0x5e0] sm:$0xff]  ;;  %v7276_v51 = vpack.c.bf16 %v5594_v43, %v5590_v40  ;;  %v5628_v40 = vld [vmem:[#allocation11 + $0x708] sm:$0xff]  ;;  %v5645_v18 = vld [vmem:[#allocation11 + $0x790] sm:$0xff] }
 0x7de   : > { %v7150_v60 = vpack.c.bf16 %v5591_v46, %v5587_v45  ;;  %v5632_v43 = vld [vmem:[#allocation11 + $0x728] sm:$0xff]  ;;  %v7294_v46 = vpack.c.bf16 %v5625_v39, %v5621_v38  ;;  %v5649_v19 = vld [vmem:[#allocation11 + $0x7b0] sm:$0xff]  ;;  %v7378_v38 = vadd.f32 %v9489_v14, %v5106_v25 }
 0x7df   : > { %7131 = vmatpush1.bf16.msra.mxu0 %v7130_v58  ;;  %7259 = vmatpush1.bf16.msra.mxu1 %v7258_v59  ;;  %v5598_v58 = vld [vmem:[#allocation11 + $0x618] sm:$0xff]  ;;  %v7168_v47 = vpack.c.bf16 %v5632_v43, %v5628_v40  ;;  %v5653_v30 = vld [vmem:[#allocation11 + $0x7d0] sm:$0xff]  ;;  %v5988_v14 = vld [vmem:[%s9754_s11 + $0x98] sm:$0xff] }
 0x7e0   : > { %7133 = vmatprep.subr.bf16.mxu0 %v7132_v62  ;;  %7261 = vmatprep.subr.bf16.mxu1 %v7260_v63  ;;  %v5602_v59 = vld [vmem:[#allocation11 + $0x638] sm:$0xff]  ;;  %v5595_v62 = vld [vmem:[#allocation11 + $0x600] sm:$0xff]  ;;  %v6001_v43 = vld [vmem:[%s9754_s11 + $0x100] sm:$0xff] }
 0x7e1   : > { %v5599_v63 = vld [vmem:[#allocation11 + $0x620] sm:$0xff]  ;;  %v7280_v9 = vpack.c.bf16 %v5602_v59, %v5598_v58  ;;  %v5636_v58 = vld [vmem:[#allocation11 + $0x748] sm:$0xff]  ;;  %v6018_v54 = vld [vmem:[%s9754_s11 + $0x188] sm:$0xff] }
 0x7e2   : > { %v7154_v0 = vpack.c.bf16 %v5599_v63, %v5595_v62  ;;  %v5640_v59 = vld [vmem:[#allocation11 + $0x768] sm:$0xff]  ;;  %v7298_v63 = vpack.c.bf16 %v5633_v56, %v5629_v55  ;;  %v5401_v55 = vmax.f32 %v7378_v38, 0.0  ;;  %v5979_v38 = vld [vmem:[%s9754_s11 + $0x50] sm:$0xff] }
 0x7e3   : > { %7135 = vmatpush1.bf16.msra.mxu0 %v7134_v52  ;;  %7263 = vmatpush1.bf16.msra.mxu1 %v7262_v6  ;;  %v5606_v52 = vld [vmem:[#allocation11 + $0x658] sm:$0xff]  ;;  %v7172_v4 = vpack.c.bf16 %v5640_v59, %v5636_v58 }
 0x7e4   : > { %7137 = vmatprep.subr.bf16.mxu0 %v7136_v10  ;;  %7265 = vmatprep.subr.bf16.mxu1 %v7264_v11  ;;  %v5610_v6 = vld [vmem:[#allocation11 + $0x678] sm:$0xff]  ;;  %v5603_v10 = vld [vmem:[#allocation11 + $0x640] sm:$0xff] }
 0x7e5   : > { %v5607_v11 = vld [vmem:[#allocation11 + $0x660] sm:$0xff]  ;;  %v7284_v15 = vpack.c.bf16 %v5610_v6, %v5606_v52  ;;  %v5644_v52 = vld [vmem:[#allocation11 + $0x788] sm:$0xff] }
 0x7e6   : > { %v7158_v22 = vpack.c.bf16 %v5607_v11, %v5603_v10  ;;  %v5648_v6 = vld [vmem:[#allocation11 + $0x7a8] sm:$0xff]  ;;  %v7302_v11 = vpack.c.bf16 %v5641_v3, %v5637_v5  ;;  %v6003_v59 = vld [vmem:[%s9754_s11 + $0x110] sm:$0xff]  ;;  %v5974_v5 = vld [vmem:[%s9754_s11 + $0x28] sm:$0xff] }
 0x7e7   : > { %7139 = vmatpush1.bf16.msra.mxu0 %v7138_v41  ;;  %7267 = vmatpush1.bf16.msra.mxu1 %v7266_v21  ;;  %v5614_v41 = vld [vmem:[#allocation11 + $0x698] sm:$0xff]  ;;  %v7176_v16 = vpack.c.bf16 %v5648_v6, %v5644_v52  ;;  %v6005_v6 = vld [vmem:[%s9754_s11 + $0x120] sm:$0xff] }
 0x7e8   : > { %7141 = vmatprep.subr.bf16.mxu0 %v7140_v36  ;;  %7269 = vmatprep.subr.bf16.mxu1 %v7268_v23  ;;  %v5618_v21 = vld [vmem:[#allocation11 + $0x6b8] sm:$0xff]  ;;  %v5611_v36 = vld [vmem:[#allocation11 + $0x680] sm:$0xff] }
 0x7e9   : > { %v5615_v23 = vld [vmem:[#allocation11 + $0x6a0] sm:$0xff]  ;;  %v7288_v50 = vpack.c.bf16 %v5618_v21, %v5614_v41  ;;  %v5652_v41 = vld [vmem:[#allocation11 + $0x7c8] sm:$0xff] }
 0x7ea   : > { %v7162_v57 = vpack.c.bf16 %v5615_v23, %v5611_v36  ;;  %v5656_v21 = vld [vmem:[#allocation11 + $0x7e8] sm:$0xff]  ;;  %v7306_v23 = vpack.c.bf16 %v5649_v19, %v5645_v18 }
 0x7eb   : > { %7143 = vmatpush1.bf16.msra.mxu0 %v7142_v12  ;;  %7271 = vmatpush1.bf16.msra.mxu1 %v7270_v31  ;;  %v5622_v12 = vld [vmem:[#allocation11 + $0x6d8] sm:$0xff]  ;;  %v7180_v26 = vpack.c.bf16 %v5656_v21, %v5652_v41  ;;  %v5976_v18 = vld [vmem:[%s9754_s11 + $0x38] sm:$0xff] }
 0x7ec   : > { %7145 = vmatprep.subr.bf16.mxu0 %v7144_v32  ;;  %7273 = vmatprep.subr.bf16.mxu1 %v7272_v49  ;;  %v5626_v31 = vld [vmem:[#allocation11 + $0x6f8] sm:$0xff]  ;;  %v5619_v32 = vld [vmem:[#allocation11 + $0x6c0] sm:$0xff] }
 0x7ed   : > { %v5623_v49 = vld [vmem:[#allocation11 + $0x6e0] sm:$0xff]  ;;  %v7292_v29 = vpack.c.bf16 %v5626_v31, %v5622_v12  ;;  %v5657_v12 = vld [vmem:[#allocation11 + $0x7f0] sm:$0xff] }
 0x7ee   : > { %v7166_v45 = vpack.c.bf16 %v5623_v49, %v5619_v32  ;;  %v5985_v31 = vld [vmem:[%s9754_s11 + $0x80] sm:$0xff]  ;;  %v7310_v49 = vpack.c.bf16 %v5657_v12, %v5653_v30  ;;  %v6007_v21 = vld [vmem:[%s9754_s11 + $0x130] sm:$0xff] }
 0x7ef   : > { %7147 = vmatpush1.bf16.msra.mxu0 %v7146_v44  ;;  %7275 = vmatpush1.bf16.msra.mxu1 %v7274_v37  ;;  %v5630_v44 = vld [vmem:[#allocation11 + $0x718] sm:$0xff] }
 0x7f0   : > { %7149 = vmatprep.subr.bf16.mxu0 %v7148_v48  ;;  %7277 = vmatprep.subr.bf16.mxu1 %v7276_v51  ;;  %v5634_v37 = vld [vmem:[#allocation11 + $0x738] sm:$0xff]  ;;  %v5627_v48 = vld [vmem:[#allocation11 + $0x700] sm:$0xff] }
 0x7f1   : > { %v5631_v51 = vld [vmem:[#allocation11 + $0x720] sm:$0xff]  ;;  %v7296_v53 = vpack.c.bf16 %v5634_v37, %v5630_v44  ;;  %v6002_v44 = vld [vmem:[%s9754_s11 + $0x108] sm:$0xff] }
 0x7f2   : > { %v7170_v62 = vpack.c.bf16 %v5631_v51, %v5627_v48  ;;  %v5987_v37 = vld [vmem:[%s9754_s11 + $0x90] sm:$0xff]  ;;  %v7346_v51 = vpack.c.bf16 %v6002_v44, %v6001_v43 }
 0x7f3   : > { %7151 = vmatpush1.bf16.msra.mxu0 %v7150_v60  ;;  %7279 = vmatpush1.bf16.msra.mxu1 %v7278_v61  ;;  %v5638_v60 = vld [vmem:[#allocation11 + $0x758] sm:$0xff]  ;;  %v7316_v56 = vpack.c.bf16 %v5988_v14, %v5987_v37  ;;  %v6012_v37 = vld [vmem:[%s9754_s11 + $0x158] sm:$0xff]  ;;  %v5997_v14 = vld [vmem:[%s9754_s11 + $0xe0] sm:$0xff] }
 0x7f4   : > { %7153 = vmatprep.subr.bf16.mxu0 %v7152_v2  ;;  %7281 = vmatprep.subr.bf16.mxu1 %v7280_v9  ;;  %v5642_v61 = vld [vmem:[#allocation11 + $0x778] sm:$0xff]  ;;  %v5635_v2 = vld [vmem:[#allocation11 + $0x740] sm:$0xff] }
 0x7f5   : > { %v5639_v9 = vld [vmem:[#allocation11 + $0x760] sm:$0xff]  ;;  %v7300_v8 = vpack.c.bf16 %v5642_v61, %v5638_v60  ;;  %v5989_v61 = vld [vmem:[%s9754_s11 + $0xa0] sm:$0xff] }
 0x7f6   : > { %v7174_v10 = vpack.c.bf16 %v5639_v9, %v5635_v2  ;;  %v6004_v60 = vld [vmem:[%s9754_s11 + $0x118] sm:$0xff]  ;;  %v6022_v2 = vld [vmem:[%s9754_s11 + $0x1a8] sm:$0xff]  ;;  %v6011_v44 = vld [vmem:[%s9754_s11 + $0x150] sm:$0xff] }
 0x7f7   : > { %7155 = vmatpush1.bf16.msra.mxu0 %v7154_v0  ;;  %7283 = vmatpush1.bf16.msra.mxu1 %v7282_v7  ;;  %v5646_v0 = vld [vmem:[#allocation11 + $0x798] sm:$0xff] }
 0x7f8   : > { %7157 = vmatprep.subr.bf16.mxu0 %v7156_v24  ;;  %7285 = vmatprep.subr.bf16.mxu1 %v7284_v15  ;;  %v5650_v7 = vld [vmem:[#allocation11 + $0x7b8] sm:$0xff]  ;;  %v5643_v24 = vld [vmem:[#allocation11 + $0x780] sm:$0xff] }
 0x7f9   : > { %v5647_v15 = vld [vmem:[#allocation11 + $0x7a0] sm:$0xff]  ;;  %v7304_v17 = vpack.c.bf16 %v5650_v7, %v5646_v0  ;;  %v6006_v0 = vld [vmem:[%s9754_s11 + $0x128] sm:$0xff] }
 0x7fa   : > { %v7178_v36 = vpack.c.bf16 %v5647_v15, %v5643_v24  ;;  %v5991_v7 = vld [vmem:[%s9754_s11 + $0xb0] sm:$0xff]  ;;  %v6024_v24 = vld [vmem:[%s9754_s11 + $0x1b8] sm:$0xff] }
 0x7fb   : > { %7159 = vmatpush1.bf16.msra.mxu0 %v7158_v22  ;;  %7287 = vmatpush1.bf16.msra.mxu1 %v7286_v13  ;;  %v5654_v22 = vld [vmem:[#allocation11 + $0x7d8] sm:$0xff] }
 0x7fc   : > { %7161 = vmatprep.subr.bf16.mxu0 %v7160_v1  ;;  %7289 = vmatprep.subr.bf16.mxu1 %v7288_v50  ;;  %v5658_v13 = vld [vmem:[#allocation11 + $0x7f8] sm:$0xff]  ;;  %v5651_v1 = vld [vmem:[#allocation11 + $0x7c0] sm:$0xff] }
 0x7fd   : > { %v5655_v50 = vld [vmem:[#allocation11 + $0x7e0] sm:$0xff]  ;;  %v7308_v28 = vpack.c.bf16 %v5658_v13, %v5654_v22  ;;  %v5993_v13 = vld [vmem:[%s9754_s11 + $0xc0] sm:$0xff] }
 0x7fe   : > { %v7182_v32 = vpack.c.bf16 %v5655_v50, %v5651_v1  ;;  %v6008_v22 = vld [vmem:[%s9754_s11 + $0x138] sm:$0xff]  ;;  %v6026_v1 = vld [vmem:[%s9754_s11 + $0x1c8] sm:$0xff] }
 0x7ff   : > { %7163 = vmatpush1.bf16.msra.mxu0 %v7162_v57  ;;  %7291 = vmatpush1.bf16.msra.mxu1 %v7290_v20  ;;  %v5986_v57 = vld [vmem:[%s9754_s11 + $0x88] sm:$0xff]  ;;  %v6017_v20 = vld [vmem:[%s9754_s11 + $0x180] sm:$0xff]  ;;  %v7358_v25 = vpack.c.bf16 %v6008_v22, %v6007_v21 }
 0x800   : > { %7165 = vmatprep.subr.bf16.mxu0 %v7164_v35  ;;  %7293 = vmatprep.subr.bf16.mxu1 %v7292_v29  ;;  %v5969_v35 = vld [vmem:[%s9754_s11] sm:$0xff]  ;;  %v5970_v29 = vld [vmem:[%s9754_s11 + $0x8] sm:$0xff]  ;;  %v7312_v39 = vpack.c.bf16 %v5986_v57, %v5985_v31  ;;  %v7344_v40 = vpack.c.bf16 %v6018_v54, %v6017_v20  ;;  %v5995_v20 = vld [vmem:[%s9754_s11 + $0xd0] sm:$0xff] }
 0x801   : > { %v7314_v48 = vpack.c.bf16 %v5970_v29, %v5969_v35  ;;  %v6009_v31 = vld [vmem:[%s9754_s11 + $0x140] sm:$0xff]  ;;  %v6010_v57 = vld [vmem:[%s9754_s11 + $0x148] sm:$0xff]  ;;  %v5996_v54 = vld [vmem:[%s9754_s11 + $0xd8] sm:$0xff] }
 0x802   : > { %v7362_v29 = vpack.c.bf16 %v6010_v57, %v6009_v31 }
 0x803   : > { %7167 = vmatpush1.bf16.msra.mxu0 %v7166_v45  ;;  %7295 = vmatpush1.bf16.msra.mxu1 %v7294_v46  ;;  %v6019_v45 = vld [vmem:[%s9754_s11 + $0x190] sm:$0xff]  ;;  %v6020_v46 = vld [vmem:[%s9754_s11 + $0x198] sm:$0xff] }
 0x804   : > { %7169 = vmatprep.subr.bf16.mxu0 %v7168_v47  ;;  %7297 = vmatprep.subr.bf16.mxu1 %v7296_v53  ;;  %v5971_v47 = vld [vmem:[%s9754_s11 + $0x10] sm:$0xff]  ;;  %v5972_v53 = vld [vmem:[%s9754_s11 + $0x18] sm:$0xff]  ;;  %v7348_v58 = vpack.c.bf16 %v6020_v46, %v6019_v45  ;;  %v5998_v45 = vld [vmem:[%s9754_s11 + $0xe8] sm:$0xff] }
 0x805   : > { %v7318_v9 = vpack.c.bf16 %v5972_v53, %v5971_v47  ;;  %v6029_v46 = vld [vmem:[%s9754_s11 + $0x1e0] sm:$0xff]  ;;  %v7366_v47 = vpack.c.bf16 %v6012_v37, %v6011_v44  ;;  %v7336_v53 = vpack.c.bf16 %v5998_v45, %v5997_v14 }
 0x807   : > { %7171 = vmatpush1.bf16.msra.mxu0 %v7170_v62  ;;  %7299 = vmatpush1.bf16.msra.mxu1 %v7298_v63  ;;  %v5990_v62 = vld [vmem:[%s9754_s11 + $0xa8] sm:$0xff]  ;;  %v6021_v63 = vld [vmem:[%s9754_s11 + $0x1a0] sm:$0xff] }
 0x808   : > { %7173 = vmatprep.subr.bf16.mxu0 %v7172_v4  ;;  %7301 = vmatprep.subr.bf16.mxu1 %v7300_v8  ;;  %v7350_v4 = vpack.c.bf16 %v6004_v60, %v6003_v59  ;;  %v5973_v8 = vld [vmem:[%s9754_s11 + $0x20] sm:$0xff]  ;;  %v7320_v3 = vpack.c.bf16 %v5990_v62, %v5989_v61  ;;  %v7352_v52 = vpack.c.bf16 %v6022_v2, %v6021_v63  ;;  %v6014_v61 = vld [vmem:[%s9754_s11 + $0x168] sm:$0xff]  ;;  %v5999_v62 = vld [vmem:[%s9754_s11 + $0xf0] sm:$0xff] }
 0x809   : > { %v7322_v15 = vpack.c.bf16 %v5974_v5, %v5973_v8  ;;  %v6013_v59 = vld [vmem:[%s9754_s11 + $0x160] sm:$0xff]  ;;  %v6000_v63 = vld [vmem:[%s9754_s11 + $0xf8] sm:$0xff]  ;;  %v5983_v5 = vld [vmem:[%s9754_s11 + $0x70] sm:$0xff] }
 0x80a   : > { %v7370_v2 = vpack.c.bf16 %v6014_v61, %v6013_v59  ;;  %v6032_v8 = vld [vmem:[%s9754_s11 + $0x1f8] sm:$0xff] }
 0x80b   : > { %7175 = vmatpush1.bf16.msra.mxu0 %v7174_v10  ;;  %7303 = vmatpush1.bf16.msra.mxu1 %v7302_v11  ;;  %v5992_v10 = vld [vmem:[%s9754_s11 + $0xb8] sm:$0xff]  ;;  %v6023_v11 = vld [vmem:[%s9754_s11 + $0x1b0] sm:$0xff] }
 0x80c   : > { %7177 = vmatprep.subr.bf16.mxu0 %v7176_v16  ;;  %7305 = vmatprep.subr.bf16.mxu1 %v7304_v17  ;;  %v7354_v16 = vpack.c.bf16 %v6006_v0, %v6005_v6  ;;  %v5975_v17 = vld [vmem:[%s9754_s11 + $0x30] sm:$0xff]  ;;  %v7324_v19 = vpack.c.bf16 %v5992_v10, %v5991_v7  ;;  %v7356_v41 = vpack.c.bf16 %v6024_v24, %v6023_v11  ;;  %v6016_v0 = vld [vmem:[%s9754_s11 + $0x178] sm:$0xff]  ;;  %v5659_v11 = vld [vmem:[%s9753_s10] sm:$0xf] }
 0x80d   : > { %v7326_v50 = vpack.c.bf16 %v5976_v18, %v5975_v17  ;;  %v6015_v6 = vld [vmem:[%s9754_s11 + $0x170] sm:$0xff]  ;;  %v5664_v24 = vrot.slane %v5659_v11, %v9460_v34  ;;  %v5676_v17 = vrot.slane %v5659_v11, %v9465_v42 }
 0x80e   : > { %v7374_v10 = vpack.c.bf16 %v6016_v0, %v6015_v6 }
 0x80f   : > { %7179 = vmatpush1.bf16.msra.mxu0 %v7178_v36  ;;  %7307 = vmatpush1.bf16.msra.mxu1 %v7306_v23  ;;  %v5994_v36 = vld [vmem:[%s9754_s11 + $0xc8] sm:$0xff]  ;;  %v6025_v23 = vld [vmem:[%s9754_s11 + $0x1c0] sm:$0xff] }
 0x810   : > { %7181 = vmatprep.subr.bf16.mxu0 %v7180_v26  ;;  %7309 = vmatprep.subr.bf16.mxu1 %v7308_v28  ;;  %v5977_v26 = vld [vmem:[%s9754_s11 + $0x40] sm:$0xff]  ;;  %v5978_v28 = vld [vmem:[%s9754_s11 + $0x48] sm:$0xff]  ;;  %v7328_v30 = vpack.c.bf16 %v5994_v36, %v5993_v13  ;;  %v7360_v12 = vpack.c.bf16 %v6026_v1, %v6025_v23 }
 0x811   : > { %v7330_v35 = vpack.c.bf16 %v5978_v28, %v5977_v26 }
 0x813   : > { %7183 = vmatpush1.bf16.msra.mxu0 %v7182_v32  ;;  %7311 = vmatpush1.bf16.msra.mxu1 %v7310_v49  ;;  %v6027_v32 = vld [vmem:[%s9754_s11 + $0x1d0] sm:$0xff]  ;;  %v6028_v49 = vld [vmem:[%s9754_s11 + $0x1d8] sm:$0xff] }
 0x814   : > { %7313 = vmatprep.subr.bf16.mxu0 %v7312_v39  ;;  %7345 = vmatprep.subr.bf16.mxu1 %v7344_v40  ;;  %v5980_v39 = vld [vmem:[%s9754_s11 + $0x58] sm:$0xff]  ;;  %v7332_v40 = vpack.c.bf16 %v5996_v54, %v5995_v20  ;;  %v7364_v43 = vpack.c.bf16 %v6028_v49, %v6027_v32 }
 0x816   : > { %5817 = vmatmul.mubr.f32.vlgmr.msra.gmra.mrb[38].mxu0 %v5401_v55  ;;  %5959 = vmatmul.mubr.f32.vlgmr.msra.gmra.mrb[24].mxu1 %v5401_v55 }
 0x817   : > { %7315 = vmatpush3.bf16.msra.mxu0 %v7314_v48  ;;  %7347 = vmatpush3.bf16.msra.mxu1 %v7346_v51  ;;  %v6030_v48 = vld [vmem:[%s9754_s11 + $0x1e8] sm:$0xff]  ;;  %v7334_v51 = vpack.c.bf16 %v5980_v39, %v5979_v38 }
 0x818   : > { %7317 = vmatprep.subr.bf16.mxu0 %v7316_v56  ;;  %7349 = vmatprep.subr.bf16.mxu1 %v7348_v58  ;;  %v7368_v55 = vpack.c.bf16 %v6030_v48, %v6029_v46  ;;  %v5981_v56 = vld [vmem:[%s9754_s11 + $0x60] sm:$0xff]  ;;  %v5982_v58 = vld [vmem:[%s9754_s11 + $0x68] sm:$0xff] }
 0x819   : > { %v7338_v60 = vpack.c.bf16 %v5982_v58, %v5981_v56 }
 0x81b   : > { %7319 = vmatpush3.bf16.msra.mxu0 %v7318_v9  ;;  %7351 = vmatpush3.bf16.msra.mxu1 %v7350_v4  ;;  %v7340_v9 = vpack.c.bf16 %v6000_v63, %v5999_v62  ;;  %v6031_v4 = vld [vmem:[%s9754_s11 + $0x1f0] sm:$0xff] }
 0x81c   : > { %7321 = vmatprep.subr.bf16.mxu0 %v7320_v3  ;;  %7353 = vmatprep.subr.bf16.mxu1 %v7352_v52  ;;  %v7372_v3 = vpack.c.bf16 %v6032_v8, %v6031_v4  ;;  %v5984_v52 = vld [vmem:[%s9754_s11 + $0x78] sm:$0xff] }
 0x81d   : > { %v7342_v7 = vpack.c.bf16 %v5984_v52, %v5983_v5 }
 0x81f   : > { %7323 = vmatpush3.bf16.msra.mxu0 %v7322_v15  ;;  %7355 = vmatpush3.bf16.msra.mxu1 %v7354_v16  ;;  %v5672_v15 = vrot.slane %v5659_v11, %v9474_v27  ;;  %v5668_v16 = vrot.slane %v5659_v11, %v9457_v33  ;;  %v6033_v27 = vld [vmem:[%s9755_s12] sm:$0x1] }
 0x820   : > { %7325 = vmatprep.subr.bf16.mxu0 %v7324_v19  ;;  %7357 = vmatprep.subr.bf16.mxu1 %v7356_v41 }
 0x823   : > { %7327 = vmatpush3.bf16.msra.mxu0 %v7326_v50  ;;  %7359 = vmatpush3.bf16.msra.mxu1 %v7358_v25 }
 0x824   : > { %7329 = vmatprep.subr.bf16.mxu0 %v7328_v30  ;;  %7361 = vmatprep.subr.bf16.mxu1 %v7360_v12 }
 0x827   : > { %7331 = vmatpush3.bf16.msra.mxu0 %v7330_v35  ;;  %7363 = vmatpush3.bf16.msra.mxu1 %v7362_v29 }
 0x828   : > { %7333 = vmatprep.subr.bf16.mxu0 %v7332_v40  ;;  %7365 = vmatprep.subr.bf16.mxu1 %v7364_v43 }
 0x82b   : > { %7335 = vmatpush3.bf16.msra.mxu0 %v7334_v51  ;;  %7367 = vmatpush3.bf16.msra.mxu1 %v7366_v47 }
 0x82c   : > { %7337 = vmatprep.subr.bf16.mxu0 %v7336_v53  ;;  %7369 = vmatprep.subr.bf16.mxu1 %v7368_v55 }
 0x82f   : > { %7339 = vmatpush3.bf16.msra.mxu0 %v7338_v60  ;;  %7371 = vmatpush3.bf16.msra.mxu1 %v7370_v2 }
 0x830   : > { %7341 = vmatprep.subr.bf16.mxu0 %v7340_v9  ;;  %7373 = vmatprep.subr.bf16.mxu1 %v7372_v3 }
 0x833   : > { %7343 = vmatpush3.bf16.msra.mxu0 %v7342_v7  ;;  %7375 = vmatpush3.bf16.msra.mxu1 %v7374_v10 }
 0x8e9   : > { %v5818_v18 = vpop.f32.mrb[38].mxu0  ;;  %v5960_v19 = vpop.f32.mrb[24].mxu1 }
 0x8ea   : > { %v7380_v41 = vadd.f32 %v5818_v18, %v5664_v24  ;;  %v7382_v21 = vadd.f32 %v5960_v19, %v5672_v15  ;;  %v5820_v22 = vpop.f32.mrb[39].mxu0  ;;  %v5962_v13 = vpop.f32.mrb[25].mxu1 }
 0x8eb   : > { %v7381_v36 = vadd.f32 %v5820_v22, %v5668_v16  ;;  %v7383_v23 = vadd.f32 %v5962_v13, %v5676_v17 }
 0x8ec   : > { %v5965_v25 = vmax.f32 %v7380_v41, 0.0  ;;  %v5967_v34 = vmax.f32 %v7382_v21, 0.0 }
 0x8ed   : > { %v5966_v1 = vmax.f32 %v7381_v36, 0.0  ;;  %v5968_v50 = vmax.f32 %v7383_v23, 0.0 }
 0x8ef   : > { %6098 = vmatprep.mubr.f32.mxu0 %v5966_v1  ;;  %6168 = vmatprep.mubr.f32.mxu1 %v5968_v50 }
 0x8f0   : > { %6099 = vmatmul.mubr.f32.vlgmr.msra.gmra.mrb[40].mxu0 %v5965_v25  ;;  %6169 = vmatmul.mubr.f32.vlgmr.msra.gmra.mrb[26].mxu1 %v5967_v34 }
 0x9c3   : > { %v6570_v33 = vpop.f32.mrb[40].mxu0  ;;  %v6605_v42 = vpop.f32.mrb[26].mxu1 }
 0x9c4   : > { %v6571_v26 = vpop.f32.mrb[41].mxu0  ;;  %v6606_v28 = vpop.f32.mrb[27].mxu1 }
 0x9c5   : > { %v6572_v30 = vadd.f32 %v6571_v26, %v6570_v33  ;;  %v6607_v12 = vadd.f32 %v6606_v28, %v6605_v42 }
 0x9c7   : > { %v6101_v31 = vadd.f32 %v6572_v30, %v6033_v27 }
 0x9c9   : > { %v6171_v57 = vadd.f32 %v6607_v12, %v6101_v31 }
 0x9cb   : > { %6175 = vst.msk [vmem:[%s462_s20] sm:$0x1] %vm6174_vm11, %v6171_v57 }
 0x9cc   : > { %7559 = shalt.err (!%p7556_p11)
}
 0x9cd   : > { %s7560_s25 = scalar_lea.hbm %s9701_s13, 16  ;;  %s7564_s24 = scalar_lea.hbm %s9961_s21, 32 }
 0x9ce   : > { %p7561_p13 = scmp.ne.s32.totalorder %s9701_s13, %s7560_s25  ;;  %p7565_p6 = scmp.lt.u32.totalorder %s9701_s13, %s9961_s21 }
 0x9cf   : > { %p7566_p9 = scmp.lt.u32.totalorder %s7564_s24, %s7560_s25  ;;  %p7568_p12 = scmp.lt.u32.totalorder %s7560_s25, %s9701_s13 }
 0x9d0   : > { %p7562_p5 = pnand %p7561_p13, %p9962_p1 }
 0x9d1   : > { %p7567_p10 = por %p7566_p9, %p7565_p6 }
 0x9d2   : > { %p7563_p0 = pneg %p7562_p5 }
 0x9d3   : > { %p7569_p2 = por %p7568_p12, %p7567_p10 }
 0x9d5   : > { %p7570_p3 = pnand %p7569_p2, %p7563_p0 }
 0x9d7   : > { %7573 = shalt.err (!%p7570_p3)
}
 0x9d8   : > { %7400 = dma.vmem_to_hbm [thread:$0]  (%p9962_p1), %s9703_s23, 16, %s9701_s13, %s6177_s15  }
 0x9d9 PF: > { %s9963_s30 = sld [smem:[#allocation19_spill]]  ;;  %s9964_s22 = sld [smem:[#allocation17_spill]] }
 0x9da   : > { %s9965_s14 = sld [smem:[#allocation22_spill]] }
 0x9df   : > { %p7417_p4 = scmp.ge.s32.totalorder %s9963_s30, 2  ;;  %s6201_s29 = sand.u32 1, %s9964_s22  }
 0x9e0   : > { %p9966_p7 = scmp.ne.s32.totalorder %s9965_s14, 0  ;;  %s6202_s19 = scalar_lea.sflag [#allocation10], %s6201_s29 }
 0x9e2   : > { %p7410_p8 = pnand %p7417_p4, %p9966_p7 }
 0x9e4   : > { %7599 = dma.done.wait (!%p7410_p8), %s6202_s19, 16  }
 0x9e5   : > { %7601 = vsyncadd (!%p7410_p8), %s6202_s19, 4294967280  ;;  %s9967_s28 = sld [smem:[#allocation20_spill]]  ;;  %s9968_s16 = sld [smem:[#allocation18_spill]] }
 0x9e6   : > { %s9969_s27 = sld [smem:[#allocation21_spill]]  ;;  %s9970_s25 = smov %s7608_s26 }
 0x9eb   : > { %p25_p11 = scmp.ge.s32.totalorder %s9967_s28, 4   ;;  %s9971_s26 = smov %s9968_s16 }
 0x9ed   :  { %27 = sbr.rel (!%p25_p11) target bundleno = 7 (0x7), region = 122 }
 0x9f4   :  { %6206 = vsyncpa [#allocation9], 1 }
 0x9f5   :  { %6208 = vsyncpa [#allocation9 + $0x1], 1 }
 0x9f6   :  { %6209 = vsyncpa [#allocation12], 1 }
 0x9f7   :  { %6210 = vsyncpa [#allocation10], 1 }
 0x9f8   :  { %6212 = vsyncpa [#allocation10 + $0x1], 1 }

</bundles_post_ra>
